<compile_context>
chip_gen: v6e
topology: v6e:2x2x1
jax: 0.10.0
libtpu: 0.0.40
codegen_flags: <defaults>
</compile_context>

<pallas_src>
import jax
import jax.numpy as jnp
from jax.experimental import pallas as pl
from jax.experimental.pallas import tpu as pltpu


def _iwt_kernel(x1_ref, x2_ref, x3_ref, x4_ref, o_ref):
    # x*_ref: (1, TC, H, W) sub-band blocks; o_ref: (1, TC, H, 4W)
    x1 = x1_ref[0].astype(jnp.float32)   # (TC, H, W)
    x2 = x2_ref[0].astype(jnp.float32)
    x3 = x3_ref[0].astype(jnp.float32)
    x4 = x4_ref[0].astype(jnp.float32)

    # Haar butterfly, 0.5 scale applied once to the partial sums/differences.
    s12 = (x1 + x2) * 0.5
    d12 = (x1 - x2) * 0.5
    s34 = (x3 + x4) * 0.5
    d34 = (x3 - x4) * 0.5

    a = d12 - d34   # -> h[0::2, 0::2]
    b = d12 + d34   # -> h[1::2, 0::2]
    c = s12 - s34   # -> h[0::2, 1::2]
    d = s12 + s34   # -> h[1::2, 1::2]

    TC, H, W = a.shape
    # Width (lane) interleave: even output rows are [a c a c ...],
    # odd output rows are [b d b d ...].
    even = jnp.stack([a, c], axis=-1).reshape(TC, H, 2 * W)
    odd = jnp.stack([b, d], axis=-1).reshape(TC, H, 2 * W)
    # Super-row i = [output row 2i | output row 2i+1]  -> lane-dense (H, 4W).
    o_ref[0] = jnp.concatenate([even, odd], axis=-1)


def _pick_tc(C, H, W, in_itemsize):
    """Largest divisor of C whose working set fits a conservative VMEM budget."""
    budget = 8 * 1024 * 1024  # fits default scoped VMEM on v5e/v6e/v7x
    # 4 input blocks + 1 (4x-wide) f32 output block, double buffered,
    # plus ~24 f32 planes of in-kernel temporaries.
    per_tc = H * W * (2 * (4 * in_itemsize + 16) + 96)
    tc = int(max(1, min(C, budget // max(per_tc, 1))))
    while C % tc:
        tc -= 1
    return tc


def iwt(x):
    """Inverse 2-D Haar wavelet transform. x: (B, 4*C, H, W) -> (B, C, 2H, 2W)."""
    B, C4, H, W = x.shape
    assert C4 % 4 == 0, "channel count must be divisible by 4"
    C = C4 // 4

    TC = _pick_tc(C, H, W, jnp.dtype(x.dtype).itemsize)
    nblk = C // TC

    def band_spec(k):
        # Sub-band k occupies channels [k*C, (k+1)*C); slice it directly out
        # of the original NCHW layout (no wrapper transpose / extra HBM pass).
        return pl.BlockSpec((1, TC, H, W),
                            lambda b, ci, k=k: (b, k * nblk + ci, 0, 0))

    out = pl.pallas_call(
        _iwt_kernel,
        out_shape=jax.ShapeDtypeStruct((B, C, H, 4 * W), jnp.float32),
        grid_spec=pltpu.PrefetchScalarGridSpec(
            num_scalar_prefetch=0,
            grid=(B, nblk),
            in_specs=[band_spec(k) for k in range(4)],
            out_specs=pl.BlockSpec((1, TC, H, 4 * W),
                                   lambda b, ci: (b, ci, 0, 0)),
        ),
        compiler_params=pltpu.CompilerParams(
            dimension_semantics=("parallel", "parallel")),
    )(x, x, x, x)

    # (B, C, H, 4W) -> (B, C, 2H, 2W): free contiguous reshape (same flat order).
    return out.reshape(B, C, 2 * H, 2 * W)


def iwt_ref(x):
    """Pure-JAX reference, literal transcription of iwt_init."""
    B, C4, H, W = x.shape
    C = C4 // 4
    xf = x.astype(jnp.float32)
    x1 = xf[:, 0:C] / 2
    x2 = xf[:, C:2 * C] / 2
    x3 = xf[:, 2 * C:3 * C] / 2
    x4 = xf[:, 3 * C:4 * C] / 2
    h = jnp.zeros((B, C, 2 * H, 2 * W), jnp.float32)
    h = h.at[:, :, 0::2, 0::2].set(x1 - x2 - x3 + x4)
    h = h.at[:, :, 1::2, 0::2].set(x1 - x2 + x3 - x4)
    h = h.at[:, :, 0::2, 1::2].set(x1 + x2 - x3 - x4)
    h = h.at[:, :, 1::2, 1::2].set(x1 + x2 + x3 + x4)
    return h


if __name__ == "__main__":
    key = jax.random.PRNGKey(0)
    B, C, H, W = 2, 4, 16, 16            # input has 4*C = 16 channels
    x = jax.random.normal(key, (B, 4 * C, H, W), dtype=jnp.float32)

    out = iwt(x)
    out = jax.block_until_ready(out)

    ref = iwt_ref(x)
    assert out.shape == (B, C, 2 * H, 2 * W)
    assert out.dtype == jnp.float32
    assert jnp.allclose(out, ref, atol=1e-5, rtol=1e-5)

    print("KERNEL_OK")
</pallas_src>

<mosaic_0001>
module attributes {stable_mosaic.version = 11 : i64} {
  func.func @_iwt_kernel(%arg0: i32, %arg1: i32, %arg2: memref<1x4x16x16xf32, #tpu.memory_space<vmem>>, %arg3: memref<1x4x16x16xf32, #tpu.memory_space<vmem>>, %arg4: memref<1x4x16x16xf32, #tpu.memory_space<vmem>>, %arg5: memref<1x4x16x16xf32, #tpu.memory_space<vmem>>, %arg6: memref<1x4x16x64xf32, #tpu.memory_space<vmem>>) attributes {dimension_semantics = [#tpu.dimension_semantics<parallel>, #tpu.dimension_semantics<parallel>], iteration_bounds = array<i64: 2, 1>, scalar_prefetch = 0 : i64, scratch_operands = 0 : i64, tpu.core_type = #tpu.core_type<tc>, window_params = [{transform_indices = @transform_0, window_bounds = array<i64: 1, 4, 16, 16>}, {transform_indices = @transform_1, window_bounds = array<i64: 1, 4, 16, 16>}, {transform_indices = @transform_2, window_bounds = array<i64: 1, 4, 16, 16>}, {transform_indices = @transform_3, window_bounds = array<i64: 1, 4, 16, 16>}, {transform_indices = @transform_4, window_bounds = array<i64: 1, 4, 16, 64>}]} {
    %c0 = arith.constant 0 : index
    %c0_0 = arith.constant 0 : index
    %c0_1 = arith.constant 0 : index
    %c0_2 = arith.constant 0 : index
    %0 = vector.load %arg2[%c0, %c0_0, %c0_1, %c0_2] : memref<1x4x16x16xf32, #tpu.memory_space<vmem>>, vector<1x4x16x16xf32>
    %1 = vector.shape_cast %0 : vector<1x4x16x16xf32> to vector<4x16x16xf32>
    %c0_3 = arith.constant 0 : index
    %c0_4 = arith.constant 0 : index
    %c0_5 = arith.constant 0 : index
    %c0_6 = arith.constant 0 : index
    %2 = vector.load %arg3[%c0_3, %c0_4, %c0_5, %c0_6] : memref<1x4x16x16xf32, #tpu.memory_space<vmem>>, vector<1x4x16x16xf32>
    %3 = vector.shape_cast %2 : vector<1x4x16x16xf32> to vector<4x16x16xf32>
    %c0_7 = arith.constant 0 : index
    %c0_8 = arith.constant 0 : index
    %c0_9 = arith.constant 0 : index
    %c0_10 = arith.constant 0 : index
    %4 = vector.load %arg4[%c0_7, %c0_8, %c0_9, %c0_10] : memref<1x4x16x16xf32, #tpu.memory_space<vmem>>, vector<1x4x16x16xf32>
    %5 = vector.shape_cast %4 : vector<1x4x16x16xf32> to vector<4x16x16xf32>
    %c0_11 = arith.constant 0 : index
    %c0_12 = arith.constant 0 : index
    %c0_13 = arith.constant 0 : index
    %c0_14 = arith.constant 0 : index
    %6 = vector.load %arg5[%c0_11, %c0_12, %c0_13, %c0_14] : memref<1x4x16x16xf32, #tpu.memory_space<vmem>>, vector<1x4x16x16xf32>
    %7 = vector.shape_cast %6 : vector<1x4x16x16xf32> to vector<4x16x16xf32>
    %8 = arith.addf %1, %3 : vector<4x16x16xf32>
    %cst = arith.constant 5.000000e-01 : f32
    %9 = vector.broadcast %cst : f32 to vector<4x16x16xf32>
    %10 = arith.mulf %8, %9 : vector<4x16x16xf32>
    %11 = arith.subf %1, %3 : vector<4x16x16xf32>
    %cst_15 = arith.constant 5.000000e-01 : f32
    %12 = vector.broadcast %cst_15 : f32 to vector<4x16x16xf32>
    %13 = arith.mulf %11, %12 : vector<4x16x16xf32>
    %14 = arith.addf %5, %7 : vector<4x16x16xf32>
    %cst_16 = arith.constant 5.000000e-01 : f32
    %15 = vector.broadcast %cst_16 : f32 to vector<4x16x16xf32>
    %16 = arith.mulf %14, %15 : vector<4x16x16xf32>
    %17 = arith.subf %5, %7 : vector<4x16x16xf32>
    %cst_17 = arith.constant 5.000000e-01 : f32
    %18 = vector.broadcast %cst_17 : f32 to vector<4x16x16xf32>
    %19 = arith.mulf %17, %18 : vector<4x16x16xf32>
    %20 = arith.subf %13, %19 : vector<4x16x16xf32>
    %21 = arith.addf %13, %19 : vector<4x16x16xf32>
    %22 = arith.subf %10, %16 : vector<4x16x16xf32>
    %23 = arith.addf %10, %16 : vector<4x16x16xf32>
    %24 = vector.shape_cast %20 : vector<4x16x16xf32> to vector<4x16x16x1xf32>
    %25 = vector.shape_cast %22 : vector<4x16x16xf32> to vector<4x16x16x1xf32>
    %26 = tpu.concatenate %24, %25 in 3 : vector<4x16x16x1xf32>, vector<4x16x16x1xf32> -> vector<4x16x16x2xf32>
    %27 = vector.shape_cast %26 : vector<4x16x16x2xf32> to vector<4x16x32xf32>
    %28 = vector.shape_cast %21 : vector<4x16x16xf32> to vector<4x16x16x1xf32>
    %29 = vector.shape_cast %23 : vector<4x16x16xf32> to vector<4x16x16x1xf32>
    %30 = tpu.concatenate %28, %29 in 3 : vector<4x16x16x1xf32>, vector<4x16x16x1xf32> -> vector<4x16x16x2xf32>
    %31 = vector.shape_cast %30 : vector<4x16x16x2xf32> to vector<4x16x32xf32>
    %32 = tpu.concatenate %27, %31 in 2 : vector<4x16x32xf32>, vector<4x16x32xf32> -> vector<4x16x64xf32>
    %c0_18 = arith.constant 0 : index
    %c0_19 = arith.constant 0 : index
    %c0_20 = arith.constant 0 : index
    %c0_21 = arith.constant 0 : index
    %33 = vector.load %arg6[%c0_18, %c0_19, %c0_20, %c0_21] : memref<1x4x16x64xf32, #tpu.memory_space<vmem>>, vector<1x4x16x64xf32>
    %34 = vector.shape_cast %33 : vector<1x4x16x64xf32> to vector<4x16x64xf32>
    %35 = vector.shape_cast %32 : vector<4x16x64xf32> to vector<1x4x16x64xf32>
    tpu.vector_store %arg6[%c0_18, %c0_19, %c0_20, %c0_21], %35 {strides = array<i32>} : memref<1x4x16x64xf32, #tpu.memory_space<vmem>>, vector<1x4x16x64xf32>,
    return
  }
  func.func @transform_0(%arg0: i32, %arg1: i32) -> (i32, i32, i32, i32) {
    %c0_i32 = arith.constant 0 : i32
    %0 = arith.addi %c0_i32, %arg1 : i32
    %c0_i32_0 = arith.constant 0 : i32
    %c0_i32_1 = arith.constant 0 : i32
    %c0_i32_2 = arith.constant 0 : i32
    return %arg0, %0, %c0_i32_0, %c0_i32_1 : i32, i32, i32, i32
  }
  func.func @transform_1(%arg0: i32, %arg1: i32) -> (i32, i32, i32, i32) {
    %c1_i32 = arith.constant 1 : i32
    %0 = arith.addi %c1_i32, %arg1 : i32
    %c0_i32 = arith.constant 0 : i32
    %c0_i32_0 = arith.constant 0 : i32
    %c0_i32_1 = arith.constant 0 : i32
    return %arg0, %0, %c0_i32, %c0_i32_0 : i32, i32, i32, i32
  }
  func.func @transform_2(%arg0: i32, %arg1: i32) -> (i32, i32, i32, i32) {
    %c2_i32 = arith.constant 2 : i32
    %0 = arith.addi %c2_i32, %arg1 : i32
    %c0_i32 = arith.constant 0 : i32
    %c0_i32_0 = arith.constant 0 : i32
    %c0_i32_1 = arith.constant 0 : i32
    return %arg0, %0, %c0_i32, %c0_i32_0 : i32, i32, i32, i32
  }
  func.func @transform_3(%arg0: i32, %arg1: i32) -> (i32, i32, i32, i32) {
    %c3_i32 = arith.constant 3 : i32
    %0 = arith.addi %c3_i32, %arg1 : i32
    %c0_i32 = arith.constant 0 : i32
    %c0_i32_0 = arith.constant 0 : i32
    %c0_i32_1 = arith.constant 0 : i32
    return %arg0, %0, %c0_i32, %c0_i32_0 : i32, i32, i32, i32
  }
  func.func @transform_4(%arg0: i32, %arg1: i32) -> (i32, i32, i32, i32) {
    %c0_i32 = arith.constant 0 : i32
    %c0_i32_0 = arith.constant 0 : i32
    %c0_i32_1 = arith.constant 0 : i32
    return %arg0, %arg1, %c0_i32, %c0_i32_0 : i32, i32, i32, i32
  }
}

</mosaic_0001>

<bundles_post_ra>
// kernel: tpu_custom_call.1
= control target key start
LH: loop header
LB: loop body
LE: loop exit
PB: predicated region body
PF: predicated region fallthrough
CT: control target
= control target key end

     0   :  { %s15720_s0 = inlined_call_operand.hbm [shape: f32[2,16,16,16], index: 0, kind: input, shape index: {}]   ;;  %s15721_s1 = inlined_call_operand.hbm [shape: f32[2,16,16,16], index: 1, kind: input, shape index: {}]   ;;  %s15722_s2 = inlined_call_operand.hbm [shape: f32[2,16,16,16], index: 2, kind: input, shape index: {}]   ;;  %s15723_s3 = inlined_call_operand.hbm [shape: f32[2,16,16,16], index: 3, kind: input, shape index: {}]   ;;  %s15724_s4 = inlined_call_operand.hbm [shape: f32[2,4,16,64], index: 4, kind: output, shape index: {}]  }
   0x1   :  { %16083 = sst [smem:[#allocation277_spill]] %s15720_s0 }
   0x2   :  { %16084 = sst [smem:[#allocation278_spill]] %s15721_s1 }
   0x3   :  { %9 = vsyncpa [#allocation3], 0 }
   0x4   :  { %11 = vsyncpa [#allocation3 + $0x1], 0 }
   0x5   :  { %12 = vsyncpa [#allocation6], 0 }
   0x6   :  { %14 = vsyncpa [#allocation6 + $0x1], 0 }
   0x7   :  { %15 = vsyncpa [#allocation9], 0 }
   0x8   :  { %17 = vsyncpa [#allocation9 + $0x1], 0 }
   0x9   :  { %18 = vsyncpa [#allocation4], 0 }
   0xa   :  { %20 = vsyncpa [#allocation4 + $0x1], 0  ;;  %s9774_s15 = smov 0   ;;  %s9776_s16 = smov 0  }
   0xb   :  { %s9778_s17 = smov 0   ;;  %s9780_s18 = smov 0  }
   0xc   :  { %s9782_s19 = smov 0   ;;  %s9784_s20 = smov 0  }
   0xd LB: > { %16085 = sst [smem:[#allocation15_spill]] %s9709_s17  ;;  %s9805_s21 = sadd.s32 4294967295, %s9721_s20   ;;  %s9721_s20 = sphi %s9784_s20, %s26_s20   ;;  %s9717_s19 = sphi %s9782_s19, %s17437_s19   ;;  %s9713_s18 = sphi %s9780_s18, %s17436_s18   ;;  %s9709_s17 = sphi %s9778_s17, %s17435_s17   ;;  %s9705_s16 = sphi %s9776_s16, %s17439_s16   ;;  %s9701_s15 = sphi %s9774_s15, %s17438_s15  }
   0xe   : > { %16086 = sst [smem:[#allocation16_spill]] %s9717_s19  ;;  %s9385_s22 = sadd.s32 4294967294, %s9721_s20  }
   0xf   : > { %16087 = sst [smem:[#allocation17_spill]] %s9721_s20  ;;  %s38_s23 = sadd.s32 1, %s9717_s19 }
  0x10   : > { %s47_s24 = sadd.s32 1, %s9709_s17  ;;  %p40_p0 = scmp.ge.s32.totalorder %s38_s23, 2 }
  0x11   : > { %p54_p1 = scmp.ne.s32.totalorder %s9709_s17, %s9705_s16  ;;  %p55_p2 = scmp.eq.s32.totalorder %s9721_s20, 0 }
  0x12   : > { %p60_p3 = scmp.ne.s32.totalorder %s9705_s16, %s9701_s15  ;;  %s17441_s23 = smov (%p40_p0, %s38_s23), 0 }
  0x13   : > { %16088 = sst [smem:[#allocation18_spill]] %s17441_s23  ;;  %p9817_p4 = por %p55_p2, %p54_p1 }
  0x14   : > { %p61_p5 = scmp.eq.s32.totalorder %s9805_s21, 0  ;;  %s42_s26 = ssub.s32 %s9717_s19, %s17441_s23 }
  0x15   : > { %p176_p6 = scmp.eq.s32.totalorder %s9805_s21, 1  ;;  %p45_p7 = scmp.eq.s32.totalorder %s42_s26, 0 }
  0x16   : > { %p9825_p8 = por %p61_p5, %p60_p3  ;;  %p182_p10 = scmp.eq.s32.totalorder %s9385_s22, 1 }
  0x17   : > { %p9829_p9 = por %p176_p6, %p54_p1  ;;  %p9387_p12 = scmp.ge.s32.totalorder %s9721_s20, 2 }
  0x18   : > { %s9834_s29 = scalar_select %p45_p7, %s9709_s17, %s47_s24  }
  0x19   : > { %p9836_p11 = por %p182_p10, %p60_p3  ;;  %p9443_p13 = scmp.lt.s32.totalorder %s9721_s20, 2 }
  0x1a   : > { %16092 = sst [smem:[#allocation19_spill]] %s9834_s29  ;;  %s9843_s5 = sand.u32 1, %s9709_s17  }
  0x1b   : > { %s9846_s6 = sshll.u32 %s9843_s5, 6  ;;  %s9849_s7 = sshll.u32 %s9717_s19, 12 }
  0x1c   : > { %p9853_p0 = pnand %p9443_p13, %p9817_p4  ;;  %s226_s9 = sand.u32 1, %s9721_s20  }
  0x1d   : > { %s16095_s1 = sld [smem:[#allocation278_spill]]  ;;  %s230_s14 = scalar_lea.vmem [#allocation5], %s9846_s6 }
  0x1e   : > { %s241_s22 = sshll.u32 %s230_s14, 4  ;;  %p9400_p1 = scmp.ge.s32.totalorder %s9721_s20, 1  ;;  %s242_s22 = int_to_ptr.vmem [resolvable:$true] %s241_s22 }
  0x1f   : > { %s9864_s24 = scalar_lea.sflag [#allocation6], %s226_s9  ;;  %p9520_p2 = pneg %p9853_p0 }
  0x20   : > { %s9531_s25 = scalar_lea.vmem %s242_s22, 1024  ;;  %s9723_s26 = smov [#allocation5]  }
  0x21   : > { %p9532_p3 = scmp.ne.s32.totalorder %s242_s22, %s9531_s25  ;;  %s9536_s23 = sshll.u32 %s9723_s26, 4  ;;  %s9537_s23 = int_to_ptr.vmem [resolvable:$false] %s9536_s23 }
  0x22   : > { %s9538_s10 = scalar_lea.vmem %s9537_s23, 2048  ;;  %p9539_p6 = scmp.lt.s32.totalorder %s242_s22, %s9537_s23 }
  0x23   : > { %s9267_s12 = scalar_lea.hbm %s16095_s1, %s9849_s7  ;;  %p9534_p4 = pnand %p9532_p3, %p9520_p2 }
  0x24   : > { %s9268_s13 = scalar_lea.hbm %s9267_s12, 1024  ;;  %p9540_p7 = scmp.lt.s32.totalorder %s9538_s10, %s9531_s25 }
  0x25   : > { %p9535_p5 = pneg %p9534_p4 }
  0x26   : > { %p9541_p10 = por %p9540_p7, %p9539_p6 }
  0x28   : > { %p9542_p13 = pnand %p9541_p10, %p9535_p5 }
  0x2a   : > { %9545 = shalt.err (!%p9542_p13)
}
  0x2b   : > { %s15727_s11 = smov 128   ;;  %s9725_s9 = smov 8  }
  0x2c   : > { %9432 = dma.hbm_to_vmem [thread:$0]  (!%p9853_p0), %s9268_s13, 1024, %s242_s22, %s9864_s24, %s15727_s11, %s15727_s11, %s9725_s9  }
  0x2d   : > { %p299_p3 = scmp.lt.s32.totalorder %s9721_s20, 3  ;;  %s16097_s0 = sld [smem:[#allocation277_spill]] }
  0x2e   : > { %s206_s26 = scalar_lea.vmem [#allocation2], %s9846_s6  ;;  %s203_s1 = scalar_lea.sflag [#allocation3], %s9843_s5 }
  0x2f   : > { %p9880_p4 = pnand %p9400_p1, %p299_p3  ;;  %s216_s10 = sshll.u32 %s206_s26, 4  ;;  %s217_s10 = int_to_ptr.vmem [resolvable:$true] %s216_s10 }
  0x30   : > { %s9560_s19 = scalar_lea.vmem %s217_s10, 1024  ;;  %s9726_s13 = smov [#allocation2]  }
  0x31   : > { %p9561_p5 = scmp.ne.s32.totalorder %s217_s10, %s9560_s19  ;;  %s9565_s22 = sshll.u32 %s9726_s13, 4  ;;  %s9566_s22 = int_to_ptr.vmem [resolvable:$false] %s9565_s22 }
  0x32   : > { %s9567_s11 = scalar_lea.vmem %s9566_s22, 2048  ;;  %p9568_p1 = scmp.lt.s32.totalorder %s217_s10, %s9566_s22 }
  0x33   : > { %s215_s25 = scalar_lea.hbm %s16097_s0, %s9849_s7  ;;  %p9563_p6 = pnand %p9561_p5, %p9520_p2 }
  0x34   : > { %p9569_p10 = scmp.lt.s32.totalorder %s9567_s11, %s9560_s19 }
  0x35   : > { %p9564_p7 = pneg %p9563_p6 }
  0x36   : > { %p9570_p13 = por %p9569_p10, %p9568_p1 }
  0x38   : > { %p9571_p3 = pnand %p9570_p13, %p9564_p7 }
  0x3a   : > { %9574 = shalt.err (!%p9571_p3)
}
  0x3b   : > { %s16098_s12 = smov 128   ;;  %s9276_s13 = scalar_lea.hbm %s15722_s2, %s9849_s7 }
  0x3c   : > { %9429 = dma.hbm_to_vmem [thread:$0]  (!%p9853_p0), %s215_s25, 1024, %s217_s10, %s203_s1, %s16098_s12, %s16098_s12, %s9725_s9  }
  0x3d   : > { %s255_s0 = scalar_lea.vmem [#allocation7], %s9846_s6  ;;  %s9277_s22 = scalar_lea.hbm %s9276_s13, 2048 }
  0x3e   : > { %s266_s29 = sshll.u32 %s255_s0, 4  ;;  %s9727_s11 = smov [#allocation7]   ;;  %s267_s29 = int_to_ptr.vmem [resolvable:$true] %s266_s29 }
  0x3f   : > { %s9588_s19 = scalar_lea.vmem %s267_s29, 1024  ;;  %s9593_s17 = sshll.u32 %s9727_s11, 4  ;;  %s9594_s17 = int_to_ptr.vmem [resolvable:$false] %s9593_s17 }
  0x40   : > { %p9589_p5 = scmp.ne.s32.totalorder %s267_s29, %s9588_s19  ;;  %s9595_s20 = scalar_lea.vmem %s9594_s17, 2048 }
  0x41   : > { %p9596_p1 = scmp.lt.s32.totalorder %s267_s29, %s9594_s17  ;;  %p9597_p10 = scmp.lt.s32.totalorder %s9595_s20, %s9588_s19 }
  0x42   : > { %p9591_p6 = pnand %p9589_p5, %p9520_p2 }
  0x43   : > { %p9598_p13 = por %p9597_p10, %p9596_p1 }
  0x44   : > { %p9592_p7 = pneg %p9591_p6 }
  0x46   : > { %p9599_p3 = pnand %p9598_p13, %p9592_p7 }
  0x48   : > { %9602 = shalt.err (!%p9599_p3)
}
  0x49   : > { %9435 = dma.hbm_to_vmem [thread:$0]  (!%p9853_p0), %s9277_s22, 1024, %s267_s29, %s9864_s24, %s16098_s12, %s16098_s12, %s9725_s9  }
  0x4a   : > { %s9285_s25 = scalar_lea.hbm %s15723_s3, %s9849_s7  ;;  %s280_s17 = scalar_lea.vmem [#allocation8], %s9846_s6 }
  0x4b   : > { %s291_s20 = sshll.u32 %s280_s17, 4  ;;  %s9286_s10 = scalar_lea.hbm %s9285_s25, 3072  ;;  %s292_s20 = int_to_ptr.vmem [resolvable:$true] %s291_s20 }
  0x4c   : > { %s277_s14 = scalar_lea.sflag [#allocation9], %s9843_s5  ;;  %s9617_s26 = scalar_lea.vmem %s292_s20, 1024 }
  0x4d   : > { %p9618_p5 = scmp.ne.s32.totalorder %s292_s20, %s9617_s26  ;;  %s9728_s13 = smov [#allocation8]  }
  0x4e   : > { %s9622_s19 = sshll.u32 %s9728_s13, 4  ;;  %s9623_s19 = int_to_ptr.vmem [resolvable:$false] %s9622_s19 }
  0x4f   : > { %p9620_p6 = pnand %p9618_p5, %p9520_p2  ;;  %s9624_s11 = scalar_lea.vmem %s9623_s19, 2048 }
  0x50   : > { %p9625_p1 = scmp.lt.s32.totalorder %s292_s20, %s9623_s19  ;;  %p9626_p10 = scmp.lt.s32.totalorder %s9624_s11, %s9617_s26 }
  0x51   : > { %p9621_p7 = pneg %p9620_p6 }
  0x52   : > { %p9627_p13 = por %p9626_p10, %p9625_p1 }
  0x54   : > { %p9628_p3 = pnand %p9627_p13, %p9621_p7 }
  0x56   : > { %9631 = shalt.err (!%p9628_p3)
}
  0x57   : > { %9438 = dma.hbm_to_vmem [thread:$0]  (!%p9853_p0), %s9286_s10, 1024, %s292_s20, %s277_s14, %s16098_s12, %s16098_s12, %s9725_s9  }
  0x58   : > { %303 = sbr.rel (%p9880_p4) target bundleno = 2051 (0x803), region = 36 }
  0x5d   : > { %s9929_s29 = sand.u32 1, %s9705_s16  }
  0x5e   : > { %s9932_s5 = sshll.u32 %s9929_s29, 6  ;;  %s306_s6 = scalar_lea.sflag [#allocation3], %s9929_s29 }
  0x5f   : > { %s9936_s7 = scalar_lea.vmem [#allocation2], %s9932_s5 }
  0x60   : > { %9684 = dma.done.wait (%p9825_p8), %s306_s6, 1024  }
  0x61   : > { %9686 = vsyncadd (%p9825_p8), %s306_s6, 4294966272  ;;  %s314_s8 = sand.u32 1, %s9805_s21   ;;  %s9944_s9 = scalar_lea.vmem [#allocation5], %s9932_s5 }
  0x62   : > { %s315_s24 = scalar_lea.sflag [#allocation6], %s314_s8 }
  0x63   : > { %9688 = dma.done.wait (%p9825_p8), %s315_s24, 2048  }
  0x64   : > { %9690 = vsyncadd (%p9825_p8), %s315_s24, 4294965248  ;;  %s9951_s23 = scalar_lea.vmem [#allocation7], %s9932_s5  ;;  %s333_s12 = scalar_lea.sflag [#allocation9], %s9929_s29 }
  0x65   : > { %s9955_s22 = scalar_lea.vmem [#allocation8], %s9932_s5 }
  0x66   : > { %9692 = dma.done.wait (%p9825_p8), %s333_s12, 1024  }
  0x67   : > { %9694 = vsyncadd (%p9825_p8), %s333_s12, 4294966272  ;;  %v512_v0 = vlaneseq  ;;  %v384_v1 = vld [vmem:[%s9936_s7] sm:$0xff]  ;;  %v385_v8 = vld [vmem:[%s9936_s7 + $0x8] sm:$0xff]  ;;  %vm1920_vm0 = vcmask 7168   ;;  %s9731_s21 = smov 2   ;;  %s9732_s27 = smov 4  }
  0x68   : > { %v392_v2 = vld [vmem:[%s9944_s9] sm:$0xff]  ;;  %v393_v9 = vld [vmem:[%s9944_s9 + $0x8] sm:$0xff]  ;;  %v9982_v17 = vld [vmem:[%s9936_s7 + $0x10] sm:$0xff]  ;;  %s9733_s0 = smov 6   ;;  %s9734_s1 = smov 8   ;;  %vm4705_vm1 = vcmask 15360  }
  0x69   : > { %v400_v3 = vld [vmem:[%s9951_s23] sm:$0xff]  ;;  %v9964_v4 = vshrl.u32 %v512_v0, 7  ;;  %v432_v6 = vsub.f32 %v384_v1, %v392_v2  ;;  %v9967_v7 = vadd.f32 %v392_v2, %v384_v1  ;;  %v401_v12 = vld [vmem:[%s9951_s23 + $0x8] sm:$0xff]  ;;  %v9975_v14 = vadd.f32 %v393_v9, %v385_v8  ;;  %v9985_v18 = vld [vmem:[%s9944_s9 + $0x10] sm:$0xff]  ;;  %s9735_s25 = smov 10   ;;  %s9736_s17 = smov 12  }
  0x6a   : > { %v408_v5 = vld [vmem:[%s9955_s22] sm:$0xff]  ;;  %v409_v13 = vld [vmem:[%s9955_s22 + $0x8] sm:$0xff]  ;;  %v9988_v19 = vld [vmem:[%s9951_s23 + $0x10] sm:$0xff]  ;;  %v10003_v24 = vadd.f32 %v9985_v18, %v9982_v17  ;;  %v433_v50 = vsub.f32 %v385_v8, %v393_v9  ;;  %v434_v8 = vsub.f32 %v9982_v17, %v9985_v18  ;;  %s9737_s20 = smov 14   ;;  %s9738_s10 = smov 16   ;;  %vm16080_vm2 = vcmask 31744  }
  0x6b   : > { %v9971_v10 = vadd.f32 %v408_v5, %v400_v3  ;;  %v464_v11 = vsub.f32 %v400_v3, %v408_v5  ;;  %v9977_v15 = vmul.f32 0.5, %v432_v6  ;;  %v9979_v16 = vadd.f32 %v409_v13, %v401_v12  ;;  %v9999_v23 = vld [vmem:[%s9955_s22 + $0x10] sm:$0xff]  ;;  %v10006_v25 = vld [vmem:[%s9936_s7 + $0x18] sm:$0xff]  ;;  %v10037_v36 = vld [vmem:[%s9936_s7 + $0x20] sm:$0xff]  ;;  %s9739_s14 = smov 18   ;;  %s9740_s26 = smov 20  }
  0x6c   : > { %v9993_v21 = vsub.s32 1, %v9964_v4  ;;  %v9996_v22 = vsub.s32 0, %v9964_v4  ;;  %v10009_v26 = vld [vmem:[%s9944_s9 + $0x18] sm:$0xff]  ;;  %v10013_v27 = vadd.f32 %v9999_v23, %v9988_v19  ;;  %v10034_v35 = vsub.s32 2, %v9964_v4  ;;  %v10040_v37 = vld [vmem:[%s9944_s9 + $0x20] sm:$0xff]  ;;  %v10085_v59 = vld [vmem:[%s9936_s7 + $0x28] sm:$0xff] }
  0x6d   : > { %16099 = vst [vmem:[#allocation20_spill] sm:$0xff] %v9977_v15  ;;  %v9990_v20 = vmul.f32 0.5, %v464_v11  ;;  %v10016_v28 = vld [vmem:[%s9951_s23 + $0x18] sm:$0xff]  ;;  %v10023_v30 = vadd.f32 %v10009_v26, %v10006_v25  ;;  %v10043_v38 = vld [vmem:[%s9951_s23 + $0x20] sm:$0xff]  ;;  %v10050_v40 = vadd.f32 %v10040_v37, %v10037_v36  ;;  %v10058_v43 = vsub.s32 3, %v9964_v4  ;;  %v10088_v60 = vld [vmem:[%s9944_s9 + $0x28] sm:$0xff] }
  0x6e   : > { %16101 = vst [vmem:[#allocation22_spill] sm:$0xff] %v9993_v21  ;;  %16102 = vst [vmem:[#allocation23_spill] sm:$0xff] %v9996_v22  ;;  %v10019_v29 = vld [vmem:[%s9955_s22 + $0x18] sm:$0xff]  ;;  %v10046_v39 = vld [vmem:[%s9955_s22 + $0x20] sm:$0xff]  ;;  %v10062_v45 = vsub.s32 4, %v9964_v4  ;;  %v10066_v47 = vsub.s32 5, %v9964_v4  ;;  %v465_v51 = vsub.f32 %v401_v12, %v409_v13  ;;  %v10098_v63 = vadd.f32 %v10088_v60, %v10085_v59 }
  0x6f   : > { %16100 = vst [vmem:[#allocation21_spill] sm:$0xff] %v9990_v20  ;;  %v480_v31 = vsub.f32 %v9977_v15, %v9990_v20  ;;  %v10029_v32 = vadd.f32 %v10019_v29, %v10016_v28  ;;  %16103 = vst [vmem:[#allocation24_spill] sm:$0xff] %v10034_v35  ;;  %v10054_v41 = vadd.f32 %v10046_v39, %v10043_v38  ;;  %v10070_v49 = vsub.s32 6, %v9964_v4  ;;  %v10091_v61 = vld [vmem:[%s9951_s23 + $0x28] sm:$0xff]  ;;  %s9741_s13 = smov 22   ;;  %s9742_s19 = smov 24  }
  0x70   : > { %16104 = vst [vmem:[#allocation25_spill] sm:$0xff] %v10058_v43  ;;  %16105 = vst [vmem:[#allocation26_spill] sm:$0xff] %v10062_v45  ;;  %v10074_v53 = vsub.s32 7, %v9964_v4  ;;  %v10076_v54 = vmul.f32 0.5, %v433_v50  ;;  %v10078_v55 = vmul.f32 0.5, %v465_v51  ;;  %v10094_v62 = vld [vmem:[%s9955_s22 + $0x28] sm:$0xff]  ;;  %v466_v9 = vsub.f32 %v9988_v19, %v9999_v23 }
  0x71   : > { %v526_v33 = vrot.slane %v480_v31, %v9993_v21  ;;  %v515_v34 = vrot.slane %v480_v31, %v9996_v22  ;;  %v537_v42 = vrot.slane %v480_v31, %v10034_v35  ;;  %v548_v44 = vrot.slane %v480_v31, %v10058_v43  ;;  %16106 = vst [vmem:[#allocation27_spill] sm:$0xff] %v10066_v47  ;;  %v10123_v19 = vld [vmem:[%s9936_s7 + $0x30] sm:$0xff]  ;;  %s9743_s11 = smov 26   ;;  %s9744_s6 = smov 28  }
  0x72   : > { %v559_v46 = vrot.slane %v480_v31, %v10062_v45  ;;  %v570_v48 = vrot.slane %v480_v31, %v10066_v47  ;;  %16107 = vst [vmem:[#allocation28_spill] sm:$0xff] %v10070_v49  ;;  %v581_v52 = vrot.slane %v480_v31, %v10070_v49  ;;  %16108 = vst [vmem:[#allocation29_spill] sm:$0xff] %v10074_v53  ;;  %v10114_v12 = vmul.f32 0.5, %v434_v8  ;;  %v10126_v23 = vld [vmem:[%s9944_s9 + $0x30] sm:$0xff]  ;;  %s9746_s8 = smov 32   ;;  %s15471_s24 = scalar_lea.vmem [#allocation10], %s9932_s5 }
  0x73   : > { %528 = vbcast.lane.b32.xlu1 %v526_v33, 256  ;;  %517 = vbcast.lane.b32.xlu0 %v515_v34, 256  ;;  %16109 = vst [vmem:[#allocation30_spill] sm:$0xff] %v10076_v54  ;;  %16110 = vst [vmem:[#allocation31_spill] sm:$0xff] %v10078_v55  ;;  %v592_v56 = vrot.slane %v480_v31, %v10074_v53  ;;  %v481_v57 = vsub.f32 %v10076_v54, %v10078_v55  ;;  %v10116_v13 = vmul.f32 0.5, %v466_v9  ;;  %vm4723_vm3 = vcmask 48128  }
  0x74   : > { %v10102_v0 = vadd.f32 %v10094_v62, %v10091_v61  ;;  %16111 = vst [vmem:[#allocation32_spill] sm:$0xff] %v10114_v12  ;;  %v436_v9 = vsub.f32 %v10037_v36, %v10040_v37  ;;  %vm4732_vm4 = vcmask 64512   ;;  %vm4741_vm5 = vcmask 80896   ;;  %s9219_s5 = sshll.u32 %s15471_s24, 4  ;;  %s15661_s5 = int_to_ptr.vmem [resolvable:$true] %s9219_s5 }
  0x75   : > { %v603_v58 = vrot.slane %v481_v57, %v9996_v22  ;;  %v614_v1 = vrot.slane %v481_v57, %v9993_v21  ;;  %v625_v2 = vrot.slane %v481_v57, %v10034_v35  ;;  %v636_v3 = vrot.slane %v481_v57, %v10058_v43  ;;  %16112 = vst [vmem:[#allocation33_spill] sm:$0xff] %v10116_v13 }
  0x76   : > { %v647_v5 = vrot.slane %v481_v57, %v10062_v45  ;;  %v658_v6 = vrot.slane %v481_v57, %v10066_v47  ;;  %v669_v11 = vrot.slane %v481_v57, %v10070_v49  ;;  %v680_v31 = vrot.slane %v481_v57, %v10074_v53 }
  0x77   : > { %532 = vbcast.lane.b32.xlu1 %v526_v33, 264  ;;  %521 = vbcast.lane.b32.xlu0 %v515_v34, 264  ;;  %v482_v17 = vsub.f32 %v10114_v12, %v10116_v13  ;;  %v10129_v33 = vld [vmem:[%s9951_s23 + $0x30] sm:$0xff]  ;;  %v467_v57 = vsub.f32 %v10016_v28, %v10019_v29  ;;  %vm4750_vm6 = vcmask 97280   ;;  %vm4759_vm7 = vcmask 113664  }
  0x78   : > { %v10132_v34 = vld [vmem:[%s9955_s22 + $0x30] sm:$0xff]  ;;  %vm4768_vm8 = vcmask 130048   ;;  %vm4777_vm9 = vcmask 146432   ;;  %vm4786_vm10 = vcmask 162816   ;;  %vm4795_vm11 = vcmask 179200  }
  0x79   : > { %v691_v18 = vrot.slane %v482_v17, %v9996_v22  ;;  %v724_v50 = vrot.slane %v482_v17, %v10058_v43  ;;  %v735_v51 = vrot.slane %v482_v17, %v10062_v45  ;;  %vm4804_vm12 = vcmask 195584  }
  0x7a   : > { %vm16081_vm13 = vcmask 211968   ;;  %vm4822_vm14 = vcmask 228352   ;;  %vm4831_vm15 = vcmask 244736  }
  0x7b   : > { %543 = vbcast.lane.b32.xlu1 %v537_v42, 264  ;;  %539 = vbcast.lane.b32.xlu0 %v537_v42, 256  ;;  %v10136_v42 = vadd.f32 %v10126_v23, %v10123_v19 }
  0x7d   : > { %16113 = vst [vmem:[#allocation34_spill] sm:$0xff] %v10136_v42 }
  0x7f   : > { %554 = vbcast.lane.b32.xlu1 %v548_v44, 264  ;;  %550 = vbcast.lane.b32.xlu0 %v548_v44, 256  ;;  %v10140_v44 = vadd.f32 %v10132_v34, %v10129_v33 }
  0x81   : > { %16114 = vst [vmem:[#allocation35_spill] sm:$0xff] %v10140_v44  ;;  %v470_v44 = vsub.f32 %v10129_v33, %v10132_v34 }
  0x83   : > { %565 = vbcast.lane.b32.xlu1 %v559_v46, 264  ;;  %561 = vbcast.lane.b32.xlu0 %v559_v46, 256  ;;  %v702_v46 = vrot.slane %v482_v17, %v9993_v21 }
  0x87   : > { %576 = vbcast.lane.b32.xlu1 %v570_v48, 264  ;;  %572 = vbcast.lane.b32.xlu0 %v570_v48, 256  ;;  %v713_v48 = vrot.slane %v482_v17, %v10034_v35 }
  0x8b   : > { %587 = vbcast.lane.b32.xlu1 %v581_v52, 264  ;;  %583 = vbcast.lane.b32.xlu0 %v581_v52, 256  ;;  %v746_v52 = vrot.slane %v482_v17, %v10066_v47 }
  0x8f   : > { %598 = vbcast.lane.b32.xlu1 %v592_v56, 264  ;;  %594 = vbcast.lane.b32.xlu0 %v592_v56, 256  ;;  %v435_v56 = vsub.f32 %v10006_v25, %v10009_v26 }
  0x93   : > { %609 = vbcast.lane.b32.xlu1 %v603_v58, 264  ;;  %605 = vbcast.lane.b32.xlu0 %v603_v58, 256  ;;  %v757_v58 = vrot.slane %v482_v17, %v10070_v49 }
  0x97   : > { %620 = vbcast.lane.b32.xlu1 %v614_v1, 264  ;;  %616 = vbcast.lane.b32.xlu0 %v614_v1, 256  ;;  %v10152_v1 = vmul.f32 0.5, %v435_v56 }
  0x99   : > { %16115 = vst [vmem:[#allocation36_spill] sm:$0xff] %v10152_v1 }
  0x9b   : > { %631 = vbcast.lane.b32.xlu1 %v625_v2, 264  ;;  %627 = vbcast.lane.b32.xlu0 %v625_v2, 256  ;;  %v10154_v2 = vmul.f32 0.5, %v467_v57 }
  0x9d   : > { %16116 = vst [vmem:[#allocation37_spill] sm:$0xff] %v10154_v2 }
  0x9f   : > { %642 = vbcast.lane.b32.xlu1 %v636_v3, 264  ;;  %638 = vbcast.lane.b32.xlu0 %v636_v3, 256  ;;  %v768_v3 = vrot.slane %v482_v17, %v10074_v53 }
  0xa3   : > { %653 = vbcast.lane.b32.xlu1 %v647_v5, 264  ;;  %649 = vbcast.lane.b32.xlu0 %v647_v5, 256  ;;  %v483_v5 = vsub.f32 %v10152_v1, %v10154_v2 }
  0xa5   : > { %v779_v25 = vrot.slane %v483_v5, %v9996_v22  ;;  %v790_v26 = vrot.slane %v483_v5, %v9993_v21  ;;  %v801_v28 = vrot.slane %v483_v5, %v10034_v35  ;;  %v812_v29 = vrot.slane %v483_v5, %v10058_v43 }
  0xa6   : > { %v834_v8 = vrot.slane %v483_v5, %v10066_v47  ;;  %v856_v36 = vrot.slane %v483_v5, %v10074_v53 }
  0xa7   : > { %664 = vbcast.lane.b32.xlu1 %v658_v6, 264  ;;  %660 = vbcast.lane.b32.xlu0 %v658_v6, 256  ;;  %v823_v6 = vrot.slane %v483_v5, %v10062_v45 }
  0xab   : > { %675 = vbcast.lane.b32.xlu1 %v669_v11, 264  ;;  %671 = vbcast.lane.b32.xlu0 %v669_v11, 256  ;;  %v468_v11 = vsub.f32 %v10043_v38, %v10046_v39 }
  0xaf   : > { %686 = vbcast.lane.b32.xlu1 %v680_v31, 264  ;;  %682 = vbcast.lane.b32.xlu0 %v680_v31, 256 }
  0xb3   : > { %697 = vbcast.lane.b32.xlu1 %v691_v18, 264  ;;  %693 = vbcast.lane.b32.xlu0 %v691_v18, 256  ;;  %v845_v18 = vrot.slane %v483_v5, %v10070_v49 }
  0xb7   : > { %708 = vbcast.lane.b32.xlu1 %v702_v46, 264  ;;  %704 = vbcast.lane.b32.xlu0 %v702_v46, 256  ;;  %v10174_v46 = vmul.f32 0.5, %v436_v9 }
  0xb9   : > { %16117 = vst [vmem:[#allocation38_spill] sm:$0xff] %v10174_v46 }
  0xbb   : > { %719 = vbcast.lane.b32.xlu1 %v713_v48, 264  ;;  %715 = vbcast.lane.b32.xlu0 %v713_v48, 256  ;;  %v10176_v48 = vmul.f32 0.5, %v468_v11 }
  0xbd   : > { %16118 = vst [vmem:[#allocation39_spill] sm:$0xff] %v10176_v48  ;;  %v484_v37 = vsub.f32 %v10174_v46, %v10176_v48 }
  0xbf   : > { %730 = vbcast.lane.b32.xlu1 %v724_v50, 264  ;;  %726 = vbcast.lane.b32.xlu0 %v724_v50, 256  ;;  %v911_v9 = vrot.slane %v484_v37, %v10062_v45 }
  0xc3   : > { %741 = vbcast.lane.b32.xlu1 %v735_v51, 264  ;;  %737 = vbcast.lane.b32.xlu0 %v735_v51, 256 }
  0xc7   : > { %752 = vbcast.lane.b32.xlu1 %v746_v52, 264  ;;  %748 = vbcast.lane.b32.xlu0 %v746_v52, 256  ;;  %v867_v52 = vrot.slane %v484_v37, %v9996_v22 }
  0xcb   : > { %763 = vbcast.lane.b32.xlu1 %v757_v58, 264  ;;  %759 = vbcast.lane.b32.xlu0 %v757_v58, 256  ;;  %v878_v58 = vrot.slane %v484_v37, %v9993_v21 }
  0xcf   : > { %774 = vbcast.lane.b32.xlu1 %v768_v3, 264  ;;  %770 = vbcast.lane.b32.xlu0 %v768_v3, 256 }
  0xd3   : > { %785 = vbcast.lane.b32.xlu1 %v779_v25, 264  ;;  %781 = vbcast.lane.b32.xlu0 %v779_v25, 256  ;;  %v889_v25 = vrot.slane %v484_v37, %v10034_v35 }
  0xd7   : > { %796 = vbcast.lane.b32.xlu1 %v790_v26, 264  ;;  %792 = vbcast.lane.b32.xlu0 %v790_v26, 256 }
  0xdb   : > { %807 = vbcast.lane.b32.xlu1 %v801_v28, 264  ;;  %803 = vbcast.lane.b32.xlu0 %v801_v28, 256 }
  0xdf   : > { %818 = vbcast.lane.b32.xlu1 %v812_v29, 264  ;;  %814 = vbcast.lane.b32.xlu0 %v812_v29, 256  ;;  %v900_v29 = vrot.slane %v484_v37, %v10058_v43 }
  0xe3   : > { %829 = vbcast.lane.b32.xlu1 %v823_v6, 264  ;;  %825 = vbcast.lane.b32.xlu0 %v823_v6, 256 }
  0xe5   : > { %v10169_v31 = vpop.permute.xlu1 %528  ;;  %v10171_v17 = vpop.permute.xlu0 %517 }
  0xe7   : > { %840 = vbcast.lane.b32.xlu1 %v834_v8, 264  ;;  %836 = vbcast.lane.b32.xlu0 %v834_v8, 256 }
  0xe9   : > { %v10178_v50 = vpop.permute.xlu1 %532  ;;  %v10180_v51 = vpop.permute.xlu0 %521 }
  0xeb   : > { %851 = vbcast.lane.b32.xlu1 %v845_v18, 264  ;;  %847 = vbcast.lane.b32.xlu0 %v845_v18, 256 }
  0xed   : > { %v10185_v38 = vpop.permute.xlu1 %543  ;;  %v10187_v39 = vpop.permute.xlu0 %539 }
  0xef   : > { %862 = vbcast.lane.b32.xlu1 %v856_v36, 264  ;;  %858 = vbcast.lane.b32.xlu0 %v856_v36, 256  ;;  %v922_v36 = vrot.slane %v484_v37, %v10066_v47 }
  0xf1   : > { %v10190_v56 = vpop.permute.xlu1 %554  ;;  %v10192_v57 = vpop.permute.xlu0 %550 }
  0xf3   : > { %873 = vbcast.lane.b32.xlu1 %v867_v52, 264  ;;  %869 = vbcast.lane.b32.xlu0 %v867_v52, 256  ;;  %v437_v52 = vsub.f32 %v10085_v59, %v10088_v60  ;;  %v944_v59 = vrot.slane %v484_v37, %v10074_v53 }
  0xf5   : > { %v10195_v3 = vpop.permute.xlu1 %565  ;;  %v10197_v5 = vpop.permute.xlu0 %561  ;;  %v10224_v46 = vmul.f32 0.5, %v437_v52 }
  0xf7   : > { %884 = vbcast.lane.b32.xlu1 %v878_v58, 264  ;;  %880 = vbcast.lane.b32.xlu0 %v878_v58, 256  ;;  %v469_v58 = vsub.f32 %v10091_v61, %v10094_v62  ;;  %16119 = vst [vmem:[#allocation40_spill] sm:$0xff] %v10224_v46 }
  0xf9   : > { %v10200_v26 = vpop.permute.xlu1 %576  ;;  %v10202_v28 = vpop.permute.xlu0 %572  ;;  %v10226_v2 = vmul.f32 0.5, %v469_v58 }
  0xfb   : > { %895 = vbcast.lane.b32.xlu1 %v889_v25, 264  ;;  %891 = vbcast.lane.b32.xlu0 %v889_v25, 256  ;;  %16120 = vst [vmem:[#allocation41_spill] sm:$0xff] %v10226_v2  ;;  %v485_v60 = vsub.f32 %v10224_v46, %v10226_v2 }
  0xfd   : > { %v10205_v6 = vpop.permute.xlu1 %587  ;;  %v10207_v8 = vpop.permute.xlu0 %583  ;;  %v977_v2 = vrot.slane %v485_v60, %v10034_v35  ;;  %v988_v12 = vrot.slane %v485_v60, %v10058_v43  ;;  %v999_v54 = vrot.slane %v485_v60, %v10062_v45  ;;  %v1010_v15 = vrot.slane %v485_v60, %v10066_v47 }
  0xff   : > { %906 = vbcast.lane.b32.xlu1 %v900_v29, 264  ;;  %902 = vbcast.lane.b32.xlu0 %v900_v29, 256  ;;  %v933_v29 = vrot.slane %v484_v37, %v10070_v49 }
 0x101   : > { %v10210_v11 = vpop.permute.xlu1 %598  ;;  %v10212_v18 = vpop.permute.xlu0 %594 }
 0x103   : > { %917 = vbcast.lane.b32.xlu1 %v911_v9, 264  ;;  %913 = vbcast.lane.b32.xlu0 %v911_v9, 256 }
 0x105   : > { %v10219_v25 = vpop.permute.xlu1 %609  ;;  %v10221_v48 = vpop.permute.xlu0 %605 }
 0x107   : > { %928 = vbcast.lane.b32.xlu1 %v922_v36, 264  ;;  %924 = vbcast.lane.b32.xlu0 %v922_v36, 256  ;;  %v955_v36 = vrot.slane %v485_v60, %v9996_v22 }
 0x109   : > { %v10228_v9 = vpop.permute.xlu1 %620  ;;  %v10230_v1 = vpop.permute.xlu0 %616 }
 0x10b   : > { %939 = vbcast.lane.b32.xlu1 %v933_v29, 264  ;;  %935 = vbcast.lane.b32.xlu0 %v933_v29, 256  ;;  %v966_v29 = vrot.slane %v485_v60, %v9993_v21 }
 0x10d   : > { %v10235_v61 = vpop.permute.xlu1 %631  ;;  %v10237_v62 = vpop.permute.xlu0 %627 }
 0x10f   : > { %950 = vbcast.lane.b32.xlu1 %v944_v59, 264  ;;  %946 = vbcast.lane.b32.xlu0 %v944_v59, 256 }
 0x111   : > { %v10240_v52 = vpop.permute.xlu1 %642  ;;  %v10242_v58 = vpop.permute.xlu0 %638 }
 0x113   : > { %961 = vbcast.lane.b32.xlu1 %v955_v36, 264  ;;  %957 = vbcast.lane.b32.xlu0 %v955_v36, 256 }
 0x115   : > { %v10245_v37 = vpop.permute.xlu1 %653  ;;  %v10247_v13 = vpop.permute.xlu0 %649 }
 0x117   : > { %972 = vbcast.lane.b32.xlu1 %v966_v29, 264  ;;  %968 = vbcast.lane.b32.xlu0 %v966_v29, 256 }
 0x119   : > { %v10250_v46 = vpop.permute.xlu1 %664  ;;  %v10252_v59 = vpop.permute.xlu0 %660 }
 0x11a   : > { %16121 = vst [vmem:[#allocation42_spill] sm:$0xff] %v10250_v46  ;;  %16122 = vst [vmem:[#allocation43_spill] sm:$0xff] %v10252_v59 }
 0x11b   : > { %983 = vbcast.lane.b32.xlu1 %v977_v2, 264  ;;  %979 = vbcast.lane.b32.xlu0 %v977_v2, 256  ;;  %v438_v2 = vsub.f32 %v10123_v19, %v10126_v23  ;;  %v1032_v19 = vrot.slane %v485_v60, %v10074_v53 }
 0x11d   : > { %v10255_v55 = vpop.permute.xlu1 %675  ;;  %v10257_v36 = vpop.permute.xlu0 %671 }
 0x11e   : > { %16123 = vst [vmem:[#allocation44_spill] sm:$0xff] %v10257_v36 }
 0x11f   : > { %994 = vbcast.lane.b32.xlu1 %v988_v12, 264  ;;  %990 = vbcast.lane.b32.xlu0 %v988_v12, 256  ;;  %v1021_v12 = vrot.slane %v485_v60, %v10070_v49 }
 0x121   : > { %v10260_v20 = vpop.permute.xlu1 %686  ;;  %v10262_v29 = vpop.permute.xlu0 %682 }
 0x122   : > { %16124 = vst [vmem:[#allocation45_spill] sm:$0xff] %v10260_v20  ;;  %16125 = vst [vmem:[#allocation46_spill] sm:$0xff] %v10262_v29  ;;  %v10274_v20 = vmul.f32 0.5, %v438_v2  ;;  %v10276_v29 = vmul.f32 0.5, %v470_v44 }
 0x123   : > { %1005 = vbcast.lane.b32.xlu1 %v999_v54, 264  ;;  %1001 = vbcast.lane.b32.xlu0 %v999_v54, 256 }
 0x124   : > { %16128 = vst [vmem:[#allocation49_spill] sm:$0xff] %v10274_v20  ;;  %16129 = vst [vmem:[#allocation50_spill] sm:$0xff] %v10276_v29  ;;  %v486_v23 = vsub.f32 %v10274_v20, %v10276_v29 }
 0x125   : > { %v10269_v42 = vpop.permute.xlu1 %697  ;;  %v10271_v59 = vpop.permute.xlu0 %693 }
 0x126   : > { %16126 = vst [vmem:[#allocation47_spill] sm:$0xff] %v10269_v42  ;;  %16127 = vst [vmem:[#allocation48_spill] sm:$0xff] %v10271_v59  ;;  %v1043_v34 = vrot.slane %v486_v23, %v9996_v22 }
 0x127   : > { %1016 = vbcast.lane.b32.xlu1 %v1010_v15, 264  ;;  %1012 = vbcast.lane.b32.xlu0 %v1010_v15, 256 }
 0x129   : > { %v10278_v54 = vpop.permute.xlu1 %708  ;;  %v10280_v46 = vpop.permute.xlu0 %704 }
 0x12a   : > { %16130 = vst [vmem:[#allocation51_spill] sm:$0xff] %v10278_v54  ;;  %16131 = vst [vmem:[#allocation52_spill] sm:$0xff] %v10280_v46  ;;  %v391_v46 = vld [vmem:[%s9936_s7 + $0x38] sm:$0xff] }
 0x12b   : > { %1027 = vbcast.lane.b32.xlu1 %v1021_v12, 264  ;;  %1023 = vbcast.lane.b32.xlu0 %v1021_v12, 256  ;;  %v1054_v12 = vrot.slane %v486_v23, %v9993_v21  ;;  %v407_v54 = vld [vmem:[%s9951_s23 + $0x38] sm:$0xff] }
 0x12d   : > { %v10285_v33 = vpop.permute.xlu1 %719  ;;  %v10287_v15 = vpop.permute.xlu0 %715 }
 0x12e   : > { %16132 = vst [vmem:[#allocation53_spill] sm:$0xff] %v10285_v33  ;;  %16133 = vst [vmem:[#allocation54_spill] sm:$0xff] %v10287_v15  ;;  %v415_v15 = vld [vmem:[%s9955_s22 + $0x38] sm:$0xff] }
 0x12f   : > { %1038 = vbcast.lane.b32.xlu1 %v1032_v19, 264  ;;  %1034 = vbcast.lane.b32.xlu0 %v1032_v19, 256  ;;  %v1065_v19 = vrot.slane %v486_v23, %v10034_v35 }
 0x131   : > { %v10290_v44 = vpop.permute.xlu1 %730  ;;  %v10292_v2 = vpop.permute.xlu0 %726 }
 0x132   : > { %16134 = vst [vmem:[#allocation55_spill] sm:$0xff] %v10290_v44  ;;  %16135 = vst [vmem:[#allocation56_spill] sm:$0xff] %v10292_v2 }
 0x133   : > { %1049 = vbcast.lane.b32.xlu1 %v1043_v34, 264  ;;  %1045 = vbcast.lane.b32.xlu0 %v1043_v34, 256  ;;  %v1076_v34 = vrot.slane %v486_v23, %v10058_v43 }
 0x135   : > { %v10295_v60 = vpop.permute.xlu1 %741  ;;  %v10297_v29 = vpop.permute.xlu0 %737 }
 0x136   : > { %16136 = vst [vmem:[#allocation57_spill] sm:$0xff] %v10295_v60  ;;  %16137 = vst [vmem:[#allocation58_spill] sm:$0xff] %v10297_v29  ;;  %v1087_v29 = vrot.slane %v486_v23, %v10062_v45 }
 0x137   : > { %1060 = vbcast.lane.b32.xlu1 %v1054_v12, 264  ;;  %1056 = vbcast.lane.b32.xlu0 %v1054_v12, 256  ;;  %v399_v12 = vld [vmem:[%s9944_s9 + $0x38] sm:$0xff] }
 0x139   : > { %v10300_v20 = vpop.permute.xlu1 %752  ;;  %v10302_v44 = vpop.permute.xlu0 %748 }
 0x13a   : > { %16138 = vst [vmem:[#allocation59_spill] sm:$0xff] %v10300_v20  ;;  %16139 = vst [vmem:[#allocation60_spill] sm:$0xff] %v10302_v44  ;;  %v439_v44 = vsub.f32 %v391_v46, %v399_v12  ;;  %v1120_v46 = vrot.slane %v486_v23, %v10074_v53 }
 0x13b   : > { %1071 = vbcast.lane.b32.xlu1 %v1065_v19, 264  ;;  %1067 = vbcast.lane.b32.xlu0 %v1065_v19, 256  ;;  %v1098_v19 = vrot.slane %v486_v23, %v10066_v47 }
 0x13c   : > { %v10324_v42 = vmul.f32 0.5, %v439_v44 }
 0x13d   : > { %v10305_v2 = vpop.permute.xlu1 %763  ;;  %v10307_v60 = vpop.permute.xlu0 %759 }
 0x13e   : > { %16140 = vst [vmem:[#allocation61_spill] sm:$0xff] %v10305_v2  ;;  %16141 = vst [vmem:[#allocation62_spill] sm:$0xff] %v10307_v60  ;;  %v471_v2 = vsub.f32 %v407_v54, %v415_v15 }
 0x13f   : > { %1082 = vbcast.lane.b32.xlu1 %v1076_v34, 264  ;;  %1078 = vbcast.lane.b32.xlu0 %v1076_v34, 256  ;;  %v1109_v34 = vrot.slane %v486_v23, %v10070_v49  ;;  %16144 = vst [vmem:[#allocation65_spill] sm:$0xff] %v10324_v42 }
 0x140   : > { %v10326_v36 = vmul.f32 0.5, %v471_v2 }
 0x141   : > { %v10314_v33 = vpop.permute.xlu1 %774  ;;  %v10316_v20 = vpop.permute.xlu0 %770 }
 0x142   : > { %16142 = vst [vmem:[#allocation63_spill] sm:$0xff] %v10314_v33  ;;  %16143 = vst [vmem:[#allocation64_spill] sm:$0xff] %v10316_v20 }
 0x143   : > { %1093 = vbcast.lane.b32.xlu1 %v1087_v29, 264  ;;  %1089 = vbcast.lane.b32.xlu0 %v1087_v29, 256  ;;  %16145 = vst [vmem:[#allocation66_spill] sm:$0xff] %v10326_v36  ;;  %v487_v29 = vsub.f32 %v10324_v42, %v10326_v36 }
 0x145   : > { %v10319_v59 = vpop.permute.xlu1 %785  ;;  %v10321_v60 = vpop.permute.xlu0 %781  ;;  %v1131_v44 = vrot.slane %v487_v29, %v9996_v22  ;;  %v1153_v36 = vrot.slane %v487_v29, %v10034_v35 }
 0x147   : > { %1104 = vbcast.lane.b32.xlu1 %v1098_v19, 264  ;;  %1100 = vbcast.lane.b32.xlu0 %v1098_v19, 256  ;;  %v1142_v19 = vrot.slane %v487_v29, %v9993_v21 }
 0x149   : > { %v10328_v33 = vpop.permute.xlu1 %796  ;;  %v10330_v20 = vpop.permute.xlu0 %792 }
 0x14b   : > { %1115 = vbcast.lane.b32.xlu1 %v1109_v34, 264  ;;  %1111 = vbcast.lane.b32.xlu0 %v1109_v34, 256 }
 0x14d   : > { %v10335_v54 = vpop.permute.xlu1 %807  ;;  %v10337_v15 = vpop.permute.xlu0 %803 }
 0x14f   : > { %1126 = vbcast.lane.b32.xlu1 %v1120_v46, 264  ;;  %1122 = vbcast.lane.b32.xlu0 %v1120_v46, 256 }
 0x151   : > { %v10340_v2 = vpop.permute.xlu1 %818  ;;  %v10342_v12 = vpop.permute.xlu0 %814 }
 0x152   : > { %16146 = vst [vmem:[#allocation67_spill] sm:$0xff] %v10340_v2  ;;  %16147 = vst [vmem:[#allocation68_spill] sm:$0xff] %v10342_v12  ;;  %v1164_v12 = vrot.slane %v487_v29, %v10058_v43 }
 0x153   : > { %1137 = vbcast.lane.b32.xlu1 %v1131_v44, 264  ;;  %1133 = vbcast.lane.b32.xlu0 %v1131_v44, 256 }
 0x155   : > { %v10345_v23 = vpop.permute.xlu1 %829  ;;  %v10347_v34 = vpop.permute.xlu0 %825 }
 0x156   : > { %16148 = vst [vmem:[#allocation69_spill] sm:$0xff] %v10345_v23  ;;  %16149 = vst [vmem:[#allocation70_spill] sm:$0xff] %v10347_v34  ;;  %v1175_v34 = vrot.slane %v487_v29, %v10062_v45 }
 0x157   : > { %1148 = vbcast.lane.b32.xlu1 %v1142_v19, 264  ;;  %1144 = vbcast.lane.b32.xlu0 %v1142_v19, 256 }
 0x159   : > { %v10350_v42 = vpop.permute.xlu1 %840  ;;  %v10352_v46 = vpop.permute.xlu0 %836 }
 0x15a   : > { %16150 = vst [vmem:[#allocation71_spill] sm:$0xff] %v10350_v42  ;;  %16151 = vst [vmem:[#allocation72_spill] sm:$0xff] %v10352_v46  ;;  %v1186_v46 = vrot.slane %v487_v29, %v10066_v47 }
 0x15b   : > { %1159 = vbcast.lane.b32.xlu1 %v1153_v36, 264  ;;  %1155 = vbcast.lane.b32.xlu0 %v1153_v36, 256 }
 0x15d   : > { %v10355_v2 = vpop.permute.xlu1 %851  ;;  %v10357_v44 = vpop.permute.xlu0 %847 }
 0x15e   : > { %16152 = vst [vmem:[#allocation73_spill] sm:$0xff] %v10355_v2  ;;  %16153 = vst [vmem:[#allocation74_spill] sm:$0xff] %v10357_v44  ;;  %v1197_v44 = vrot.slane %v487_v29, %v10070_v49  ;;  %v10374_v2 = vmul.f32 0.5, %v9971_v10 }
 0x15f   : > { %1170 = vbcast.lane.b32.xlu1 %v1164_v12, 264  ;;  %1166 = vbcast.lane.b32.xlu0 %v1164_v12, 256  ;;  %v10371_v12 = vmul.f32 0.5, %v9967_v7 }
 0x160   : > { %16159 = vst [vmem:[#allocation80_spill] sm:$0xff] %v10374_v2 }
 0x161   : > { %v10360_v23 = vpop.permute.xlu1 %862  ;;  %v10362_v19 = vpop.permute.xlu0 %858  ;;  %16158 = vst [vmem:[#allocation79_spill] sm:$0xff] %v10371_v12 }
 0x162   : > { %16154 = vst [vmem:[#allocation75_spill] sm:$0xff] %v10360_v23  ;;  %16155 = vst [vmem:[#allocation76_spill] sm:$0xff] %v10362_v19 }
 0x163   : > { %1181 = vbcast.lane.b32.xlu1 %v1175_v34, 264  ;;  %1177 = vbcast.lane.b32.xlu0 %v1175_v34, 256  ;;  %v1208_v34 = vrot.slane %v487_v29, %v10074_v53 }
 0x165   : > { %v10365_v42 = vpop.permute.xlu1 %873  ;;  %v10367_v36 = vpop.permute.xlu0 %869 }
 0x166   : > { %16156 = vst [vmem:[#allocation77_spill] sm:$0xff] %v10365_v42  ;;  %16157 = vst [vmem:[#allocation78_spill] sm:$0xff] %v10367_v36  ;;  %v496_v36 = vsub.f32 %v10371_v12, %v10374_v2 }
 0x167   : > { %1192 = vbcast.lane.b32.xlu1 %v1186_v46, 264  ;;  %1188 = vbcast.lane.b32.xlu0 %v1186_v46, 256 }
 0x168   : > { %v1219_v7 = vrot.slane %v496_v36, %v9996_v22  ;;  %v1241_v2 = vrot.slane %v496_v36, %v10034_v35 }
 0x169   : > { %v10376_v23 = vpop.permute.xlu1 %884  ;;  %v10378_v19 = vpop.permute.xlu0 %880 }
 0x16a   : > { %16160 = vst [vmem:[#allocation81_spill] sm:$0xff] %v10376_v23  ;;  %16161 = vst [vmem:[#allocation82_spill] sm:$0xff] %v10378_v19 }
 0x16b   : > { %1203 = vbcast.lane.b32.xlu1 %v1197_v44, 264  ;;  %1199 = vbcast.lane.b32.xlu0 %v1197_v44, 256  ;;  %v1230_v44 = vrot.slane %v496_v36, %v9993_v21 }
 0x16d   : > { %v10383_v46 = vpop.permute.xlu1 %895  ;;  %v10385_v42 = vpop.permute.xlu0 %891 }
 0x16f   : > { %1214 = vbcast.lane.b32.xlu1 %v1208_v34, 264  ;;  %1210 = vbcast.lane.b32.xlu0 %v1208_v34, 256 }
 0x171   : > { %v10388_v10 = vpop.permute.xlu1 %906  ;;  %v10390_v23 = vpop.permute.xlu0 %902 }
 0x172   : > { %16162 = vst [vmem:[#allocation83_spill] sm:$0xff] %v10388_v10  ;;  %16163 = vst [vmem:[#allocation84_spill] sm:$0xff] %v10390_v23  ;;  %v1252_v23 = vrot.slane %v496_v36, %v10058_v43 }
 0x173   : > { %1225 = vbcast.lane.b32.xlu1 %v1219_v7, 264  ;;  %1221 = vbcast.lane.b32.xlu0 %v1219_v7, 256 }
 0x175   : > { %v10393_v29 = vpop.permute.xlu1 %917  ;;  %v10395_v19 = vpop.permute.xlu0 %913 }
 0x176   : > { %16164 = vst [vmem:[#allocation85_spill] sm:$0xff] %v10393_v29  ;;  %16165 = vst [vmem:[#allocation86_spill] sm:$0xff] %v10395_v19  ;;  %v1263_v19 = vrot.slane %v496_v36, %v10062_v45 }
 0x177   : > { %1236 = vbcast.lane.b32.xlu1 %v1230_v44, 264  ;;  %1232 = vbcast.lane.b32.xlu0 %v1230_v44, 256 }
 0x179   : > { %v10398_v12 = vpop.permute.xlu1 %928  ;;  %v10400_v34 = vpop.permute.xlu0 %924 }
 0x17a   : > { %16166 = vst [vmem:[#allocation87_spill] sm:$0xff] %v10398_v12  ;;  %16167 = vst [vmem:[#allocation88_spill] sm:$0xff] %v10400_v34  ;;  %v1274_v34 = vrot.slane %v496_v36, %v10066_v47 }
 0x17b   : > { %1247 = vbcast.lane.b32.xlu1 %v1241_v2, 264  ;;  %1243 = vbcast.lane.b32.xlu0 %v1241_v2, 256 }
 0x17d   : > { %v10403_v10 = vpop.permute.xlu1 %939  ;;  %v10405_v7 = vpop.permute.xlu0 %935 }
 0x17e   : > { %16168 = vst [vmem:[#allocation89_spill] sm:$0xff] %v10403_v10  ;;  %16169 = vst [vmem:[#allocation90_spill] sm:$0xff] %v10405_v7  ;;  %v1285_v7 = vrot.slane %v496_v36, %v10070_v49  ;;  %v10422_v10 = vmul.f32 0.5, %v9979_v16 }
 0x17f   : > { %1258 = vbcast.lane.b32.xlu1 %v1252_v23, 264  ;;  %1254 = vbcast.lane.b32.xlu0 %v1252_v23, 256  ;;  %v10419_v23 = vmul.f32 0.5, %v9975_v14 }
 0x180   : > { %16175 = vst [vmem:[#allocation96_spill] sm:$0xff] %v10422_v10 }
 0x181   : > { %v10408_v29 = vpop.permute.xlu1 %950  ;;  %v10410_v44 = vpop.permute.xlu0 %946  ;;  %16174 = vst [vmem:[#allocation95_spill] sm:$0xff] %v10419_v23 }
 0x182   : > { %16170 = vst [vmem:[#allocation91_spill] sm:$0xff] %v10408_v29  ;;  %16171 = vst [vmem:[#allocation92_spill] sm:$0xff] %v10410_v44 }
 0x183   : > { %1269 = vbcast.lane.b32.xlu1 %v1263_v19, 264  ;;  %1265 = vbcast.lane.b32.xlu0 %v1263_v19, 256  ;;  %v1296_v19 = vrot.slane %v496_v36, %v10074_v53 }
 0x185   : > { %v10413_v12 = vpop.permute.xlu1 %961  ;;  %v10415_v2 = vpop.permute.xlu0 %957 }
 0x186   : > { %16172 = vst [vmem:[#allocation93_spill] sm:$0xff] %v10413_v12  ;;  %16173 = vst [vmem:[#allocation94_spill] sm:$0xff] %v10415_v2  ;;  %v497_v2 = vsub.f32 %v10419_v23, %v10422_v10 }
 0x187   : > { %1280 = vbcast.lane.b32.xlu1 %v1274_v34, 264  ;;  %1276 = vbcast.lane.b32.xlu0 %v1274_v34, 256 }
 0x188   : > { %v1307_v14 = vrot.slane %v497_v2, %v9996_v22  ;;  %v1329_v10 = vrot.slane %v497_v2, %v10034_v35 }
 0x189   : > { %v10424_v29 = vpop.permute.xlu1 %972  ;;  %v10426_v44 = vpop.permute.xlu0 %968 }
 0x18a   : > { %16176 = vst [vmem:[#allocation97_spill] sm:$0xff] %v10424_v29  ;;  %16177 = vst [vmem:[#allocation98_spill] sm:$0xff] %v10426_v44 }
 0x18b   : > { %1291 = vbcast.lane.b32.xlu1 %v1285_v7, 264  ;;  %1287 = vbcast.lane.b32.xlu0 %v1285_v7, 256  ;;  %v1318_v7 = vrot.slane %v497_v2, %v9993_v21 }
 0x18d   : > { %v10431_v34 = vpop.permute.xlu1 %983  ;;  %v10433_v12 = vpop.permute.xlu0 %979 }
 0x18e   : > { %16178 = vst [vmem:[#allocation99_spill] sm:$0xff] %v10433_v12 }
 0x18f   : > { %1302 = vbcast.lane.b32.xlu1 %v1296_v19, 264  ;;  %1298 = vbcast.lane.b32.xlu0 %v1296_v19, 256 }
 0x191   : > { %v10436_v16 = vpop.permute.xlu1 %994  ;;  %v10438_v29 = vpop.permute.xlu0 %990 }
 0x192   : > { %16179 = vst [vmem:[#allocation100_spill] sm:$0xff] %v10436_v16  ;;  %16180 = vst [vmem:[#allocation101_spill] sm:$0xff] %v10438_v29  ;;  %v1340_v29 = vrot.slane %v497_v2, %v10058_v43 }
 0x193   : > { %1313 = vbcast.lane.b32.xlu1 %v1307_v14, 264  ;;  %1309 = vbcast.lane.b32.xlu0 %v1307_v14, 256 }
 0x195   : > { %v10441_v36 = vpop.permute.xlu1 %1005  ;;  %v10443_v44 = vpop.permute.xlu0 %1001 }
 0x196   : > { %16181 = vst [vmem:[#allocation102_spill] sm:$0xff] %v10441_v36  ;;  %16182 = vst [vmem:[#allocation103_spill] sm:$0xff] %v10443_v44  ;;  %v1351_v44 = vrot.slane %v497_v2, %v10062_v45 }
 0x197   : > { %1324 = vbcast.lane.b32.xlu1 %v1318_v7, 264  ;;  %1320 = vbcast.lane.b32.xlu0 %v1318_v7, 256 }
 0x199   : > { %v10446_v23 = vpop.permute.xlu1 %1016  ;;  %v10448_v19 = vpop.permute.xlu0 %1012 }
 0x19a   : > { %16183 = vst [vmem:[#allocation104_spill] sm:$0xff] %v10446_v23  ;;  %16184 = vst [vmem:[#allocation105_spill] sm:$0xff] %v10448_v19  ;;  %v1362_v19 = vrot.slane %v497_v2, %v10066_v47 }
 0x19b   : > { %1335 = vbcast.lane.b32.xlu1 %v1329_v10, 264  ;;  %1331 = vbcast.lane.b32.xlu0 %v1329_v10, 256 }
 0x19d   : > { %v10451_v16 = vpop.permute.xlu1 %1027  ;;  %v10453_v14 = vpop.permute.xlu0 %1023 }
 0x19e   : > { %16185 = vst [vmem:[#allocation106_spill] sm:$0xff] %v10451_v16  ;;  %16186 = vst [vmem:[#allocation107_spill] sm:$0xff] %v10453_v14  ;;  %v1373_v14 = vrot.slane %v497_v2, %v10070_v49  ;;  %v10470_v16 = vmul.f32 0.5, %v10013_v27 }
 0x19f   : > { %1346 = vbcast.lane.b32.xlu1 %v1340_v29, 264  ;;  %1342 = vbcast.lane.b32.xlu0 %v1340_v29, 256  ;;  %v10467_v29 = vmul.f32 0.5, %v10003_v24 }
 0x1a0   : > { %16192 = vst [vmem:[#allocation113_spill] sm:$0xff] %v10470_v16 }
 0x1a1   : > { %v10456_v36 = vpop.permute.xlu1 %1038  ;;  %v10458_v7 = vpop.permute.xlu0 %1034  ;;  %16191 = vst [vmem:[#allocation112_spill] sm:$0xff] %v10467_v29 }
 0x1a2   : > { %16187 = vst [vmem:[#allocation108_spill] sm:$0xff] %v10456_v36  ;;  %16188 = vst [vmem:[#allocation109_spill] sm:$0xff] %v10458_v7 }
 0x1a3   : > { %1357 = vbcast.lane.b32.xlu1 %v1351_v44, 264  ;;  %1353 = vbcast.lane.b32.xlu0 %v1351_v44, 256  ;;  %v1384_v44 = vrot.slane %v497_v2, %v10074_v53 }
 0x1a5   : > { %v10461_v23 = vpop.permute.xlu1 %1049  ;;  %v10463_v10 = vpop.permute.xlu0 %1045 }
 0x1a6   : > { %16189 = vst [vmem:[#allocation110_spill] sm:$0xff] %v10461_v23  ;;  %16190 = vst [vmem:[#allocation111_spill] sm:$0xff] %v10463_v10  ;;  %v498_v10 = vsub.f32 %v10467_v29, %v10470_v16 }
 0x1a7   : > { %1368 = vbcast.lane.b32.xlu1 %v1362_v19, 264  ;;  %1364 = vbcast.lane.b32.xlu0 %v1362_v19, 256 }
 0x1a8   : > { %v1395_v24 = vrot.slane %v498_v10, %v9996_v22  ;;  %v1417_v16 = vrot.slane %v498_v10, %v10034_v35 }
 0x1a9   : > { %v10472_v36 = vpop.permute.xlu1 %1060  ;;  %v10474_v7 = vpop.permute.xlu0 %1056 }
 0x1aa   : > { %16193 = vst [vmem:[#allocation114_spill] sm:$0xff] %v10472_v36  ;;  %16194 = vst [vmem:[#allocation115_spill] sm:$0xff] %v10474_v7 }
 0x1ab   : > { %1379 = vbcast.lane.b32.xlu1 %v1373_v14, 264  ;;  %1375 = vbcast.lane.b32.xlu0 %v1373_v14, 256  ;;  %v1406_v14 = vrot.slane %v498_v10, %v9993_v21 }
 0x1ad   : > { %v10479_v19 = vpop.permute.xlu1 %1071  ;;  %v10481_v23 = vpop.permute.xlu0 %1067 }
 0x1ae   : > { %16195 = vst [vmem:[#allocation116_spill] sm:$0xff] %v10479_v19  ;;  %16196 = vst [vmem:[#allocation117_spill] sm:$0xff] %v10481_v23  ;;  %v1428_v23 = vrot.slane %v498_v10, %v10058_v43 }
 0x1af   : > { %1390 = vbcast.lane.b32.xlu1 %v1384_v44, 264  ;;  %1386 = vbcast.lane.b32.xlu0 %v1384_v44, 256 }
 0x1b1   : > { %v10484_v27 = vpop.permute.xlu1 %1082  ;;  %v10486_v36 = vpop.permute.xlu0 %1078 }
 0x1b2   : > { %16197 = vst [vmem:[#allocation118_spill] sm:$0xff] %v10484_v27  ;;  %16198 = vst [vmem:[#allocation119_spill] sm:$0xff] %v10486_v36 }
 0x1b3   : > { %1401 = vbcast.lane.b32.xlu1 %v1395_v24, 264  ;;  %1397 = vbcast.lane.b32.xlu0 %v1395_v24, 256 }
 0x1b5   : > { %v10489_v2 = vpop.permute.xlu1 %1093  ;;  %v10491_v7 = vpop.permute.xlu0 %1089 }
 0x1b6   : > { %16199 = vst [vmem:[#allocation120_spill] sm:$0xff] %v10489_v2  ;;  %16200 = vst [vmem:[#allocation121_spill] sm:$0xff] %v10491_v7  ;;  %v1439_v7 = vrot.slane %v498_v10, %v10062_v45 }
 0x1b7   : > { %1412 = vbcast.lane.b32.xlu1 %v1406_v14, 264  ;;  %1408 = vbcast.lane.b32.xlu0 %v1406_v14, 256 }
 0x1b9   : > { %v10494_v29 = vpop.permute.xlu1 %1104  ;;  %v10496_v44 = vpop.permute.xlu0 %1100 }
 0x1ba   : > { %16201 = vst [vmem:[#allocation122_spill] sm:$0xff] %v10494_v29  ;;  %16202 = vst [vmem:[#allocation123_spill] sm:$0xff] %v10496_v44  ;;  %v1450_v44 = vrot.slane %v498_v10, %v10066_v47 }
 0x1bb   : > { %1423 = vbcast.lane.b32.xlu1 %v1417_v16, 264  ;;  %1419 = vbcast.lane.b32.xlu0 %v1417_v16, 256 }
 0x1bd   : > { %v10499_v36 = vpop.permute.xlu1 %1115  ;;  %v10501_v24 = vpop.permute.xlu0 %1111 }
 0x1be   : > { %16203 = vst [vmem:[#allocation124_spill] sm:$0xff] %v10499_v36  ;;  %16204 = vst [vmem:[#allocation125_spill] sm:$0xff] %v10501_v24  ;;  %v1461_v24 = vrot.slane %v498_v10, %v10070_v49  ;;  %v10518_v36 = vmul.f32 0.5, %v10029_v32 }
 0x1bf   : > { %1434 = vbcast.lane.b32.xlu1 %v1428_v23, 264  ;;  %1430 = vbcast.lane.b32.xlu0 %v1428_v23, 256  ;;  %v10515_v23 = vmul.f32 0.5, %v10023_v30 }
 0x1c0   : > { %16210 = vst [vmem:[#allocation131_spill] sm:$0xff] %v10518_v36 }
 0x1c1   : > { %v10504_v2 = vpop.permute.xlu1 %1126  ;;  %v10506_v14 = vpop.permute.xlu0 %1122  ;;  %16209 = vst [vmem:[#allocation130_spill] sm:$0xff] %v10515_v23 }
 0x1c2   : > { %16205 = vst [vmem:[#allocation126_spill] sm:$0xff] %v10504_v2  ;;  %16206 = vst [vmem:[#allocation127_spill] sm:$0xff] %v10506_v14 }
 0x1c3   : > { %1445 = vbcast.lane.b32.xlu1 %v1439_v7, 264  ;;  %1441 = vbcast.lane.b32.xlu0 %v1439_v7, 256  ;;  %v1472_v7 = vrot.slane %v498_v10, %v10074_v53 }
 0x1c5   : > { %v10509_v29 = vpop.permute.xlu1 %1137  ;;  %v10511_v16 = vpop.permute.xlu0 %1133 }
 0x1c6   : > { %16207 = vst [vmem:[#allocation128_spill] sm:$0xff] %v10509_v29  ;;  %16208 = vst [vmem:[#allocation129_spill] sm:$0xff] %v10511_v16  ;;  %v499_v16 = vsub.f32 %v10515_v23, %v10518_v36 }
 0x1c7   : > { %1456 = vbcast.lane.b32.xlu1 %v1450_v44, 264  ;;  %1452 = vbcast.lane.b32.xlu0 %v1450_v44, 256 }
 0x1c8   : > { %v1483_v30 = vrot.slane %v499_v16, %v9996_v22  ;;  %v1505_v36 = vrot.slane %v499_v16, %v10034_v35 }
 0x1c9   : > { %v10520_v2 = vpop.permute.xlu1 %1148  ;;  %v10522_v14 = vpop.permute.xlu0 %1144 }
 0x1ca   : > { %16211 = vst [vmem:[#allocation132_spill] sm:$0xff] %v10520_v2  ;;  %16212 = vst [vmem:[#allocation133_spill] sm:$0xff] %v10522_v14 }
 0x1cb   : > { %1467 = vbcast.lane.b32.xlu1 %v1461_v24, 264  ;;  %1463 = vbcast.lane.b32.xlu0 %v1461_v24, 256  ;;  %v1494_v24 = vrot.slane %v499_v16, %v9993_v21 }
 0x1cd   : > { %v10527_v44 = vpop.permute.xlu1 %1159  ;;  %v10529_v29 = vpop.permute.xlu0 %1155 }
 0x1ce   : > { %16213 = vst [vmem:[#allocation134_spill] sm:$0xff] %v10527_v44  ;;  %16214 = vst [vmem:[#allocation135_spill] sm:$0xff] %v10529_v29  ;;  %v1516_v29 = vrot.slane %v499_v16, %v10058_v43 }
 0x1cf   : > { %1478 = vbcast.lane.b32.xlu1 %v1472_v7, 264  ;;  %1474 = vbcast.lane.b32.xlu0 %v1472_v7, 256 }
 0x1d1   : > { %v10532_v32 = vpop.permute.xlu1 %1170  ;;  %v10534_v2 = vpop.permute.xlu0 %1166 }
 0x1d2   : > { %16215 = vst [vmem:[#allocation136_spill] sm:$0xff] %v10532_v32  ;;  %16216 = vst [vmem:[#allocation137_spill] sm:$0xff] %v10534_v2  ;;  %v9729_v32 = vmov 1983009808  }
 0x1d3   : > { %1489 = vbcast.lane.b32.xlu1 %v1483_v30, 264  ;;  %1485 = vbcast.lane.b32.xlu0 %v1483_v30, 256 }
 0x1d5   : > { %v10537_v10 = vpop.permute.xlu1 %1181  ;;  %v10539_v14 = vpop.permute.xlu0 %1177 }
 0x1d6   : > { %16217 = vst [vmem:[#allocation138_spill] sm:$0xff] %v10537_v10  ;;  %16218 = vst [vmem:[#allocation139_spill] sm:$0xff] %v10539_v14  ;;  %v1527_v14 = vrot.slane %v499_v16, %v10062_v45 }
 0x1d7   : > { %1500 = vbcast.lane.b32.xlu1 %v1494_v24, 264  ;;  %1496 = vbcast.lane.b32.xlu0 %v1494_v24, 256 }
 0x1d9   : > { %v10542_v23 = vpop.permute.xlu1 %1192  ;;  %v10544_v7 = vpop.permute.xlu0 %1188 }
 0x1da   : > { %16219 = vst [vmem:[#allocation140_spill] sm:$0xff] %v10542_v23  ;;  %16220 = vst [vmem:[#allocation141_spill] sm:$0xff] %v10544_v7  ;;  %v1538_v7 = vrot.slane %v499_v16, %v10066_v47 }
 0x1db   : > { %1511 = vbcast.lane.b32.xlu1 %v1505_v36, 264  ;;  %1507 = vbcast.lane.b32.xlu0 %v1505_v36, 256 }
 0x1dd   : > { %v10547_v2 = vpop.permute.xlu1 %1203  ;;  %v10549_v30 = vpop.permute.xlu0 %1199 }
 0x1de   : > { %16221 = vst [vmem:[#allocation142_spill] sm:$0xff] %v10547_v2  ;;  %16222 = vst [vmem:[#allocation143_spill] sm:$0xff] %v10549_v30  ;;  %v1549_v2 = vrot.slane %v499_v16, %v10070_v49  ;;  %v10559_v30 = vmul.f32 0.5, %v10050_v40 }
 0x1df   : > { %1522 = vbcast.lane.b32.xlu1 %v1516_v29, 264  ;;  %1518 = vbcast.lane.b32.xlu0 %v1516_v29, 256  ;;  %v10562_v29 = vmul.f32 0.5, %v10054_v41 }
 0x1e0   : > { %16225 = vst [vmem:[#allocation146_spill] sm:$0xff] %v10559_v30 }
 0x1e1   : > { %v10552_v10 = vpop.permute.xlu1 %1214  ;;  %v10554_v24 = vpop.permute.xlu0 %1210  ;;  %16226 = vst [vmem:[#allocation147_spill] sm:$0xff] %v10562_v29 }
 0x1e2   : > { %16223 = vst [vmem:[#allocation144_spill] sm:$0xff] %v10552_v10  ;;  %16224 = vst [vmem:[#allocation145_spill] sm:$0xff] %v10554_v24  ;;  %v2052_v10 = vunpack.c.l.s4 %v9729_v32 }
 0x1e3   : > { %1533 = vbcast.lane.b32.xlu1 %v1527_v14, 264  ;;  %1529 = vbcast.lane.b32.xlu0 %v1527_v14, 256  ;;  %v1560_v14 = vrot.slane %v499_v16, %v10074_v53 }
 0x1e4   : > { %v2053_v27 = vunpack.c.0.s8 %v2052_v10 }
 0x1e5   : > { %v1226_v23 = vpop.permute.xlu1 %1225  ;;  %v1222_v36 = vpop.permute.xlu0 %1221 }
 0x1e6   : > { %v10571_v41 = vsel %vm1920_vm0, %v10180_v51, %v1226_v23  ;;  %v1921_v32 = vsel %vm1920_vm0, %v10171_v17, %v1222_v36  ;;  %v10586_v51 = vsub.s32 %v2053_v27, %v9964_v4 }
 0x1e7   : > { %1544 = vbcast.lane.b32.xlu1 %v1538_v7, 264  ;;  %1540 = vbcast.lane.b32.xlu0 %v1538_v7, 256  ;;  %v10567_v7 = vsub.f32 %v10559_v30, %v10562_v29  ;;  %16227 = vst [vmem:[#allocation148_spill] sm:$0xff] %v10571_v41 }
 0x1e9   : > { %v1237_v44 = vpop.permute.xlu1 %1236  ;;  %v1233_v24 = vpop.permute.xlu0 %1232  ;;  %v1571_v29 = vrot.slane %v10567_v7, %v9996_v22 }
 0x1ea   : > { %v10590_v17 = vsel %vm1920_vm0, %v10178_v50, %v1237_v44  ;;  %v1582_v50 = vrot.slane %v10567_v7, %v9993_v21 }
 0x1eb   : > { %1555 = vbcast.lane.b32.xlu1 %v1549_v2, 264  ;;  %1551 = vbcast.lane.b32.xlu0 %v1549_v2, 256  ;;  %16229 = vst [vmem:[#allocation150_spill] sm:$0xff] %v10590_v17 }
 0x1ed   : > { %v1248_v19 = vpop.permute.xlu1 %1247  ;;  %v1244_v40 = vpop.permute.xlu0 %1243 }
 0x1ee   : > { %v10577_v12 = vsel %vm1920_vm0, %v10185_v38, %v1248_v19  ;;  %v1925_v2 = vsel %vm1920_vm0, %v10187_v39, %v1244_v40  ;;  %v1923_v39 = vsel %vm1920_vm0, %v10169_v31, %v1233_v24 }
 0x1ef   : > { %16228 = vst [vmem:[#allocation149_spill] sm:$0xff] %v10577_v12  ;;  %v2322_v16 = vcombine.high %v10571_v41, %v10577_v12  ;;  %v2050_v10 = vcombine.high %v1921_v32, %v1925_v2  ;;  %1566 = vbcast.lane.b32.xlu1 %v1560_v14, 264  ;;  %1562 = vbcast.lane.b32.xlu0 %v1560_v14, 256 }
 0x1f0   : > { %v2049_v23 = vcombine.low %v1921_v32, %v1925_v2 }
 0x1f1   : > { %v1259_v38 = vpop.permute.xlu1 %1258  ;;  %v1255_v19 = vpop.permute.xlu0 %1254  ;;  %v10605_v31 = vrot.slane %v2322_v16, %v10586_v51 }
 0x1f2   : > { %v10596_v36 = vsel %vm1920_vm0, %v10190_v56, %v1259_v38  ;;  %v1927_v14 = vsel %vm1920_vm0, %v10192_v57, %v1255_v19  ;;  %v10617_v2 = vrot.slane %v2049_v23, %v10586_v51  ;;  %v10620_v38 = vrot.slane %v2050_v10, %v10586_v51 }
 0x1f3   : > { %16230 = vst [vmem:[#allocation151_spill] sm:$0xff] %v10596_v36  ;;  %v2338_v27 = vcombine.high %v10590_v17, %v10596_v36  ;;  %v2065_v40 = vcombine.low %v1923_v39, %v1927_v14  ;;  %v2066_v30 = vcombine.high %v1923_v39, %v1927_v14  ;;  %1577 = vbcast.lane.b32.xlu1 %v1571_v29, 264 }
 0x1f4   : > { %1573 = vbcast.lane.b32.xlu0 %v1571_v29, 256  ;;  %v1593_v19 = vrot.slane %v10567_v7, %v10034_v35  ;;  %v1615_v36 = vrot.slane %v10567_v7, %v10062_v45 }
 0x1f5   : > { %v10608_v44 = vrot.slane %v2338_v27, %v10586_v51  ;;  %v10611_v56 = vrot.slane %v2065_v40, %v10586_v51  ;;  %v10614_v57 = vrot.slane %v2066_v30, %v10586_v51  ;;  %v1270_v24 = vpop.permute.xlu1 %1269  ;;  %v1266_v32 = vpop.permute.xlu0 %1265  ;;  %v1604_v27 = vrot.slane %v10567_v7, %v10058_v43 }
 0x1f6   : > { %v9730_v40 = vmov 1934713408   ;;  %v10638_v17 = vsel %vm1920_vm0, %v10195_v3, %v1270_v24  ;;  %v1929_v39 = vsel %vm1920_vm0, %v10197_v5, %v1266_v32 }
 0x1f7   : > { %v2401_v29 = vcombine.low %v10605_v31, %v10608_v44  ;;  %1588 = vbcast.lane.b32.xlu1 %v1582_v50, 264  ;;  %v2114_v30 = vcombine.high %v10617_v2, %v10611_v56  ;;  %v2116_v16 = vunpack.c.l.s4 %v9730_v40  ;;  %16231 = vst [vmem:[#allocation152_spill] sm:$0xff] %v10638_v17 }
 0x1f8   : > { %1584 = vbcast.lane.b32.xlu0 %v1582_v50, 256 }
 0x1f9   : > { %v1281_v23 = vpop.permute.xlu1 %1280  ;;  %v1277_v14 = vpop.permute.xlu0 %1276  ;;  %v2117_v3 = vunpack.c.0.s8 %v2116_v16 }
 0x1fa   : > { %v10654_v5 = vsel %vm1920_vm0, %v10200_v26, %v1281_v23  ;;  %v1626_v26 = vrot.slane %v10567_v7, %v10066_v47 }
 0x1fb   : > { %1599 = vbcast.lane.b32.xlu1 %v1593_v19, 264  ;;  %16233 = vst [vmem:[#allocation154_spill] sm:$0xff] %v10654_v5  ;;  %v10669_v23 = vsub.s32 %v2117_v3, %v9964_v4 }
 0x1fc   : > { %1595 = vbcast.lane.b32.xlu0 %v1593_v19, 256 }
 0x1fd   : > { %v1292_v41 = vpop.permute.xlu1 %1291  ;;  %v1288_v12 = vpop.permute.xlu0 %1287 }
 0x1fe   : > { %v10644_v50 = vsel %vm1920_vm0, %v10205_v6, %v1292_v41  ;;  %v1933_v10 = vsel %vm1920_vm0, %v10207_v8, %v1288_v12  ;;  %v1931_v41 = vsel %vm1920_vm0, %v10202_v28, %v1277_v14  ;;  %v2113_v28 = vcombine.low %v10617_v2, %v10611_v56 }
 0x1ff   : > { %16232 = vst [vmem:[#allocation153_spill] sm:$0xff] %v10644_v50  ;;  %v2354_v40 = vcombine.high %v10638_v17, %v10644_v50  ;;  %v2082_v19 = vcombine.high %v1929_v39, %v1933_v10  ;;  %1610 = vbcast.lane.b32.xlu1 %v1604_v27, 264  ;;  %v2081_v8 = vcombine.low %v1929_v39, %v1933_v10  ;;  %v16294_v50 = vld [vmem:[#allocation60_spill] sm:$0xff] }
 0x200   : > { %1606 = vbcast.lane.b32.xlu0 %v1604_v27, 256  ;;  %v1648_v2 = vrot.slane %v10567_v7, %v10074_v53 }
 0x201   : > { %v1303_v24 = vpop.permute.xlu1 %1302  ;;  %v1299_v6 = vpop.permute.xlu0 %1298  ;;  %v2368_v39 = vrot.slane %v2354_v40, %v10586_v51 }
 0x202   : > { %v10660_v12 = vsel %vm1920_vm0, %v10210_v11, %v1303_v24  ;;  %v1935_v32 = vsel %vm1920_vm0, %v10212_v18, %v1299_v6  ;;  %v10674_v11 = vmul.f32 0.5, %v10098_v63  ;;  %v10677_v18 = vmul.f32 0.5, %v10102_v0 }
 0x203   : > { %16234 = vst [vmem:[#allocation155_spill] sm:$0xff] %v10660_v12  ;;  %v2370_v16 = vcombine.high %v10654_v5, %v10660_v12  ;;  %v2097_v27 = vcombine.low %v1931_v41, %v1935_v32  ;;  %v2098_v17 = vcombine.high %v1931_v41, %v1935_v32  ;;  %1621 = vbcast.lane.b32.xlu1 %v1615_v36, 264  ;;  %v16295_v5 = vld [vmem:[#allocation63_spill] sm:$0xff] }
 0x204   : > { %1617 = vbcast.lane.b32.xlu0 %v1615_v36, 256  ;;  %16235 = vst [vmem:[#allocation156_spill] sm:$0xff] %v10674_v11  ;;  %16236 = vst [vmem:[#allocation157_spill] sm:$0xff] %v10677_v18  ;;  %v2089_v6 = vrot.slane %v2081_v8, %v10586_v51  ;;  %v2096_v36 = vrot.slane %v2082_v19, %v10586_v51  ;;  %v1637_v0 = vrot.slane %v10567_v7, %v10070_v49 }
 0x205   : > { %v2384_v10 = vrot.slane %v2370_v16, %v10586_v51  ;;  %v2105_v14 = vrot.slane %v2097_v27, %v10586_v51  ;;  %v2112_v24 = vrot.slane %v2098_v17, %v10586_v51  ;;  %v1314_v4 = vpop.permute.xlu1 %1313  ;;  %v1310_v3 = vpop.permute.xlu0 %1309  ;;  %v10690_v17 = vrot.slane %v2401_v29, %v10669_v23 }
 0x206   : > { %v10693_v8 = vrot.slane %v2113_v28, %v10669_v23  ;;  %v10696_v19 = vrot.slane %v2114_v30, %v10669_v23  ;;  %v16240_v30 = vcombine.high %v10605_v31, %v10608_v44 }
 0x207   : > { %v2433_v56 = vcombine.low %v2368_v39, %v2384_v10  ;;  %v2434_v63 = vcombine.high %v2368_v39, %v2384_v10  ;;  %1632 = vbcast.lane.b32.xlu1 %v1626_v26, 264  ;;  %v2145_v40 = vcombine.low %v2089_v6, %v2105_v14  ;;  %v2146_v41 = vcombine.high %v2089_v6, %v2105_v14 }
 0x208   : > { %v2161_v32 = vcombine.low %v2096_v36, %v2112_v24  ;;  %v2162_v16 = vcombine.high %v2096_v36, %v2112_v24  ;;  %1628 = vbcast.lane.b32.xlu0 %v1626_v26, 256  ;;  %16237 = vst [vmem:[#allocation158_spill] sm:$0xff] %v10690_v17  ;;  %16238 = vst [vmem:[#allocation159_spill] sm:$0xff] %v10693_v8  ;;  %v10700_v10 = vsub.f32 %v10674_v11, %v10677_v18 }
 0x209   : > { %v1325_v27 = vpop.permute.xlu1 %1324  ;;  %v1321_v39 = vpop.permute.xlu0 %1320  ;;  %v10703_v7 = vrot.slane %v2145_v40, %v10669_v23  ;;  %v10706_v26 = vrot.slane %v2146_v41, %v10669_v23  ;;  %v10718_v14 = vrot.slane %v16240_v30, %v10669_v23  ;;  %v16242_v24 = vcombine.low %v10620_v38, %v10614_v57 }
 0x20a   : > { %v10709_v29 = vrot.slane %v2161_v32, %v10669_v23  ;;  %v10712_v28 = vrot.slane %v2162_v16, %v10669_v23  ;;  %v16243_v36 = vcombine.high %v10620_v38, %v10614_v57  ;;  %v10733_v41 = vrot.slane %v2433_v56, %v10669_v23 }
 0x20b   : > { %16239 = vst [vmem:[#allocation160_spill] sm:$0xff] %v10703_v7  ;;  %16241 = vst [vmem:[#allocation161_spill] sm:$0xff] %v10718_v14  ;;  %v10724_v6 = vrot.slane %v16242_v24, %v10669_v23  ;;  %1643 = vbcast.lane.b32.xlu1 %v1637_v0, 264  ;;  %v10736_v31 = vrot.slane %v2434_v63, %v10669_v23  ;;  %v10754_v24 = vsel %vm1920_vm0, %v10219_v25, %v1314_v4 }
 0x20c   : > { %v10730_v40 = vrot.slane %v16243_v36, %v10669_v23  ;;  %16244 = vst [vmem:[#allocation162_spill] sm:$0xff] %v10733_v41  ;;  %1639 = vbcast.lane.b32.xlu0 %v1637_v0, 256  ;;  %16246 = vst [vmem:[#allocation164_spill] sm:$0xff] %v10754_v24  ;;  %v1937_v36 = vsel %vm1920_vm0, %v10221_v48, %v1310_v3  ;;  %v1659_v0 = vrot.slane %v10700_v10, %v9996_v22  ;;  %v16258_v41 = vld [vmem:[#allocation46_spill] sm:$0xff] }
 0x20d   : > { %16245 = vst [vmem:[#allocation163_spill] sm:$0xff] %v10736_v31  ;;  %v1336_v57 = vpop.permute.xlu1 %1335  ;;  %v1332_v38 = vpop.permute.xlu0 %1331  ;;  %v10778_v4 = vsel %vm1920_vm0, %v10228_v9, %v1325_v27  ;;  %v1670_v9 = vrot.slane %v10700_v10, %v9993_v21  ;;  %v1703_v31 = vrot.slane %v10700_v10, %v10062_v45 }
 0x20e   : > { %v10760_v16 = vsel %vm1920_vm0, %v10235_v61, %v1336_v57  ;;  %v1941_v30 = vsel %vm1920_vm0, %v10237_v62, %v1332_v38  ;;  %16248 = vst [vmem:[#allocation166_spill] sm:$0xff] %v10778_v4 }
 0x20f   : > { %16247 = vst [vmem:[#allocation165_spill] sm:$0xff] %v10760_v16  ;;  %v2458_v63 = vcombine.high %v10754_v24, %v10760_v16  ;;  %v2186_v56 = vcombine.high %v1937_v36, %v1941_v30  ;;  %1654 = vbcast.lane.b32.xlu1 %v1648_v2, 264  ;;  %v2185_v38 = vcombine.low %v1937_v36, %v1941_v30 }
 0x210   : > { %1650 = vbcast.lane.b32.xlu0 %v1648_v2, 256  ;;  %v1939_v2 = vsel %vm1920_vm0, %v10230_v1, %v1321_v39 }
 0x211   : > { %v1347_v3 = vpop.permute.xlu1 %1346  ;;  %v1343_v57 = vpop.permute.xlu0 %1342  ;;  %v10793_v1 = vrot.slane %v2458_v63, %v10586_v51  ;;  %v10805_v36 = vrot.slane %v2185_v38, %v10586_v51 }
 0x212   : > { %v10784_v25 = vsel %vm1920_vm0, %v10240_v52, %v1347_v3  ;;  %v1943_v61 = vsel %vm1920_vm0, %v10242_v58, %v1343_v57 }
 0x213   : > { %16249 = vst [vmem:[#allocation167_spill] sm:$0xff] %v10784_v25  ;;  %v2474_v62 = vcombine.high %v10778_v4, %v10784_v25  ;;  %v2201_v48 = vcombine.low %v1939_v2, %v1943_v61  ;;  %v2202_v32 = vcombine.high %v1939_v2, %v1943_v61  ;;  %1665 = vbcast.lane.b32.xlu1 %v1659_v0, 264 }
 0x214   : > { %1661 = vbcast.lane.b32.xlu0 %v1659_v0, 256  ;;  %v10808_v61 = vrot.slane %v2186_v56, %v10586_v51  ;;  %v1692_v2 = vrot.slane %v10700_v10, %v10058_v43 }
 0x215   : > { %v10796_v27 = vrot.slane %v2474_v62, %v10586_v51  ;;  %v10799_v52 = vrot.slane %v2201_v48, %v10586_v51  ;;  %v10802_v58 = vrot.slane %v2202_v32, %v10586_v51  ;;  %v1358_v39 = vpop.permute.xlu1 %1357  ;;  %v1354_v30 = vpop.permute.xlu0 %1353  ;;  %v1681_v48 = vrot.slane %v10700_v10, %v10034_v35 }
 0x216   : > { %v10826_v0 = vsel %vm1920_vm0, %v10245_v37, %v1358_v39  ;;  %v1945_v62 = vsel %vm1920_vm0, %v10247_v13, %v1354_v30  ;;  %v16253_v37 = vld [vmem:[#allocation42_spill] sm:$0xff] }
 0x217   : > { %v2537_v63 = vcombine.low %v10793_v1, %v10796_v27  ;;  %1676 = vbcast.lane.b32.xlu1 %v1670_v9, 264  ;;  %v2250_v32 = vcombine.high %v10805_v36, %v10799_v52  ;;  %16250 = vst [vmem:[#allocation168_spill] sm:$0xff] %v10826_v0 }
 0x218   : > { %1672 = vbcast.lane.b32.xlu0 %v1670_v9, 256  ;;  %v16252_v9 = vld [vmem:[#allocation44_spill] sm:$0xff] }
 0x219   : > { %v1369_v3 = vpop.permute.xlu1 %1368  ;;  %v1365_v57 = vpop.permute.xlu0 %1364 }
 0x21a   : > { %v10842_v39 = vsel %vm1920_vm0, %v16253_v37, %v1369_v3  ;;  %v1714_v3 = vrot.slane %v10700_v10, %v10066_v47  ;;  %v16261_v37 = vld [vmem:[#allocation35_spill] sm:$0xff] }
 0x21b   : > { %1687 = vbcast.lane.b32.xlu1 %v1681_v48, 264  ;;  %16254 = vst [vmem:[#allocation44_spill] sm:$0xff] %v10842_v39 }
 0x21c   : > { %1683 = vbcast.lane.b32.xlu0 %v1681_v48, 256 }
 0x21d   : > { %v1380_v38 = vpop.permute.xlu1 %1379  ;;  %v1376_v44 = vpop.permute.xlu0 %1375 }
 0x21e   : > { %v10832_v56 = vsel %vm1920_vm0, %v10255_v55, %v1380_v38  ;;  %v1949_v18 = vsel %vm1920_vm0, %v16252_v9, %v1376_v44  ;;  %v16255_v55 = vld [vmem:[#allocation43_spill] sm:$0xff]  ;;  %v16256_v44 = vld [vmem:[#allocation45_spill] sm:$0xff] }
 0x21f   : > { %16251 = vst [vmem:[#allocation169_spill] sm:$0xff] %v10832_v56  ;;  %v2490_v11 = vcombine.high %v10826_v0, %v10832_v56  ;;  %v2218_v48 = vcombine.high %v1945_v62, %v1949_v18  ;;  %1698 = vbcast.lane.b32.xlu1 %v1692_v2, 264  ;;  %v1947_v38 = vsel %vm1920_vm0, %v16255_v55, %v1365_v57  ;;  %v16282_v56 = vld [vmem:[#allocation52_spill] sm:$0xff] }
 0x220   : > { %1694 = vbcast.lane.b32.xlu0 %v1692_v2, 256  ;;  %v2217_v14 = vcombine.low %v1945_v62, %v1949_v18  ;;  %v2249_v57 = vcombine.low %v10805_v36, %v10799_v52  ;;  %v16259_v18 = vld [vmem:[#allocation34_spill] sm:$0xff] }
 0x221   : > { %v1391_v13 = vpop.permute.xlu1 %1390  ;;  %v1387_v30 = vpop.permute.xlu0 %1386  ;;  %v10859_v62 = vmul.f32 0.5, %v16259_v18  ;;  %v1725_v18 = vrot.slane %v10700_v10, %v10070_v49 }
 0x222   : > { %v10848_v9 = vsel %vm1920_vm0, %v16256_v44, %v1391_v13  ;;  %v1951_v17 = vsel %vm1920_vm0, %v16258_v41, %v1387_v30  ;;  %v10862_v13 = vmul.f32 0.5, %v16261_v37  ;;  %v2504_v41 = vrot.slane %v2490_v11, %v10586_v51 }
 0x223   : > { %16257 = vst [vmem:[#allocation42_spill] sm:$0xff] %v10848_v9  ;;  %v2506_v2 = vcombine.high %v10842_v39, %v10848_v9  ;;  %v2233_v24 = vcombine.low %v1947_v38, %v1951_v17  ;;  %v2234_v16 = vcombine.high %v1947_v38, %v1951_v17  ;;  %1709 = vbcast.lane.b32.xlu1 %v1703_v31, 264  ;;  %16260 = vst [vmem:[#allocation43_spill] sm:$0xff] %v10859_v62 }
 0x224   : > { %1705 = vbcast.lane.b32.xlu0 %v1703_v31, 256  ;;  %16262 = vst [vmem:[#allocation45_spill] sm:$0xff] %v10862_v13  ;;  %v2225_v4 = vrot.slane %v2217_v14, %v10586_v51  ;;  %v2232_v31 = vrot.slane %v2218_v48, %v10586_v51  ;;  %v1736_v11 = vrot.slane %v10700_v10, %v10074_v53 }
 0x225   : > { %v2520_v30 = vrot.slane %v2506_v2, %v10586_v51  ;;  %v2241_v17 = vrot.slane %v2233_v24, %v10586_v51  ;;  %v2248_v55 = vrot.slane %v2234_v16, %v10586_v51  ;;  %v1402_v38 = vpop.permute.xlu1 %1401  ;;  %v1398_v44 = vpop.permute.xlu0 %1397  ;;  %v10875_v16 = vrot.slane %v2537_v63, %v10669_v23 }
 0x226   : > { %v10878_v14 = vrot.slane %v2249_v57, %v10669_v23  ;;  %v10881_v48 = vrot.slane %v2250_v32, %v10669_v23  ;;  %v10885_v0 = vsub.f32 %v10859_v62, %v10862_v13  ;;  %v16267_v32 = vcombine.high %v10793_v1, %v10796_v27  ;;  %v16276_v27 = vld [vmem:[#allocation48_spill] sm:$0xff] }
 0x227   : > { %v2569_v52 = vcombine.low %v2504_v41, %v2520_v30  ;;  %v2570_v36 = vcombine.high %v2504_v41, %v2520_v30  ;;  %1720 = vbcast.lane.b32.xlu1 %v1714_v3, 264  ;;  %v2281_v2 = vcombine.low %v2225_v4, %v2241_v17  ;;  %v2282_v37 = vcombine.high %v2225_v4, %v2241_v17 }
 0x228   : > { %v2297_v24 = vcombine.low %v2232_v31, %v2248_v55  ;;  %v2298_v25 = vcombine.high %v2232_v31, %v2248_v55  ;;  %1716 = vbcast.lane.b32.xlu0 %v1714_v3, 256  ;;  %16263 = vst [vmem:[#allocation46_spill] sm:$0xff] %v10875_v16  ;;  %16264 = vst [vmem:[#allocation34_spill] sm:$0xff] %v10878_v14  ;;  %v10903_v57 = vrot.slane %v16267_v32, %v10669_v23 }
 0x229   : > { %v1413_v41 = vpop.permute.xlu1 %1412  ;;  %v1409_v30 = vpop.permute.xlu0 %1408  ;;  %v10888_v10 = vrot.slane %v2281_v2, %v10669_v23  ;;  %v10891_v4 = vrot.slane %v2282_v37, %v10669_v23  ;;  %v16269_v17 = vcombine.low %v10808_v61, %v10802_v58  ;;  %v16270_v31 = vcombine.high %v10808_v61, %v10802_v58  ;;  %v16277_v37 = vld [vmem:[#allocation53_spill] sm:$0xff] }
 0x22a   : > { %v10894_v63 = vrot.slane %v2297_v24, %v10669_v23  ;;  %v10897_v3 = vrot.slane %v2298_v25, %v10669_v23  ;;  %16268 = vst [vmem:[#allocation171_spill] sm:$0xff] %v10903_v57  ;;  %v10918_v25 = vrot.slane %v2569_v52, %v10669_v23  ;;  %v10921_v1 = vrot.slane %v2570_v36, %v10669_v23  ;;  %v16279_v52 = vld [vmem:[#allocation54_spill] sm:$0xff] }
 0x22b   : > { %16265 = vst [vmem:[#allocation35_spill] sm:$0xff] %v10888_v10  ;;  %v10909_v55 = vrot.slane %v16269_v17, %v10669_v23  ;;  %v10915_v2 = vrot.slane %v16270_v31, %v10669_v23  ;;  %1731 = vbcast.lane.b32.xlu1 %v1725_v18, 264  ;;  %v16274_v17 = vld [vmem:[#allocation47_spill] sm:$0xff]  ;;  %v1953_v24 = vsel %vm1920_vm0, %v16276_v27, %v1398_v44  ;;  %v16285_v44 = vld [vmem:[#allocation56_spill] sm:$0xff] }
 0x22c   : > { %16266 = vst [vmem:[#allocation170_spill] sm:$0xff] %v10897_v3  ;;  %16272 = vst [vmem:[#allocation173_spill] sm:$0xff] %v10918_v25  ;;  %1727 = vbcast.lane.b32.xlu0 %v1725_v18, 256  ;;  %v10939_v31 = vsel %vm1920_vm0, %v16274_v17, %v1402_v38  ;;  %v1747_v18 = vrot.slane %v10885_v0, %v9996_v22  ;;  %v16283_v38 = vld [vmem:[#allocation55_spill] sm:$0xff]  ;;  %v16288_v25 = vld [vmem:[#allocation58_spill] sm:$0xff] }
 0x22d   : > { %16271 = vst [vmem:[#allocation172_spill] sm:$0xff] %v10915_v2  ;;  %16273 = vst [vmem:[#allocation174_spill] sm:$0xff] %v10921_v1  ;;  %v1424_v58 = vpop.permute.xlu1 %1423  ;;  %v1420_v61 = vpop.permute.xlu0 %1419  ;;  %v16291_v3 = vld [vmem:[#allocation62_spill] sm:$0xff] }
 0x22e   : > { %16275 = vst [vmem:[#allocation47_spill] sm:$0xff] %v10939_v31  ;;  %v10945_v13 = vsel %vm1920_vm0, %v16277_v37, %v1424_v58  ;;  %v1957_v32 = vsel %vm1920_vm0, %v16279_v52, %v1420_v61  ;;  %v16280_v58 = vld [vmem:[#allocation51_spill] sm:$0xff] }
 0x22f   : > { %16278 = vst [vmem:[#allocation48_spill] sm:$0xff] %v10945_v13  ;;  %v2866_v36 = vcombine.high %v10939_v31, %v10945_v13  ;;  %v2594_v62 = vcombine.high %v1953_v24, %v1957_v32  ;;  %1742 = vbcast.lane.b32.xlu1 %v1736_v11, 264  ;;  %v10963_v61 = vsel %vm1920_vm0, %v16280_v58, %v1413_v41 }
 0x230   : > { %1738 = vbcast.lane.b32.xlu0 %v1736_v11, 256  ;;  %16281 = vst [vmem:[#allocation53_spill] sm:$0xff] %v10963_v61  ;;  %v1955_v11 = vsel %vm1920_vm0, %v16282_v56, %v1409_v30  ;;  %v2593_v39 = vcombine.low %v1953_v24, %v1957_v32  ;;  %v1758_v41 = vrot.slane %v10885_v0, %v9993_v21 }
 0x231   : > { %v1435_v52 = vpop.permute.xlu1 %1434  ;;  %v1431_v17 = vpop.permute.xlu0 %1430  ;;  %v10978_v56 = vrot.slane %v2866_v36, %v10586_v51  ;;  %v10993_v58 = vrot.slane %v2594_v62, %v10586_v51  ;;  %v16286_v36 = vld [vmem:[#allocation57_spill] sm:$0xff]  ;;  %v1791_v13 = vrot.slane %v10885_v0, %v10062_v45 }
 0x232   : > { %v10969_v9 = vsel %vm1920_vm0, %v16283_v38, %v1435_v52  ;;  %v1959_v27 = vsel %vm1920_vm0, %v16285_v44, %v1431_v17  ;;  %v1780_v17 = vrot.slane %v10885_v0, %v10058_v43  ;;  %v16289_v62 = vld [vmem:[#allocation61_spill] sm:$0xff] }
 0x233   : > { %16284 = vst [vmem:[#allocation54_spill] sm:$0xff] %v10969_v9  ;;  %v2882_v37 = vcombine.high %v10963_v61, %v10969_v9  ;;  %v2609_v1 = vcombine.low %v1955_v11, %v1959_v27  ;;  %v2610_v57 = vcombine.high %v1955_v11, %v1959_v27  ;;  %1753 = vbcast.lane.b32.xlu1 %v1747_v18, 264 }
 0x234   : > { %1749 = vbcast.lane.b32.xlu0 %v1747_v18, 256  ;;  %v10990_v27 = vrot.slane %v2593_v39, %v10586_v51 }
 0x235   : > { %v10981_v30 = vrot.slane %v2882_v37, %v10586_v51  ;;  %v10984_v24 = vrot.slane %v2609_v1, %v10586_v51  ;;  %v10987_v32 = vrot.slane %v2610_v57, %v10586_v51  ;;  %v1446_v38 = vpop.permute.xlu1 %1445  ;;  %v1442_v44 = vpop.permute.xlu0 %1441  ;;  %v1769_v1 = vrot.slane %v10885_v0, %v10034_v35 }
 0x236   : > { %v11011_v39 = vsel %vm1920_vm0, %v16286_v36, %v1446_v38  ;;  %v9514_v38 = vld [vmem:[%s9936_s7 + $0x38] sm:$0xff]  ;;  %s9745_s7 = smov 30  }
 0x237   : > { %1764 = vbcast.lane.b32.xlu1 %v1758_v41, 264  ;;  %v2658_v57 = vcombine.high %v10990_v27, %v10984_v24  ;;  %16287 = vst [vmem:[#allocation51_spill] sm:$0xff] %v11011_v39  ;;  %v9515_v36 = vld [vmem:[%s9944_s9 + $0x38] sm:$0xff]  ;;  %s9415_s9 = sshll.u32 %s9713_s18, 10 }
 0x238   : > { %1760 = vbcast.lane.b32.xlu0 %v1758_v41, 256  ;;  %v1961_v41 = vsel %vm1920_vm0, %v16288_v25, %v1442_v44  ;;  %v423_v61 = vadd.f32 %v9515_v36, %v9514_v38  ;;  %v9516_v25 = vld [vmem:[%s9951_s23 + $0x38] sm:$0xff]  ;;  %s15668_s18 = scalar_lea.hbm %s15724_s4, %s9415_s9 }
 0x239   : > { %v1457_v37 = vpop.permute.xlu1 %1456  ;;  %v1453_v52 = vpop.permute.xlu0 %1452  ;;  %v9517_v44 = vld [vmem:[%s9955_s22 + $0x38] sm:$0xff]  ;;  %s9203_s22 = scalar_lea.sflag [#allocation4], %s9929_s29 }
 0x23a   : > { %v455_v9 = vadd.f32 %v9517_v44, %v9516_v25 }
 0x23b   : > { %1775 = vbcast.lane.b32.xlu1 %v1769_v1, 264 }
 0x23c   : > { %1771 = vbcast.lane.b32.xlu0 %v1769_v1, 256 }
 0x23d   : > { %v1468_v11 = vpop.permute.xlu1 %1467  ;;  %v1464_v18 = vpop.permute.xlu0 %1463 }
 0x23e   : > { %v11017_v16 = vsel %vm1920_vm0, %v16289_v62, %v1468_v11  ;;  %v1965_v2 = vsel %vm1920_vm0, %v16291_v3, %v1464_v18  ;;  %v16292_v62 = vld [vmem:[#allocation59_spill] sm:$0xff] }
 0x23f   : > { %16290 = vst [vmem:[#allocation52_spill] sm:$0xff] %v11017_v16  ;;  %v2898_v1 = vcombine.high %v11011_v39, %v11017_v16  ;;  %v2626_v31 = vcombine.high %v1961_v41, %v1965_v2  ;;  %1786 = vbcast.lane.b32.xlu1 %v1780_v17, 264  ;;  %v11031_v11 = vsel %vm1920_vm0, %v16292_v62, %v1457_v37 }
 0x240   : > { %1782 = vbcast.lane.b32.xlu0 %v1780_v17, 256  ;;  %16293 = vst [vmem:[#allocation55_spill] sm:$0xff] %v11031_v11  ;;  %v1963_v39 = vsel %vm1920_vm0, %v16294_v50, %v1453_v52  ;;  %v2625_v16 = vcombine.low %v1961_v41, %v1965_v2  ;;  %v16297_v17 = vld [vmem:[#allocation64_spill] sm:$0xff]  ;;  %v1802_v37 = vrot.slane %v10885_v0, %v10066_v47  ;;  %v11047_v2 = vmul.f32 0.5, %v423_v61 }
 0x241   : > { %v1479_v3 = vpop.permute.xlu1 %1478  ;;  %v1475_v18 = vpop.permute.xlu0 %1474  ;;  %v2657_v50 = vcombine.low %v10990_v27, %v10984_v24  ;;  %v2912_v52 = vrot.slane %v2898_v1, %v10586_v51  ;;  %v1824_v61 = vrot.slane %v10885_v0, %v10074_v53 }
 0x242   : > { %v11037_v12 = vsel %vm1920_vm0, %v16295_v5, %v1479_v3  ;;  %v1967_v38 = vsel %vm1920_vm0, %v16297_v17, %v1475_v18  ;;  %16298 = vst [vmem:[#allocation57_spill] sm:$0xff] %v11047_v2  ;;  %v11049_v5 = vmul.f32 0.5, %v455_v9  ;;  %v2633_v17 = vrot.slane %v2625_v16, %v10586_v51 }
 0x243   : > { %16296 = vst [vmem:[#allocation56_spill] sm:$0xff] %v11037_v12  ;;  %v2914_v36 = vcombine.high %v11031_v11, %v11037_v12  ;;  %v2641_v25 = vcombine.low %v1963_v39, %v1967_v38  ;;  %v2642_v44 = vcombine.high %v1963_v39, %v1967_v38  ;;  %1797 = vbcast.lane.b32.xlu1 %v1791_v13, 264 }
 0x244   : > { %1793 = vbcast.lane.b32.xlu0 %v1791_v13, 256  ;;  %16299 = vst [vmem:[#allocation58_spill] sm:$0xff] %v11049_v5  ;;  %v2640_v38 = vrot.slane %v2626_v31, %v10586_v51  ;;  %v1813_v9 = vrot.slane %v10885_v0, %v10070_v49  ;;  %v16300_v16 = vcombine.low %v10978_v56, %v10981_v30 }
 0x245   : > { %v2928_v41 = vrot.slane %v2914_v36, %v10586_v51  ;;  %v2649_v62 = vrot.slane %v2641_v25, %v10586_v51  ;;  %v2656_v39 = vrot.slane %v2642_v44, %v10586_v51  ;;  %v1490_v3 = vpop.permute.xlu1 %1489  ;;  %v1486_v18 = vpop.permute.xlu0 %1485  ;;  %v11068_v31 = vrot.slane %v2657_v50, %v10669_v23 }
 0x246   : > { %v11065_v44 = vrot.slane %v16300_v16, %v10669_v23  ;;  %v11075_v0 = vsub.f32 %v11047_v2, %v11049_v5 }
 0x247   : > { %v2977_v24 = vcombine.low %v2912_v52, %v2928_v41  ;;  %v2978_v13 = vcombine.high %v2912_v52, %v2928_v41  ;;  %1808 = vbcast.lane.b32.xlu1 %v1802_v37, 264  ;;  %v2689_v27 = vcombine.low %v2633_v17, %v2649_v62  ;;  %v2690_v1 = vcombine.high %v2633_v17, %v2649_v62 }
 0x248   : > { %v2705_v36 = vcombine.low %v2640_v38, %v2656_v39  ;;  %v2706_v25 = vcombine.high %v2640_v38, %v2656_v39  ;;  %1804 = vbcast.lane.b32.xlu0 %v1802_v37, 256  ;;  %16301 = vst [vmem:[#allocation61_spill] sm:$0xff] %v11065_v44  ;;  %16302 = vst [vmem:[#allocation62_spill] sm:$0xff] %v11068_v31  ;;  %v11071_v52 = vrot.slane %v2658_v57, %v10669_v23 }
 0x249   : > { %v1501_v41 = vpop.permute.xlu1 %1500  ;;  %v1497_v11 = vpop.permute.xlu0 %1496  ;;  %v11078_v37 = vrot.slane %v2689_v27, %v10669_v23  ;;  %v11081_v62 = vrot.slane %v2690_v1, %v10669_v23  ;;  %v16304_v57 = vcombine.high %v10978_v56, %v10981_v30  ;;  %v16306_v38 = vcombine.low %v10993_v58, %v10987_v32 }
 0x24a   : > { %v11084_v39 = vrot.slane %v2705_v36, %v10669_v23  ;;  %v11087_v50 = vrot.slane %v2706_v25, %v10669_v23  ;;  %v16307_v1 = vcombine.high %v10993_v58, %v10987_v32  ;;  %v11108_v25 = vrot.slane %v2977_v24, %v10669_v23 }
 0x24b   : > { %16303 = vst [vmem:[#allocation59_spill] sm:$0xff] %v11078_v37  ;;  %v11093_v17 = vrot.slane %v16304_v57, %v10669_v23  ;;  %v11099_v27 = vrot.slane %v16306_v38, %v10669_v23  ;;  %1819 = vbcast.lane.b32.xlu1 %v1813_v9, 264  ;;  %v11111_v56 = vrot.slane %v2978_v13, %v10669_v23 }
 0x24c   : > { %v11105_v36 = vrot.slane %v16307_v1, %v10669_v23  ;;  %16308 = vst [vmem:[#allocation63_spill] sm:$0xff] %v11108_v25  ;;  %1815 = vbcast.lane.b32.xlu0 %v1813_v9, 256  ;;  %v11129_v1 = vsel %vm1920_vm0, %v10319_v59, %v1490_v3  ;;  %v1969_v57 = vsel %vm1920_vm0, %v10321_v60, %v1486_v18  ;;  %v16313_v59 = vld [vmem:[#allocation67_spill] sm:$0xff]  ;;  %v16315_v60 = vld [vmem:[#allocation68_spill] sm:$0xff] }
 0x24d   : > { %16305 = vst [vmem:[#allocation60_spill] sm:$0xff] %v11093_v17  ;;  %16309 = vst [vmem:[#allocation64_spill] sm:$0xff] %v11111_v56  ;;  %v1512_v32 = vpop.permute.xlu1 %1511  ;;  %v1508_v58 = vpop.permute.xlu0 %1507  ;;  %v1835_v9 = vrot.slane %v11075_v0, %v9996_v22  ;;  %v11153_v3 = vsel %vm1920_vm0, %v10328_v33, %v1501_v41  ;;  %v1846_v33 = vrot.slane %v11075_v0, %v9993_v21  ;;  %v16318_v21 = vld [vmem:[#allocation70_spill] sm:$0xff]  ;;  %v16319_v56 = vld [vmem:[#allocation73_spill] sm:$0xff] }
 0x24e   : > { %16310 = vst [vmem:[#allocation175_spill] sm:$0xff] %v11129_v1  ;;  %v11135_v16 = vsel %vm1920_vm0, %v10335_v54, %v1512_v32  ;;  %v1973_v38 = vsel %vm1920_vm0, %v10337_v15, %v1508_v58  ;;  %16312 = vst [vmem:[#allocation177_spill] sm:$0xff] %v11153_v3  ;;  %v1879_v17 = vrot.slane %v11075_v0, %v10062_v45 }
 0x24f   : > { %16311 = vst [vmem:[#allocation176_spill] sm:$0xff] %v11135_v16  ;;  %v3002_v13 = vcombine.high %v11129_v1, %v11135_v16  ;;  %v2730_v24 = vcombine.high %v1969_v57, %v1973_v38  ;;  %1830 = vbcast.lane.b32.xlu1 %v1824_v61, 264  ;;  %v2729_v58 = vcombine.low %v1969_v57, %v1973_v38  ;;  %v16327_v1 = vld [vmem:[#allocation76_spill] sm:$0xff] }
 0x250   : > { %1826 = vbcast.lane.b32.xlu0 %v1824_v61, 256  ;;  %v1971_v61 = vsel %vm1920_vm0, %v10330_v20, %v1497_v11 }
 0x251   : > { %v1523_v18 = vpop.permute.xlu1 %1522  ;;  %v1519_v32 = vpop.permute.xlu0 %1518  ;;  %v11168_v20 = vrot.slane %v3002_v13, %v10586_v51  ;;  %v16316_v13 = vld [vmem:[#allocation69_spill] sm:$0xff] }
 0x252   : > { %v11159_v30 = vsel %vm1920_vm0, %v16313_v59, %v1523_v18  ;;  %v1975_v54 = vsel %vm1920_vm0, %v16315_v60, %v1519_v32  ;;  %v2737_v60 = vrot.slane %v2729_v58, %v10586_v51 }
 0x253   : > { %16314 = vst [vmem:[#allocation67_spill] sm:$0xff] %v11159_v30  ;;  %v3018_v15 = vcombine.high %v11153_v3, %v11159_v30  ;;  %v2745_v5 = vcombine.low %v1971_v61, %v1975_v54  ;;  %v2746_v2 = vcombine.high %v1971_v61, %v1975_v54  ;;  %1841 = vbcast.lane.b32.xlu1 %v1835_v9, 264 }
 0x254   : > { %1837 = vbcast.lane.b32.xlu0 %v1835_v9, 256  ;;  %v11181_v54 = vrot.slane %v2730_v24, %v10586_v51  ;;  %v1868_v61 = vrot.slane %v11075_v0, %v10058_v43 }
 0x255   : > { %v11171_v11 = vrot.slane %v3018_v15, %v10586_v51  ;;  %v11174_v41 = vrot.slane %v2745_v5, %v10586_v51  ;;  %v11177_v57 = vrot.slane %v2746_v2, %v10586_v51  ;;  %v1534_v38 = vpop.permute.xlu1 %1533  ;;  %v1530_v59 = vpop.permute.xlu0 %1529  ;;  %v1857_v5 = vrot.slane %v11075_v0, %v10034_v35 }
 0x256   : > { %v11198_v35 = vsel %vm1920_vm0, %v16316_v13, %v1534_v38  ;;  %v1977_v22 = vsel %vm1920_vm0, %v16318_v21, %v1530_v59  ;;  %v16322_v13 = vld [vmem:[#allocation71_spill] sm:$0xff] }
 0x257   : > { %1852 = vbcast.lane.b32.xlu1 %v1846_v33, 264  ;;  %v2794_v2 = vcombine.high %v2737_v60, %v11174_v41  ;;  %v2809_v15 = vcombine.low %v11181_v54, %v11177_v57  ;;  %v2810_v18 = vcombine.high %v11181_v54, %v11177_v57  ;;  %16317 = vst [vmem:[#allocation68_spill] sm:$0xff] %v11198_v35 }
 0x258   : > { %1848 = vbcast.lane.b32.xlu0 %v1846_v33, 256  ;;  %v16321_v33 = vld [vmem:[#allocation74_spill] sm:$0xff] }
 0x259   : > { %v1545_v24 = vpop.permute.xlu1 %1544  ;;  %v1541_v32 = vpop.permute.xlu0 %1540 }
 0x25a   : > { %v11214_v21 = vsel %vm1920_vm0, %v16322_v13, %v1545_v24  ;;  %v1890_v24 = vrot.slane %v11075_v0, %v10066_v47 }
 0x25b   : > { %1863 = vbcast.lane.b32.xlu1 %v1857_v5, 264  ;;  %16323 = vst [vmem:[#allocation70_spill] sm:$0xff] %v11214_v21 }
 0x25c   : > { %1859 = vbcast.lane.b32.xlu0 %v1857_v5, 256 }
 0x25d   : > { %v1556_v58 = vpop.permute.xlu1 %1555  ;;  %v1552_v9 = vpop.permute.xlu0 %1551 }
 0x25e   : > { %v11204_v57 = vsel %vm1920_vm0, %v16319_v56, %v1556_v58  ;;  %v1981_v54 = vsel %vm1920_vm0, %v16321_v33, %v1552_v9  ;;  %v16324_v56 = vld [vmem:[#allocation75_spill] sm:$0xff]  ;;  %v16326_v33 = vld [vmem:[#allocation72_spill] sm:$0xff] }
 0x25f   : > { %16320 = vst [vmem:[#allocation69_spill] sm:$0xff] %v11204_v57  ;;  %v3034_v43 = vcombine.high %v11198_v35, %v11204_v57  ;;  %v2762_v5 = vcombine.high %v1977_v22, %v1981_v54  ;;  %1874 = vbcast.lane.b32.xlu1 %v1868_v61, 264  ;;  %v2761_v59 = vcombine.low %v1977_v22, %v1981_v54 }
 0x260   : > { %1870 = vbcast.lane.b32.xlu0 %v1868_v61, 256  ;;  %v1979_v25 = vsel %vm1920_vm0, %v16326_v33, %v1541_v32  ;;  %v2793_v54 = vcombine.low %v2737_v60, %v11174_v41 }
 0x261   : > { %v1567_v38 = vpop.permute.xlu1 %1566  ;;  %v1563_v9 = vpop.permute.xlu0 %1562  ;;  %v2769_v33 = vrot.slane %v2761_v59, %v10586_v51  ;;  %v2776_v45 = vrot.slane %v2762_v5, %v10586_v51  ;;  %v11241_v5 = vrot.slane %v2794_v2, %v10669_v23  ;;  %v11259_v2 = vrot.slane %v2810_v18, %v10669_v23 }
 0x262   : > { %v11218_v58 = vsel %vm1920_vm0, %v16324_v56, %v1567_v38  ;;  %v1983_v61 = vsel %vm1920_vm0, %v16327_v1, %v1563_v9  ;;  %v3048_v38 = vrot.slane %v3034_v43, %v10586_v51  ;;  %v11238_v60 = vrot.slane %v2793_v54, %v10669_v23 }
 0x263   : > { %16325 = vst [vmem:[#allocation73_spill] sm:$0xff] %v11218_v58  ;;  %v3050_v44 = vcombine.high %v11214_v21, %v11218_v58  ;;  %1885 = vbcast.lane.b32.xlu1 %v1879_v17, 264  ;;  %v2777_v13 = vcombine.low %v1979_v25, %v1983_v61  ;;  %v2778_v22 = vcombine.high %v1979_v25, %v1983_v61  ;;  %16331 = vst [vmem:[#allocation72_spill] sm:$0xff] %v11259_v2  ;;  %v16384_v58 = vld [vmem:[#allocation104_spill] sm:$0xff]  ;;  %v16388_v2 = vld [vmem:[#allocation105_spill] sm:$0xff] }
 0x264   : > { %1881 = vbcast.lane.b32.xlu0 %v1879_v17, 256  ;;  %v1901_v17 = vrot.slane %v11075_v0, %v10070_v49  ;;  %16328 = vst [vmem:[#allocation74_spill] sm:$0xff] %v11238_v60 }
 0x265   : > { %v3064_v56 = vrot.slane %v3050_v44, %v10586_v51  ;;  %v1578_v32 = vpop.permute.xlu1 %1577  ;;  %v2785_v1 = vrot.slane %v2777_v13, %v10586_v51  ;;  %v2792_v9 = vrot.slane %v2778_v22, %v10586_v51 }
 0x266   : > { %v1574_v16 = vpop.permute.xlu0 %1573 }
 0x267   : > { %v3113_v47 = vcombine.low %v3048_v38, %v3064_v56  ;;  %v3114_v35 = vcombine.high %v3048_v38, %v3064_v56  ;;  %1896 = vbcast.lane.b32.xlu1 %v1890_v24, 264  ;;  %v2825_v25 = vcombine.low %v2769_v33, %v2785_v1  ;;  %v2826_v43 = vcombine.high %v2769_v33, %v2785_v1 }
 0x268   : > { %v2841_v41 = vcombine.low %v2776_v45, %v2792_v9  ;;  %v2842_v44 = vcombine.high %v2776_v45, %v2792_v9  ;;  %1892 = vbcast.lane.b32.xlu0 %v1890_v24, 256  ;;  %v11256_v24 = vrot.slane %v2809_v15, %v10669_v23  ;;  %v1912_v56 = vrot.slane %v11075_v0, %v10074_v53 }
 0x269   : > { %v1589_v59 = vpop.permute.xlu1 %1588  ;;  %v11244_v61 = vrot.slane %v2825_v25, %v10669_v23  ;;  %v11247_v13 = vrot.slane %v2826_v43, %v10669_v23  ;;  %v11262_v54 = vrot.slane %v3113_v47, %v10669_v23  ;;  %v11267_v33 = vrot.slane %v3114_v35, %v10669_v23  ;;  %v16341_v47 = vld [vmem:[#allocation78_spill] sm:$0xff] }
 0x26a   : > { %v11250_v22 = vrot.slane %v2841_v41, %v10669_v23  ;;  %v11253_v38 = vrot.slane %v2842_v44, %v10669_v23  ;;  %v1585_v45 = vpop.permute.xlu0 %1584  ;;  %v16334_v25 = vcombine.low %v11168_v20, %v11171_v11  ;;  %v16336_v41 = vld [vmem:[#allocation77_spill] sm:$0xff]  ;;  %v16339_v35 = vcombine.high %v11168_v20, %v11171_v11 }
 0x26b   : > { %16329 = vst [vmem:[#allocation71_spill] sm:$0xff] %v11244_v61  ;;  %16332 = vst [vmem:[#allocation76_spill] sm:$0xff] %v11262_v54  ;;  %1907 = vbcast.lane.b32.xlu1 %v1901_v17, 264  ;;  %v11291_v44 = vsel %vm1920_vm0, %v16336_v41, %v1578_v32  ;;  %v1985_v18 = vsel %vm1920_vm0, %v16341_v47, %v1574_v16  ;;  %v2178_v15 = vcombine.high %v10693_v8, %v10703_v7  ;;  %v16347_v47 = vld [vmem:[#allocation84_spill] sm:$0xff] }
 0x26c   : > { %16330 = vst [vmem:[#allocation75_spill] sm:$0xff] %v11253_v38  ;;  %16333 = vst [vmem:[#allocation178_spill] sm:$0xff] %v11267_v33  ;;  %1903 = vbcast.lane.b32.xlu0 %v1901_v17, 256  ;;  %v11287_v43 = vrot.slane %v16334_v25, %v10669_v23  ;;  %v11301_v17 = vrot.slane %v16339_v35, %v10669_v23  ;;  %v16344_v35 = vld [vmem:[#allocation83_spill] sm:$0xff]  ;;  %v16358_v54 = vld [vmem:[#allocation88_spill] sm:$0xff] }
 0x26d   : > { %v1600_v9 = vpop.permute.xlu1 %1599  ;;  %16337 = vst [vmem:[#allocation77_spill] sm:$0xff] %v11291_v44  ;;  %v16354_v33 = vld [vmem:[#allocation87_spill] sm:$0xff]  ;;  %v16386_v38 = vld [vmem:[#allocation108_spill] sm:$0xff] }
 0x26e   : > { %16335 = vst [vmem:[#allocation179_spill] sm:$0xff] %v11287_v43  ;;  %v11295_v1 = vsel %vm1920_vm0, %v10383_v46, %v1600_v9  ;;  %v1596_v0 = vpop.permute.xlu0 %1595  ;;  %16340 = vst [vmem:[#allocation181_spill] sm:$0xff] %v11301_v17  ;;  %v2314_v9 = vcombine.high %v10878_v14, %v10888_v10  ;;  %v16346_v10 = vld [vmem:[#allocation82_spill] sm:$0xff]  ;;  %v16356_v17 = vld [vmem:[#allocation91_spill] sm:$0xff] }
 0x26f   : > { %16338 = vst [vmem:[#allocation180_spill] sm:$0xff] %v11295_v1  ;;  %v3410_v25 = vcombine.high %v11291_v44, %v11295_v1  ;;  %v1989_v32 = vsel %vm1920_vm0, %v10385_v42, %v1596_v0  ;;  %1918 = vbcast.lane.b32.xlu1 %v1912_v56, 264  ;;  %v16342_v42 = vld [vmem:[#allocation81_spill] sm:$0xff]  ;;  %v1987_v14 = vsel %vm1920_vm0, %v16346_v10, %v1585_v45  ;;  %v16359_v43 = vld [vmem:[#allocation92_spill] sm:$0xff] }
 0x270   : > { %v3138_v41 = vcombine.high %v1985_v18, %v1989_v32  ;;  %1914 = vbcast.lane.b32.xlu0 %v1912_v56, 256  ;;  %v11321_v0 = vsel %vm1920_vm0, %v16342_v42, %v1589_v59  ;;  %v3137_v56 = vcombine.low %v1985_v18, %v1989_v32  ;;  %v2722_v45 = vcombine.high %v11068_v31, %v11078_v37  ;;  %v16350_v37 = vld [vmem:[#allocation89_spill] sm:$0xff] }
 0x271   : > { %v1611_v11 = vpop.permute.xlu1 %1610  ;;  %16343 = vst [vmem:[#allocation78_spill] sm:$0xff] %v11321_v0  ;;  %v11338_v32 = vrot.slane %v3410_v25, %v10586_v51 }
 0x272   : > { %v11325_v46 = vsel %vm1920_vm0, %v16344_v35, %v1611_v11  ;;  %v1607_v20 = vpop.permute.xlu0 %1606 }
 0x273   : > { %16345 = vst [vmem:[#allocation81_spill] sm:$0xff] %v11325_v46  ;;  %v3426_v16 = vcombine.high %v11321_v0, %v11325_v46  ;;  %v1991_v53 = vsel %vm1920_vm0, %v16347_v47, %v1607_v20  ;;  %4235 = vrot.lane.b32.xlu1 %v2314_v9, %s9731_s21  ;;  %v2858_v20 = vcombine.high %v11238_v60, %v11244_v61 }
 0x274   : > { %v3153_v59 = vcombine.low %v1987_v14, %v1991_v53  ;;  %v3154_v18 = vcombine.high %v1987_v14, %v1991_v53  ;;  %4233 = vrot.lane.b32.xlu0 %v2178_v15, %s9731_s21  ;;  %v3145_v47 = vrot.slane %v3137_v56, %v10586_v51  ;;  %v3152_v9 = vrot.slane %v3138_v41, %v10586_v51 }
 0x275   : > { %v11341_v11 = vrot.slane %v3426_v16, %v10586_v51  ;;  %v1622_v10 = vpop.permute.xlu1 %1621  ;;  %v16352_v16 = vld [vmem:[#allocation86_spill] sm:$0xff] }
 0x276   : > { %v3161_v53 = vrot.slane %v3153_v59, %v10586_v51  ;;  %v3168_v14 = vrot.slane %v3154_v18, %v10586_v51  ;;  %v1618_v15 = vpop.permute.xlu0 %1617  ;;  %v16348_v59 = vld [vmem:[#allocation85_spill] sm:$0xff] }
 0x277   : > { %v3489_v25 = vcombine.low %v11338_v32, %v11341_v11  ;;  %4239 = vrot.lane.b32.xlu1 %v2858_v20, %s9731_s21  ;;  %v11359_v18 = vsel %vm1920_vm0, %v16348_v59, %v1622_v10  ;;  %v1993_v20 = vsel %vm1920_vm0, %v16352_v16, %v1618_v15 }
 0x278   : > { %v3202_v42 = vcombine.high %v3145_v47, %v3161_v53  ;;  %v3217_v35 = vcombine.low %v3152_v9, %v3168_v14  ;;  %v3218_v61 = vcombine.high %v3152_v9, %v3168_v14  ;;  %4237 = vrot.lane.b32.xlu0 %v2722_v45, %s9731_s21  ;;  %16349 = vst [vmem:[#allocation83_spill] sm:$0xff] %v11359_v18  ;;  %v16353_v14 = vld [vmem:[#allocation90_spill] sm:$0xff] }
 0x279   : > { %v1633_v56 = vpop.permute.xlu1 %1632  ;;  %v3201_v3 = vcombine.low %v3145_v47, %v3161_v53 }
 0x27a   : > { %v1629_v41 = vpop.permute.xlu0 %1628  ;;  %v11373_v10 = vsel %vm1920_vm0, %v16354_v33, %v1633_v56 }
 0x27b   : > { %16355 = vst [vmem:[#allocation84_spill] sm:$0xff] %v11373_v10  ;;  %v1995_v15 = vsel %vm1920_vm0, %v16358_v54, %v1629_v41  ;;  %v11392_v53 = vrot.slane %v3201_v3, %v10669_v23 }
 0x27d   : > { %v1644_v60 = vpop.permute.xlu1 %1643  ;;  %16360 = vst [vmem:[#allocation89_spill] sm:$0xff] %v11392_v53 }
 0x27e   : > { %v11363_v31 = vsel %vm1920_vm0, %v16350_v37, %v1644_v60  ;;  %v1640_v7 = vpop.permute.xlu0 %1639 }
 0x27f   : > { %16351 = vst [vmem:[#allocation82_spill] sm:$0xff] %v11363_v31  ;;  %v3442_v9 = vcombine.high %v11359_v18, %v11363_v31  ;;  %v1997_v45 = vsel %vm1920_vm0, %v16353_v14, %v1640_v7 }
 0x280   : > { %v3170_v8 = vcombine.high %v1993_v20, %v1997_v45  ;;  %v3169_v59 = vcombine.low %v1993_v20, %v1997_v45 }
 0x281   : > { %v1655_v49 = vpop.permute.xlu1 %1654  ;;  %v3456_v33 = vrot.slane %v3442_v9, %v10586_v51  ;;  %v11395_v9 = vrot.slane %v3202_v42, %v10669_v23  ;;  %v11413_v42 = vrot.slane %v3489_v25, %v10669_v23 }
 0x282   : > { %v11377_v37 = vsel %vm1920_vm0, %v16356_v17, %v1655_v49  ;;  %v1651_v60 = vpop.permute.xlu0 %1650  ;;  %v3177_v49 = vrot.slane %v3169_v59, %v10586_v51  ;;  %v3184_v17 = vrot.slane %v3170_v8, %v10586_v51  ;;  %v11398_v59 = vrot.slane %v3217_v35, %v10669_v23 }
 0x283   : > { %16357 = vst [vmem:[#allocation85_spill] sm:$0xff] %v11377_v37  ;;  %v3458_v16 = vcombine.high %v11373_v10, %v11377_v37  ;;  %v1999_v7 = vsel %vm1920_vm0, %v16359_v43, %v1651_v60  ;;  %16362 = vst [vmem:[#allocation90_spill] sm:$0xff] %v11413_v42  ;;  %v11416_v35 = vrot.slane %v3218_v61, %v10669_v23  ;;  %v16432_v37 = vld [vmem:[#allocation134_spill] sm:$0xff] }
 0x284   : > { %v3185_v14 = vcombine.low %v1995_v15, %v1999_v7  ;;  %v3186_v57 = vcombine.high %v1995_v15, %v1999_v7 }
 0x285   : > { %v3472_v56 = vrot.slane %v3458_v16, %v10586_v51  ;;  %v1666_v20 = vpop.permute.xlu1 %1665 }
 0x286   : > { %v3193_v54 = vrot.slane %v3185_v14, %v10586_v51  ;;  %v3200_v41 = vrot.slane %v3186_v57, %v10586_v51  ;;  %v1662_v45 = vpop.permute.xlu0 %1661 }
 0x287   : > { %v3521_v30 = vcombine.low %v3456_v33, %v3472_v56  ;;  %v3522_v21 = vcombine.high %v3456_v33, %v3472_v56 }
 0x288   : > { %v3233_v43 = vcombine.low %v3177_v49, %v3193_v54  ;;  %v3234_v60 = vcombine.high %v3177_v49, %v3193_v54  ;;  %v3249_v15 = vcombine.low %v3184_v17, %v3200_v41  ;;  %v3250_v47 = vcombine.high %v3184_v17, %v3200_v41 }
 0x289   : > { %v1677_v8 = vpop.permute.xlu1 %1676  ;;  %v11419_v33 = vrot.slane %v3521_v30, %v10669_v23  ;;  %v11422_v56 = vrot.slane %v3522_v21, %v10669_v23  ;;  %v16370_v21 = vld [vmem:[#allocation94_spill] sm:$0xff] }
 0x28a   : > { %v11401_v16 = vrot.slane %v3233_v43, %v10669_v23  ;;  %v11404_v57 = vrot.slane %v3234_v60, %v10669_v23  ;;  %v11407_v7 = vrot.slane %v3249_v15, %v10669_v23  ;;  %v11410_v14 = vrot.slane %v3250_v47, %v10669_v23  ;;  %v1673_v3 = vpop.permute.xlu0 %1672  ;;  %v16367_v47 = vld [vmem:[#allocation93_spill] sm:$0xff] }
 0x28b   : > { %16363 = vst [vmem:[#allocation87_spill] sm:$0xff] %v11419_v33  ;;  %16364 = vst [vmem:[#allocation91_spill] sm:$0xff] %v11422_v56  ;;  %v16365_v60 = vcombine.high %v11338_v32, %v11341_v11  ;;  %v11448_v25 = vsel %vm1920_vm0, %v16367_v47, %v1666_v20  ;;  %v2001_v43 = vsel %vm1920_vm0, %v16370_v21, %v1662_v45  ;;  %v16371_v32 = vld [vmem:[#allocation99_spill] sm:$0xff]  ;;  %v16372_v21 = vld [vmem:[#allocation97_spill] sm:$0xff] }
 0x28c   : > { %16361 = vst [vmem:[#allocation86_spill] sm:$0xff] %v11401_v16  ;;  %v3266_v49 = vcombine.high %v11392_v53, %v11401_v16  ;;  %16368 = vst [vmem:[#allocation92_spill] sm:$0xff] %v11448_v25  ;;  %v11471_v47 = vsel %vm1920_vm0, %v16372_v21, %v1677_v8  ;;  %v16376_v16 = vld [vmem:[#allocation98_spill] sm:$0xff]  ;;  %v16377_v53 = vld [vmem:[#allocation101_spill] sm:$0xff] }
 0x28d   : > { %v1688_v61 = vpop.permute.xlu1 %1687  ;;  %v11444_v15 = vrot.slane %v16365_v60, %v10669_v23  ;;  %16373 = vst [vmem:[#allocation94_spill] sm:$0xff] %v11471_v47 }
 0x28e   : > { %v11452_v30 = vsel %vm1920_vm0, %v10431_v34, %v1688_v61  ;;  %4241 = vrot.lane.b32.xlu0 %v3266_v49, %s9731_s21  ;;  %v1684_v41 = vpop.permute.xlu0 %1683  ;;  %v2003_v34 = vsel %vm1920_vm0, %v16376_v16, %v1673_v3 }
 0x28f   : > { %16366 = vst [vmem:[#allocation88_spill] sm:$0xff] %v11444_v15  ;;  %16369 = vst [vmem:[#allocation93_spill] sm:$0xff] %v11452_v30  ;;  %v3546_v54 = vcombine.high %v11448_v25, %v11452_v30  ;;  %v2005_v11 = vsel %vm1920_vm0, %v16371_v32, %v1684_v41  ;;  %v16374_v41 = vld [vmem:[#allocation100_spill] sm:$0xff]  ;;  %v16382_v30 = vld [vmem:[#allocation103_spill] sm:$0xff] }
 0x290   : > { %v3274_v60 = vcombine.high %v2001_v43, %v2005_v11  ;;  %v3273_v17 = vcombine.low %v2001_v43, %v2005_v11 }
 0x291   : > { %v1699_v61 = vpop.permute.xlu1 %1698  ;;  %v11484_v8 = vrot.slane %v3546_v54, %v10586_v51 }
 0x292   : > { %v11475_v32 = vsel %vm1920_vm0, %v16374_v41, %v1699_v61  ;;  %v1695_v20 = vpop.permute.xlu0 %1694  ;;  %v3281_v61 = vrot.slane %v3273_v17, %v10586_v51  ;;  %v3288_v21 = vrot.slane %v3274_v60, %v10586_v51  ;;  %v16378_v17 = vld [vmem:[#allocation102_spill] sm:$0xff] }
 0x293   : > { %16375 = vst [vmem:[#allocation99_spill] sm:$0xff] %v11475_v32  ;;  %v3562_v49 = vcombine.high %v11471_v47, %v11475_v32  ;;  %v2007_v33 = vsel %vm1920_vm0, %v16377_v53, %v1695_v20 }
 0x294   : > { %v3289_v45 = vcombine.low %v2003_v34, %v2007_v33  ;;  %v3290_v56 = vcombine.high %v2003_v34, %v2007_v33 }
 0x295   : > { %v11487_v43 = vrot.slane %v3562_v49, %v10586_v51  ;;  %v1710_v11 = vpop.permute.xlu1 %1709 }
 0x296   : > { %v3297_v16 = vrot.slane %v3289_v45, %v10586_v51  ;;  %v3304_v3 = vrot.slane %v3290_v56, %v10586_v51  ;;  %v1706_v41 = vpop.permute.xlu0 %1705  ;;  %v11499_v60 = vsel %vm1920_vm0, %v16378_v17, %v1710_v11  ;;  %v16380_v45 = vld [vmem:[#allocation106_spill] sm:$0xff] }
 0x297   : > { %v3625_v53 = vcombine.low %v11484_v8, %v11487_v43  ;;  %v3626_v33 = vcombine.high %v11484_v8, %v11487_v43  ;;  %16379 = vst [vmem:[#allocation97_spill] sm:$0xff] %v11499_v60  ;;  %v2009_v47 = vsel %vm1920_vm0, %v16382_v30, %v1706_v41  ;;  %v16383_v43 = vld [vmem:[#allocation107_spill] sm:$0xff] }
 0x298   : > { %v3338_v54 = vcombine.high %v3281_v61, %v3297_v16  ;;  %v3353_v20 = vcombine.low %v3288_v21, %v3304_v3  ;;  %v3354_v34 = vcombine.high %v3288_v21, %v3304_v3  ;;  %v3337_v44 = vcombine.low %v3281_v61, %v3297_v16 }
 0x299   : > { %v1721_v49 = vpop.permute.xlu1 %1720 }
 0x29a   : > { %v1717_v15 = vpop.permute.xlu0 %1716  ;;  %v11513_v11 = vsel %vm1920_vm0, %v16384_v58, %v1721_v49  ;;  %v11532_v16 = vrot.slane %v3337_v44, %v10669_v23 }
 0x29b   : > { %16385 = vst [vmem:[#allocation98_spill] sm:$0xff] %v11513_v11  ;;  %v2011_v30 = vsel %vm1920_vm0, %v16388_v2, %v1717_v15 }
 0x29c   : > { %16390 = vst [vmem:[#allocation102_spill] sm:$0xff] %v11532_v16 }
 0x29d   : > { %v1732_v42 = vpop.permute.xlu1 %1731 }
 0x29e   : > { %v11503_v56 = vsel %vm1920_vm0, %v16380_v45, %v1732_v42  ;;  %v1728_v25 = vpop.permute.xlu0 %1727 }
 0x29f   : > { %16381 = vst [vmem:[#allocation100_spill] sm:$0xff] %v11503_v56  ;;  %v3578_v8 = vcombine.high %v11499_v60, %v11503_v56  ;;  %v2013_v21 = vsel %vm1920_vm0, %v16383_v43, %v1728_v25  ;;  %v16389_v60 = vld [vmem:[#allocation109_spill] sm:$0xff] }
 0x2a0   : > { %v3306_v3 = vcombine.high %v2009_v47, %v2013_v21  ;;  %v3305_v17 = vcombine.low %v2009_v47, %v2013_v21 }
 0x2a1   : > { %v1743_v32 = vpop.permute.xlu1 %1742  ;;  %v3592_v58 = vrot.slane %v3578_v8, %v10586_v51  ;;  %v11535_v8 = vrot.slane %v3338_v54, %v10669_v23  ;;  %v11553_v54 = vrot.slane %v3625_v53, %v10669_v23  ;;  %v16402_v53 = vld [vmem:[#allocation116_spill] sm:$0xff] }
 0x2a2   : > { %v11517_v42 = vsel %vm1920_vm0, %v16386_v38, %v1743_v32  ;;  %v1739_v45 = vpop.permute.xlu0 %1738  ;;  %v3313_v38 = vrot.slane %v3305_v17, %v10586_v51  ;;  %v3320_v32 = vrot.slane %v3306_v3, %v10586_v51  ;;  %v11538_v17 = vrot.slane %v3353_v20, %v10669_v23 }
 0x2a3   : > { %16387 = vst [vmem:[#allocation101_spill] sm:$0xff] %v11517_v42  ;;  %v3594_v41 = vcombine.high %v11513_v11, %v11517_v42  ;;  %v2015_v25 = vsel %vm1920_vm0, %v16389_v60, %v1739_v45  ;;  %16395 = vst [vmem:[#allocation108_spill] sm:$0xff] %v11553_v54  ;;  %v11556_v20 = vrot.slane %v3354_v34, %v10669_v23 }
 0x2a4   : > { %v3321_v43 = vcombine.low %v2011_v30, %v2015_v25  ;;  %v3322_v56 = vcombine.high %v2011_v30, %v2015_v25  ;;  %16391 = vst [vmem:[#allocation106_spill] sm:$0xff] %v11538_v17  ;;  %v16451_v17 = vld [vmem:[#allocation140_spill] sm:$0xff] }
 0x2a5   : > { %v3608_v47 = vrot.slane %v3594_v41, %v10586_v51  ;;  %v1754_v49 = vpop.permute.xlu1 %1753  ;;  %16396 = vst [vmem:[#allocation105_spill] sm:$0xff] %v11556_v20 }
 0x2a6   : > { %v3329_v2 = vrot.slane %v3321_v43, %v10586_v51  ;;  %v3336_v15 = vrot.slane %v3322_v56, %v10586_v51  ;;  %v1750_v21 = vpop.permute.xlu0 %1749 }
 0x2a7   : > { %v3657_v11 = vcombine.low %v3592_v58, %v3608_v47  ;;  %v3658_v42 = vcombine.high %v3592_v58, %v3608_v47 }
 0x2a8   : > { %v3369_v60 = vcombine.low %v3313_v38, %v3329_v2  ;;  %v3370_v45 = vcombine.high %v3313_v38, %v3329_v2  ;;  %v3385_v30 = vcombine.low %v3320_v32, %v3336_v15  ;;  %v3386_v61 = vcombine.high %v3320_v32, %v3336_v15 }
 0x2a9   : > { %v1765_v3 = vpop.permute.xlu1 %1764  ;;  %v11559_v58 = vrot.slane %v3657_v11, %v10669_v23  ;;  %v11562_v47 = vrot.slane %v3658_v42, %v10669_v23  ;;  %v16406_v42 = vld [vmem:[#allocation118_spill] sm:$0xff] }
 0x2aa   : > { %v11541_v41 = vrot.slane %v3369_v60, %v10669_v23  ;;  %v11544_v56 = vrot.slane %v3370_v45, %v10669_v23  ;;  %v11547_v25 = vrot.slane %v3385_v30, %v10669_v23  ;;  %v11550_v43 = vrot.slane %v3386_v61, %v10669_v23  ;;  %v1761_v44 = vpop.permute.xlu0 %1760  ;;  %v16400_v30 = vld [vmem:[#allocation110_spill] sm:$0xff] }
 0x2ab   : > { %16397 = vst [vmem:[#allocation109_spill] sm:$0xff] %v11559_v58  ;;  %16398 = vst [vmem:[#allocation182_spill] sm:$0xff] %v11562_v47  ;;  %v11581_v45 = vrot.slane %v3626_v33, %v10669_v23  ;;  %v11585_v61 = vsel %vm1920_vm0, %v16400_v30, %v1754_v49 }
 0x2ac   : > { %16392 = vst [vmem:[#allocation103_spill] sm:$0xff] %v11541_v41  ;;  %16393 = vst [vmem:[#allocation107_spill] sm:$0xff] %v11547_v25  ;;  %v3402_v38 = vcombine.high %v11532_v16, %v11541_v41 }
 0x2ad   : > { %16394 = vst [vmem:[#allocation104_spill] sm:$0xff] %v11550_v43  ;;  %v1776_v34 = vpop.permute.xlu1 %1775  ;;  %16399 = vst [vmem:[#allocation183_spill] sm:$0xff] %v11581_v45  ;;  %v16410_v43 = vld [vmem:[#allocation117_spill] sm:$0xff] }
 0x2ae   : > { %16401 = vst [vmem:[#allocation110_spill] sm:$0xff] %v11585_v61  ;;  %v11589_v2 = vsel %vm1920_vm0, %v16402_v53, %v1776_v34  ;;  %4243 = vrot.lane.b32.xlu1 %v3402_v38, %s9731_s21  ;;  %v1772_v11 = vpop.permute.xlu0 %1771  ;;  %v16404_v34 = vld [vmem:[#allocation114_spill] sm:$0xff] }
 0x2af   : > { %16403 = vst [vmem:[#allocation116_spill] sm:$0xff] %v11589_v2  ;;  %v3954_v15 = vcombine.high %v11585_v61, %v11589_v2  ;;  %v11604_v38 = vsel %vm1920_vm0, %v16404_v34, %v1765_v3  ;;  %v16408_v3 = vld [vmem:[#allocation119_spill] sm:$0xff]  ;;  %v11624_v20 = vsel %vm1920_vm0, %v16410_v43, %v1772_v11  ;;  %v16411_v61 = vld [vmem:[#allocation120_spill] sm:$0xff]  ;;  %v16416_v11 = vld [vmem:[#allocation125_spill] sm:$0xff] }
 0x2b0   : > { %16405 = vst [vmem:[#allocation114_spill] sm:$0xff] %v11604_v38  ;;  %v16415_v2 = vld [vmem:[#allocation111_spill] sm:$0xff] }
 0x2b1   : > { %v1787_v30 = vpop.permute.xlu1 %1786  ;;  %v3968_v33 = vrot.slane %v3954_v15, %v10586_v51 }
 0x2b2   : > { %v11608_v32 = vsel %vm1920_vm0, %v16406_v42, %v1787_v30  ;;  %v1783_v41 = vpop.permute.xlu0 %1782  ;;  %v16409_v42 = vld [vmem:[#allocation115_spill] sm:$0xff] }
 0x2b3   : > { %16407 = vst [vmem:[#allocation118_spill] sm:$0xff] %v11608_v32  ;;  %v3970_v60 = vcombine.high %v11604_v38, %v11608_v32  ;;  %v11616_v34 = vsel %vm1920_vm0, %v16408_v3, %v1783_v41  ;;  %v11620_v30 = vsel %vm1920_vm0, %v16409_v42, %v1761_v44  ;;  %v11638_v44 = vsel %vm1920_vm0, %v16415_v2, %v1750_v21  ;;  %v16418_v32 = vld [vmem:[#allocation122_spill] sm:$0xff] }
 0x2b5   : > { %v3984_v49 = vrot.slane %v3970_v60, %v10586_v51  ;;  %v1798_v16 = vpop.permute.xlu1 %1797  ;;  %v3697_v60 = vcombine.low %v11620_v30, %v11616_v34 }
 0x2b6   : > { %v1794_v58 = vpop.permute.xlu0 %1793 }
 0x2b7   : > { %v4033_v54 = vcombine.low %v3968_v33, %v3984_v49  ;;  %v4034_v53 = vcombine.high %v3968_v33, %v3984_v49  ;;  %v11630_v33 = vsel %vm1920_vm0, %v16411_v61, %v1798_v16  ;;  %v16413_v49 = vld [vmem:[#allocation124_spill] sm:$0xff]  ;;  %v3681_v16 = vcombine.low %v11638_v44, %v11624_v20  ;;  %v16417_v61 = vld [vmem:[#allocation121_spill] sm:$0xff] }
 0x2b8   : > { %16412 = vst [vmem:[#allocation119_spill] sm:$0xff] %v11630_v33  ;;  %v11650_v38 = vsel %vm1920_vm0, %v16417_v61, %v1794_v58 }
 0x2b9   : > { %v1809_v47 = vpop.permute.xlu1 %1808 }
 0x2ba   : > { %v1805_v45 = vpop.permute.xlu0 %1804  ;;  %v11655_v21 = vsel %vm1920_vm0, %v16418_v32, %v1809_v47  ;;  %v3689_v47 = vrot.slane %v3681_v16, %v10586_v51 }
 0x2bb   : > { %16419 = vst [vmem:[#allocation117_spill] sm:$0xff] %v11655_v21 }
 0x2bd   : > { %v1820_v15 = vpop.permute.xlu1 %1819 }
 0x2be   : > { %v11634_v41 = vsel %vm1920_vm0, %v16413_v49, %v1820_v15  ;;  %v1816_v3 = vpop.permute.xlu0 %1815  ;;  %v3705_v49 = vrot.slane %v3697_v60, %v10586_v51  ;;  %v16423_v60 = vld [vmem:[#allocation127_spill] sm:$0xff] }
 0x2bf   : > { %16414 = vst [vmem:[#allocation115_spill] sm:$0xff] %v11634_v41  ;;  %v3986_v43 = vcombine.high %v11630_v33, %v11634_v41  ;;  %v11644_v42 = vsel %vm1920_vm0, %v16416_v11, %v1816_v3  ;;  %v16420_v33 = vld [vmem:[#allocation126_spill] sm:$0xff]  ;;  %v16422_v41 = vld [vmem:[#allocation123_spill] sm:$0xff] }
 0x2c0   : > { %v3713_v2 = vcombine.low %v11650_v38, %v11644_v42  ;;  %v11665_v1 = vsel %vm1920_vm0, %v16422_v41, %v1805_v45  ;;  %v3745_v31 = vcombine.low %v3689_v47, %v3705_v49 }
 0x2c1   : > { %v1831_v15 = vpop.permute.xlu1 %1830 }
 0x2c2   : > { %v11661_v3 = vsel %vm1920_vm0, %v16420_v33, %v1831_v15  ;;  %v1827_v11 = vpop.permute.xlu0 %1826  ;;  %v4000_v33 = vrot.slane %v3986_v43, %v10586_v51  ;;  %v3721_v45 = vrot.slane %v3713_v2, %v10586_v51  ;;  %v11681_v16 = vrot.slane %v3745_v31, %v10669_v23 }
 0x2c3   : > { %16421 = vst [vmem:[#allocation120_spill] sm:$0xff] %v11661_v3  ;;  %v4002_v58 = vcombine.high %v11655_v21, %v11661_v3  ;;  %v11671_v61 = vsel %vm1920_vm0, %v16423_v60, %v1827_v11 }
 0x2c4   : > { %v3729_v32 = vcombine.low %v11665_v1, %v11671_v61  ;;  %16424 = vst [vmem:[#allocation124_spill] sm:$0xff] %v11681_v16 }
 0x2c5   : > { %v4016_v15 = vrot.slane %v4002_v58, %v10586_v51  ;;  %v1842_v18 = vpop.permute.xlu1 %1841 }
 0x2c6   : > { %v3737_v41 = vrot.slane %v3729_v32, %v10586_v51  ;;  %v1838_v21 = vpop.permute.xlu0 %1837  ;;  %v11695_v32 = vrot.slane %v4033_v54, %v10669_v23 }
 0x2c7   : > { %v4065_v3 = vcombine.low %v4000_v33, %v4016_v15  ;;  %v4066_v0 = vcombine.high %v4000_v33, %v4016_v15  ;;  %v11700_v15 = vrot.slane %v4034_v53, %v10669_v23  ;;  %v16438_v53 = vcombine.low %v10696_v19, %v10706_v26 }
 0x2c8   : > { %v3777_v11 = vcombine.low %v3721_v45, %v3737_v41  ;;  %16428 = vst [vmem:[#allocation122_spill] sm:$0xff] %v11695_v32 }
 0x2c9   : > { %v1853_v60 = vpop.permute.xlu1 %1852  ;;  %v11687_v58 = vrot.slane %v4065_v3, %v10669_v23  ;;  %v11690_v10 = vrot.slane %v4066_v0, %v10669_v23  ;;  %16429 = vst [vmem:[#allocation126_spill] sm:$0xff] %v11700_v15 }
 0x2ca   : > { %v11684_v46 = vrot.slane %v3777_v11, %v10669_v23  ;;  %v1849_v43 = vpop.permute.xlu0 %1848  ;;  %v16430_v11 = vld [vmem:[#allocation128_spill] sm:$0xff] }
 0x2cb   : > { %16426 = vst [vmem:[#allocation125_spill] sm:$0xff] %v11687_v58  ;;  %16427 = vst [vmem:[#allocation121_spill] sm:$0xff] %v11690_v10  ;;  %v11704_v3 = vsel %vm1920_vm0, %v16430_v11, %v1842_v18  ;;  %v3778_v58 = vcombine.high %v3721_v45, %v3737_v41  ;;  %v3746_v10 = vcombine.high %v3689_v47, %v3705_v49  ;;  %v16441_v49 = vld [vmem:[#allocation137_spill] sm:$0xff] }
 0x2cc   : > { %16425 = vst [vmem:[#allocation111_spill] sm:$0xff] %v11684_v46  ;;  %v3810_v2 = vcombine.high %v11681_v16, %v11684_v46  ;;  %16431 = vst [vmem:[#allocation123_spill] sm:$0xff] %v11704_v3  ;;  %v16436_v46 = vld [vmem:[#allocation136_spill] sm:$0xff]  ;;  %v16440_v45 = vcombine.low %v11395_v9, %v11404_v57 }
 0x2cd   : > { %v1864_v33 = vpop.permute.xlu1 %1863 }
 0x2ce   : > { %v11708_v0 = vsel %vm1920_vm0, %v16432_v37, %v1864_v33  ;;  %4245 = vrot.lane.b32.xlu0 %v3810_v2, %s9731_s21  ;;  %v1860_v12 = vpop.permute.xlu0 %1859  ;;  %v16434_v33 = vld [vmem:[#allocation132_spill] sm:$0xff] }
 0x2cf   : > { %16433 = vst [vmem:[#allocation127_spill] sm:$0xff] %v11708_v0  ;;  %v4090_v54 = vcombine.high %v11704_v3, %v11708_v0  ;;  %v11723_v2 = vsel %vm1920_vm0, %v16434_v33, %v1853_v60  ;;  %v3760_v0 = vrot.slane %v3746_v10, %v10669_v23 }
 0x2d0   : > { %16435 = vst [vmem:[#allocation128_spill] sm:$0xff] %v11723_v2 }
 0x2d1   : > { %v1875_v11 = vpop.permute.xlu1 %1874  ;;  %v4104_v37 = vrot.slane %v4090_v54, %v10586_v51 }
 0x2d2   : > { %v11727_v16 = vsel %vm1920_vm0, %v16436_v46, %v1875_v11  ;;  %4265 = vrot.lane.b32.xlu0 %v16438_v53, %s9732_s27  ;;  %v1871_v31 = vpop.permute.xlu0 %1870  ;;  %v16439_v46 = vcombine.low %v11071_v52, %v11081_v62  ;;  %v3792_v53 = vrot.slane %v3778_v58, %v10669_v23 }
 0x2d3   : > { %16437 = vst [vmem:[#allocation134_spill] sm:$0xff] %v11727_v16  ;;  %v4106_v18 = vcombine.high %v11723_v2, %v11727_v16  ;;  %v11749_v47 = vsel %vm1920_vm0, %v16441_v49, %v1871_v31  ;;  %v16444_v2 = vld [vmem:[#allocation138_spill] sm:$0xff]  ;;  %v16448_v49 = vld [vmem:[#allocation129_spill] sm:$0xff] }
 0x2d4   : > { %v3811_v54 = vcombine.low %v3760_v0, %v3792_v53  ;;  %v16446_v16 = vld [vmem:[#allocation142_spill] sm:$0xff] }
 0x2d5   : > { %v4120_v60 = vrot.slane %v4106_v18, %v10586_v51  ;;  %v1886_v33 = vpop.permute.xlu1 %1885  ;;  %v16442_v18 = vld [vmem:[#allocation133_spill] sm:$0xff] }
 0x2d6   : > { %4269 = vrot.lane.b32.xlu0 %v16439_v46, %s9732_s27  ;;  %v1882_v11 = vpop.permute.xlu0 %1881  ;;  %v11753_v46 = vsel %vm1920_vm0, %v16442_v18, %v1849_v43  ;;  %v11772_v18 = vsel %vm1920_vm0, %v16448_v49, %v1838_v21 }
 0x2d7   : > { %v4169_v15 = vcombine.low %v4104_v37, %v4120_v60  ;;  %v4170_v32 = vcombine.high %v4104_v37, %v4120_v60  ;;  %v16443_v37 = vld [vmem:[#allocation135_spill] sm:$0xff]  ;;  %v3833_v60 = vcombine.low %v11753_v46, %v11749_v47 }
 0x2d8   : > { %v11757_v58 = vsel %vm1920_vm0, %v16443_v37, %v1860_v12  ;;  %v16449_v37 = vld [vmem:[#allocation143_spill] sm:$0xff] }
 0x2d9   : > { %v1897_v3 = vpop.permute.xlu1 %1896 }
 0x2da   : > { %4273 = vrot.lane.b32.xlu0 %v16440_v45, %s9732_s27  ;;  %v1893_v41 = vpop.permute.xlu0 %1892  ;;  %v11763_v45 = vsel %vm1920_vm0, %v16444_v2, %v1886_v33  ;;  %v3817_v2 = vcombine.low %v11772_v18, %v11757_v58  ;;  %v16450_v33 = vld [vmem:[#allocation139_spill] sm:$0xff]  ;;  %v11789_v21 = vsel %vm1920_vm0, %v16451_v17, %v1897_v3  ;;  %v16457_v3 = vld [vmem:[#allocation145_spill] sm:$0xff] }
 0x2db   : > { %16445 = vst [vmem:[#allocation132_spill] sm:$0xff] %v11763_v45  ;;  %16452 = vst [vmem:[#allocation137_spill] sm:$0xff] %v11789_v21 }
 0x2dd   : > { %v1908_v10 = vpop.permute.xlu1 %1907 }
 0x2de   : > { %v11767_v31 = vsel %vm1920_vm0, %v16446_v16, %v1908_v10  ;;  %4277 = vrot.lane.b32.xlu0 %v3811_v54, %s9732_s27  ;;  %v1904_v43 = vpop.permute.xlu0 %1903  ;;  %v11784_v16 = vsel %vm1920_vm0, %v16450_v33, %v1882_v11  ;;  %v3841_v10 = vrot.slane %v3833_v60, %v10586_v51  ;;  %v16455_v11 = vcombine.high %v10696_v19, %v10706_v26  ;;  %v16456_v33 = vld [vmem:[#allocation141_spill] sm:$0xff] }
 0x2df   : > { %16447 = vst [vmem:[#allocation136_spill] sm:$0xff] %v11767_v31  ;;  %v4122_v12 = vcombine.high %v11763_v45, %v11767_v31  ;;  %v11778_v25 = vsel %vm1920_vm0, %v16449_v37, %v1904_v43  ;;  %v16453_v45 = vld [vmem:[#allocation144_spill] sm:$0xff]  ;;  %v11803_v60 = vsel %vm1920_vm0, %v16456_v33, %v1893_v41 }
 0x2e0   : > { %v3849_v49 = vcombine.low %v11784_v16, %v11778_v25 }
 0x2e1   : > { %v1919_v54 = vpop.permute.xlu1 %1918  ;;  %v4136_v19 = vrot.slane %v4122_v12, %v10586_v51 }
 0x2e2   : > { %v11795_v43 = vsel %vm1920_vm0, %v16453_v45, %v1919_v54  ;;  %4297 = vrot.lane.b32.xlu0 %v16455_v11, %s9733_s0  ;;  %v1915_v37 = vpop.permute.xlu0 %1914  ;;  %v3825_v45 = vrot.slane %v3817_v2, %v10586_v51  ;;  %v3857_v41 = vrot.slane %v3849_v49, %v10586_v51  ;;  %v16461_v49 = vcombine.high %v11395_v9, %v11404_v57 }
 0x2e3   : > { %16454 = vst [vmem:[#allocation133_spill] sm:$0xff] %v11795_v43  ;;  %v4138_v17 = vcombine.high %v11789_v21, %v11795_v43  ;;  %v11809_v31 = vsel %vm1920_vm0, %v16457_v3, %v1915_v37  ;;  %v16458_v21 = vcombine.high %v11071_v52, %v11081_v62  ;;  %v3730_v62 = vcombine.high %v11665_v1, %v11671_v61  ;;  %v16637_v1 = vld [vmem:[#allocation109_spill] sm:$0xff] }
 0x2e4   : > { %v3865_v54 = vcombine.low %v11803_v60, %v11809_v31  ;;  %v3881_v11 = vcombine.low %v3825_v45, %v3841_v10  ;;  %v3698_v57 = vcombine.high %v11620_v30, %v11616_v34  ;;  %v3682_v34 = vcombine.high %v11638_v44, %v11624_v20 }
 0x2e5   : > { %v4152_v26 = vrot.slane %v4138_v17, %v10586_v51 }
 0x2e6   : > { %v3873_v33 = vrot.slane %v3865_v54, %v10586_v51  ;;  %4301 = vrot.lane.b32.xlu0 %v16458_v21, %s9733_s0  ;;  %v11823_v43 = vrot.slane %v3881_v11, %v10669_v23  ;;  %v3812_v21 = vcombine.high %v3760_v0, %v3792_v53  ;;  %v3714_v11 = vcombine.high %v11650_v38, %v11644_v42 }
 0x2e7   : > { %v4201_v37 = vcombine.low %v4136_v19, %v4152_v26  ;;  %v4202_v3 = vcombine.high %v4136_v19, %v4152_v26  ;;  %v11843_v19 = vrot.slane %v4169_v15, %v10669_v23  ;;  %v11846_v26 = vrot.slane %v4170_v32, %v10669_v23 }
 0x2e8   : > { %v3913_v2 = vcombine.low %v3857_v41, %v3873_v33  ;;  %16459 = vst [vmem:[#allocation135_spill] sm:$0xff] %v11823_v43  ;;  %v3744_v38 = vrot.slane %v3730_v62, %v10586_v51  ;;  %v3712_v30 = vrot.slane %v3698_v57, %v10586_v51  ;;  %v3728_v42 = vrot.slane %v3714_v11, %v10586_v51 }
 0x2e9   : > { %v11833_v17 = vrot.slane %v4201_v37, %v10669_v23  ;;  %v11836_v52 = vrot.slane %v4202_v3, %v10669_v23  ;;  %v16462_v0 = vcombine.low %v10724_v6, %v10709_v29  ;;  %v16463_v53 = vcombine.low %v10881_v48, %v10891_v4 }
 0x2ea   : > { %v11826_v12 = vrot.slane %v3913_v2, %v10669_v23  ;;  %4305 = vrot.lane.b32.xlu0 %v16461_v49, %s9733_s0  ;;  %v3696_v37 = vrot.slane %v3682_v34, %v10586_v51  ;;  %v3793_v20 = vcombine.low %v3728_v42, %v3744_v38  ;;  %v3914_v44 = vcombine.high %v3857_v41, %v3873_v33 }
 0x2eb   : > { %v3882_v2 = vcombine.high %v3825_v45, %v3841_v10  ;;  %v16464_v49 = vcombine.low %v11099_v27, %v11084_v39  ;;  %v16465_v62 = vcombine.low %v11241_v5, %v11247_v13  ;;  %v16466_v10 = vcombine.low %v11398_v59, %v11407_v7 }
 0x2ec   : > { %16460 = vst [vmem:[#allocation138_spill] sm:$0xff] %v11826_v12  ;;  %v3946_v54 = vcombine.high %v11823_v43, %v11826_v12  ;;  %v3761_v3 = vcombine.low %v3696_v37, %v3712_v30  ;;  %v16467_v45 = vcombine.low %v11535_v8, %v11544_v56  ;;  %v16468_v34 = vcombine.high %v10724_v6, %v10709_v29 }
 0x2ed   : > { %v3896_v41 = vrot.slane %v3882_v2, %v10669_v23  ;;  %v16472_v29 = vcombine.high %v11398_v59, %v11407_v7  ;;  %v16473_v6 = vcombine.high %v11535_v8, %v11544_v56  ;;  %v16474_v56 = vcombine.low %v10730_v40, %v10712_v28  ;;  %v16480_v2 = vld [vmem:[#allocation107_spill] sm:$0xff] }
 0x2ee   : > { %4309 = vrot.lane.b32.xlu0 %v3812_v21, %s9733_s0  ;;  %4247 = vrot.lane.b32.xlu1 %v3946_v54, %s9731_s21  ;;  %v3801_v21 = vrot.slane %v3793_v20, %v10669_v23  ;;  %v3928_v54 = vrot.slane %v3914_v44, %v10669_v23  ;;  %v3769_v57 = vrot.slane %v3761_v3, %v10669_v23  ;;  %v16479_v3 = vld [vmem:[#allocation106_spill] sm:$0xff] }
 0x2ef   : > { %v16471_v20 = vcombine.high %v11241_v5, %v11247_v13  ;;  %v3850_v5 = vcombine.high %v11784_v16, %v11778_v25  ;;  %v3818_v13 = vcombine.high %v11772_v18, %v11757_v58  ;;  %v16475_v25 = vcombine.low %v10909_v55, %v10894_v63 }
 0x2f0   : > { %v3813_v33 = vcombine.low %v3769_v57, %v3801_v21  ;;  %v3947_v11 = vcombine.low %v3896_v41, %v3928_v54  ;;  %v16476_v16 = vcombine.low %v11105_v36, %v11087_v50 }
 0x2f1   : > { %v11941_v8 = vrot.slane %v3850_v5, %v10586_v51 }
 0x2f2   : > { %4329 = vrot.lane.b32.xlu0 %v16462_v0, %s9734_s1  ;;  %4267 = vrot.lane.b32.xlu1 %v16463_v53, %s9732_s27  ;;  %v16469_v0 = vcombine.high %v10881_v48, %v10891_v4  ;;  %v16470_v53 = vcombine.high %v11099_v27, %v11084_v39  ;;  %v3866_v48 = vcombine.high %v11803_v60, %v11809_v31 }
 0x2f3   : > { %v3814_v4 = vcombine.high %v3769_v57, %v3801_v21  ;;  %v3948_v39 = vcombine.high %v3896_v41, %v3928_v54  ;;  %v3834_v27 = vcombine.high %v11753_v46, %v11749_v47  ;;  %v3794_v47 = vcombine.high %v3728_v42, %v3744_v38  ;;  %v16482_v54 = vld [vmem:[#allocation155_spill] sm:$0xff]  ;;  %v16483_v57 = vld [vmem:[#allocation154_spill] sm:$0xff] }
 0x2f4   : > { %v11935_v59 = vrot.slane %v3866_v48, %v10586_v51  ;;  %v11952_v46 = vrot.slane %v3818_v13, %v10586_v51  ;;  %v3762_v31 = vcombine.high %v3696_v37, %v3712_v30  ;;  %v16477_v60 = vcombine.low %v11256_v24, %v11250_v22 }
 0x2f5   : > { %v11938_v7 = vrot.slane %v3834_v27, %v10586_v51  ;;  %v3808_v38 = vrot.slane %v3794_v47, %v10669_v23  ;;  %v16478_v37 = vcombine.low %v11416_v35, %v11410_v14  ;;  %v2369_v41 = vcombine.low %v16483_v57, %v16482_v54  ;;  %v16493_v27 = vld [vmem:[#allocation55_spill] sm:$0xff]  ;;  %v16504_v57 = vld [vmem:[#allocation81_spill] sm:$0xff] }
 0x2f6   : > { %4333 = vrot.lane.b32.xlu0 %v16464_v49, %s9734_s1  ;;  %4271 = vrot.lane.b32.xlu1 %v16465_v62, %s9732_s27  ;;  %v3929_v58 = vcombine.low %v11941_v8, %v11935_v59  ;;  %v3776_v44 = vrot.slane %v3762_v31, %v10669_v23  ;;  %v16481_v49 = vcombine.low %v16479_v3, %v16480_v2 }
 0x2f7   : > { %v3897_v18 = vcombine.low %v11952_v46, %v11938_v7  ;;  %v16499_v31 = vcombine.high %v11256_v24, %v11250_v22 }
 0x2f8   : > { %v3937_v42 = vrot.slane %v3929_v58, %v10669_v23  ;;  %v3815_v62 = vcombine.low %v3776_v44, %v3808_v38  ;;  %v16498_v58 = vcombine.high %v11105_v36, %v11087_v50  ;;  %v16503_v50 = vld [vmem:[#allocation84_spill] sm:$0xff] }
 0x2f9   : > { %v3905_v30 = vrot.slane %v3897_v18, %v10669_v23 }
 0x2fa   : > { %4337 = vrot.lane.b32.xlu0 %v16466_v10, %s9734_s1  ;;  %4275 = vrot.lane.b32.xlu1 %v16467_v45, %s9732_s27  ;;  %v16484_v10 = vld [vmem:[#allocation151_spill] sm:$0xff]  ;;  %v16485_v45 = vld [vmem:[#allocation150_spill] sm:$0xff] }
 0x2fb   : > { %v3949_v21 = vcombine.low %v3905_v30, %v3937_v42 }
 0x2fe   : > { %4341 = vrot.lane.b32.xlu0 %v3813_v33, %s9734_s1  ;;  %4279 = vrot.lane.b32.xlu1 %v3947_v11, %s9732_s27  ;;  %v2337_v33 = vcombine.low %v16485_v45, %v16484_v10  ;;  %v16486_v11 = vld [vmem:[#allocation153_spill] sm:$0xff]  ;;  %v16506_v45 = vld [vmem:[#allocation82_spill] sm:$0xff] }
 0x300   : > { %v12002_v13 = vrot.slane %v2337_v33, %v10586_v51  ;;  %v16507_v33 = vld [vmem:[#allocation83_spill] sm:$0xff] }
 0x302   : > { %4361 = vrot.lane.b32.xlu0 %v16468_v34, %s9735_s25  ;;  %4299 = vrot.lane.b32.xlu1 %v16469_v0, %s9733_s0  ;;  %v16487_v34 = vld [vmem:[#allocation152_spill] sm:$0xff] }
 0x303   : > { %v2353_v0 = vcombine.low %v16487_v34, %v16486_v11  ;;  %v3441_v11 = vcombine.low %v16507_v33, %v16506_v45  ;;  %v16508_v34 = vcombine.high %v11416_v35, %v11410_v14  ;;  %v16512_v14 = vld [vmem:[#allocation120_spill] sm:$0xff]  ;;  %v16513_v35 = vld [vmem:[#allocation117_spill] sm:$0xff]  ;;  %v16522_v33 = vld [vmem:[#allocation170_spill] sm:$0xff] }
 0x304   : > { %v16521_v45 = vld [vmem:[#allocation172_spill] sm:$0xff] }
 0x306   : > { %4365 = vrot.lane.b32.xlu0 %v16470_v53, %s9735_s25  ;;  %4303 = vrot.lane.b32.xlu1 %v16471_v20, %s9733_s0  ;;  %v16488_v53 = vcombine.high %v10730_v40, %v10712_v28  ;;  %v16489_v20 = vcombine.high %v10909_v55, %v10894_v63  ;;  %v12005_v28 = vrot.slane %v2353_v0, %v10586_v51  ;;  %v16494_v40 = vld [vmem:[#allocation54_spill] sm:$0xff]  ;;  %v16496_v63 = vld [vmem:[#allocation52_spill] sm:$0xff]  ;;  %v16497_v55 = vld [vmem:[#allocation51_spill] sm:$0xff] }
 0x307   : > { %v2897_v47 = vcombine.low %v16497_v55, %v16496_v63  ;;  %v16509_v0 = vcombine.high %v16479_v3, %v16480_v2  ;;  %v3950_v3 = vcombine.high %v3905_v30, %v3937_v42  ;;  %v12071_v63 = vrot.slane %v3441_v11, %v10586_v51  ;;  %v16514_v55 = vld [vmem:[#allocation118_spill] sm:$0xff] }
 0x308   : > { %v16523_v11 = vcombine.low %v16521_v45, %v16522_v33 }
 0x309   : > { %v12037_v24 = vrot.slane %v2897_v47, %v10586_v51  ;;  %v16515_v47 = vld [vmem:[#allocation114_spill] sm:$0xff] }
 0x30a   : > { %4369 = vrot.lane.b32.xlu0 %v16472_v29, %s9735_s25  ;;  %4307 = vrot.lane.b32.xlu1 %v16473_v6, %s9733_s0  ;;  %v16490_v29 = vld [vmem:[#allocation149_spill] sm:$0xff]  ;;  %v16491_v6 = vld [vmem:[#allocation148_spill] sm:$0xff] }
 0x30b   : > { %v2321_v48 = vcombine.low %v16491_v6, %v16490_v29  ;;  %v16510_v6 = vld [vmem:[#allocation180_spill] sm:$0xff] }
 0x30d   : > { %v12020_v18 = vrot.slane %v2321_v48, %v10586_v51  ;;  %v16511_v48 = vld [vmem:[#allocation77_spill] sm:$0xff] }
 0x30e   : > { %4373 = vrot.lane.b32.xlu0 %v3814_v4, %s9735_s25  ;;  %4311 = vrot.lane.b32.xlu1 %v3948_v39, %s9733_s0  ;;  %v11997_v4 = vrot.slane %v2369_v41, %v10586_v51  ;;  %v16492_v39 = vld [vmem:[#allocation56_spill] sm:$0xff]  ;;  %v16505_v41 = vld [vmem:[#allocation78_spill] sm:$0xff] }
 0x30f   : > { %v2913_v5 = vcombine.low %v16493_v27, %v16492_v39  ;;  %v2385_v54 = vcombine.low %v12020_v18, %v12002_v13  ;;  %v3425_v10 = vcombine.low %v16505_v41, %v16504_v57  ;;  %v3409_v39 = vcombine.low %v16511_v48, %v16510_v6 }
 0x310   : > { %v3930_v48 = vcombine.high %v11941_v8, %v11935_v59 }
 0x311   : > { %v2393_v2 = vrot.slane %v2385_v54, %v10669_v23 }
 0x312   : > { %4393 = vrot.lane.b32.xlu0 %v16474_v56, %s9736_s17  ;;  %4331 = vrot.lane.b32.xlu1 %v16475_v25, %s9734_s1  ;;  %v16495_v56 = vld [vmem:[#allocation53_spill] sm:$0xff]  ;;  %v12128_v59 = vrot.slane %v3930_v48, %v10669_v23  ;;  %v16537_v48 = vld [vmem:[#allocation167_spill] sm:$0xff] }
 0x313   : > { %v2881_v25 = vcombine.low %v16495_v56, %v16494_v40  ;;  %v3816_v40 = vcombine.high %v3776_v44, %v3808_v38  ;;  %v12081_v44 = vrot.slane %v3409_v39, %v10586_v51 }
 0x315   : > { %v12034_v22 = vrot.slane %v2881_v25, %v10586_v51  ;;  %v12068_v25 = vrot.slane %v3425_v10, %v10586_v51  ;;  %v12099_v10 = vpop.permute.xlu0 %4233 }
 0x316   : > { %4397 = vrot.lane.b32.xlu0 %v16476_v16, %s9736_s17  ;;  %4335 = vrot.lane.b32.xlu1 %v16477_v60, %s9734_s1  ;;  %v2417_v16 = vcombine.low %v12005_v28, %v11997_v4  ;;  %v16500_v60 = vld [vmem:[#allocation48_spill] sm:$0xff]  ;;  %16520 = vst [vmem:[#allocation142_spill] sm:$0xff] %v12099_v10 }
 0x317   : > { %v3473_v54 = vcombine.low %v12081_v44, %v12068_v25 }
 0x319   : > { %v3481_v39 = vrot.slane %v3473_v54, %v10669_v23  ;;  %v12130_v8 = vpop.permute.xlu0 %4237  ;;  %v16535_v54 = vld [vmem:[#allocation168_spill] sm:$0xff] }
 0x31a   : > { %4401 = vrot.lane.b32.xlu0 %v16478_v37, %s9736_s17  ;;  %4339 = vrot.lane.b32.xlu1 %v16481_v49, %s9734_s1  ;;  %v16501_v37 = vld [vmem:[#allocation47_spill] sm:$0xff]  ;;  %16527 = vst [vmem:[#allocation129_spill] sm:$0xff] %v12130_v8 }
 0x31b   : > { %v2865_v49 = vcombine.low %v16501_v37, %v16500_v60  ;;  %v16518_v37 = vld [vmem:[#allocation116_spill] sm:$0xff] }
 0x31e   : > { %4405 = vrot.lane.b32.xlu0 %v3815_v62, %s9736_s17  ;;  %4343 = vrot.lane.b32.xlu1 %v3949_v21, %s9734_s1  ;;  %v12027_v62 = vrot.slane %v2913_v5, %v10586_v51  ;;  %v16502_v21 = vld [vmem:[#allocation85_spill] sm:$0xff]  ;;  %v4001_v5 = vcombine.low %v16513_v35, %v16512_v14  ;;  %v3898_v35 = vcombine.high %v11952_v46, %v11938_v7 }
 0x31f   : > { %v3457_v36 = vcombine.low %v16503_v50, %v16502_v21  ;;  %v16528_v46 = vld [vmem:[#allocation105_spill] sm:$0xff] }
 0x320   : > { %v2961_v29 = vcombine.low %v12037_v24, %v12027_v62  ;;  %v12088_v50 = vrot.slane %v4001_v5, %v10586_v51  ;;  %v16524_v5 = vld [vmem:[#allocation72_spill] sm:$0xff]  ;;  %v12136_v7 = vrot.slane %v3898_v35, %v10669_v23 }
 0x321   : > { %v12060_v27 = vrot.slane %v3457_v36, %v10586_v51 }
 0x322   : > { %4425 = vrot.lane.b32.xlu0 %v16488_v53, %s9737_s20  ;;  %4363 = vrot.lane.b32.xlu1 %v16489_v20, %s9735_s25  ;;  %v2425_v53 = vrot.slane %v2417_v16, %v10669_v23  ;;  %v12053_v20 = vrot.slane %v2865_v49, %v10586_v51  ;;  %v16517_v16 = vld [vmem:[#allocation119_spill] sm:$0xff]  ;;  %v2969_v38 = vrot.slane %v2961_v29, %v10669_v23  ;;  %v16519_v49 = vld [vmem:[#allocation110_spill] sm:$0xff] }
 0x323   : > { %v3505_v30 = vcombine.low %v12071_v63, %v12060_v27  ;;  %v3953_v21 = vcombine.low %v16519_v49, %v16518_v37  ;;  %v16533_v37 = vld [vmem:[#allocation44_spill] sm:$0xff] }
 0x324   : > { %v2929_v56 = vcombine.low %v12053_v20, %v12034_v22  ;;  %v2449_v42 = vcombine.low %v2393_v2, %v2425_v53 }
 0x325   : > { %v12108_v29 = vrot.slane %v3953_v21, %v10586_v51  ;;  %v16534_v21 = vld [vmem:[#allocation169_spill] sm:$0xff] }
 0x326   : > { %4429 = vrot.lane.b32.xlu0 %v16498_v58, %s9737_s20  ;;  %4367 = vrot.lane.b32.xlu1 %v16499_v31, %s9735_s25  ;;  %v3969_v58 = vcombine.low %v16515_v47, %v16514_v55  ;;  %v16516_v31 = vld [vmem:[#allocation115_spill] sm:$0xff]  ;;  %v2937_v36 = vrot.slane %v2929_v56, %v10669_v23 }
 0x327   : > { %v3985_v60 = vcombine.low %v16517_v16, %v16516_v31  ;;  %v12143_v16 = vpop.permute.xlu0 %4241 }
 0x328   : > { %v12094_v57 = vrot.slane %v3969_v58, %v10586_v51  ;;  %v16529_v58 = vld [vmem:[#allocation104_spill] sm:$0xff]  ;;  %16531 = vst [vmem:[#allocation143_spill] sm:$0xff] %v12143_v16  ;;  %v16765_v16 = vld [vmem:[#allocation50_spill] sm:$0xff] }
 0x329   : > { %v12097_v41 = vrot.slane %v3985_v60, %v10586_v51  ;;  %v16530_v31 = vcombine.low %v16528_v46, %v16529_v58 }
 0x32a   : > { %4433 = vrot.lane.b32.xlu0 %v16508_v34, %s9737_s20  ;;  %4371 = vrot.lane.b32.xlu1 %v16509_v0, %s9735_s25  ;;  %v2993_v34 = vcombine.low %v2937_v36, %v2969_v38  ;;  %v3513_v0 = vrot.slane %v3505_v30, %v10669_v23  ;;  %v4017_v14 = vcombine.low %v12108_v29, %v12094_v57  ;;  %v16532_v30 = vld [vmem:[#allocation42_spill] sm:$0xff] }
 0x32b   : > { %v4049_v6 = vcombine.low %v12097_v41, %v12088_v50  ;;  %v2505_v49 = vcombine.low %v16533_v37, %v16532_v30  ;;  %v16543_v30 = vld [vmem:[#allocation70_spill] sm:$0xff] }
 0x32c   : > { %v3537_v55 = vcombine.low %v3481_v39, %v3513_v0  ;;  %v12133_v47 = vrot.slane %v4017_v14, %v10669_v23  ;;  %v16538_v14 = vld [vmem:[#allocation166_spill] sm:$0xff] }
 0x32d   : > { %v12125_v56 = vrot.slane %v4049_v6, %v10669_v23  ;;  %v2450_v6 = vcombine.high %v2393_v2, %v2425_v53  ;;  %v2473_v35 = vcombine.low %v16538_v14, %v16537_v48  ;;  %v16542_v2 = vld [vmem:[#allocation73_spill] sm:$0xff]  ;;  %v16548_v14 = vld [vmem:[#allocation68_spill] sm:$0xff] }
 0x32e   : > { %4437 = vrot.lane.b32.xlu0 %v3816_v40, %s9737_s20  ;;  %4375 = vrot.lane.b32.xlu1 %v3950_v3, %s9735_s25  ;;  %v16525_v40 = vld [vmem:[#allocation75_spill] sm:$0xff]  ;;  %v3049_v37 = vcombine.low %v16543_v30, %v16542_v2  ;;  %v16547_v48 = vld [vmem:[#allocation69_spill] sm:$0xff]  ;;  %v16553_v30 = vld [vmem:[#allocation98_spill] sm:$0xff] }
 0x32f   : > { %v16526_v3 = vcombine.low %v16524_v5, %v16525_v40  ;;  %v4081_v60 = vcombine.low %v12133_v47, %v12125_v56  ;;  %v16552_v2 = vld [vmem:[#allocation101_spill] sm:$0xff] }
 0x332   : > { %4457 = vrot.lane.b32.xlu0 %v2449_v42, %s9738_s10  ;;  %4395 = vrot.lane.b32.xlu1 %v16523_v11, %s9736_s17  ;;  %v3951_v42 = vcombine.low %v12136_v7, %v12128_v59  ;;  %v2489_v11 = vcombine.low %v16535_v54, %v16534_v21  ;;  %v2994_v21 = vcombine.high %v2937_v36, %v2969_v38  ;;  %v16550_v36 = vld [vmem:[#allocation176_spill] sm:$0xff] }
 0x333   : > { %v12181_v54 = vrot.slane %v2473_v35, %v10586_v51 }
 0x336   : > { %4461 = vrot.lane.b32.xlu0 %v2993_v34, %s9738_s10  ;;  %4399 = vrot.lane.b32.xlu1 %v16526_v3, %s9736_s17  ;;  %v2418_v3 = vcombine.high %v12005_v28, %v11997_v4  ;;  %v2386_v4 = vcombine.high %v12020_v18, %v12002_v13  ;;  %v12176_v28 = vrot.slane %v2489_v11, %v10586_v51  ;;  %v16551_v11 = vld [vmem:[#allocation175_spill] sm:$0xff] }
 0x337   : > { %v16549_v18 = vcombine.high %v16524_v5, %v16525_v40  ;;  %v3001_v35 = vcombine.low %v16551_v11, %v16550_v36  ;;  %v16558_v36 = vld [vmem:[#allocation97_spill] sm:$0xff] }
 0x33a   : > { %4465 = vrot.lane.b32.xlu0 %v3537_v55, %s9738_s10  ;;  %4403 = vrot.lane.b32.xlu1 %v16530_v31, %s9736_s17  ;;  %v12162_v55 = vrot.slane %v2505_v49, %v10586_v51  ;;  %v16539_v31 = vcombine.high %v16521_v45, %v16522_v33  ;;  %v16545_v45 = vld [vmem:[#allocation67_spill] sm:$0xff]  ;;  %v16546_v33 = vld [vmem:[#allocation177_spill] sm:$0xff] }
 0x33c   : > { %v2553_v13 = vcombine.low %v12176_v28, %v12162_v55 }
 0x33e   : > { %4469 = vrot.lane.b32.xlu0 %v4081_v60, %s9738_s10  ;;  %4407 = vrot.lane.b32.xlu1 %v3951_v42, %s9736_s17  ;;  %v16540_v60 = vld [vmem:[#allocation165_spill] sm:$0xff]  ;;  %v16541_v42 = vld [vmem:[#allocation164_spill] sm:$0xff] }
 0x33f   : > { %v2457_v53 = vcombine.low %v16541_v42, %v16540_v60  ;;  %v12188_v60 = vrot.slane %v2418_v3, %v10669_v23  ;;  %v12203_v42 = vrot.slane %v3049_v37, %v10586_v51  ;;  %v12206_v3 = vrot.slane %v2386_v4, %v10669_v23  ;;  %v16555_v37 = vld [vmem:[#allocation99_spill] sm:$0xff] }
 0x340   : > { %v12155_v34 = vpop.permute.xlu0 %4245  ;;  %v12223_v4 = vrot.slane %v2553_v13, %v10669_v23 }
 0x341   : > { %16536 = vst [vmem:[#allocation139_spill] sm:$0xff] %v12155_v34  ;;  %v12198_v38 = vrot.slane %v2457_v53, %v10586_v51 }
 0x342   : > { %4489 = vrot.lane.b32.xlu0 %v2450_v6, %s9739_s14  ;;  %4427 = vrot.lane.b32.xlu1 %v16539_v31, %s9737_s20  ;;  %v3017_v6 = vcombine.low %v16546_v33, %v16545_v45  ;;  %v3033_v31 = vcombine.low %v16548_v14, %v16547_v48  ;;  %v3538_v33 = vcombine.high %v3481_v39, %v3513_v0  ;;  %v16556_v48 = vld [vmem:[#allocation94_spill] sm:$0xff] }
 0x343   : > { %v2521_v5 = vcombine.low %v12198_v38, %v12181_v54  ;;  %v3561_v14 = vcombine.low %v16556_v48, %v16555_v37  ;;  %v16559_v0 = vcombine.high %v16528_v46, %v16529_v58  ;;  %v2451_v39 = vcombine.low %v12206_v3, %v12188_v60  ;;  %v16562_v46 = vld [vmem:[#allocation133_spill] sm:$0xff] }
 0x344   : > { %v12178_v49 = vpop.permute.xlu0 %4265  ;;  %v12215_v40 = vrot.slane %v3017_v6, %v10586_v51  ;;  %v12218_v53 = vrot.slane %v3033_v31, %v10586_v51  ;;  %v2962_v6 = vcombine.high %v12037_v24, %v12027_v62  ;;  %v12237_v31 = vrot.slane %v3001_v35, %v10586_v51  ;;  %v16563_v58 = vld [vmem:[#allocation137_spill] sm:$0xff] }
 0x345   : > { %16544 = vst [vmem:[#allocation140_spill] sm:$0xff] %v12178_v49  ;;  %v4137_v48 = vcombine.low %v16563_v58, %v16562_v46  ;;  %v4082_v62 = vcombine.high %v12133_v47, %v12125_v56  ;;  %v3952_v24 = vcombine.high %v12136_v7, %v12128_v59  ;;  %v12255_v35 = vrot.slane %v2521_v5, %v10669_v23  ;;  %v16566_v56 = vld [vmem:[#allocation128_spill] sm:$0xff] }
 0x346   : > { %4493 = vrot.lane.b32.xlu0 %v2994_v21, %s9739_s14  ;;  %4431 = vrot.lane.b32.xlu1 %v16549_v18, %s9737_s20  ;;  %v3593_v21 = vcombine.low %v16553_v30, %v16552_v2  ;;  %v16557_v18 = vld [vmem:[#allocation100_spill] sm:$0xff]  ;;  %v3097_v13 = vcombine.low %v12218_v53, %v12203_v42  ;;  %v16560_v2 = vld [vmem:[#allocation93_spill] sm:$0xff]  ;;  %v3506_v5 = vcombine.high %v12071_v63, %v12060_v27 }
 0x347   : > { %v3577_v11 = vcombine.low %v16558_v36, %v16557_v18  ;;  %v16561_v30 = vld [vmem:[#allocation92_spill] sm:$0xff]  ;;  %v2930_v36 = vcombine.high %v12053_v20, %v12034_v22  ;;  %v2976_v22 = vrot.slane %v2962_v6, %v10669_v23  ;;  %v3474_v63 = vcombine.high %v12081_v44, %v12068_v25 }
 0x348   : > { %v12210_v45 = vpop.permute.xlu0 %4269  ;;  %v12244_v37 = vrot.slane %v3593_v21, %v10586_v51  ;;  %v3065_v21 = vcombine.low %v12237_v31, %v12215_v40  ;;  %v16567_v46 = vld [vmem:[#allocation136_spill] sm:$0xff]  ;;  %v3105_v20 = vrot.slane %v3097_v13, %v10669_v23 }
 0x349   : > { %16554 = vst [vmem:[#allocation144_spill] sm:$0xff] %v12210_v45  ;;  %v16568_v59 = vld [vmem:[#allocation132_spill] sm:$0xff]  ;;  %v2944_v13 = vrot.slane %v2930_v36, %v10669_v23  ;;  %v3520_v36 = vrot.slane %v3506_v5, %v10669_v23  ;;  %v4018_v5 = vcombine.high %v12108_v29, %v12094_v57 }
 0x34a   : > { %4497 = vrot.lane.b32.xlu0 %v3538_v33, %s9739_s14  ;;  %4435 = vrot.lane.b32.xlu1 %v16559_v0, %s9737_s20  ;;  %v3545_v33 = vcombine.low %v16561_v30, %v16560_v2  ;;  %v12262_v0 = vrot.slane %v3561_v14, %v10586_v51  ;;  %v12265_v2 = vrot.slane %v3577_v11, %v10586_v51  ;;  %v16565_v30 = vld [vmem:[#allocation134_spill] sm:$0xff] }
 0x34b   : > { %v4105_v47 = vcombine.low %v16566_v56, %v16565_v30  ;;  %v4121_v7 = vcombine.low %v16568_v59, %v16567_v46  ;;  %v2585_v14 = vcombine.low %v12255_v35, %v12223_v4  ;;  %v16569_v30 = vld [vmem:[#allocation127_spill] sm:$0xff]  ;;  %v3073_v27 = vrot.slane %v3065_v21, %v10669_v23 }
 0x34c   : > { %v12248_v18 = vpop.permute.xlu0 %4273  ;;  %v12280_v11 = vrot.slane %v3545_v33, %v10586_v51  ;;  %v3641_v58 = vcombine.low %v12265_v2, %v12244_v37  ;;  %v2995_v21 = vcombine.low %v2944_v13, %v2976_v22  ;;  %v4032_v15 = vrot.slane %v4018_v5, %v10669_v23 }
 0x34d   : > { %16564 = vst [vmem:[#allocation141_spill] sm:$0xff] %v12248_v18  ;;  %v12298_v46 = vrot.slane %v4105_v47, %v10586_v51  ;;  %v12301_v59 = vrot.slane %v4121_v7, %v10586_v51  ;;  %v3129_v25 = vcombine.low %v3073_v27, %v3105_v20  ;;  %v4050_v47 = vcombine.high %v12097_v41, %v12088_v50 }
 0x34e   : > { %4501 = vrot.lane.b32.xlu0 %v4082_v62, %s9739_s14  ;;  %4439 = vrot.lane.b32.xlu1 %v3952_v24, %s9737_s20  ;;  %v16570_v62 = vld [vmem:[#allocation123_spill] sm:$0xff]  ;;  %v12287_v24 = vrot.slane %v4137_v48, %v10586_v51  ;;  %v3609_v33 = vcombine.low %v12280_v11, %v12262_v0  ;;  %v12303_v48 = vpop.permute.xlu1 %4235  ;;  %v3649_v44 = vrot.slane %v3641_v58, %v10669_v23 }
 0x34f   : > { %v4089_v56 = vcombine.low %v16570_v62, %v16569_v30  ;;  %16572 = vst [vmem:[#allocation106_spill] sm:$0xff] %v12303_v48  ;;  %v4064_v50 = vrot.slane %v4050_v47, %v10669_v23  ;;  %v2452_v5 = vcombine.high %v12206_v3, %v12188_v60  ;;  %v2554_v60 = vcombine.high %v12176_v28, %v12162_v55 }
 0x350   : > { %v12289_v6 = vpop.permute.xlu0 %4277  ;;  %v4185_v7 = vcombine.low %v12301_v59, %v12287_v24 }
 0x351   : > { %16571 = vst [vmem:[#allocation145_spill] sm:$0xff] %v12289_v6  ;;  %v12312_v30 = vrot.slane %v4089_v56, %v10586_v51  ;;  %v4084_v28 = vcombine.high %v4032_v15, %v4064_v50 }
 0x352   : > { %4521 = vrot.lane.b32.xlu0 %v2451_v39, %s9740_s26  ;;  %4459 = vrot.lane.b32.xlu1 %v2585_v14, %s9738_s10  ;;  %v3488_v39 = vrot.slane %v3474_v63, %v10669_v23  ;;  %v3617_v14 = vrot.slane %v3609_v33, %v10669_v23  ;;  %v4193_v41 = vrot.slane %v4185_v7, %v10669_v23  ;;  %v12328_v56 = vpop.permute.xlu1 %4239 }
 0x353   : > { %v4153_v58 = vcombine.low %v12312_v30, %v12298_v46  ;;  %16574 = vst [vmem:[#allocation155_spill] sm:$0xff] %v12328_v56 }
 0x354   : > { %v12316_v62 = vpop.permute.xlu0 %4297  ;;  %v3539_v63 = vcombine.low %v3488_v39, %v3520_v36  ;;  %v3673_v33 = vcombine.low %v3617_v14, %v3649_v44 }
 0x355   : > { %16573 = vst [vmem:[#allocation107_spill] sm:$0xff] %v12316_v62  ;;  %v4161_v57 = vrot.slane %v4153_v58, %v10669_v23  ;;  %v2586_v58 = vcombine.high %v12255_v35, %v12223_v4  ;;  %v3540_v35 = vcombine.high %v3488_v39, %v3520_v36 }
 0x356   : > { %4525 = vrot.lane.b32.xlu0 %v2995_v21, %s9740_s26  ;;  %4463 = vrot.lane.b32.xlu1 %v3129_v25, %s9738_s10  ;;  %v12336_v29 = vpop.permute.xlu1 %4243  ;;  %v4083_v25 = vcombine.low %v4032_v15, %v4064_v50 }
 0x357   : > { %16576 = vst [vmem:[#allocation151_spill] sm:$0xff] %v12336_v29  ;;  %v4217_v47 = vcombine.low %v4161_v57, %v4193_v41  ;;  %v16682_v29 = vld [vmem:[#allocation182_spill] sm:$0xff] }
 0x358   : > { %v12330_v9 = vpop.permute.xlu0 %4301 }
 0x359   : > { %16575 = vst [vmem:[#allocation154_spill] sm:$0xff] %v12330_v9 }
 0x35a   : > { %4529 = vrot.lane.b32.xlu0 %v3539_v63, %s9740_s26  ;;  %4467 = vrot.lane.b32.xlu1 %v3673_v33, %s9738_s10 }
 0x35c   : > { %v12338_v21 = vpop.permute.xlu0 %4305 }
 0x35d   : > { %16577 = vst [vmem:[#allocation150_spill] sm:$0xff] %v12338_v21 }
 0x35e   : > { %4533 = vrot.lane.b32.xlu0 %v4083_v25, %s9740_s26  ;;  %4471 = vrot.lane.b32.xlu1 %v4217_v47, %s9738_s10  ;;  %v2996_v25 = vcombine.high %v2944_v13, %v2976_v22  ;;  %v3130_v47 = vcombine.high %v3073_v27, %v3105_v20  ;;  %v2568_v22 = vrot.slane %v2554_v60, %v10669_v23  ;;  %v16594_v60 = vld [vmem:[#allocation63_spill] sm:$0xff] }
 0x35f   : > { %v3098_v20 = vcombine.high %v12218_v53, %v12203_v42  ;;  %v4218_v27 = vcombine.high %v4161_v57, %v4193_v41  ;;  %v3642_v42 = vcombine.high %v12265_v2, %v12244_v37  ;;  %v4186_v2 = vcombine.high %v12301_v59, %v12287_v24 }
 0x360   : > { %v12342_v7 = vpop.permute.xlu1 %4247  ;;  %v12344_v32 = vpop.permute.xlu0 %4309 }
 0x361   : > { %16578 = vst [vmem:[#allocation153_spill] sm:$0xff] %v12342_v7  ;;  %16579 = vst [vmem:[#allocation152_spill] sm:$0xff] %v12344_v32  ;;  %v3656_v37 = vrot.slane %v3642_v42, %v10669_v23  ;;  %v16645_v7 = vld [vmem:[#allocation126_spill] sm:$0xff] }
 0x362   : > { %4553 = vrot.lane.b32.xlu0 %v2452_v5, %s9741_s13  ;;  %4491 = vrot.lane.b32.xlu1 %v2586_v58, %s9739_s14  ;;  %v3674_v5 = vcombine.high %v3617_v14, %v3649_v44  ;;  %v2522_v58 = vcombine.high %v12198_v38, %v12181_v54  ;;  %v3066_v54 = vcombine.high %v12237_v31, %v12215_v40  ;;  %v16588_v40 = vld [vmem:[#allocation158_spill] sm:$0xff] }
 0x363   : > { %v3112_v38 = vrot.slane %v3098_v20, %v10669_v23  ;;  %v3610_v14 = vcombine.high %v12280_v11, %v12262_v0  ;;  %v16589_v31 = vld [vmem:[#allocation162_spill] sm:$0xff]  ;;  %v4154_v11 = vcombine.high %v12312_v30, %v12298_v46 }
 0x364   : > { %v12352_v63 = vpop.permute.xlu1 %4267  ;;  %v12354_v33 = vpop.permute.xlu0 %4329  ;;  %v2536_v36 = vrot.slane %v2522_v58, %v10669_v23  ;;  %v3080_v39 = vrot.slane %v3066_v54, %v10669_v23  ;;  %v16590_v50 = vcombine.low %v16588_v40, %v16589_v31 }
 0x365   : > { %16580 = vst [vmem:[#allocation149_spill] sm:$0xff] %v12352_v63  ;;  %16581 = vst [vmem:[#allocation148_spill] sm:$0xff] %v12354_v33  ;;  %v3624_v0 = vrot.slane %v3610_v14, %v10669_v23  ;;  %v4168_v20 = vrot.slane %v4154_v11, %v10669_v23  ;;  %v16604_v14 = vld [vmem:[#allocation125_spill] sm:$0xff] }
 0x366   : > { %4557 = vrot.lane.b32.xlu0 %v2996_v25, %s9741_s13  ;;  %4495 = vrot.lane.b32.xlu1 %v3130_v47, %s9739_s14  ;;  %v2587_v15 = vcombine.low %v2536_v36, %v2568_v22  ;;  %v3131_v25 = vcombine.low %v3080_v39, %v3112_v38  ;;  %v16593_v47 = vld [vmem:[#allocation61_spill] sm:$0xff]  ;;  %v2588_v11 = vcombine.high %v2536_v36, %v2568_v22 }
 0x367   : > { %v3675_v58 = vcombine.low %v3624_v0, %v3656_v37 }
 0x368   : > { %v12360_v3 = vpop.permute.xlu1 %4271  ;;  %v12362_v4 = vpop.permute.xlu0 %4333 }
 0x369   : > { %16582 = vst [vmem:[#allocation56_spill] sm:$0xff] %v12360_v3  ;;  %16583 = vst [vmem:[#allocation55_spill] sm:$0xff] %v12362_v4 }
 0x36a   : > { %4561 = vrot.lane.b32.xlu0 %v3540_v35, %s9741_s13  ;;  %4499 = vrot.lane.b32.xlu1 %v3674_v5, %s9739_s14  ;;  %v16595_v35 = vcombine.low %v16593_v47, %v16594_v60  ;;  %v4200_v5 = vrot.slane %v4186_v2, %v10669_v23 }
 0x36c   : > { %v12371_v13 = vpop.permute.xlu1 %4275  ;;  %v12373_v55 = vpop.permute.xlu0 %4337  ;;  %v4219_v42 = vcombine.low %v4168_v20, %v4200_v5 }
 0x36d   : > { %16584 = vst [vmem:[#allocation54_spill] sm:$0xff] %v12371_v13  ;;  %16585 = vst [vmem:[#allocation53_spill] sm:$0xff] %v12373_v55 }
 0x36e   : > { %4565 = vrot.lane.b32.xlu0 %v4084_v28, %s9741_s13  ;;  %4503 = vrot.lane.b32.xlu1 %v4218_v27, %s9739_s14  ;;  %v16598_v28 = vld [vmem:[#allocation90_spill] sm:$0xff]  ;;  %v16599_v27 = vld [vmem:[#allocation87_spill] sm:$0xff] }
 0x36f   : > { %v16600_v46 = vcombine.low %v16598_v28, %v16599_v27 }
 0x370   : > { %v12383_v53 = vpop.permute.xlu1 %4279  ;;  %v12385_v44 = vpop.permute.xlu0 %4341 }
 0x371   : > { %16586 = vst [vmem:[#allocation52_spill] sm:$0xff] %v12383_v53  ;;  %16587 = vst [vmem:[#allocation51_spill] sm:$0xff] %v12385_v44  ;;  %v16640_v53 = vld [vmem:[#allocation91_spill] sm:$0xff] }
 0x372   : > { %4585 = vrot.lane.b32.xlu0 %v16590_v50, %s9742_s19  ;;  %4523 = vrot.lane.b32.xlu1 %v2587_v15, %s9740_s26  ;;  %v16603_v15 = vld [vmem:[#allocation122_spill] sm:$0xff] }
 0x373   : > { %v16605_v50 = vcombine.low %v16603_v15, %v16604_v14 }
 0x374   : > { %v12398_v41 = vpop.permute.xlu1 %4299  ;;  %v12400_v57 = vpop.permute.xlu0 %4361 }
 0x375   : > { %16591 = vst [vmem:[#allocation48_spill] sm:$0xff] %v12398_v41  ;;  %16592 = vst [vmem:[#allocation47_spill] sm:$0xff] %v12400_v57 }
 0x376   : > { %4589 = vrot.lane.b32.xlu0 %v16595_v35, %s9742_s19  ;;  %4527 = vrot.lane.b32.xlu1 %v3131_v25, %s9740_s26  ;;  %v16608_v35 = vcombine.high %v16588_v40, %v16589_v31  ;;  %v16614_v40 = vcombine.high %v16598_v28, %v16599_v27  ;;  %v4220_v31 = vcombine.high %v4168_v20, %v4200_v5  ;;  %v16621_v28 = vld [vmem:[#allocation173_spill] sm:$0xff]  ;;  %v16624_v5 = vld [vmem:[#allocation163_spill] sm:$0xff] }
 0x378   : > { %v12411_v24 = vpop.permute.xlu1 %4303  ;;  %v12413_v59 = vpop.permute.xlu0 %4365 }
 0x379   : > { %16596 = vst [vmem:[#allocation85_spill] sm:$0xff] %v12411_v24  ;;  %16597 = vst [vmem:[#allocation84_spill] sm:$0xff] %v12413_v59 }
 0x37a   : > { %4593 = vrot.lane.b32.xlu0 %v16600_v46, %s9742_s19  ;;  %4531 = vrot.lane.b32.xlu1 %v3675_v58, %s9740_s26 }
 0x37c   : > { %v12421_v30 = vpop.permute.xlu1 %4307  ;;  %v12423_v54 = vpop.permute.xlu0 %4369 }
 0x37d   : > { %16601 = vst [vmem:[#allocation81_spill] sm:$0xff] %v12421_v30  ;;  %16602 = vst [vmem:[#allocation78_spill] sm:$0xff] %v12423_v54 }
 0x37e   : > { %4597 = vrot.lane.b32.xlu0 %v16605_v50, %s9742_s19  ;;  %4535 = vrot.lane.b32.xlu1 %v4219_v42, %s9740_s26  ;;  %v3132_v50 = vcombine.high %v3080_v39, %v3112_v38  ;;  %v16611_v42 = vcombine.high %v16593_v47, %v16594_v60  ;;  %v16617_v47 = vcombine.high %v16603_v15, %v16604_v14  ;;  %v16620_v60 = vld [vmem:[#allocation46_spill] sm:$0xff]  ;;  %v16628_v15 = vld [vmem:[#allocation179_spill] sm:$0xff]  ;;  %v16629_v14 = vld [vmem:[#allocation76_spill] sm:$0xff] }
 0x37f   : > { %v16622_v27 = vcombine.low %v16620_v60, %v16621_v28 }
 0x380   : > { %v12430_v2 = vpop.permute.xlu1 %4311  ;;  %v12432_v25 = vpop.permute.xlu0 %4373 }
 0x381   : > { %16606 = vst [vmem:[#allocation82_spill] sm:$0xff] %v12430_v2  ;;  %16607 = vst [vmem:[#allocation83_spill] sm:$0xff] %v12432_v25  ;;  %v16639_v2 = vld [vmem:[#allocation88_spill] sm:$0xff] }
 0x382   : > { %4555 = vrot.lane.b32.xlu1 %v2588_v11, %s9741_s13  ;;  %4617 = vrot.lane.b32.xlu0 %v16608_v35, %s9743_s11  ;;  %v3676_v11 = vcombine.high %v3624_v0, %v3656_v37  ;;  %v16623_v35 = vld [vmem:[#allocation161_spill] sm:$0xff]  ;;  %v16641_v12 = vcombine.low %v16639_v2, %v16640_v53 }
 0x383   : > { %v16625_v20 = vcombine.low %v16623_v35, %v16624_v5 }
 0x384   : > { %v12439_v58 = vpop.permute.xlu1 %4331  ;;  %v12441_v46 = vpop.permute.xlu0 %4393 }
 0x385   : > { %16609 = vst [vmem:[#allocation180_spill] sm:$0xff] %v12439_v58  ;;  %16610 = vst [vmem:[#allocation77_spill] sm:$0xff] %v12441_v46 }
 0x386   : > { %4559 = vrot.lane.b32.xlu1 %v3132_v50, %s9741_s13  ;;  %4621 = vrot.lane.b32.xlu0 %v16611_v42, %s9743_s11 }
 0x388   : > { %v12448_v22 = vpop.permute.xlu1 %4335  ;;  %v12450_v36 = vpop.permute.xlu0 %4397 }
 0x389   : > { %16612 = vst [vmem:[#allocation120_spill] sm:$0xff] %v12448_v22  ;;  %16613 = vst [vmem:[#allocation117_spill] sm:$0xff] %v12450_v36 }
 0x38a   : > { %4563 = vrot.lane.b32.xlu1 %v3676_v11, %s9741_s13  ;;  %4625 = vrot.lane.b32.xlu0 %v16614_v40, %s9743_s11  ;;  %v16630_v11 = vcombine.low %v16628_v15, %v16629_v14  ;;  %v16631_v40 = vld [vmem:[#allocation60_spill] sm:$0xff] }
 0x38c   : > { %v12457_v38 = vpop.permute.xlu1 %4339  ;;  %v12459_v39 = vpop.permute.xlu0 %4401 }
 0x38d   : > { %16615 = vst [vmem:[#allocation118_spill] sm:$0xff] %v12457_v38  ;;  %16616 = vst [vmem:[#allocation114_spill] sm:$0xff] %v12459_v39  ;;  %v16646_v38 = vld [vmem:[#allocation121_spill] sm:$0xff] }
 0x38e   : > { %4567 = vrot.lane.b32.xlu1 %v4220_v31, %s9741_s13  ;;  %4629 = vrot.lane.b32.xlu0 %v16617_v47, %s9743_s11  ;;  %v16632_v31 = vld [vmem:[#allocation64_spill] sm:$0xff]  ;;  %v16647_v30 = vcombine.low %v16645_v7, %v16646_v38 }
 0x38f   : > { %v16633_v47 = vcombine.low %v16631_v40, %v16632_v31 }
 0x390   : > { %v12466_v37 = vpop.permute.xlu1 %4343  ;;  %v12468_v0 = vpop.permute.xlu0 %4405 }
 0x391   : > { %16618 = vst [vmem:[#allocation115_spill] sm:$0xff] %v12466_v37  ;;  %16619 = vst [vmem:[#allocation119_spill] sm:$0xff] %v12468_v0  ;;  %v16702_v0 = vld [vmem:[#allocation31_spill] sm:$0xff] }
 0x392   : > { %4587 = vrot.lane.b32.xlu1 %v16622_v27, %s9742_s19  ;;  %4649 = vrot.lane.b32.xlu0 %v16625_v20, %s9744_s6  ;;  %v16636_v20 = vld [vmem:[#allocation108_spill] sm:$0xff] }
 0x393   : > { %v16638_v37 = vcombine.low %v16636_v20, %v16637_v1 }
 0x394   : > { %v12478_v50 = vpop.permute.xlu1 %4363  ;;  %v12480_v42 = vpop.permute.xlu0 %4425 }
 0x395   : > { %16626 = vst [vmem:[#allocation116_spill] sm:$0xff] %v12478_v50  ;;  %16627 = vst [vmem:[#allocation110_spill] sm:$0xff] %v12480_v42 }
 0x396   : > { %4591 = vrot.lane.b32.xlu1 %v16630_v11, %s9742_s19  ;;  %4653 = vrot.lane.b32.xlu0 %v16633_v47, %s9744_s6  ;;  %v16644_v47 = vcombine.low %v11843_v19, %v11833_v17 }
 0x398   : > { %v12490_v27 = vpop.permute.xlu1 %4367  ;;  %v12492_v61 = vpop.permute.xlu0 %4429 }
 0x399   : > { %16634 = vst [vmem:[#allocation172_spill] sm:$0xff] %v12490_v27  ;;  %16635 = vst [vmem:[#allocation170_spill] sm:$0xff] %v12492_v61 }
 0x39a   : > { %4595 = vrot.lane.b32.xlu1 %v16638_v37, %s9742_s19  ;;  %4657 = vrot.lane.b32.xlu0 %v16641_v12, %s9744_s6  ;;  %v16650_v12 = vcombine.high %v16620_v60, %v16621_v28  ;;  %v16655_v60 = vcombine.high %v16631_v40, %v16632_v31  ;;  %v16664_v31 = vcombine.high %v11843_v19, %v11833_v17 }
 0x39c   : > { %v12502_v11 = vpop.permute.xlu1 %4371  ;;  %v12504_v43 = vpop.permute.xlu0 %4433 }
 0x39d   : > { %16642 = vst [vmem:[#allocation72_spill] sm:$0xff] %v12502_v11  ;;  %16643 = vst [vmem:[#allocation75_spill] sm:$0xff] %v12504_v43  ;;  %v16651_v11 = vcombine.high %v16623_v35, %v16624_v5  ;;  %v16658_v35 = vcombine.high %v16636_v20, %v16637_v1  ;;  %v16659_v5 = vcombine.high %v16639_v2, %v16640_v53  ;;  %v16666_v20 = vld [vmem:[#allocation23_spill] sm:$0xff] }
 0x39e   : > { %4599 = vrot.lane.b32.xlu1 %v16644_v47, %s9742_s19  ;;  %4661 = vrot.lane.b32.xlu0 %v16647_v30, %s9744_s6  ;;  %v16654_v30 = vcombine.high %v16628_v15, %v16629_v14  ;;  %v16660_v15 = vld [vmem:[#allocation20_spill] sm:$0xff]  ;;  %v16661_v14 = vld [vmem:[#allocation21_spill] sm:$0xff]  ;;  %v16665_v1 = vcombine.high %v16645_v7, %v16646_v38  ;;  %v16676_v38 = vld [vmem:[#allocation178_spill] sm:$0xff] }
 0x39f   : > { %v16675_v7 = vld [vmem:[#allocation181_spill] sm:$0xff] }
 0x3a0   : > { %v12514_v37 = vpop.permute.xlu1 %4375  ;;  %v12516_v13 = vpop.permute.xlu0 %4437 }
 0x3a1   : > { %16648 = vst [vmem:[#allocation105_spill] sm:$0xff] %v12514_v37  ;;  %16649 = vst [vmem:[#allocation104_spill] sm:$0xff] %v12516_v13 }
 0x3a2   : > { %4619 = vrot.lane.b32.xlu1 %v16650_v12, %s9743_s11  ;;  %4681 = vrot.lane.b32.xlu0 %v16651_v11, %s9745_s7  ;;  %v488_v11 = vadd.f32 %v16661_v14, %v16660_v15  ;;  %v16672_v14 = vld [vmem:[#allocation22_spill] sm:$0xff] }
 0x3a4   : > { %v12526_v47 = vpop.permute.xlu1 %4395  ;;  %v12528_v27 = vpop.permute.xlu0 %4457  ;;  %v4843_v53 = vrot.slane %v488_v11, %v16666_v20  ;;  %v4854_v17 = vrot.slane %v488_v11, %v16672_v14 }
 0x3a5   : > { %16652 = vst [vmem:[#allocation42_spill] sm:$0xff] %v12526_v47  ;;  %16653 = vst [vmem:[#allocation44_spill] sm:$0xff] %v12528_v27 }
 0x3a6   : > { %4623 = vrot.lane.b32.xlu1 %v16654_v30, %s9743_s11  ;;  %4685 = vrot.lane.b32.xlu0 %v16655_v60, %s9745_s7 }
 0x3a8   : > { %v12538_v28 = vpop.permute.xlu1 %4399  ;;  %v12540_v12 = vpop.permute.xlu0 %4461 }
 0x3a9   : > { %16656 = vst [vmem:[#allocation169_spill] sm:$0xff] %v12538_v28  ;;  %16657 = vst [vmem:[#allocation168_spill] sm:$0xff] %v12540_v12 }
 0x3aa   : > { %4627 = vrot.lane.b32.xlu1 %v16658_v35, %s9743_s11  ;;  %4689 = vrot.lane.b32.xlu0 %v16659_v5, %s9745_s7  ;;  %v16669_v35 = vld [vmem:[#allocation171_spill] sm:$0xff]  ;;  %v16670_v5 = vld [vmem:[#allocation174_spill] sm:$0xff] }
 0x3ab   : > { %v16671_v15 = vcombine.low %v16669_v35, %v16670_v5 }
 0x3ac   : > { %v12552_v30 = vpop.permute.xlu1 %4403  ;;  %v12554_v40 = vpop.permute.xlu0 %4465 }
 0x3ad   : > { %16662 = vst [vmem:[#allocation167_spill] sm:$0xff] %v12552_v30  ;;  %16663 = vst [vmem:[#allocation166_spill] sm:$0xff] %v12554_v40 }
 0x3ae   : > { %4631 = vrot.lane.b32.xlu1 %v16664_v31, %s9743_s11  ;;  %4693 = vrot.lane.b32.xlu0 %v16665_v1, %s9745_s7  ;;  %v16677_v1 = vcombine.low %v16675_v7, %v16676_v38 }
 0x3b0   : > { %v12565_v2 = vpop.permute.xlu1 %4407  ;;  %v12567_v60 = vpop.permute.xlu0 %4469 }
 0x3b1   : > { %16667 = vst [vmem:[#allocation165_spill] sm:$0xff] %v12565_v2  ;;  %16668 = vst [vmem:[#allocation164_spill] sm:$0xff] %v12567_v60  ;;  %v16678_v2 = vld [vmem:[#allocation24_spill] sm:$0xff] }
 0x3b2   : > { %4651 = vrot.lane.b32.xlu1 %v16671_v15, %s9744_s6  ;;  %4845 = vbcast.lane.b32.xlu0 %v4843_v53, 256  ;;  %v4865_v37 = vrot.slane %v488_v11, %v16678_v2  ;;  %v16681_v15 = vld [vmem:[#allocation183_spill] sm:$0xff] }
 0x3b3   : > { %v16683_v22 = vcombine.low %v16681_v15, %v16682_v29 }
 0x3b4   : > { %v12574_v19 = vpop.permute.xlu1 %4427  ;;  %v12576_v31 = vpop.permute.xlu0 %4489 }
 0x3b5   : > { %16673 = vst [vmem:[#allocation73_spill] sm:$0xff] %v12574_v19  ;;  %16674 = vst [vmem:[#allocation70_spill] sm:$0xff] %v12576_v31  ;;  %v16684_v19 = vld [vmem:[#allocation25_spill] sm:$0xff] }
 0x3b6   : > { %4655 = vrot.lane.b32.xlu1 %v16677_v1, %s9744_s6  ;;  %4856 = vbcast.lane.b32.xlu0 %v4854_v17, 256  ;;  %v4876_v24 = vrot.slane %v488_v11, %v16684_v19  ;;  %v16687_v1 = vcombine.low %v11846_v26, %v11836_v52 }
 0x3b8   : > { %v12583_v30 = vpop.permute.xlu1 %4431  ;;  %v12585_v28 = vpop.permute.xlu0 %4493 }
 0x3b9   : > { %16679 = vst [vmem:[#allocation67_spill] sm:$0xff] %v12583_v30  ;;  %16680 = vst [vmem:[#allocation177_spill] sm:$0xff] %v12585_v28  ;;  %v16688_v30 = vld [vmem:[#allocation26_spill] sm:$0xff] }
 0x3ba   : > { %4659 = vrot.lane.b32.xlu1 %v16683_v22, %s9744_s6  ;;  %4867 = vbcast.lane.b32.xlu0 %v4865_v37, 256  ;;  %v4887_v50 = vrot.slane %v488_v11, %v16688_v30  ;;  %v16691_v22 = vcombine.high %v16669_v35, %v16670_v5  ;;  %v16699_v35 = vcombine.high %v16681_v15, %v16682_v29  ;;  %v16700_v5 = vld [vmem:[#allocation29_spill] sm:$0xff] }
 0x3bc   : > { %v12592_v47 = vpop.permute.xlu1 %4435  ;;  %v12594_v3 = vpop.permute.xlu0 %4497 }
 0x3bd   : > { %16685 = vst [vmem:[#allocation69_spill] sm:$0xff] %v12592_v47  ;;  %16686 = vst [vmem:[#allocation68_spill] sm:$0xff] %v12594_v3  ;;  %v16692_v47 = vld [vmem:[#allocation27_spill] sm:$0xff] }
 0x3be   : > { %4663 = vrot.lane.b32.xlu1 %v16687_v1, %s9744_s6  ;;  %4878 = vbcast.lane.b32.xlu0 %v4876_v24, 256  ;;  %v4898_v41 = vrot.slane %v488_v11, %v16692_v47  ;;  %v16695_v1 = vcombine.high %v16675_v7, %v16676_v38 }
 0x3c0   : > { %v12601_v56 = vpop.permute.xlu1 %4439  ;;  %v12603_v58 = vpop.permute.xlu0 %4501 }
 0x3c1   : > { %16689 = vst [vmem:[#allocation176_spill] sm:$0xff] %v12601_v56  ;;  %16690 = vst [vmem:[#allocation175_spill] sm:$0xff] %v12603_v58  ;;  %v16696_v56 = vld [vmem:[#allocation28_spill] sm:$0xff] }
 0x3c2   : > { %4683 = vrot.lane.b32.xlu1 %v16691_v22, %s9745_s7  ;;  %4889 = vbcast.lane.b32.xlu0 %v4887_v50, 256  ;;  %v4909_v58 = vrot.slane %v488_v11, %v16696_v56  ;;  %v4920_v22 = vrot.slane %v488_v11, %v16700_v5 }
 0x3c4   : > { %v12610_v63 = vpop.permute.xlu1 %4459  ;;  %v12612_v48 = vpop.permute.xlu0 %4521 }
 0x3c5   : > { %16693 = vst [vmem:[#allocation101_spill] sm:$0xff] %v12610_v63  ;;  %16694 = vst [vmem:[#allocation98_spill] sm:$0xff] %v12612_v48  ;;  %v16701_v63 = vld [vmem:[#allocation30_spill] sm:$0xff] }
 0x3c6   : > { %4687 = vrot.lane.b32.xlu1 %v16695_v1, %s9745_s7  ;;  %4900 = vbcast.lane.b32.xlu0 %v4898_v41, 256  ;;  %v489_v3 = vadd.f32 %v16702_v0, %v16701_v63  ;;  %v16705_v1 = vcombine.high %v11846_v26, %v11836_v52 }
 0x3c8   : > { %v12619_v60 = vpop.permute.xlu1 %4463  ;;  %v12621_v13 = vpop.permute.xlu0 %4525  ;;  %v4942_v63 = vrot.slane %v489_v3, %v16672_v14  ;;  %v4953_v52 = vrot.slane %v489_v3, %v16678_v2 }
 0x3c9   : > { %16697 = vst [vmem:[#allocation99_spill] sm:$0xff] %v12619_v60  ;;  %16698 = vst [vmem:[#allocation94_spill] sm:$0xff] %v12621_v13  ;;  %v4931_v60 = vrot.slane %v489_v3, %v16666_v20 }
 0x3ca   : > { %4691 = vrot.lane.b32.xlu1 %v16699_v35, %s9745_s7  ;;  %4911 = vbcast.lane.b32.xlu0 %v4909_v58, 256 }
 0x3cc   : > { %v12630_v7 = vpop.permute.xlu1 %4467  ;;  %v12632_v38 = vpop.permute.xlu0 %4529 }
 0x3cd   : > { %16703 = vst [vmem:[#allocation100_spill] sm:$0xff] %v12630_v7  ;;  %16704 = vst [vmem:[#allocation97_spill] sm:$0xff] %v12632_v38  ;;  %v4975_v7 = vrot.slane %v489_v3, %v16688_v30 }
 0x3ce   : > { %4695 = vrot.lane.b32.xlu1 %v16705_v1, %s9745_s7  ;;  %4922 = vbcast.lane.b32.xlu0 %v4920_v22, 256  ;;  %v4964_v1 = vrot.slane %v489_v3, %v16684_v19 }
 0x3d0   : > { %v12639_v29 = vpop.permute.xlu1 %4471  ;;  %v12641_v15 = vpop.permute.xlu0 %4533 }
 0x3d1   : > { %16706 = vst [vmem:[#allocation93_spill] sm:$0xff] %v12639_v29  ;;  %16707 = vst [vmem:[#allocation92_spill] sm:$0xff] %v12641_v15 }
 0x3d2   : > { %4849 = vbcast.lane.b32.xlu1 %v4843_v53, 264  ;;  %4933 = vbcast.lane.b32.xlu0 %v4931_v60, 256 }
 0x3d4   : > { %v12644_v0 = vpop.permute.xlu1 %4491  ;;  %v12646_v11 = vpop.permute.xlu0 %4553 }
 0x3d5   : > { %16708 = vst [vmem:[#allocation133_spill] sm:$0xff] %v12644_v0  ;;  %16709 = vst [vmem:[#allocation137_spill] sm:$0xff] %v12646_v11 }
 0x3d6   : > { %4860 = vbcast.lane.b32.xlu1 %v4854_v17, 264  ;;  %4944 = vbcast.lane.b32.xlu0 %v4942_v63, 256 }
 0x3d8   : > { %v12649_v26 = vpop.permute.xlu1 %4495  ;;  %v12651_v35 = vpop.permute.xlu0 %4557 }
 0x3d9   : > { %16710 = vst [vmem:[#allocation134_spill] sm:$0xff] %v12649_v26  ;;  %16711 = vst [vmem:[#allocation128_spill] sm:$0xff] %v12651_v35  ;;  %v4986_v26 = vrot.slane %v489_v3, %v16692_v47 }
 0x3da   : > { %4871 = vbcast.lane.b32.xlu1 %v4865_v37, 264  ;;  %4955 = vbcast.lane.b32.xlu0 %v4953_v52, 256 }
 0x3dc   : > { %v12654_v53 = vpop.permute.xlu1 %4499  ;;  %v12656_v29 = vpop.permute.xlu0 %4561 }
 0x3dd   : > { %16712 = vst [vmem:[#allocation136_spill] sm:$0xff] %v12654_v53  ;;  %16713 = vst [vmem:[#allocation132_spill] sm:$0xff] %v12656_v29  ;;  %v4997_v53 = vrot.slane %v489_v3, %v16696_v56 }
 0x3de   : > { %4882 = vbcast.lane.b32.xlu1 %v4876_v24, 264  ;;  %4966 = vbcast.lane.b32.xlu0 %v4964_v1, 256 }
 0x3e0   : > { %v12659_v17 = vpop.permute.xlu1 %4503  ;;  %v12661_v0 = vpop.permute.xlu0 %4565 }
 0x3e1   : > { %16714 = vst [vmem:[#allocation127_spill] sm:$0xff] %v12659_v17  ;;  %16715 = vst [vmem:[#allocation123_spill] sm:$0xff] %v12661_v0  ;;  %v5008_v17 = vrot.slane %v489_v3, %v16700_v5  ;;  %v16721_v0 = vld [vmem:[#allocation33_spill] sm:$0xff] }
 0x3e2   : > { %4893 = vbcast.lane.b32.xlu1 %v4887_v50, 264  ;;  %4977 = vbcast.lane.b32.xlu0 %v4975_v7, 256  ;;  %v16720_v50 = vld [vmem:[#allocation32_spill] sm:$0xff] }
 0x3e3   : > { %v490_v38 = vadd.f32 %v16721_v0, %v16720_v50 }
 0x3e4   : > { %v12664_v37 = vpop.permute.xlu1 %4523  ;;  %v12666_v15 = vpop.permute.xlu0 %4585 }
 0x3e5   : > { %16716 = vst [vmem:[#allocation158_spill] sm:$0xff] %v12664_v37  ;;  %16717 = vst [vmem:[#allocation162_spill] sm:$0xff] %v12666_v15  ;;  %v5041_v0 = vrot.slane %v490_v38, %v16678_v2 }
 0x3e6   : > { %4904 = vbcast.lane.b32.xlu1 %v4898_v41, 264  ;;  %4988 = vbcast.lane.b32.xlu0 %v4986_v26, 256  ;;  %v5019_v41 = vrot.slane %v490_v38, %v16666_v20 }
 0x3e8   : > { %v12669_v24 = vpop.permute.xlu1 %4527  ;;  %v12671_v29 = vpop.permute.xlu0 %4589 }
 0x3e9   : > { %16718 = vst [vmem:[#allocation61_spill] sm:$0xff] %v12669_v24  ;;  %16719 = vst [vmem:[#allocation63_spill] sm:$0xff] %v12671_v29 }
 0x3ea   : > { %4915 = vbcast.lane.b32.xlu1 %v4909_v58, 264  ;;  %4999 = vbcast.lane.b32.xlu0 %v4997_v53, 256  ;;  %v5030_v58 = vrot.slane %v490_v38, %v16672_v14 }
 0x3ec   : > { %v12676_v25 = vpop.permute.xlu1 %4531  ;;  %v12678_v37 = vpop.permute.xlu0 %4593 }
 0x3ed   : > { %16722 = vst [vmem:[#allocation90_spill] sm:$0xff] %v12676_v25  ;;  %16723 = vst [vmem:[#allocation87_spill] sm:$0xff] %v12678_v37 }
 0x3ee   : > { %4926 = vbcast.lane.b32.xlu1 %v4920_v22, 264  ;;  %5010 = vbcast.lane.b32.xlu0 %v5008_v17, 256 }
 0x3f0   : > { %v12681_v40 = vpop.permute.xlu1 %4535  ;;  %v12683_v24 = vpop.permute.xlu0 %4597 }
 0x3f1   : > { %16724 = vst [vmem:[#allocation122_spill] sm:$0xff] %v12681_v40  ;;  %16725 = vst [vmem:[#allocation125_spill] sm:$0xff] %v12683_v24  ;;  %v5052_v40 = vrot.slane %v490_v38, %v16684_v19 }
 0x3f2   : > { %4937 = vbcast.lane.b32.xlu1 %v4931_v60, 264  ;;  %5021 = vbcast.lane.b32.xlu0 %v5019_v41, 256 }
 0x3f4   : > { %v12686_v3 = vpop.permute.xlu1 %4555  ;;  %v12688_v29 = vpop.permute.xlu0 %4617 }
 0x3f5   : > { %16726 = vst [vmem:[#allocation46_spill] sm:$0xff] %v12686_v3  ;;  %16727 = vst [vmem:[#allocation173_spill] sm:$0xff] %v12688_v29  ;;  %v5063_v3 = vrot.slane %v490_v38, %v16688_v30  ;;  %v16763_v29 = vld [vmem:[#allocation41_spill] sm:$0xff] }
 0x3f6   : > { %4948 = vbcast.lane.b32.xlu1 %v4942_v63, 264  ;;  %5032 = vbcast.lane.b32.xlu0 %v5030_v58, 256 }
 0x3f8   : > { %v12691_v22 = vpop.permute.xlu1 %4559  ;;  %v12693_v50 = vpop.permute.xlu0 %4621 }
 0x3f9   : > { %16728 = vst [vmem:[#allocation161_spill] sm:$0xff] %v12691_v22  ;;  %16729 = vst [vmem:[#allocation163_spill] sm:$0xff] %v12693_v50  ;;  %v5074_v22 = vrot.slane %v490_v38, %v16692_v47 }
 0x3fa   : > { %4959 = vbcast.lane.b32.xlu1 %v4953_v52, 264  ;;  %5043 = vbcast.lane.b32.xlu0 %v5041_v0, 256 }
 0x3fc   : > { %v12696_v60 = vpop.permute.xlu1 %4563  ;;  %v12698_v25 = vpop.permute.xlu0 %4625 }
 0x3fd   : > { %16730 = vst [vmem:[#allocation179_spill] sm:$0xff] %v12696_v60  ;;  %16731 = vst [vmem:[#allocation76_spill] sm:$0xff] %v12698_v25  ;;  %v5085_v60 = vrot.slane %v490_v38, %v16696_v56 }
 0x3fe   : > { %4970 = vbcast.lane.b32.xlu1 %v4964_v1, 264  ;;  %5054 = vbcast.lane.b32.xlu0 %v5052_v40, 256 }
 0x400   : > { %v12701_v63 = vpop.permute.xlu1 %4567  ;;  %v12703_v24 = vpop.permute.xlu0 %4629 }
 0x401   : > { %16732 = vst [vmem:[#allocation60_spill] sm:$0xff] %v12701_v63  ;;  %16733 = vst [vmem:[#allocation64_spill] sm:$0xff] %v12703_v24  ;;  %v5096_v63 = vrot.slane %v490_v38, %v16700_v5  ;;  %v16739_v24 = vld [vmem:[#allocation37_spill] sm:$0xff] }
 0x402   : > { %4981 = vbcast.lane.b32.xlu1 %v4975_v7, 264  ;;  %5065 = vbcast.lane.b32.xlu0 %v5063_v3, 256  ;;  %v16738_v7 = vld [vmem:[#allocation36_spill] sm:$0xff] }
 0x403   : > { %v491_v50 = vadd.f32 %v16739_v24, %v16738_v7 }
 0x404   : > { %v12706_v52 = vpop.permute.xlu1 %4587  ;;  %v12708_v37 = vpop.permute.xlu0 %4649 }
 0x405   : > { %16734 = vst [vmem:[#allocation108_spill] sm:$0xff] %v12706_v52  ;;  %16735 = vst [vmem:[#allocation109_spill] sm:$0xff] %v12708_v37  ;;  %v5129_v24 = vrot.slane %v491_v50, %v16678_v2 }
 0x406   : > { %4992 = vbcast.lane.b32.xlu1 %v4986_v26, 264  ;;  %5076 = vbcast.lane.b32.xlu0 %v5074_v22, 256  ;;  %v5107_v26 = vrot.slane %v491_v50, %v16666_v20 }
 0x408   : > { %v12711_v1 = vpop.permute.xlu1 %4591  ;;  %v12713_v25 = vpop.permute.xlu0 %4653 }
 0x409   : > { %16736 = vst [vmem:[#allocation88_spill] sm:$0xff] %v12711_v1  ;;  %16737 = vst [vmem:[#allocation91_spill] sm:$0xff] %v12713_v25 }
 0x40a   : > { %5003 = vbcast.lane.b32.xlu1 %v4997_v53, 264  ;;  %5087 = vbcast.lane.b32.xlu0 %v5085_v60, 256  ;;  %v5118_v53 = vrot.slane %v491_v50, %v16672_v14 }
 0x40c   : > { %v12718_v44 = vpop.permute.xlu1 %4595  ;;  %v12720_v52 = vpop.permute.xlu0 %4657 }
 0x40d   : > { %16740 = vst [vmem:[#allocation126_spill] sm:$0xff] %v12718_v44  ;;  %16741 = vst [vmem:[#allocation121_spill] sm:$0xff] %v12720_v52 }
 0x40e   : > { %5014 = vbcast.lane.b32.xlu1 %v5008_v17, 264  ;;  %5098 = vbcast.lane.b32.xlu0 %v5096_v63, 256 }
 0x410   : > { %v12723_v35 = vpop.permute.xlu1 %4599  ;;  %v12725_v1 = vpop.permute.xlu0 %4661 }
 0x411   : > { %16742 = vst [vmem:[#allocation20_spill] sm:$0xff] %v12723_v35  ;;  %16743 = vst [vmem:[#allocation21_spill] sm:$0xff] %v12725_v1  ;;  %v5140_v35 = vrot.slane %v491_v50, %v16684_v19 }
 0x412   : > { %5025 = vbcast.lane.b32.xlu1 %v5019_v41, 264  ;;  %5109 = vbcast.lane.b32.xlu0 %v5107_v26, 256 }
 0x414   : > { %v12728_v38 = vpop.permute.xlu1 %4619  ;;  %v12730_v25 = vpop.permute.xlu0 %4681 }
 0x415   : > { %16744 = vst [vmem:[#allocation23_spill] sm:$0xff] %v12728_v38  ;;  %16745 = vst [vmem:[#allocation171_spill] sm:$0xff] %v12730_v25  ;;  %v5151_v38 = vrot.slane %v491_v50, %v16688_v30 }
 0x416   : > { %5036 = vbcast.lane.b32.xlu1 %v5030_v58, 264  ;;  %5120 = vbcast.lane.b32.xlu0 %v5118_v53, 256 }
 0x418   : > { %v12733_v17 = vpop.permute.xlu1 %4623  ;;  %v12735_v7 = vpop.permute.xlu0 %4685 }
 0x419   : > { %16746 = vst [vmem:[#allocation174_spill] sm:$0xff] %v12733_v17  ;;  %16747 = vst [vmem:[#allocation22_spill] sm:$0xff] %v12735_v7  ;;  %v5162_v17 = vrot.slane %v491_v50, %v16692_v47 }
 0x41a   : > { %5047 = vbcast.lane.b32.xlu1 %v5041_v0, 264  ;;  %5131 = vbcast.lane.b32.xlu0 %v5129_v24, 256 }
 0x41c   : > { %v12738_v41 = vpop.permute.xlu1 %4627  ;;  %v12740_v44 = vpop.permute.xlu0 %4689 }
 0x41d   : > { %16748 = vst [vmem:[#allocation181_spill] sm:$0xff] %v12738_v41  ;;  %16749 = vst [vmem:[#allocation178_spill] sm:$0xff] %v12740_v44  ;;  %v5173_v41 = vrot.slane %v491_v50, %v16696_v56 }
 0x41e   : > { %5058 = vbcast.lane.b32.xlu1 %v5052_v40, 264  ;;  %5142 = vbcast.lane.b32.xlu0 %v5140_v35, 256 }
 0x420   : > { %v12743_v58 = vpop.permute.xlu1 %4631  ;;  %v12745_v1 = vpop.permute.xlu0 %4693 }
 0x421   : > { %16750 = vst [vmem:[#allocation24_spill] sm:$0xff] %v12743_v58  ;;  %16751 = vst [vmem:[#allocation183_spill] sm:$0xff] %v12745_v1  ;;  %v5184_v58 = vrot.slane %v491_v50, %v16700_v5  ;;  %v16755_v1 = vld [vmem:[#allocation39_spill] sm:$0xff] }
 0x422   : > { %5069 = vbcast.lane.b32.xlu1 %v5063_v3, 264  ;;  %5153 = vbcast.lane.b32.xlu0 %v5151_v38, 256  ;;  %v16754_v3 = vld [vmem:[#allocation38_spill] sm:$0xff] }
 0x423   : > { %v492_v7 = vadd.f32 %v16755_v1, %v16754_v3 }
 0x424   : > { %v12748_v0 = vpop.permute.xlu1 %4651  ;;  %v12750_v52 = vpop.permute.xlu0 %4845 }
 0x425   : > { %16752 = vst [vmem:[#allocation182_spill] sm:$0xff] %v12748_v0  ;;  %v5217_v1 = vrot.slane %v492_v7, %v16678_v2 }
 0x426   : > { %5080 = vbcast.lane.b32.xlu1 %v5074_v22, 264  ;;  %5164 = vbcast.lane.b32.xlu0 %v5162_v17, 256  ;;  %v5195_v22 = vrot.slane %v492_v7, %v16666_v20 }
 0x428   : > { %v12753_v40 = vpop.permute.xlu1 %4655  ;;  %v12755_v44 = vpop.permute.xlu0 %4856 }
 0x429   : > { %16753 = vst [vmem:[#allocation25_spill] sm:$0xff] %v12753_v40 }
 0x42a   : > { %5091 = vbcast.lane.b32.xlu1 %v5085_v60, 264  ;;  %5175 = vbcast.lane.b32.xlu0 %v5173_v41, 256  ;;  %v5206_v60 = vrot.slane %v492_v7, %v16672_v14 }
 0x42c   : > { %v12760_v25 = vpop.permute.xlu1 %4659  ;;  %v12762_v0 = vpop.permute.xlu0 %4867 }
 0x42d   : > { %16756 = vst [vmem:[#allocation26_spill] sm:$0xff] %v12760_v25 }
 0x42e   : > { %5102 = vbcast.lane.b32.xlu1 %v5096_v63, 264  ;;  %5186 = vbcast.lane.b32.xlu0 %v5184_v58, 256 }
 0x430   : > { %v12765_v43 = vpop.permute.xlu1 %4663  ;;  %v12767_v40 = vpop.permute.xlu0 %4878 }
 0x431   : > { %16757 = vst [vmem:[#allocation27_spill] sm:$0xff] %v12765_v43  ;;  %v5228_v43 = vrot.slane %v492_v7, %v16684_v19 }
 0x432   : > { %5113 = vbcast.lane.b32.xlu1 %v5107_v26, 264  ;;  %5197 = vbcast.lane.b32.xlu0 %v5195_v22, 256 }
 0x434   : > { %v12770_v50 = vpop.permute.xlu1 %4683  ;;  %v12772_v32 = vpop.permute.xlu0 %4889 }
 0x435   : > { %16758 = vst [vmem:[#allocation28_spill] sm:$0xff] %v12770_v50  ;;  %v5239_v50 = vrot.slane %v492_v7, %v16688_v30 }
 0x436   : > { %5124 = vbcast.lane.b32.xlu1 %v5118_v53, 264  ;;  %5208 = vbcast.lane.b32.xlu0 %v5206_v60, 256 }
 0x438   : > { %v12775_v63 = vpop.permute.xlu1 %4687  ;;  %v12777_v3 = vpop.permute.xlu0 %4900 }
 0x439   : > { %16759 = vst [vmem:[#allocation29_spill] sm:$0xff] %v12775_v63  ;;  %v5250_v63 = vrot.slane %v492_v7, %v16692_v47 }
 0x43a   : > { %5135 = vbcast.lane.b32.xlu1 %v5129_v24, 264  ;;  %5219 = vbcast.lane.b32.xlu0 %v5217_v1, 256 }
 0x43c   : > { %v12780_v26 = vpop.permute.xlu1 %4691  ;;  %v12782_v25 = vpop.permute.xlu0 %4911 }
 0x43d   : > { %16760 = vst [vmem:[#allocation30_spill] sm:$0xff] %v12780_v26  ;;  %v5261_v26 = vrot.slane %v492_v7, %v16696_v56 }
 0x43e   : > { %5146 = vbcast.lane.b32.xlu1 %v5140_v35, 264  ;;  %5230 = vbcast.lane.b32.xlu0 %v5228_v43, 256 }
 0x440   : > { %v12785_v53 = vpop.permute.xlu1 %4695  ;;  %v12787_v37 = vpop.permute.xlu0 %4922 }
 0x441   : > { %16761 = vst [vmem:[#allocation31_spill] sm:$0xff] %v12785_v53  ;;  %v5272_v53 = vrot.slane %v492_v7, %v16700_v5 }
 0x442   : > { %5157 = vbcast.lane.b32.xlu1 %v5151_v38, 264  ;;  %5241 = vbcast.lane.b32.xlu0 %v5239_v50, 256  ;;  %v16762_v38 = vld [vmem:[#allocation40_spill] sm:$0xff] }
 0x443   : > { %v493_v28 = vadd.f32 %v16763_v29, %v16762_v38 }
 0x444   : > { %v12790_v24 = vpop.permute.xlu1 %4849  ;;  %v12792_v13 = vpop.permute.xlu0 %4933 }
 0x445   : > { %v5305_v29 = vrot.slane %v493_v28, %v16678_v2  ;;  %v5316_v11 = vrot.slane %v493_v28, %v16684_v19  ;;  %v5327_v21 = vrot.slane %v493_v28, %v16688_v30  ;;  %v5338_v48 = vrot.slane %v493_v28, %v16692_v47 }
 0x446   : > { %5168 = vbcast.lane.b32.xlu1 %v5162_v17, 264  ;;  %5252 = vbcast.lane.b32.xlu0 %v5250_v63, 256  ;;  %v5283_v17 = vrot.slane %v493_v28, %v16666_v20  ;;  %v5349_v18 = vrot.slane %v493_v28, %v16696_v56  ;;  %v5360_v59 = vrot.slane %v493_v28, %v16700_v5 }
 0x448   : > { %v12795_v35 = vpop.permute.xlu1 %4860  ;;  %v12797_v39 = vpop.permute.xlu0 %4944 }
 0x44a   : > { %5179 = vbcast.lane.b32.xlu1 %v5173_v41, 264  ;;  %5263 = vbcast.lane.b32.xlu0 %v5261_v26, 256  ;;  %v5294_v41 = vrot.slane %v493_v28, %v16672_v14 }
 0x44c   : > { %v12802_v54 = vpop.permute.xlu1 %4871  ;;  %v12804_v15 = vpop.permute.xlu0 %4955 }
 0x44e   : > { %5190 = vbcast.lane.b32.xlu1 %v5184_v58, 264  ;;  %5274 = vbcast.lane.b32.xlu0 %v5272_v53, 256 }
 0x450   : > { %v12807_v12 = vpop.permute.xlu1 %4882  ;;  %v12809_v55 = vpop.permute.xlu0 %4966 }
 0x452   : > { %5201 = vbcast.lane.b32.xlu1 %v5195_v22, 264  ;;  %5285 = vbcast.lane.b32.xlu0 %v5283_v17, 256 }
 0x454   : > { %v12812_v7 = vpop.permute.xlu1 %4893  ;;  %v12814_v6 = vpop.permute.xlu0 %4977 }
 0x456   : > { %5212 = vbcast.lane.b32.xlu1 %v5206_v60, 264  ;;  %5296 = vbcast.lane.b32.xlu0 %v5294_v41, 256 }
 0x458   : > { %v12817_v58 = vpop.permute.xlu1 %4904  ;;  %v12819_v38 = vpop.permute.xlu0 %4988 }
 0x45a   : > { %5223 = vbcast.lane.b32.xlu1 %v5217_v1, 264  ;;  %5307 = vbcast.lane.b32.xlu0 %v5305_v29, 256 }
 0x45c   : > { %v12822_v22 = vpop.permute.xlu1 %4915  ;;  %v12824_v61 = vpop.permute.xlu0 %4999 }
 0x45e   : > { %5234 = vbcast.lane.b32.xlu1 %v5228_v43, 264  ;;  %5318 = vbcast.lane.b32.xlu0 %v5316_v11, 256 }
 0x460   : > { %v12827_v60 = vpop.permute.xlu1 %4926  ;;  %v12829_v34 = vpop.permute.xlu0 %5010 }
 0x462   : > { %5245 = vbcast.lane.b32.xlu1 %v5239_v50, 264  ;;  %5329 = vbcast.lane.b32.xlu0 %v5327_v21, 256  ;;  %v16764_v50 = vld [vmem:[#allocation49_spill] sm:$0xff] }
 0x463   : > { %v494_v27 = vadd.f32 %v16765_v16, %v16764_v50 }
 0x464   : > { %v12832_v1 = vpop.permute.xlu1 %4937  ;;  %v12834_v36 = vpop.permute.xlu0 %5021 }
 0x465   : > { %v5393_v16 = vrot.slane %v494_v27, %v16678_v2  ;;  %v5404_v57 = vrot.slane %v494_v27, %v16684_v19  ;;  %v5415_v33 = vrot.slane %v494_v27, %v16688_v30  ;;  %v5426_v49 = vrot.slane %v494_v27, %v16692_v47 }
 0x466   : > { %5256 = vbcast.lane.b32.xlu1 %v5250_v63, 264  ;;  %5340 = vbcast.lane.b32.xlu0 %v5338_v48, 256  ;;  %v5371_v63 = vrot.slane %v494_v27, %v16666_v20 }
 0x468   : > { %v12837_v43 = vpop.permute.xlu1 %4948  ;;  %v12839_v31 = vpop.permute.xlu0 %5032 }
 0x46a   : > { %5267 = vbcast.lane.b32.xlu1 %v5261_v26, 264  ;;  %5351 = vbcast.lane.b32.xlu0 %v5349_v18, 256  ;;  %v5382_v26 = vrot.slane %v494_v27, %v16672_v14 }
 0x46c   : > { %v12844_v4 = vpop.permute.xlu1 %4959  ;;  %v12846_v42 = vpop.permute.xlu0 %5043 }
 0x46e   : > { %5278 = vbcast.lane.b32.xlu1 %v5272_v53, 264  ;;  %5362 = vbcast.lane.b32.xlu0 %v5360_v59, 256 }
 0x470   : > { %v12849_v9 = vpop.permute.xlu1 %4970  ;;  %v12851_v46 = vpop.permute.xlu0 %5054 }
 0x472   : > { %5289 = vbcast.lane.b32.xlu1 %v5283_v17, 264  ;;  %5373 = vbcast.lane.b32.xlu0 %v5371_v63, 256 }
 0x474   : > { %v12854_v28 = vpop.permute.xlu1 %4981  ;;  %v12856_v45 = vpop.permute.xlu0 %5065 }
 0x475   : > { %16766 = vst [vmem:[#allocation32_spill] sm:$0xff] %v12854_v28  ;;  %16767 = vst [vmem:[#allocation33_spill] sm:$0xff] %v12856_v45 }
 0x476   : > { %5300 = vbcast.lane.b32.xlu1 %v5294_v41, 264  ;;  %5384 = vbcast.lane.b32.xlu0 %v5382_v26, 256 }
 0x478   : > { %v12859_v53 = vpop.permute.xlu1 %4992  ;;  %v12861_v50 = vpop.permute.xlu0 %5076 }
 0x479   : > { %16768 = vst [vmem:[#allocation36_spill] sm:$0xff] %v12859_v53  ;;  %16769 = vst [vmem:[#allocation37_spill] sm:$0xff] %v12861_v50  ;;  %v5437_v50 = vrot.slane %v494_v27, %v16696_v56 }
 0x47a   : > { %5311 = vbcast.lane.b32.xlu1 %v5305_v29, 264  ;;  %5395 = vbcast.lane.b32.xlu0 %v5393_v16, 256 }
 0x47c   : > { %v12864_v17 = vpop.permute.xlu1 %5003  ;;  %v12866_v8 = vpop.permute.xlu0 %5087 }
 0x47d   : > { %16770 = vst [vmem:[#allocation38_spill] sm:$0xff] %v12864_v17  ;;  %16771 = vst [vmem:[#allocation39_spill] sm:$0xff] %v12866_v8 }
 0x47e   : > { %5322 = vbcast.lane.b32.xlu1 %v5316_v11, 264  ;;  %5406 = vbcast.lane.b32.xlu0 %v5404_v57, 256 }
 0x480   : > { %v12869_v41 = vpop.permute.xlu1 %5014  ;;  %v12871_v62 = vpop.permute.xlu0 %5098 }
 0x481   : > { %16772 = vst [vmem:[#allocation40_spill] sm:$0xff] %v12869_v41  ;;  %16773 = vst [vmem:[#allocation41_spill] sm:$0xff] %v12871_v62  ;;  %v5448_v62 = vrot.slane %v494_v27, %v16700_v5  ;;  %v16779_v41 = vld [vmem:[#allocation66_spill] sm:$0xff] }
 0x482   : > { %5333 = vbcast.lane.b32.xlu1 %v5327_v21, 264  ;;  %5417 = vbcast.lane.b32.xlu0 %v5415_v33, 256  ;;  %v16778_v21 = vld [vmem:[#allocation65_spill] sm:$0xff] }
 0x483   : > { %v495_v8 = vadd.f32 %v16779_v41, %v16778_v21 }
 0x484   : > { %v12874_v29 = vpop.permute.xlu1 %5025  ;;  %v12876_v10 = vpop.permute.xlu0 %5109 }
 0x485   : > { %16774 = vst [vmem:[#allocation49_spill] sm:$0xff] %v12874_v29  ;;  %16775 = vst [vmem:[#allocation50_spill] sm:$0xff] %v12876_v10  ;;  %v5481_v41 = vrot.slane %v495_v8, %v16678_v2 }
 0x486   : > { %5344 = vbcast.lane.b32.xlu1 %v5338_v48, 264  ;;  %5428 = vbcast.lane.b32.xlu0 %v5426_v49, 256  ;;  %v5459_v48 = vrot.slane %v495_v8, %v16666_v20 }
 0x488   : > { %v12879_v11 = vpop.permute.xlu1 %5036  ;;  %v12881_v53 = vpop.permute.xlu0 %5120 }
 0x489   : > { %16776 = vst [vmem:[#allocation184_spill] sm:$0xff] %v12879_v11  ;;  %16777 = vst [vmem:[#allocation185_spill] sm:$0xff] %v12881_v53 }
 0x48a   : > { %5355 = vbcast.lane.b32.xlu1 %v5349_v18, 264  ;;  %5439 = vbcast.lane.b32.xlu0 %v5437_v50, 256  ;;  %v5470_v18 = vrot.slane %v495_v8, %v16672_v14 }
 0x48c   : > { %v12886_v17 = vpop.permute.xlu1 %5047  ;;  %v12888_v29 = vpop.permute.xlu0 %5131 }
 0x48d   : > { %16780 = vst [vmem:[#allocation65_spill] sm:$0xff] %v12886_v17  ;;  %16781 = vst [vmem:[#allocation66_spill] sm:$0xff] %v12888_v29 }
 0x48e   : > { %5366 = vbcast.lane.b32.xlu1 %v5360_v59, 264  ;;  %5450 = vbcast.lane.b32.xlu0 %v5448_v62, 256 }
 0x490   : > { %v12891_v10 = vpop.permute.xlu1 %5058  ;;  %v12893_v11 = vpop.permute.xlu0 %5142 }
 0x491   : > { %16782 = vst [vmem:[#allocation186_spill] sm:$0xff] %v12891_v10  ;;  %16783 = vst [vmem:[#allocation187_spill] sm:$0xff] %v12893_v11  ;;  %v5492_v11 = vrot.slane %v495_v8, %v16684_v19 }
 0x492   : > { %5377 = vbcast.lane.b32.xlu1 %v5371_v63, 264  ;;  %5461 = vbcast.lane.b32.xlu0 %v5459_v48, 256 }
 0x494   : > { %v12896_v27 = vpop.permute.xlu1 %5069  ;;  %v12898_v53 = vpop.permute.xlu0 %5153 }
 0x495   : > { %16784 = vst [vmem:[#allocation188_spill] sm:$0xff] %v12896_v27  ;;  %16785 = vst [vmem:[#allocation189_spill] sm:$0xff] %v12898_v53  ;;  %v5503_v53 = vrot.slane %v495_v8, %v16688_v30 }
 0x496   : > { %5388 = vbcast.lane.b32.xlu1 %v5382_v26, 264  ;;  %5472 = vbcast.lane.b32.xlu0 %v5470_v18, 256 }
 0x498   : > { %v12901_v59 = vpop.permute.xlu1 %5080  ;;  %v12903_v21 = vpop.permute.xlu0 %5164 }
 0x499   : > { %16786 = vst [vmem:[#allocation190_spill] sm:$0xff] %v12901_v59  ;;  %16787 = vst [vmem:[#allocation191_spill] sm:$0xff] %v12903_v21  ;;  %v5514_v21 = vrot.slane %v495_v8, %v16692_v47 }
 0x49a   : > { %5399 = vbcast.lane.b32.xlu1 %v5393_v16, 264  ;;  %5483 = vbcast.lane.b32.xlu0 %v5481_v41, 256 }
 0x49c   : > { %v12906_v63 = vpop.permute.xlu1 %5091  ;;  %v12908_v10 = vpop.permute.xlu0 %5175 }
 0x49d   : > { %16788 = vst [vmem:[#allocation192_spill] sm:$0xff] %v12906_v63  ;;  %16789 = vst [vmem:[#allocation193_spill] sm:$0xff] %v12908_v10  ;;  %v5525_v10 = vrot.slane %v495_v8, %v16696_v56 }
 0x49e   : > { %5410 = vbcast.lane.b32.xlu1 %v5404_v57, 264  ;;  %5494 = vbcast.lane.b32.xlu0 %v5492_v11, 256 }
 0x4a0   : > { %v12911_v26 = vpop.permute.xlu1 %5102  ;;  %v12913_v27 = vpop.permute.xlu0 %5186 }
 0x4a1   : > { %16790 = vst [vmem:[#allocation194_spill] sm:$0xff] %v12911_v26  ;;  %16791 = vst [vmem:[#allocation195_spill] sm:$0xff] %v12913_v27  ;;  %v5536_v27 = vrot.slane %v495_v8, %v16700_v5  ;;  %v16797_v26 = vld [vmem:[#allocation80_spill] sm:$0xff] }
 0x4a2   : > { %5421 = vbcast.lane.b32.xlu1 %v5415_v33, 264  ;;  %5505 = vbcast.lane.b32.xlu0 %v5503_v53, 256  ;;  %v16796_v33 = vld [vmem:[#allocation79_spill] sm:$0xff] }
 0x4a3   : > { %v504_v29 = vadd.f32 %v16797_v26, %v16796_v33 }
 0x4a4   : > { %v12916_v16 = vpop.permute.xlu1 %5113  ;;  %v12918_v59 = vpop.permute.xlu0 %5197 }
 0x4a5   : > { %16792 = vst [vmem:[#allocation196_spill] sm:$0xff] %v12916_v16  ;;  %16793 = vst [vmem:[#allocation197_spill] sm:$0xff] %v12918_v59  ;;  %v5569_v26 = vrot.slane %v504_v29, %v16678_v2 }
 0x4a6   : > { %5432 = vbcast.lane.b32.xlu1 %v5426_v49, 264  ;;  %5516 = vbcast.lane.b32.xlu0 %v5514_v21, 256  ;;  %v5547_v49 = vrot.slane %v504_v29, %v16666_v20 }
 0x4a8   : > { %v12921_v57 = vpop.permute.xlu1 %5124  ;;  %v12923_v63 = vpop.permute.xlu0 %5208 }
 0x4a9   : > { %16794 = vst [vmem:[#allocation198_spill] sm:$0xff] %v12921_v57  ;;  %16795 = vst [vmem:[#allocation199_spill] sm:$0xff] %v12923_v63 }
 0x4aa   : > { %5443 = vbcast.lane.b32.xlu1 %v5437_v50, 264  ;;  %5527 = vbcast.lane.b32.xlu0 %v5525_v10, 256  ;;  %v5558_v50 = vrot.slane %v504_v29, %v16672_v14 }
 0x4ac   : > { %v12928_v17 = vpop.permute.xlu1 %5135  ;;  %v12930_v16 = vpop.permute.xlu0 %5219 }
 0x4ad   : > { %16798 = vst [vmem:[#allocation79_spill] sm:$0xff] %v12928_v17  ;;  %16799 = vst [vmem:[#allocation80_spill] sm:$0xff] %v12930_v16 }
 0x4ae   : > { %5454 = vbcast.lane.b32.xlu1 %v5448_v62, 264  ;;  %5538 = vbcast.lane.b32.xlu0 %v5536_v27, 256 }
 0x4b0   : > { %v12933_v59 = vpop.permute.xlu1 %5146  ;;  %v12935_v57 = vpop.permute.xlu0 %5230 }
 0x4b1   : > { %16800 = vst [vmem:[#allocation200_spill] sm:$0xff] %v12933_v59  ;;  %16801 = vst [vmem:[#allocation201_spill] sm:$0xff] %v12935_v57  ;;  %v5580_v57 = vrot.slane %v504_v29, %v16684_v19 }
 0x4b2   : > { %5465 = vbcast.lane.b32.xlu1 %v5459_v48, 264  ;;  %5549 = vbcast.lane.b32.xlu0 %v5547_v49, 256 }
 0x4b4   : > { %v12938_v8 = vpop.permute.xlu1 %5157  ;;  %v12940_v63 = vpop.permute.xlu0 %5241 }
 0x4b5   : > { %16802 = vst [vmem:[#allocation202_spill] sm:$0xff] %v12938_v8  ;;  %16803 = vst [vmem:[#allocation203_spill] sm:$0xff] %v12940_v63  ;;  %v5591_v63 = vrot.slane %v504_v29, %v16688_v30 }
 0x4b6   : > { %5476 = vbcast.lane.b32.xlu1 %v5470_v18, 264  ;;  %5560 = vbcast.lane.b32.xlu0 %v5558_v50, 256 }
 0x4b8   : > { %v12943_v62 = vpop.permute.xlu1 %5168  ;;  %v12945_v33 = vpop.permute.xlu0 %5252 }
 0x4b9   : > { %16804 = vst [vmem:[#allocation204_spill] sm:$0xff] %v12943_v62  ;;  %16805 = vst [vmem:[#allocation205_spill] sm:$0xff] %v12945_v33  ;;  %v5602_v33 = vrot.slane %v504_v29, %v16692_v47 }
 0x4ba   : > { %5487 = vbcast.lane.b32.xlu1 %v5481_v41, 264  ;;  %5571 = vbcast.lane.b32.xlu0 %v5569_v26, 256 }
 0x4bc   : > { %v12948_v48 = vpop.permute.xlu1 %5179  ;;  %v12950_v59 = vpop.permute.xlu0 %5263 }
 0x4bd   : > { %16806 = vst [vmem:[#allocation206_spill] sm:$0xff] %v12948_v48  ;;  %16807 = vst [vmem:[#allocation207_spill] sm:$0xff] %v12950_v59  ;;  %v5613_v59 = vrot.slane %v504_v29, %v16696_v56 }
 0x4be   : > { %5498 = vbcast.lane.b32.xlu1 %v5492_v11, 264  ;;  %5582 = vbcast.lane.b32.xlu0 %v5580_v57, 256 }
 0x4c0   : > { %v12953_v18 = vpop.permute.xlu1 %5190  ;;  %v12955_v8 = vpop.permute.xlu0 %5274 }
 0x4c1   : > { %16808 = vst [vmem:[#allocation208_spill] sm:$0xff] %v12953_v18  ;;  %16809 = vst [vmem:[#allocation209_spill] sm:$0xff] %v12955_v8  ;;  %v5624_v8 = vrot.slane %v504_v29, %v16700_v5  ;;  %v16815_v18 = vld [vmem:[#allocation96_spill] sm:$0xff] }
 0x4c2   : > { %5509 = vbcast.lane.b32.xlu1 %v5503_v53, 264  ;;  %5593 = vbcast.lane.b32.xlu0 %v5591_v63, 256  ;;  %v16814_v53 = vld [vmem:[#allocation95_spill] sm:$0xff] }
 0x4c3   : > { %v505_v16 = vadd.f32 %v16815_v18, %v16814_v53 }
 0x4c4   : > { %v12958_v41 = vpop.permute.xlu1 %5201  ;;  %v12960_v62 = vpop.permute.xlu0 %5285 }
 0x4c5   : > { %16810 = vst [vmem:[#allocation210_spill] sm:$0xff] %v12958_v41  ;;  %16811 = vst [vmem:[#allocation211_spill] sm:$0xff] %v12960_v62  ;;  %v5657_v18 = vrot.slane %v505_v16, %v16678_v2 }
 0x4c6   : > { %5520 = vbcast.lane.b32.xlu1 %v5514_v21, 264  ;;  %5604 = vbcast.lane.b32.xlu0 %v5602_v33, 256  ;;  %v5635_v21 = vrot.slane %v505_v16, %v16666_v20 }
 0x4c8   : > { %v12963_v11 = vpop.permute.xlu1 %5212  ;;  %v12965_v48 = vpop.permute.xlu0 %5296 }
 0x4c9   : > { %16812 = vst [vmem:[#allocation212_spill] sm:$0xff] %v12963_v11  ;;  %16813 = vst [vmem:[#allocation213_spill] sm:$0xff] %v12965_v48 }
 0x4ca   : > { %5531 = vbcast.lane.b32.xlu1 %v5525_v10, 264  ;;  %5615 = vbcast.lane.b32.xlu0 %v5613_v59, 256  ;;  %v5646_v10 = vrot.slane %v505_v16, %v16672_v14 }
 0x4cc   : > { %v12970_v17 = vpop.permute.xlu1 %5223  ;;  %v12972_v41 = vpop.permute.xlu0 %5307 }
 0x4cd   : > { %16816 = vst [vmem:[#allocation95_spill] sm:$0xff] %v12970_v17  ;;  %16817 = vst [vmem:[#allocation96_spill] sm:$0xff] %v12972_v41 }
 0x4ce   : > { %5542 = vbcast.lane.b32.xlu1 %v5536_v27, 264  ;;  %5626 = vbcast.lane.b32.xlu0 %v5624_v8, 256 }
 0x4d0   : > { %v12975_v62 = vpop.permute.xlu1 %5234  ;;  %v12977_v11 = vpop.permute.xlu0 %5318 }
 0x4d1   : > { %16818 = vst [vmem:[#allocation214_spill] sm:$0xff] %v12975_v62  ;;  %16819 = vst [vmem:[#allocation215_spill] sm:$0xff] %v12977_v11  ;;  %v5668_v11 = vrot.slane %v505_v16, %v16684_v19 }
 0x4d2   : > { %5553 = vbcast.lane.b32.xlu1 %v5547_v49, 264  ;;  %5637 = vbcast.lane.b32.xlu0 %v5635_v21, 256 }
 0x4d4   : > { %v12980_v29 = vpop.permute.xlu1 %5245  ;;  %v12982_v48 = vpop.permute.xlu0 %5329 }
 0x4d5   : > { %16820 = vst [vmem:[#allocation216_spill] sm:$0xff] %v12980_v29  ;;  %16821 = vst [vmem:[#allocation217_spill] sm:$0xff] %v12982_v48  ;;  %v5679_v48 = vrot.slane %v505_v16, %v16688_v30 }
 0x4d6   : > { %5564 = vbcast.lane.b32.xlu1 %v5558_v50, 264  ;;  %5648 = vbcast.lane.b32.xlu0 %v5646_v10, 256 }
 0x4d8   : > { %v12985_v27 = vpop.permute.xlu1 %5256  ;;  %v12987_v53 = vpop.permute.xlu0 %5340 }
 0x4d9   : > { %16822 = vst [vmem:[#allocation218_spill] sm:$0xff] %v12985_v27  ;;  %16823 = vst [vmem:[#allocation219_spill] sm:$0xff] %v12987_v53  ;;  %v5690_v53 = vrot.slane %v505_v16, %v16692_v47 }
 0x4da   : > { %5575 = vbcast.lane.b32.xlu1 %v5569_v26, 264  ;;  %5659 = vbcast.lane.b32.xlu0 %v5657_v18, 256 }
 0x4dc   : > { %v12990_v49 = vpop.permute.xlu1 %5267  ;;  %v12992_v62 = vpop.permute.xlu0 %5351 }
 0x4dd   : > { %16824 = vst [vmem:[#allocation220_spill] sm:$0xff] %v12990_v49  ;;  %16825 = vst [vmem:[#allocation221_spill] sm:$0xff] %v12992_v62  ;;  %v5701_v62 = vrot.slane %v505_v16, %v16696_v56 }
 0x4de   : > { %5586 = vbcast.lane.b32.xlu1 %v5580_v57, 264  ;;  %5670 = vbcast.lane.b32.xlu0 %v5668_v11, 256 }
 0x4e0   : > { %v12995_v50 = vpop.permute.xlu1 %5278  ;;  %v12997_v29 = vpop.permute.xlu0 %5362 }
 0x4e1   : > { %16826 = vst [vmem:[#allocation222_spill] sm:$0xff] %v12995_v50  ;;  %16827 = vst [vmem:[#allocation223_spill] sm:$0xff] %v12997_v29  ;;  %v5712_v29 = vrot.slane %v505_v16, %v16700_v5  ;;  %v16833_v50 = vld [vmem:[#allocation113_spill] sm:$0xff] }
 0x4e2   : > { %5597 = vbcast.lane.b32.xlu1 %v5591_v63, 264  ;;  %5681 = vbcast.lane.b32.xlu0 %v5679_v48, 256  ;;  %v16832_v63 = vld [vmem:[#allocation112_spill] sm:$0xff] }
 0x4e3   : > { %v506_v41 = vadd.f32 %v16833_v50, %v16832_v63 }
 0x4e4   : > { %v13000_v26 = vpop.permute.xlu1 %5289  ;;  %v13002_v27 = vpop.permute.xlu0 %5373 }
 0x4e5   : > { %16828 = vst [vmem:[#allocation224_spill] sm:$0xff] %v13000_v26  ;;  %16829 = vst [vmem:[#allocation225_spill] sm:$0xff] %v13002_v27  ;;  %v5745_v50 = vrot.slane %v506_v41, %v16678_v2 }
 0x4e6   : > { %5608 = vbcast.lane.b32.xlu1 %v5602_v33, 264  ;;  %5692 = vbcast.lane.b32.xlu0 %v5690_v53, 256  ;;  %v5723_v33 = vrot.slane %v506_v41, %v16666_v20 }
 0x4e8   : > { %v13005_v57 = vpop.permute.xlu1 %5300  ;;  %v13007_v49 = vpop.permute.xlu0 %5384 }
 0x4e9   : > { %16830 = vst [vmem:[#allocation226_spill] sm:$0xff] %v13005_v57  ;;  %16831 = vst [vmem:[#allocation227_spill] sm:$0xff] %v13007_v49 }
 0x4ea   : > { %5619 = vbcast.lane.b32.xlu1 %v5613_v59, 264  ;;  %5703 = vbcast.lane.b32.xlu0 %v5701_v62, 256  ;;  %v5734_v59 = vrot.slane %v506_v41, %v16672_v14 }
 0x4ec   : > { %v13012_v17 = vpop.permute.xlu1 %5311  ;;  %v13014_v26 = vpop.permute.xlu0 %5395 }
 0x4ed   : > { %16834 = vst [vmem:[#allocation112_spill] sm:$0xff] %v13012_v17  ;;  %16835 = vst [vmem:[#allocation113_spill] sm:$0xff] %v13014_v26  ;;  %v5756_v26 = vrot.slane %v506_v41, %v16684_v19 }
 0x4ee   : > { %5630 = vbcast.lane.b32.xlu1 %v5624_v8, 264  ;;  %5714 = vbcast.lane.b32.xlu0 %v5712_v29, 256 }
 0x4f0   : > { %v13017_v27 = vpop.permute.xlu1 %5322  ;;  %v13019_v57 = vpop.permute.xlu0 %5406 }
 0x4f1   : > { %16836 = vst [vmem:[#allocation228_spill] sm:$0xff] %v13017_v27  ;;  %16837 = vst [vmem:[#allocation229_spill] sm:$0xff] %v13019_v57 }
 0x4f2   : > { %5641 = vbcast.lane.b32.xlu1 %v5635_v21, 264  ;;  %5725 = vbcast.lane.b32.xlu0 %v5723_v33, 256 }
 0x4f4   : > { %v13022_v16 = vpop.permute.xlu1 %5333  ;;  %v13024_v49 = vpop.permute.xlu0 %5417 }
 0x4f5   : > { %16838 = vst [vmem:[#allocation230_spill] sm:$0xff] %v13022_v16  ;;  %16839 = vst [vmem:[#allocation231_spill] sm:$0xff] %v13024_v49  ;;  %v5767_v49 = vrot.slane %v506_v41, %v16688_v30 }
 0x4f6   : > { %5652 = vbcast.lane.b32.xlu1 %v5646_v10, 264  ;;  %5736 = vbcast.lane.b32.xlu0 %v5734_v59, 256 }
 0x4f8   : > { %v13027_v8 = vpop.permute.xlu1 %5344  ;;  %v13029_v63 = vpop.permute.xlu0 %5428 }
 0x4f9   : > { %16840 = vst [vmem:[#allocation232_spill] sm:$0xff] %v13027_v8  ;;  %16841 = vst [vmem:[#allocation233_spill] sm:$0xff] %v13029_v63  ;;  %v5778_v63 = vrot.slane %v506_v41, %v16692_v47 }
 0x4fa   : > { %5663 = vbcast.lane.b32.xlu1 %v5657_v18, 264  ;;  %5747 = vbcast.lane.b32.xlu0 %v5745_v50, 256 }
 0x4fc   : > { %v13032_v21 = vpop.permute.xlu1 %5355  ;;  %v13034_v57 = vpop.permute.xlu0 %5439 }
 0x4fd   : > { %16842 = vst [vmem:[#allocation234_spill] sm:$0xff] %v13032_v21  ;;  %16843 = vst [vmem:[#allocation235_spill] sm:$0xff] %v13034_v57  ;;  %v5789_v57 = vrot.slane %v506_v41, %v16696_v56 }
 0x4fe   : > { %5674 = vbcast.lane.b32.xlu1 %v5668_v11, 264  ;;  %5758 = vbcast.lane.b32.xlu0 %v5756_v26, 256 }
 0x500   : > { %v13037_v10 = vpop.permute.xlu1 %5366  ;;  %v13039_v16 = vpop.permute.xlu0 %5450 }
 0x501   : > { %16844 = vst [vmem:[#allocation236_spill] sm:$0xff] %v13037_v10  ;;  %16845 = vst [vmem:[#allocation237_spill] sm:$0xff] %v13039_v16  ;;  %v5800_v16 = vrot.slane %v506_v41, %v16700_v5  ;;  %v16851_v10 = vld [vmem:[#allocation131_spill] sm:$0xff] }
 0x502   : > { %5685 = vbcast.lane.b32.xlu1 %v5679_v48, 264  ;;  %5769 = vbcast.lane.b32.xlu0 %v5767_v49, 256  ;;  %v16850_v48 = vld [vmem:[#allocation130_spill] sm:$0xff] }
 0x503   : > { %v507_v27 = vadd.f32 %v16851_v10, %v16850_v48 }
 0x504   : > { %v13042_v18 = vpop.permute.xlu1 %5377  ;;  %v13044_v8 = vpop.permute.xlu0 %5461 }
 0x505   : > { %16846 = vst [vmem:[#allocation238_spill] sm:$0xff] %v13042_v18  ;;  %16847 = vst [vmem:[#allocation239_spill] sm:$0xff] %v13044_v8  ;;  %v5833_v10 = vrot.slane %v507_v27, %v16678_v2 }
 0x506   : > { %5696 = vbcast.lane.b32.xlu1 %v5690_v53, 264  ;;  %5780 = vbcast.lane.b32.xlu0 %v5778_v63, 256  ;;  %v5811_v53 = vrot.slane %v507_v27, %v16666_v20 }
 0x508   : > { %v13047_v11 = vpop.permute.xlu1 %5388  ;;  %v13049_v21 = vpop.permute.xlu0 %5472 }
 0x509   : > { %16848 = vst [vmem:[#allocation240_spill] sm:$0xff] %v13047_v11  ;;  %16849 = vst [vmem:[#allocation241_spill] sm:$0xff] %v13049_v21 }
 0x50a   : > { %5707 = vbcast.lane.b32.xlu1 %v5701_v62, 264  ;;  %5791 = vbcast.lane.b32.xlu0 %v5789_v57, 256  ;;  %v5822_v62 = vrot.slane %v507_v27, %v16672_v14 }
 0x50c   : > { %v13054_v17 = vpop.permute.xlu1 %5399  ;;  %v13056_v18 = vpop.permute.xlu0 %5483 }
 0x50d   : > { %16852 = vst [vmem:[#allocation130_spill] sm:$0xff] %v13054_v17  ;;  %16853 = vst [vmem:[#allocation131_spill] sm:$0xff] %v13056_v18  ;;  %v5844_v18 = vrot.slane %v507_v27, %v16684_v19 }
 0x50e   : > { %5718 = vbcast.lane.b32.xlu1 %v5712_v29, 264  ;;  %5802 = vbcast.lane.b32.xlu0 %v5800_v16, 256 }
 0x510   : > { %v13059_v8 = vpop.permute.xlu1 %5410  ;;  %v13061_v11 = vpop.permute.xlu0 %5494 }
 0x511   : > { %16854 = vst [vmem:[#allocation242_spill] sm:$0xff] %v13059_v8  ;;  %16855 = vst [vmem:[#allocation243_spill] sm:$0xff] %v13061_v11 }
 0x512   : > { %5729 = vbcast.lane.b32.xlu1 %v5723_v33, 264  ;;  %5813 = vbcast.lane.b32.xlu0 %v5811_v53, 256 }
 0x514   : > { %v13064_v41 = vpop.permute.xlu1 %5421  ;;  %v13066_v21 = vpop.permute.xlu0 %5505 }
 0x515   : > { %16856 = vst [vmem:[#allocation244_spill] sm:$0xff] %v13064_v41  ;;  %16857 = vst [vmem:[#allocation245_spill] sm:$0xff] %v13066_v21  ;;  %v13079_v21 = vrot.slane %v507_v27, %v16688_v30 }
 0x516   : > { %5740 = vbcast.lane.b32.xlu1 %v5734_v59, 264  ;;  %5824 = vbcast.lane.b32.xlu0 %v5822_v62, 256 }
 0x518   : > { %v13069_v29 = vpop.permute.xlu1 %5432  ;;  %v13071_v48 = vpop.permute.xlu0 %5516 }
 0x519   : > { %16858 = vst [vmem:[#allocation246_spill] sm:$0xff] %v13069_v29  ;;  %16859 = vst [vmem:[#allocation247_spill] sm:$0xff] %v13071_v48 }
 0x51a   : > { %5751 = vbcast.lane.b32.xlu1 %v5745_v50, 264  ;;  %5835 = vbcast.lane.b32.xlu0 %v5833_v10, 256  ;;  %v13087_v50 = vrot.slane %v507_v27, %v16692_v47 }
 0x51c   : > { %v13074_v33 = vpop.permute.xlu1 %5443  ;;  %v13076_v11 = vpop.permute.xlu0 %5527 }
 0x51d   : > { %16860 = vst [vmem:[#allocation248_spill] sm:$0xff] %v13074_v33  ;;  %16861 = vst [vmem:[#allocation249_spill] sm:$0xff] %v13076_v11  ;;  %v16867_v33 = vld [vmem:[#allocation147_spill] sm:$0xff] }
 0x51e   : > { %5762 = vbcast.lane.b32.xlu1 %v5756_v26, 264  ;;  %5846 = vbcast.lane.b32.xlu0 %v5844_v18, 256  ;;  %v13093_v26 = vrot.slane %v507_v27, %v16696_v56 }
 0x520   : > { %v13081_v59 = vpop.permute.xlu1 %5454  ;;  %v13083_v41 = vpop.permute.xlu0 %5538 }
 0x521   : > { %16862 = vst [vmem:[#allocation250_spill] sm:$0xff] %v13081_v59  ;;  %16863 = vst [vmem:[#allocation251_spill] sm:$0xff] %v13083_v41  ;;  %v16866_v41 = vld [vmem:[#allocation146_spill] sm:$0xff] }
 0x522   : > { %5773 = vbcast.lane.b32.xlu1 %v5767_v49, 264  ;;  %5857 = vbcast.lane.b32.xlu0 %v13079_v21, 256  ;;  %v13099_v49 = vrot.slane %v507_v27, %v16700_v5  ;;  %v13103_v8 = vadd.f32 %v16867_v33, %v16866_v41 }
 0x524   : > { %v13089_v48 = vpop.permute.xlu1 %5465  ;;  %v5550_v29 = vpop.permute.xlu0 %5549  ;;  %v13114_v27 = vrot.slane %v13103_v8, %v16666_v20 }
 0x525   : > { %16864 = vst [vmem:[#allocation252_spill] sm:$0xff] %v13089_v48  ;;  %v6248_v17 = vsel %vm1920_vm0, %v12750_v52, %v5550_v29 }
 0x526   : > { %5784 = vbcast.lane.b32.xlu1 %v5778_v63, 264  ;;  %5868 = vbcast.lane.b32.xlu0 %v13087_v50, 256 }
 0x528   : > { %v13095_v11 = vpop.permute.xlu1 %5476  ;;  %v5561_v59 = vpop.permute.xlu0 %5560 }
 0x529   : > { %16865 = vst [vmem:[#allocation253_spill] sm:$0xff] %v13095_v11 }
 0x52a   : > { %5795 = vbcast.lane.b32.xlu1 %v5789_v57, 264  ;;  %5879 = vbcast.lane.b32.xlu0 %v13093_v26, 256 }
 0x52c   : > { %v13105_v48 = vpop.permute.xlu1 %5487  ;;  %v5572_v63 = vpop.permute.xlu0 %5571 }
 0x52d   : > { %16868 = vst [vmem:[#allocation146_spill] sm:$0xff] %v13105_v48  ;;  %v6252_v11 = vsel %vm1920_vm0, %v12762_v0, %v5572_v63  ;;  %v6250_v48 = vsel %vm1920_vm0, %v12755_v44, %v5561_v59 }
 0x52e   : > { %v6377_v45 = vcombine.high %v6248_v17, %v6252_v11  ;;  %5806 = vbcast.lane.b32.xlu1 %v5800_v16, 264  ;;  %5890 = vbcast.lane.b32.xlu0 %v13099_v49, 256  ;;  %v6376_v57 = vcombine.low %v6248_v17, %v6252_v11  ;;  %v13125_v16 = vrot.slane %v13103_v8, %v16672_v14 }
 0x530   : > { %v13116_v41 = vpop.permute.xlu1 %5498  ;;  %v5583_v33 = vpop.permute.xlu0 %5582  ;;  %v6384_v17 = vrot.slane %v6376_v57, %v10586_v51  ;;  %v6391_v11 = vrot.slane %v6377_v45, %v10586_v51 }
 0x531   : > { %16869 = vst [vmem:[#allocation147_spill] sm:$0xff] %v13116_v41  ;;  %v6254_v52 = vsel %vm1920_vm0, %v12767_v40, %v5583_v33 }
 0x532   : > { %v6392_v29 = vcombine.low %v6250_v48, %v6254_v52  ;;  %v6393_v0 = vcombine.high %v6250_v48, %v6254_v52  ;;  %5817 = vbcast.lane.b32.xlu1 %v5811_v53, 264  ;;  %5901 = vbcast.lane.b32.xlu0 %v13114_v27, 256  ;;  %v13136_v52 = vrot.slane %v13103_v8, %v16678_v2 }
 0x534   : > { %v6400_v63 = vrot.slane %v6392_v29, %v10586_v51  ;;  %v6407_v44 = vrot.slane %v6393_v0, %v10586_v51  ;;  %v13131_v59 = vpop.permute.xlu1 %5509  ;;  %v5594_v40 = vpop.permute.xlu0 %5593  ;;  %v13143_v29 = vrot.slane %v13103_v8, %v16684_v19 }
 0x535   : > { %16870 = vst [vmem:[#allocation254_spill] sm:$0xff] %v13131_v59 }
 0x536   : > { %v6441_v33 = vcombine.high %v6384_v17, %v6400_v63  ;;  %v6456_v48 = vcombine.low %v6391_v11, %v6407_v44  ;;  %v6457_v53 = vcombine.high %v6391_v11, %v6407_v44  ;;  %5828 = vbcast.lane.b32.xlu1 %v5822_v62, 264  ;;  %5912 = vbcast.lane.b32.xlu0 %v13125_v16, 256 }
 0x537   : > { %v6256_v62 = vsel %vm1920_vm0, %v12772_v32, %v5594_v40 }
 0x538   : > { %v13138_v57 = vpop.permute.xlu1 %5520  ;;  %v5605_v45 = vpop.permute.xlu0 %5604 }
 0x539   : > { %16871 = vst [vmem:[#allocation255_spill] sm:$0xff] %v13138_v57 }
 0x53a   : > { %5839 = vbcast.lane.b32.xlu1 %v5833_v10, 264  ;;  %5923 = vbcast.lane.b32.xlu0 %v13136_v52, 256  ;;  %v13154_v10 = vrot.slane %v13103_v8, %v16688_v30 }
 0x53c   : > { %v13145_v0 = vpop.permute.xlu1 %5531  ;;  %v5616_v11 = vpop.permute.xlu0 %5615 }
 0x53d   : > { %16872 = vst [vmem:[#allocation256_spill] sm:$0xff] %v13145_v0  ;;  %v6260_v44 = vsel %vm1920_vm0, %v12782_v25, %v5616_v11  ;;  %v6258_v0 = vsel %vm1920_vm0, %v12777_v3, %v5605_v45  ;;  %v13166_v11 = vrot.slane %v13103_v8, %v16692_v47 }
 0x53e   : > { %v6409_v59 = vcombine.high %v6256_v62, %v6260_v44  ;;  %5850 = vbcast.lane.b32.xlu1 %v5844_v18, 264  ;;  %5934 = vbcast.lane.b32.xlu0 %v13143_v29, 256  ;;  %v6408_v57 = vcombine.low %v6256_v62, %v6260_v44  ;;  %v6440_v18 = vcombine.low %v6384_v17, %v6400_v63 }
 0x540   : > { %v13156_v41 = vpop.permute.xlu1 %5542  ;;  %v5627_v28 = vpop.permute.xlu0 %5626  ;;  %v6416_v62 = vrot.slane %v6408_v57, %v10586_v51  ;;  %v6423_v44 = vrot.slane %v6409_v59, %v10586_v51  ;;  %v13174_v63 = vrot.slane %v6440_v18, %v10669_v23  ;;  %v13182_v59 = vrot.slane %v13103_v8, %v16696_v56 }
 0x541   : > { %16873 = vst [vmem:[#allocation257_spill] sm:$0xff] %v13156_v41  ;;  %v6262_v32 = vsel %vm1920_vm0, %v12787_v37, %v5627_v28  ;;  %v13177_v41 = vrot.slane %v6441_v33, %v10669_v23 }
 0x542   : > { %v6424_v40 = vcombine.low %v6258_v0, %v6262_v32  ;;  %v6425_v25 = vcombine.high %v6258_v0, %v6262_v32  ;;  %5861 = vbcast.lane.b32.xlu1 %v13079_v21, 264  ;;  %5945 = vbcast.lane.b32.xlu0 %v13154_v10, 256  ;;  %16874 = vst [vmem:[#allocation258_spill] sm:$0xff] %v13174_v63 }
 0x544   : > { %v6432_v3 = vrot.slane %v6424_v40, %v10586_v51  ;;  %v6439_v45 = vrot.slane %v6425_v25, %v10586_v51  ;;  %v5554_v37 = vpop.permute.xlu1 %5553  ;;  %v5638_v28 = vpop.permute.xlu0 %5637 }
 0x546   : > { %v6472_v0 = vcombine.low %v6416_v62, %v6432_v3  ;;  %v6473_v32 = vcombine.high %v6416_v62, %v6432_v3  ;;  %v6488_v21 = vcombine.low %v6423_v44, %v6439_v45  ;;  %v6489_v17 = vcombine.high %v6423_v44, %v6439_v45  ;;  %5872 = vbcast.lane.b32.xlu1 %v13087_v50, 264  ;;  %v16876_v45 = vld [vmem:[#allocation156_spill] sm:$0xff] }
 0x547   : > { %5956 = vbcast.lane.b32.xlu0 %v13166_v11, 256  ;;  %v13197_v62 = vrot.slane %v6456_v48, %v10669_v23  ;;  %v13200_v44 = vrot.slane %v6457_v53, %v10669_v23  ;;  %v13204_v3 = vrot.slane %v13103_v8, %v16700_v5  ;;  %v13228_v48 = vsel %vm1920_vm0, %v12790_v24, %v5554_v37 }
 0x548   : > { %v13185_v57 = vrot.slane %v6472_v0, %v10669_v23  ;;  %v13188_v40 = vrot.slane %v6473_v32, %v10669_v23  ;;  %v13191_v50 = vrot.slane %v6488_v21, %v10669_v23  ;;  %v13194_v25 = vrot.slane %v6489_v17, %v10669_v23  ;;  %v5565_v33 = vpop.permute.xlu1 %5564  ;;  %v5649_v18 = vpop.permute.xlu0 %5648  ;;  %v16877_v0 = vld [vmem:[#allocation157_spill] sm:$0xff]  ;;  %16878 = vst [vmem:[#allocation156_spill] sm:$0xff] %v13228_v48 }
 0x549   : > { %v13209_v32 = vadd.f32 %v16877_v0, %v16876_v45  ;;  %v6264_v53 = vsel %vm1920_vm0, %v12792_v13, %v5638_v28  ;;  %v13248_v13 = vsel %vm1920_vm0, %v12795_v35, %v5565_v33 }
 0x54a   : > { %16875 = vst [vmem:[#allocation259_spill] sm:$0xff] %v13185_v57  ;;  %5883 = vbcast.lane.b32.xlu1 %v13093_v26, 264  ;;  %16880 = vst [vmem:[#allocation260_spill] sm:$0xff] %v13248_v13 }
 0x54b   : > { %5967 = vbcast.lane.b32.xlu0 %v13182_v59, 256  ;;  %v13244_v24 = vrot.slane %v13209_v32, %v16666_v20 }
 0x54c   : > { %v5576_v0 = vpop.permute.xlu1 %5575  ;;  %v5660_v21 = vpop.permute.xlu0 %5659 }
 0x54d   : > { %v13234_v8 = vsel %vm1920_vm0, %v12802_v54, %v5576_v0  ;;  %v6268_v26 = vsel %vm1920_vm0, %v12804_v15, %v5660_v21  ;;  %v6266_v15 = vsel %vm1920_vm0, %v12797_v39, %v5649_v18  ;;  %v13264_v39 = vrot.slane %v13209_v32, %v16672_v14 }
 0x54e   : > { %16879 = vst [vmem:[#allocation157_spill] sm:$0xff] %v13234_v8  ;;  %v6649_v17 = vcombine.high %v13228_v48, %v13234_v8  ;;  %v6513_v45 = vcombine.high %v6264_v53, %v6268_v26  ;;  %5894 = vbcast.lane.b32.xlu1 %v13099_v49, 264  ;;  %v6512_v28 = vcombine.low %v6264_v53, %v6268_v26 }
 0x54f   : > { %5978 = vbcast.lane.b32.xlu0 %v13204_v3, 256 }
 0x550   : > { %v5587_v54 = vpop.permute.xlu1 %5586  ;;  %v5671_v37 = vpop.permute.xlu0 %5670  ;;  %v13267_v35 = vrot.slane %v6649_v17, %v10586_v51  ;;  %v6520_v53 = vrot.slane %v6512_v28, %v10586_v51  ;;  %v13280_v26 = vrot.slane %v6513_v45, %v10586_v51  ;;  %v13295_v45 = vrot.slane %v13209_v32, %v16678_v2 }
 0x551   : > { %v13254_v21 = vsel %vm1920_vm0, %v12807_v12, %v5587_v54  ;;  %v6270_v49 = vsel %vm1920_vm0, %v12809_v55, %v5671_v37 }
 0x552   : > { %16881 = vst [vmem:[#allocation261_spill] sm:$0xff] %v13254_v21  ;;  %v6665_v0 = vcombine.high %v13248_v13, %v13254_v21  ;;  %v6528_v48 = vcombine.low %v6266_v15, %v6270_v49  ;;  %v6529_v8 = vcombine.high %v6266_v15, %v6270_v49  ;;  %5905 = vbcast.lane.b32.xlu1 %v13114_v27, 264 }
 0x553   : > { %5989 = vbcast.lane.b32.xlu0 %v13244_v24, 256 }
 0x554   : > { %v13270_v12 = vrot.slane %v6665_v0, %v10586_v51  ;;  %v13273_v55 = vrot.slane %v6528_v48, %v10586_v51  ;;  %v13276_v33 = vrot.slane %v6529_v8, %v10586_v51  ;;  %v5598_v18 = vpop.permute.xlu1 %5597  ;;  %v5682_v27 = vpop.permute.xlu0 %5681 }
 0x555   : > { %v13305_v37 = vsel %vm1920_vm0, %v12812_v7, %v5598_v18  ;;  %v6272_v8 = vsel %vm1920_vm0, %v12814_v6, %v5682_v27  ;;  %v13321_v7 = vrot.slane %v13209_v32, %v16688_v30 }
 0x556   : > { %v6728_v17 = vcombine.low %v13267_v35, %v13270_v12  ;;  %5916 = vbcast.lane.b32.xlu1 %v13125_v16, 264  ;;  %v6577_v48 = vcombine.high %v6520_v53, %v13273_v55  ;;  %v13301_v16 = vrot.slane %v13209_v32, %v16684_v19  ;;  %16882 = vst [vmem:[#allocation262_spill] sm:$0xff] %v13305_v37 }
 0x557   : > { %6000 = vbcast.lane.b32.xlu0 %v13264_v39, 256 }
 0x558   : > { %v5609_v15 = vpop.permute.xlu1 %5608  ;;  %v5693_v28 = vpop.permute.xlu0 %5692 }
 0x559   : > { %v13325_v6 = vsel %vm1920_vm0, %v12817_v58, %v5609_v15  ;;  %v6576_v58 = vcombine.low %v6520_v53, %v13273_v55 }
 0x55a   : > { %5927 = vbcast.lane.b32.xlu1 %v13136_v52, 264  ;;  %16884 = vst [vmem:[#allocation264_spill] sm:$0xff] %v13325_v6 }
 0x55b   : > { %6011 = vbcast.lane.b32.xlu0 %v13295_v45, 256 }
 0x55c   : > { %v5620_v49 = vpop.permute.xlu1 %5619  ;;  %v5704_v0 = vpop.permute.xlu0 %5703 }
 0x55d   : > { %v13311_v54 = vsel %vm1920_vm0, %v12822_v22, %v5620_v49  ;;  %v6276_v52 = vsel %vm1920_vm0, %v12824_v61, %v5704_v0  ;;  %v6274_v61 = vsel %vm1920_vm0, %v12819_v38, %v5693_v28  ;;  %v13342_v38 = vrot.slane %v13209_v32, %v16692_v47 }
 0x55e   : > { %16883 = vst [vmem:[#allocation263_spill] sm:$0xff] %v13311_v54  ;;  %v6681_v13 = vcombine.high %v13305_v37, %v13311_v54  ;;  %v6545_v21 = vcombine.high %v6272_v8, %v6276_v52  ;;  %5938 = vbcast.lane.b32.xlu1 %v13143_v29, 264  ;;  %v6544_v27 = vcombine.low %v6272_v8, %v6276_v52 }
 0x55f   : > { %6022 = vbcast.lane.b32.xlu0 %v13301_v16, 256 }
 0x560   : > { %v5631_v22 = vpop.permute.xlu1 %5630  ;;  %v5715_v18 = vpop.permute.xlu0 %5714  ;;  %v6559_v55 = vrot.slane %v6545_v21, %v10586_v51  ;;  %v13361_v21 = vrot.slane %v6728_v17, %v10669_v23 }
 0x561   : > { %v13331_v49 = vsel %vm1920_vm0, %v12827_v60, %v5631_v22  ;;  %v6278_v29 = vsel %vm1920_vm0, %v12829_v34, %v5715_v18  ;;  %v6695_v60 = vrot.slane %v6681_v13, %v10586_v51  ;;  %v13353_v18 = vrot.slane %v13209_v32, %v16696_v56 }
 0x562   : > { %16885 = vst [vmem:[#allocation265_spill] sm:$0xff] %v13331_v49  ;;  %v6697_v0 = vcombine.high %v13325_v6, %v13331_v49  ;;  %v6560_v37 = vcombine.low %v6274_v61, %v6278_v29  ;;  %v6561_v54 = vcombine.high %v6274_v61, %v6278_v29  ;;  %5949 = vbcast.lane.b32.xlu1 %v13154_v10, 264  ;;  %16886 = vst [vmem:[#allocation266_spill] sm:$0xff] %v13361_v21 }
 0x563   : > { %6033 = vbcast.lane.b32.xlu0 %v13321_v7, 256  ;;  %v6552_v10 = vrot.slane %v6544_v27, %v10586_v51  ;;  %v13357_v13 = vrot.slane %v13209_v32, %v16700_v5  ;;  %v13364_v27 = vrot.slane %v6576_v58, %v10669_v23  ;;  %v16889_v32 = vld [vmem:[#allocation45_spill] sm:$0xff] }
 0x564   : > { %v6711_v8 = vrot.slane %v6697_v0, %v10586_v51  ;;  %v6568_v34 = vrot.slane %v6560_v37, %v10586_v51  ;;  %v6575_v15 = vrot.slane %v6561_v54, %v10586_v51  ;;  %v5642_v28 = vpop.permute.xlu1 %5641  ;;  %v5726_v52 = vpop.permute.xlu0 %5725 }
 0x565   : > { %16887 = vst [vmem:[#allocation267_spill] sm:$0xff] %v13364_v27 }
 0x566   : > { %v6760_v53 = vcombine.low %v6695_v60, %v6711_v8  ;;  %v6761_v22 = vcombine.high %v6695_v60, %v6711_v8  ;;  %5960 = vbcast.lane.b32.xlu1 %v13166_v11, 264  ;;  %v6608_v37 = vcombine.low %v6552_v10, %v6568_v34  ;;  %v6609_v54 = vcombine.high %v6552_v10, %v6568_v34  ;;  %v16888_v8 = vld [vmem:[#allocation43_spill] sm:$0xff] }
 0x567   : > { %v6624_v61 = vcombine.low %v6559_v55, %v6575_v15  ;;  %v6625_v29 = vcombine.high %v6559_v55, %v6575_v15  ;;  %6044 = vbcast.lane.b32.xlu0 %v13342_v38, 256  ;;  %v13367_v11 = vrot.slane %v6577_v48, %v10669_v23  ;;  %v13371_v6 = vadd.f32 %v16889_v32, %v16888_v8 }
 0x568   : > { %v5653_v0 = vpop.permute.xlu1 %5652  ;;  %v5737_v60 = vpop.permute.xlu0 %5736  ;;  %v13374_v34 = vrot.slane %v6608_v37, %v10669_v23  ;;  %v13377_v15 = vrot.slane %v6609_v54, %v10669_v23  ;;  %v16892_v48 = vcombine.high %v13267_v35, %v13270_v12  ;;  %v16894_v55 = vcombine.low %v13280_v26, %v13276_v33  ;;  %v16903_v12 = vld [vmem:[#allocation32_spill] sm:$0xff] }
 0x569   : > { %v13380_v17 = vrot.slane %v6624_v61, %v10669_v23  ;;  %v13383_v58 = vrot.slane %v6625_v29, %v10669_v23  ;;  %v16895_v54 = vcombine.high %v13280_v26, %v13276_v33  ;;  %v13404_v29 = vrot.slane %v6760_v53, %v10669_v23 }
 0x56a   : > { %16890 = vst [vmem:[#allocation43_spill] sm:$0xff] %v13374_v34  ;;  %v13389_v10 = vrot.slane %v16892_v48, %v10669_v23  ;;  %v13395_v37 = vrot.slane %v16894_v55, %v10669_v23  ;;  %5971 = vbcast.lane.b32.xlu1 %v13182_v59, 264  ;;  %v13408_v35 = vrot.slane %v6761_v22, %v10669_v23 }
 0x56b   : > { %16891 = vst [vmem:[#allocation45_spill] sm:$0xff] %v13383_v58  ;;  %v13401_v61 = vrot.slane %v16895_v54, %v10669_v23  ;;  %16897 = vst [vmem:[#allocation270_spill] sm:$0xff] %v13404_v29  ;;  %6055 = vbcast.lane.b32.xlu0 %v13353_v18, 256  ;;  %v13427_v55 = vsel %vm1920_vm0, %v12832_v1, %v5642_v28  ;;  %v6280_v54 = vsel %vm1920_vm0, %v12834_v36, %v5726_v52 }
 0x56c   : > { %16893 = vst [vmem:[#allocation268_spill] sm:$0xff] %v13389_v10  ;;  %16898 = vst [vmem:[#allocation271_spill] sm:$0xff] %v13408_v35  ;;  %v5664_v26 = vpop.permute.xlu1 %5663  ;;  %v5748_v32 = vpop.permute.xlu0 %5747  ;;  %v13442_v1 = vrot.slane %v13371_v6, %v16666_v20  ;;  %v16906_v35 = vld [vmem:[#allocation38_spill] sm:$0xff] }
 0x56d   : > { %16896 = vst [vmem:[#allocation269_spill] sm:$0xff] %v13401_v61  ;;  %16899 = vst [vmem:[#allocation272_spill] sm:$0xff] %v13427_v55  ;;  %v13433_v33 = vsel %vm1920_vm0, %v12844_v4, %v5664_v26  ;;  %v6284_v59 = vsel %vm1920_vm0, %v12846_v42, %v5748_v32  ;;  %v6282_v32 = vsel %vm1920_vm0, %v12839_v31, %v5737_v60 }
 0x56e   : > { %16900 = vst [vmem:[#allocation273_spill] sm:$0xff] %v13433_v33  ;;  %v6785_v22 = vcombine.high %v13427_v55, %v13433_v33  ;;  %v6921_v53 = vcombine.high %v6280_v54, %v6284_v59  ;;  %5982 = vbcast.lane.b32.xlu1 %v13204_v3, 264  ;;  %v13455_v3 = vsel %vm1920_vm0, %v12837_v43, %v5653_v0  ;;  %v16912_v33 = vld [vmem:[#allocation40_spill] sm:$0xff] }
 0x56f   : > { %6066 = vbcast.lane.b32.xlu0 %v13357_v13, 256  ;;  %16901 = vst [vmem:[#allocation274_spill] sm:$0xff] %v13455_v3  ;;  %v6920_v48 = vcombine.low %v6280_v54, %v6284_v59  ;;  %v13471_v31 = vrot.slane %v13371_v6, %v16672_v14 }
 0x570   : > { %v5675_v52 = vpop.permute.xlu1 %5674  ;;  %v5759_v26 = vpop.permute.xlu0 %5758  ;;  %v13474_v43 = vrot.slane %v6785_v22, %v10586_v51  ;;  %v13487_v54 = vrot.slane %v6921_v53, %v10586_v51  ;;  %v13502_v53 = vrot.slane %v13371_v6, %v16678_v2 }
 0x571   : > { %v13461_v36 = vsel %vm1920_vm0, %v12849_v9, %v5675_v52  ;;  %v6286_v42 = vsel %vm1920_vm0, %v12851_v46, %v5759_v26  ;;  %v6928_v59 = vrot.slane %v6920_v48, %v10586_v51 }
 0x572   : > { %16902 = vst [vmem:[#allocation275_spill] sm:$0xff] %v13461_v36  ;;  %v6801_v28 = vcombine.high %v13455_v3, %v13461_v36  ;;  %v6936_v4 = vcombine.low %v6282_v32, %v6286_v42  ;;  %v6937_v8 = vcombine.high %v6282_v32, %v6286_v42  ;;  %5993 = vbcast.lane.b32.xlu1 %v13244_v24, 264 }
 0x573   : > { %6077 = vbcast.lane.b32.xlu0 %v13442_v1, 256 }
 0x574   : > { %v13477_v9 = vrot.slane %v6801_v28, %v10586_v51  ;;  %v13480_v46 = vrot.slane %v6936_v4, %v10586_v51  ;;  %v13483_v0 = vrot.slane %v6937_v8, %v10586_v51  ;;  %v5686_v60 = vpop.permute.xlu1 %5685  ;;  %v5770_v24 = vpop.permute.xlu0 %5769  ;;  %v16905_v8 = vld [vmem:[#allocation33_spill] sm:$0xff] }
 0x575   : > { %v13512_v28 = vsel %vm1920_vm0, %v16903_v12, %v5686_v60  ;;  %v6288_v42 = vsel %vm1920_vm0, %v16905_v8, %v5770_v24  ;;  %v13528_v12 = vrot.slane %v13371_v6, %v16688_v30  ;;  %v16909_v60 = vld [vmem:[#allocation36_spill] sm:$0xff] }
 0x576   : > { %v6864_v22 = vcombine.low %v13474_v43, %v13477_v9  ;;  %6004 = vbcast.lane.b32.xlu1 %v13264_v39, 264  ;;  %v6985_v4 = vcombine.high %v6928_v59, %v13480_v46  ;;  %v13508_v39 = vrot.slane %v13371_v6, %v16684_v19  ;;  %16904 = vst [vmem:[#allocation32_spill] sm:$0xff] %v13512_v28 }
 0x577   : > { %6088 = vbcast.lane.b32.xlu0 %v13471_v31, 256 }
 0x578   : > { %v5697_v48 = vpop.permute.xlu1 %5696  ;;  %v5781_v52 = vpop.permute.xlu0 %5780 }
 0x579   : > { %v13532_v24 = vsel %vm1920_vm0, %v16909_v60, %v5697_v48  ;;  %v6984_v48 = vcombine.low %v6928_v59, %v13480_v46 }
 0x57a   : > { %6015 = vbcast.lane.b32.xlu1 %v13295_v45, 264  ;;  %v16908_v45 = vld [vmem:[#allocation39_spill] sm:$0xff]  ;;  %16910 = vst [vmem:[#allocation38_spill] sm:$0xff] %v13532_v24 }
 0x57b   : > { %6099 = vbcast.lane.b32.xlu0 %v13502_v53, 256 }
 0x57c   : > { %v5708_v26 = vpop.permute.xlu1 %5707  ;;  %v5792_v32 = vpop.permute.xlu0 %5791 }
 0x57d   : > { %v13518_v10 = vsel %vm1920_vm0, %v16906_v35, %v5708_v26  ;;  %v6292_v29 = vsel %vm1920_vm0, %v16908_v45, %v5792_v32  ;;  %v16911_v26 = vld [vmem:[#allocation37_spill] sm:$0xff] }
 0x57e   : > { %16907 = vst [vmem:[#allocation33_spill] sm:$0xff] %v13518_v10  ;;  %v6817_v21 = vcombine.high %v13512_v28, %v13518_v10  ;;  %v6953_v55 = vcombine.high %v6288_v42, %v6292_v29  ;;  %6026 = vbcast.lane.b32.xlu1 %v13301_v16, 264  ;;  %v6290_v32 = vsel %vm1920_vm0, %v16911_v26, %v5781_v52  ;;  %v16914_v16 = vld [vmem:[#allocation41_spill] sm:$0xff] }
 0x57f   : > { %6110 = vbcast.lane.b32.xlu0 %v13508_v39, 256  ;;  %v6952_v45 = vcombine.low %v6288_v42, %v6292_v29  ;;  %v13549_v29 = vrot.slane %v13371_v6, %v16692_v47  ;;  %v13560_v26 = vrot.slane %v13371_v6, %v16696_v56 }
 0x580   : > { %v5719_v35 = vpop.permute.xlu1 %5718  ;;  %v5803_v8 = vpop.permute.xlu0 %5802  ;;  %v6967_v46 = vrot.slane %v6953_v55, %v10586_v51  ;;  %v13568_v55 = vrot.slane %v6864_v22, %v10669_v23 }
 0x581   : > { %v13538_v3 = vsel %vm1920_vm0, %v16912_v33, %v5719_v35  ;;  %v6294_v36 = vsel %vm1920_vm0, %v16914_v16, %v5803_v8  ;;  %v6831_v33 = vrot.slane %v6817_v21, %v10586_v51  ;;  %v13564_v21 = vrot.slane %v13371_v6, %v16700_v5  ;;  %v16918_v6 = vld [vmem:[#allocation58_spill] sm:$0xff] }
 0x582   : > { %16913 = vst [vmem:[#allocation39_spill] sm:$0xff] %v13538_v3  ;;  %v6833_v28 = vcombine.high %v13532_v24, %v13538_v3  ;;  %v6968_v10 = vcombine.low %v6290_v32, %v6294_v36  ;;  %v6969_v58 = vcombine.high %v6290_v32, %v6294_v36  ;;  %6037 = vbcast.lane.b32.xlu1 %v13321_v7, 264  ;;  %16915 = vst [vmem:[#allocation36_spill] sm:$0xff] %v13568_v55 }
 0x583   : > { %6121 = vbcast.lane.b32.xlu0 %v13528_v12, 256  ;;  %v6960_v7 = vrot.slane %v6952_v45, %v10586_v51  ;;  %v13571_v45 = vrot.slane %v6984_v48, %v10669_v23 }
 0x584   : > { %v6847_v42 = vrot.slane %v6833_v28, %v10586_v51  ;;  %v6976_v52 = vrot.slane %v6968_v10, %v10586_v51  ;;  %v6983_v60 = vrot.slane %v6969_v58, %v10586_v51  ;;  %v5730_v35 = vpop.permute.xlu1 %5729  ;;  %v5814_v36 = vpop.permute.xlu0 %5813 }
 0x585   : > { %16916 = vst [vmem:[#allocation37_spill] sm:$0xff] %v13571_v45 }
 0x586   : > { %v6896_v59 = vcombine.low %v6831_v33, %v6847_v42  ;;  %v6897_v8 = vcombine.high %v6831_v33, %v6847_v42  ;;  %6048 = vbcast.lane.b32.xlu1 %v13342_v38, 264  ;;  %v7016_v10 = vcombine.low %v6960_v7, %v6976_v52  ;;  %v7017_v58 = vcombine.high %v6960_v7, %v6976_v52  ;;  %v16917_v42 = vld [vmem:[#allocation57_spill] sm:$0xff] }
 0x587   : > { %v7032_v28 = vcombine.low %v6967_v46, %v6983_v60  ;;  %v7033_v32 = vcombine.high %v6967_v46, %v6983_v60  ;;  %6132 = vbcast.lane.b32.xlu0 %v13549_v29, 256  ;;  %v13574_v38 = vrot.slane %v6985_v4, %v10669_v23  ;;  %v13578_v24 = vadd.f32 %v16918_v6, %v16917_v42  ;;  %v16928_v42 = vld [vmem:[#allocation50_spill] sm:$0xff] }
 0x588   : > { %v5741_v16 = vpop.permute.xlu1 %5740  ;;  %v5825_v33 = vpop.permute.xlu0 %5824  ;;  %v13581_v52 = vrot.slane %v7016_v10, %v10669_v23  ;;  %v13584_v60 = vrot.slane %v7017_v58, %v10669_v23  ;;  %v16920_v4 = vcombine.high %v13474_v43, %v13477_v9  ;;  %v16922_v46 = vcombine.low %v13487_v54, %v13483_v0  ;;  %v16929_v9 = vld [vmem:[#allocation65_spill] sm:$0xff] }
 0x589   : > { %v13587_v22 = vrot.slane %v7032_v28, %v10669_v23  ;;  %v13590_v48 = vrot.slane %v7033_v32, %v10669_v23  ;;  %v16923_v58 = vcombine.high %v13487_v54, %v13483_v0  ;;  %v13611_v32 = vrot.slane %v6896_v59, %v10669_v23  ;;  %v16931_v59 = vld [vmem:[#allocation66_spill] sm:$0xff] }
 0x58a   : > { %16919 = vst [vmem:[#allocation40_spill] sm:$0xff] %v13581_v52  ;;  %v13596_v7 = vrot.slane %v16920_v4, %v10669_v23  ;;  %v13602_v10 = vrot.slane %v16922_v46, %v10669_v23  ;;  %6059 = vbcast.lane.b32.xlu1 %v13353_v18, 264  ;;  %v13615_v43 = vrot.slane %v6897_v8, %v10669_v23  ;;  %v16926_v46 = vld [vmem:[#allocation49_spill] sm:$0xff] }
 0x58b   : > { %v13608_v28 = vrot.slane %v16923_v58, %v10669_v23  ;;  %16924 = vst [vmem:[#allocation57_spill] sm:$0xff] %v13611_v32  ;;  %6143 = vbcast.lane.b32.xlu0 %v13560_v26, 256  ;;  %v13634_v58 = vsel %vm1920_vm0, %v16926_v46, %v5730_v35  ;;  %v6296_v0 = vsel %vm1920_vm0, %v16928_v42, %v5814_v36  ;;  %v16934_v46 = vld [vmem:[#allocation185_spill] sm:$0xff]  ;;  %v16935_v36 = vld [vmem:[#allocation186_spill] sm:$0xff] }
 0x58c   : > { %16921 = vst [vmem:[#allocation41_spill] sm:$0xff] %v13596_v7  ;;  %16925 = vst [vmem:[#allocation58_spill] sm:$0xff] %v13615_v43  ;;  %v5752_v54 = vpop.permute.xlu1 %5751  ;;  %v5836_v6 = vpop.permute.xlu0 %5835  ;;  %v13649_v35 = vrot.slane %v13578_v24, %v16666_v20  ;;  %v6298_v4 = vsel %vm1920_vm0, %v16934_v46, %v5825_v33  ;;  %v16938_v46 = vld [vmem:[#allocation188_spill] sm:$0xff] }
 0x58d   : > { %16927 = vst [vmem:[#allocation49_spill] sm:$0xff] %v13634_v58  ;;  %v13640_v3 = vsel %vm1920_vm0, %v16929_v9, %v5752_v54  ;;  %v6300_v18 = vsel %vm1920_vm0, %v16931_v59, %v5836_v6  ;;  %v16932_v6 = vld [vmem:[#allocation184_spill] sm:$0xff]  ;;  %v16937_v9 = vld [vmem:[#allocation187_spill] sm:$0xff] }
 0x58e   : > { %16930 = vst [vmem:[#allocation50_spill] sm:$0xff] %v13640_v3  ;;  %v7193_v8 = vcombine.high %v13634_v58, %v13640_v3  ;;  %v7057_v61 = vcombine.high %v6296_v0, %v6300_v18  ;;  %6070 = vbcast.lane.b32.xlu1 %v13357_v13, 264  ;;  %v13662_v13 = vsel %vm1920_vm0, %v16932_v6, %v5741_v16 }
 0x58f   : > { %6154 = vbcast.lane.b32.xlu0 %v13564_v21, 256  ;;  %16933 = vst [vmem:[#allocation65_spill] sm:$0xff] %v13662_v13  ;;  %v7056_v58 = vcombine.low %v6296_v0, %v6300_v18  ;;  %v13678_v16 = vrot.slane %v13578_v24, %v16672_v14 }
 0x590   : > { %v5763_v20 = vpop.permute.xlu1 %5762  ;;  %v5847_v59 = vpop.permute.xlu0 %5846  ;;  %v13681_v33 = vrot.slane %v7193_v8, %v10586_v51  ;;  %v16941_v8 = vld [vmem:[#allocation192_spill] sm:$0xff] }
 0x591   : > { %v13668_v3 = vsel %vm1920_vm0, %v16935_v36, %v5763_v20  ;;  %v6302_v42 = vsel %vm1920_vm0, %v16937_v9, %v5847_v59  ;;  %v7064_v9 = vrot.slane %v7056_v58, %v10586_v51 }
 0x592   : > { %16936 = vst [vmem:[#allocation66_spill] sm:$0xff] %v13668_v3  ;;  %v7209_v54 = vcombine.high %v13662_v13, %v13668_v3  ;;  %v7072_v43 = vcombine.low %v6298_v4, %v6302_v42  ;;  %v7073_v7 = vcombine.high %v6298_v4, %v6302_v42  ;;  %6081 = vbcast.lane.b32.xlu1 %v13442_v1, 264 }
 0x593   : > { %6165 = vbcast.lane.b32.xlu0 %v13649_v35, 256  ;;  %v13694_v42 = vrot.slane %v7057_v61, %v10586_v51  ;;  %v13709_v61 = vrot.slane %v13578_v24, %v16678_v2 }
 0x594   : > { %v13684_v0 = vrot.slane %v7209_v54, %v10586_v51  ;;  %v13687_v18 = vrot.slane %v7072_v43, %v10586_v51  ;;  %v13690_v36 = vrot.slane %v7073_v7, %v10586_v51  ;;  %v5774_v4 = vpop.permute.xlu1 %5773  ;;  %v5858_v1 = vpop.permute.xlu0 %5857 }
 0x596   : > { %6092 = vbcast.lane.b32.xlu1 %v13471_v31, 264  ;;  %v7121_v43 = vcombine.high %v7064_v9, %v13687_v18  ;;  %v7136_v7 = vcombine.low %v13694_v42, %v13690_v36  ;;  %v7137_v54 = vcombine.high %v13694_v42, %v13690_v36  ;;  %v13715_v31 = vrot.slane %v13578_v24, %v16684_v19  ;;  %v16940_v42 = vld [vmem:[#allocation189_spill] sm:$0xff] }
 0x597   : > { %6176 = vbcast.lane.b32.xlu0 %v13678_v16, 256  ;;  %v13719_v36 = vsel %vm1920_vm0, %v16938_v46, %v5774_v4  ;;  %v6304_v2 = vsel %vm1920_vm0, %v16940_v42, %v5858_v1  ;;  %v13735_v4 = vrot.slane %v13578_v24, %v16688_v30  ;;  %v16944_v1 = vld [vmem:[#allocation190_spill] sm:$0xff]  ;;  %v16946_v42 = vld [vmem:[#allocation191_spill] sm:$0xff] }
 0x598   : > { %v5785_v58 = vpop.permute.xlu1 %5784  ;;  %v5869_v6 = vpop.permute.xlu0 %5868  ;;  %16939 = vst [vmem:[#allocation184_spill] sm:$0xff] %v13719_v36 }
 0x599   : > { %v13739_v46 = vsel %vm1920_vm0, %v16944_v1, %v5785_v58  ;;  %v7120_v58 = vcombine.low %v7064_v9, %v13687_v18 }
 0x59a   : > { %6103 = vbcast.lane.b32.xlu1 %v13502_v53, 264  ;;  %v16943_v53 = vld [vmem:[#allocation193_spill] sm:$0xff]  ;;  %16945 = vst [vmem:[#allocation186_spill] sm:$0xff] %v13739_v46 }
 0x59b   : > { %6187 = vbcast.lane.b32.xlu0 %v13709_v61, 256 }
 0x59c   : > { %v5796_v20 = vpop.permute.xlu1 %5795  ;;  %v5880_v59 = vpop.permute.xlu0 %5879 }
 0x59d   : > { %v13725_v14 = vsel %vm1920_vm0, %v16941_v8, %v5796_v20  ;;  %v6308_v32 = vsel %vm1920_vm0, %v16943_v53, %v5880_v59  ;;  %v6306_v59 = vsel %vm1920_vm0, %v16946_v42, %v5869_v6 }
 0x59e   : > { %16942 = vst [vmem:[#allocation185_spill] sm:$0xff] %v13725_v14  ;;  %v7225_v19 = vcombine.high %v13719_v36, %v13725_v14  ;;  %v7089_v55 = vcombine.high %v6304_v2, %v6308_v32  ;;  %6114 = vbcast.lane.b32.xlu1 %v13508_v39, 264  ;;  %v7088_v53 = vcombine.low %v6304_v2, %v6308_v32  ;;  %v16947_v36 = vld [vmem:[#allocation194_spill] sm:$0xff]  ;;  %v16949_v39 = vld [vmem:[#allocation195_spill] sm:$0xff] }
 0x59f   : > { %6198 = vbcast.lane.b32.xlu0 %v13715_v31, 256  ;;  %v13756_v32 = vrot.slane %v13578_v24, %v16692_v47  ;;  %v13767_v47 = vrot.slane %v13578_v24, %v16696_v56 }
 0x5a0   : > { %v5807_v8 = vpop.permute.xlu1 %5806  ;;  %v5891_v20 = vpop.permute.xlu0 %5890  ;;  %v7239_v6 = vrot.slane %v7225_v19, %v10586_v51  ;;  %v7103_v18 = vrot.slane %v7089_v55, %v10586_v51 }
 0x5a1   : > { %v13745_v14 = vsel %vm1920_vm0, %v16947_v36, %v5807_v8  ;;  %v6310_v13 = vsel %vm1920_vm0, %v16949_v39, %v5891_v20 }
 0x5a2   : > { %16948 = vst [vmem:[#allocation187_spill] sm:$0xff] %v13745_v14  ;;  %v7241_v30 = vcombine.high %v13739_v46, %v13745_v14  ;;  %v7104_v3 = vcombine.low %v6306_v59, %v6310_v13  ;;  %v7105_v49 = vcombine.high %v6306_v59, %v6310_v13  ;;  %6125 = vbcast.lane.b32.xlu1 %v13528_v12, 264  ;;  %v17058_v46 = vld [vmem:[#allocation130_spill] sm:$0xff] }
 0x5a3   : > { %6209 = vbcast.lane.b32.xlu0 %v13735_v4, 256  ;;  %v7096_v12 = vrot.slane %v7088_v53, %v10586_v51  ;;  %v13774_v53 = vrot.slane %v7121_v43, %v10669_v23  ;;  %v16954_v43 = vcombine.low %v13681_v33, %v13684_v0 }
 0x5a4   : > { %v7255_v36 = vrot.slane %v7241_v30, %v10586_v51  ;;  %v7112_v2 = vrot.slane %v7104_v3, %v10586_v51  ;;  %v7119_v1 = vrot.slane %v7105_v49, %v10586_v51  ;;  %v5818_v8 = vpop.permute.xlu1 %5817  ;;  %v5902_v13 = vpop.permute.xlu0 %5901  ;;  %v13771_v49 = vrot.slane %v7120_v58, %v10669_v23 }
 0x5a6   : > { %v7304_v9 = vcombine.low %v7239_v6, %v7255_v36  ;;  %v7305_v20 = vcombine.high %v7239_v6, %v7255_v36  ;;  %6136 = vbcast.lane.b32.xlu1 %v13549_v29, 264  ;;  %v7152_v19 = vcombine.low %v7096_v12, %v7112_v2  ;;  %v7153_v42 = vcombine.high %v7096_v12, %v7112_v2 }
 0x5a7   : > { %v7168_v59 = vcombine.low %v7103_v18, %v7119_v1  ;;  %v7169_v3 = vcombine.high %v7103_v18, %v7119_v1  ;;  %6220 = vbcast.lane.b32.xlu0 %v13756_v32, 256  ;;  %16950 = vst [vmem:[#allocation188_spill] sm:$0xff] %v13771_v49  ;;  %v13795_v36 = vrot.slane %v16954_v43, %v10669_v23 }
 0x5a8   : > { %v13777_v55 = vrot.slane %v7304_v9, %v10669_v23  ;;  %v5829_v29 = vpop.permute.xlu1 %5828  ;;  %v13780_v39 = vrot.slane %v7152_v19, %v10669_v23  ;;  %v13783_v56 = vrot.slane %v7153_v42, %v10669_v23  ;;  %v5913_v58 = vpop.permute.xlu0 %5912  ;;  %v13798_v2 = vrot.slane %v7136_v7, %v10669_v23  ;;  %v16964_v7 = vld [vmem:[#allocation197_spill] sm:$0xff] }
 0x5a9   : > { %v13786_v30 = vrot.slane %v7168_v59, %v10669_v23  ;;  %v13789_v6 = vrot.slane %v7169_v3, %v10669_v23  ;;  %16955 = vst [vmem:[#allocation190_spill] sm:$0xff] %v13795_v36  ;;  %v13801_v1 = vrot.slane %v7137_v54, %v10669_v23  ;;  %v13806_v12 = vrot.slane %v13578_v24, %v16700_v5  ;;  %v16960_v3 = vld [vmem:[#allocation196_spill] sm:$0xff]  ;;  %v16962_v54 = vld [vmem:[#allocation79_spill] sm:$0xff] }
 0x5aa   : > { %16951 = vst [vmem:[#allocation189_spill] sm:$0xff] %v13777_v55  ;;  %16952 = vst [vmem:[#allocation192_spill] sm:$0xff] %v13780_v39  ;;  %6147 = vbcast.lane.b32.xlu1 %v13560_v26, 264  ;;  %v13809_v18 = vrot.slane %v7305_v20, %v10669_v23  ;;  %v16958_v42 = vcombine.high %v13681_v33, %v13684_v0  ;;  %v13834_v43 = vsel %vm1920_vm0, %v16960_v3, %v5818_v8  ;;  %v16965_v0 = vld [vmem:[#allocation80_spill] sm:$0xff]  ;;  %v16966_v3 = vld [vmem:[#allocation198_spill] sm:$0xff] }
 0x5ab   : > { %16953 = vst [vmem:[#allocation193_spill] sm:$0xff] %v13789_v6  ;;  %16956 = vst [vmem:[#allocation191_spill] sm:$0xff] %v13801_v1  ;;  %6231 = vbcast.lane.b32.xlu0 %v13767_v47, 256  ;;  %v6312_v20 = vsel %vm1920_vm0, %v16964_v7, %v5902_v13  ;;  %v13858_v24 = vsel %vm1920_vm0, %v16966_v3, %v5829_v29  ;;  %v6505_v9 = vcombine.high %v13174_v63, %v13185_v57  ;;  %v16970_v55 = vld [vmem:[#allocation199_spill] sm:$0xff] }
 0x5ac   : > { %16957 = vst [vmem:[#allocation194_spill] sm:$0xff] %v13809_v18  ;;  %v5840_v19 = vpop.permute.xlu1 %5839  ;;  %v13830_v59 = vrot.slane %v16958_v42, %v10669_v23  ;;  %16961 = vst [vmem:[#allocation196_spill] sm:$0xff] %v13834_v43  ;;  %v5924_v5 = vpop.permute.xlu0 %5923  ;;  %v16971_v18 = vld [vmem:[#allocation201_spill] sm:$0xff] }
 0x5ad   : > { %v13838_v26 = vsel %vm1920_vm0, %v16962_v54, %v5840_v19  ;;  %v6316_v42 = vsel %vm1920_vm0, %v16965_v0, %v5924_v5  ;;  %16967 = vst [vmem:[#allocation197_spill] sm:$0xff] %v13858_v24  ;;  %v16968_v0 = vld [vmem:[#allocation200_spill] sm:$0xff]  ;;  %v6314_v19 = vsel %vm1920_vm0, %v16970_v55, %v5913_v58  ;;  %v7049_v55 = vcombine.high %v13571_v45, %v13581_v52  ;;  %v16974_v52 = vld [vmem:[#allocation206_spill] sm:$0xff] }
 0x5ae   : > { %16959 = vst [vmem:[#allocation195_spill] sm:$0xff] %v13830_v59  ;;  %16963 = vst [vmem:[#allocation79_spill] sm:$0xff] %v13838_v26  ;;  %v7329_v33 = vcombine.high %v13834_v43, %v13838_v26  ;;  %6158 = vbcast.lane.b32.xlu1 %v13564_v21, 264  ;;  %v7465_v54 = vcombine.high %v6312_v20, %v6316_v42  ;;  %v7464_v5 = vcombine.low %v6312_v20, %v6316_v42 }
 0x5af   : > { %6242 = vbcast.lane.b32.xlu0 %v13806_v12, 256 }
 0x5b0   : > { %v5851_v7 = vpop.permute.xlu1 %5850  ;;  %v5935_v8 = vpop.permute.xlu0 %5934  ;;  %v13875_v42 = vrot.slane %v7329_v33, %v10586_v51  ;;  %v7472_v58 = vrot.slane %v7464_v5, %v10586_v51 }
 0x5b1   : > { %v13862_v21 = vsel %vm1920_vm0, %v16968_v0, %v5851_v7  ;;  %v6318_v59 = vsel %vm1920_vm0, %v16971_v18, %v5935_v8  ;;  %v7479_v18 = vrot.slane %v7465_v54, %v10586_v51 }
 0x5b2   : > { %16969 = vst [vmem:[#allocation80_spill] sm:$0xff] %v13862_v21  ;;  %v7345_v13 = vcombine.high %v13858_v24, %v13862_v21  ;;  %6169 = vbcast.lane.b32.xlu1 %v13649_v35, 264  ;;  %v7480_v29 = vcombine.low %v6314_v19, %v6318_v59  ;;  %v7481_v20 = vcombine.high %v6314_v19, %v6318_v59  ;;  %v17012_v21 = vld [vmem:[#allocation222_spill] sm:$0xff] }
 0x5b3   : > { %8560 = vrot.lane.b32.xlu0 %v6505_v9, %s9731_s21 }
 0x5b4   : > { %v13878_v7 = vrot.slane %v7345_v13, %v10586_v51  ;;  %v5862_v3 = vpop.permute.xlu1 %5861  ;;  %v7488_v35 = vrot.slane %v7480_v29, %v10586_v51  ;;  %v7495_v59 = vrot.slane %v7481_v20, %v10586_v51  ;;  %v5946_v8 = vpop.permute.xlu0 %5945  ;;  %v16972_v20 = vld [vmem:[#allocation202_spill] sm:$0xff] }
 0x5b5   : > { %v13895_v36 = vsel %vm1920_vm0, %v16972_v20, %v5862_v3  ;;  %v16978_v3 = vld [vmem:[#allocation204_spill] sm:$0xff] }
 0x5b6   : > { %v7408_v9 = vcombine.low %v13875_v42, %v13878_v7  ;;  %6180 = vbcast.lane.b32.xlu1 %v13678_v16, 264  ;;  %v7529_v19 = vcombine.high %v7472_v58, %v7488_v35  ;;  %v7544_v13 = vcombine.low %v7479_v18, %v7495_v59  ;;  %v7545_v0 = vcombine.high %v7479_v18, %v7495_v59  ;;  %v16976_v16 = vld [vmem:[#allocation203_spill] sm:$0xff] }
 0x5b7   : > { %8564 = vrot.lane.b32.xlu0 %v7049_v55, %s9731_s21  ;;  %16973 = vst [vmem:[#allocation198_spill] sm:$0xff] %v13895_v36  ;;  %v6320_v57 = vsel %vm1920_vm0, %v16976_v16, %v5946_v8  ;;  %v16977_v18 = vld [vmem:[#allocation207_spill] sm:$0xff]  ;;  %v16982_v16 = vld [vmem:[#allocation205_spill] sm:$0xff] }
 0x5b8   : > { %v5873_v5 = vpop.permute.xlu1 %5872 }
 0x5b9   : > { %v5957_v54 = vpop.permute.xlu0 %5956  ;;  %v13910_v20 = vsel %vm1920_vm0, %v16978_v3, %v5873_v5  ;;  %v7528_v3 = vcombine.low %v7472_v58, %v7488_v35 }
 0x5ba   : > { %6191 = vbcast.lane.b32.xlu1 %v13709_v61, 264  ;;  %16979 = vst [vmem:[#allocation199_spill] sm:$0xff] %v13910_v20  ;;  %v6322_v26 = vsel %vm1920_vm0, %v16982_v16, %v5957_v54 }
 0x5bc   : > { %v5884_v29 = vpop.permute.xlu1 %5883 }
 0x5bd   : > { %v13899_v45 = vsel %vm1920_vm0, %v16974_v52, %v5884_v29  ;;  %v5968_v33 = vpop.permute.xlu0 %5967  ;;  %v16980_v29 = vld [vmem:[#allocation208_spill] sm:$0xff] }
 0x5be   : > { %16975 = vst [vmem:[#allocation200_spill] sm:$0xff] %v13899_v45  ;;  %v7361_v55 = vcombine.high %v13895_v36, %v13899_v45  ;;  %v6324_v59 = vsel %vm1920_vm0, %v16977_v18, %v5968_v33  ;;  %6202 = vbcast.lane.b32.xlu1 %v13715_v31, 264  ;;  %v16983_v18 = vld [vmem:[#allocation209_spill] sm:$0xff] }
 0x5bf   : > { %v7497_v61 = vcombine.high %v6320_v57, %v6324_v59  ;;  %v7496_v52 = vcombine.low %v6320_v57, %v6324_v59 }
 0x5c0   : > { %v5895_v63 = vpop.permute.xlu1 %5894  ;;  %v7375_v57 = vrot.slane %v7361_v55, %v10586_v51  ;;  %v13931_v55 = vrot.slane %v7528_v3, %v10669_v23 }
 0x5c1   : > { %v13914_v43 = vsel %vm1920_vm0, %v16980_v29, %v5895_v63  ;;  %v5979_v8 = vpop.permute.xlu0 %5978  ;;  %v7504_v29 = vrot.slane %v7496_v52, %v10586_v51  ;;  %v7511_v54 = vrot.slane %v7497_v61, %v10586_v51  ;;  %v13934_v52 = vrot.slane %v7529_v19, %v10669_v23 }
 0x5c2   : > { %16981 = vst [vmem:[#allocation201_spill] sm:$0xff] %v13914_v43  ;;  %v7377_v33 = vcombine.high %v13910_v20, %v13914_v43  ;;  %v6326_v31 = vsel %vm1920_vm0, %v16983_v18, %v5979_v8  ;;  %6213 = vbcast.lane.b32.xlu1 %v13735_v4, 264  ;;  %16984 = vst [vmem:[#allocation202_spill] sm:$0xff] %v13931_v55  ;;  %v13937_v61 = vrot.slane %v7544_v13, %v10669_v23  ;;  %v17014_v20 = vld [vmem:[#allocation219_spill] sm:$0xff] }
 0x5c3   : > { %v7512_v36 = vcombine.low %v6322_v26, %v6326_v31  ;;  %v7513_v5 = vcombine.high %v6322_v26, %v6326_v31  ;;  %v13952_v19 = vrot.slane %v7408_v9, %v10669_v23  ;;  %v13955_v13 = vrot.slane %v7545_v0, %v10669_v23  ;;  %v17015_v43 = vld [vmem:[#allocation223_spill] sm:$0xff] }
 0x5c4   : > { %v7391_v63 = vrot.slane %v7377_v33, %v10586_v51  ;;  %v5906_v59 = vpop.permute.xlu1 %5905 }
 0x5c5   : > { %v7520_v16 = vrot.slane %v7512_v36, %v10586_v51  ;;  %v7527_v45 = vrot.slane %v7513_v5, %v10586_v51  ;;  %v5990_v24 = vpop.permute.xlu0 %5989  ;;  %16987 = vst [vmem:[#allocation207_spill] sm:$0xff] %v13952_v19  ;;  %v17003_v19 = vld [vmem:[#allocation215_spill] sm:$0xff] }
 0x5c6   : > { %v7440_v8 = vcombine.low %v7375_v57, %v7391_v63  ;;  %v7441_v18 = vcombine.high %v7375_v57, %v7391_v63  ;;  %6224 = vbcast.lane.b32.xlu1 %v13756_v32, 264 }
 0x5c7   : > { %v7560_v4 = vcombine.low %v7504_v29, %v7520_v16  ;;  %v7561_v26 = vcombine.high %v7504_v29, %v7520_v16  ;;  %v7576_v58 = vcombine.low %v7511_v54, %v7527_v45  ;;  %v7577_v35 = vcombine.high %v7511_v54, %v7527_v45  ;;  %v16994_v16 = vld [vmem:[#allocation95_spill] sm:$0xff]  ;;  %v17002_v29 = vld [vmem:[#allocation213_spill] sm:$0xff] }
 0x5c8   : > { %v5917_v36 = vpop.permute.xlu1 %5916  ;;  %v13958_v3 = vrot.slane %v7440_v8, %v10669_v23  ;;  %v13961_v57 = vrot.slane %v7441_v18, %v10669_v23  ;;  %v16996_v8 = vld [vmem:[#allocation211_spill] sm:$0xff] }
 0x5c9   : > { %v13940_v33 = vrot.slane %v7560_v4, %v10669_v23  ;;  %v13943_v31 = vrot.slane %v7561_v26, %v10669_v23  ;;  %v13946_v32 = vrot.slane %v7576_v58, %v10669_v23  ;;  %v13949_v45 = vrot.slane %v7577_v35, %v10669_v23  ;;  %v6001_v5 = vpop.permute.xlu0 %6000  ;;  %v16992_v58 = vld [vmem:[#allocation210_spill] sm:$0xff] }
 0x5ca   : > { %16988 = vst [vmem:[#allocation204_spill] sm:$0xff] %v13958_v3  ;;  %16989 = vst [vmem:[#allocation208_spill] sm:$0xff] %v13961_v57  ;;  %6235 = vbcast.lane.b32.xlu1 %v13767_v47, 264  ;;  %v16990_v4 = vcombine.high %v13875_v42, %v13878_v7  ;;  %v13988_v35 = vsel %vm1920_vm0, %v16992_v58, %v5906_v59  ;;  %v6328_v18 = vsel %vm1920_vm0, %v16996_v8, %v5990_v24  ;;  %v16997_v42 = vld [vmem:[#allocation96_spill] sm:$0xff] }
 0x5cb   : > { %16985 = vst [vmem:[#allocation206_spill] sm:$0xff] %v13940_v33  ;;  %16986 = vst [vmem:[#allocation203_spill] sm:$0xff] %v13949_v45  ;;  %v7593_v63 = vcombine.high %v13931_v55, %v13940_v33  ;;  %v6641_v24 = vcombine.high %v13364_v27, %v13374_v34  ;;  %v17008_v27 = vld [vmem:[#allocation217_spill] sm:$0xff]  ;;  %v17010_v55 = vld [vmem:[#allocation218_spill] sm:$0xff] }
 0x5cc   : > { %v5928_v54 = vpop.permute.xlu1 %5927  ;;  %v13984_v26 = vrot.slane %v16990_v4, %v10669_v23  ;;  %16993 = vst [vmem:[#allocation209_spill] sm:$0xff] %v13988_v35 }
 0x5cd   : > { %v13992_v0 = vsel %vm1920_vm0, %v16994_v16, %v5928_v54  ;;  %8568 = vrot.lane.b32.xlu0 %v7593_v63, %s9731_s21  ;;  %v6012_v47 = vpop.permute.xlu0 %6011  ;;  %v6330_v63 = vsel %vm1920_vm0, %v17002_v29, %v6001_v5  ;;  %v7185_v5 = vcombine.high %v13771_v49, %v13780_v39 }
 0x5ce   : > { %16991 = vst [vmem:[#allocation205_spill] sm:$0xff] %v13984_v26  ;;  %16995 = vst [vmem:[#allocation210_spill] sm:$0xff] %v13992_v0  ;;  %v7737_v9 = vcombine.high %v13988_v35, %v13992_v0  ;;  %v6332_v7 = vsel %vm1920_vm0, %v16997_v42, %v6012_v47  ;;  %6246 = vbcast.lane.b32.xlu1 %v13806_v12, 264  ;;  %v16998_v47 = vld [vmem:[#allocation212_spill] sm:$0xff]  ;;  %v17000_v42 = vld [vmem:[#allocation214_spill] sm:$0xff] }
 0x5cf   : > { %v7601_v4 = vcombine.high %v6328_v18, %v6332_v7  ;;  %v14014_v12 = vsel %vm1920_vm0, %v16998_v47, %v5917_v36  ;;  %v7600_v58 = vcombine.low %v6328_v18, %v6332_v7 }
 0x5d0   : > { %v5939_v16 = vpop.permute.xlu1 %5938  ;;  %16999 = vst [vmem:[#allocation95_spill] sm:$0xff] %v14014_v12  ;;  %v14028_v18 = vrot.slane %v7737_v9, %v10586_v51 }
 0x5d1   : > { %v14018_v59 = vsel %vm1920_vm0, %v17000_v42, %v5939_v16  ;;  %v6023_v54 = vpop.permute.xlu0 %6022  ;;  %v7608_v29 = vrot.slane %v7600_v58, %v10586_v51  ;;  %v7615_v47 = vrot.slane %v7601_v4, %v10586_v51  ;;  %v17004_v4 = vld [vmem:[#allocation216_spill] sm:$0xff] }
 0x5d2   : > { %17001 = vst [vmem:[#allocation211_spill] sm:$0xff] %v14018_v59  ;;  %v7753_v3 = vcombine.high %v14014_v12, %v14018_v59  ;;  %v6334_v34 = vsel %vm1920_vm0, %v17003_v19, %v6023_v54  ;;  %8562 = vrot.lane.b32.xlu1 %v6641_v24, %s9731_s21 }
 0x5d3   : > { %v7616_v8 = vcombine.low %v6330_v63, %v6334_v34  ;;  %v7617_v36 = vcombine.high %v6330_v63, %v6334_v34 }
 0x5d4   : > { %v14031_v7 = vrot.slane %v7753_v3, %v10586_v51  ;;  %v5950_v16 = vpop.permute.xlu1 %5949 }
 0x5d5   : > { %v7624_v19 = vrot.slane %v7616_v8, %v10586_v51  ;;  %v7631_v54 = vrot.slane %v7617_v36, %v10586_v51  ;;  %v6034_v24 = vpop.permute.xlu0 %6033  ;;  %v14046_v8 = vsel %vm1920_vm0, %v17004_v4, %v5950_v16  ;;  %v17006_v36 = vld [vmem:[#allocation220_spill] sm:$0xff] }
 0x5d6   : > { %v7816_v34 = vcombine.low %v14028_v18, %v14031_v7  ;;  %v7817_v3 = vcombine.high %v14028_v18, %v14031_v7  ;;  %8566 = vrot.lane.b32.xlu1 %v7185_v5, %s9731_s21  ;;  %17005 = vst [vmem:[#allocation96_spill] sm:$0xff] %v14046_v8  ;;  %v6336_v18 = vsel %vm1920_vm0, %v17008_v27, %v6034_v24  ;;  %v17009_v5 = vld [vmem:[#allocation221_spill] sm:$0xff] }
 0x5d7   : > { %v7665_v9 = vcombine.high %v7608_v29, %v7624_v19  ;;  %v7680_v63 = vcombine.low %v7615_v47, %v7631_v54  ;;  %v7681_v42 = vcombine.high %v7615_v47, %v7631_v54  ;;  %v7664_v1 = vcombine.low %v7608_v29, %v7624_v19 }
 0x5d8   : > { %v5961_v57 = vpop.permute.xlu1 %5960 }
 0x5d9   : > { %v6045_v58 = vpop.permute.xlu0 %6044  ;;  %v14060_v16 = vsel %vm1920_vm0, %v17010_v55, %v5961_v57  ;;  %v14079_v19 = vrot.slane %v7664_v1, %v10669_v23 }
 0x5da   : > { %17011 = vst [vmem:[#allocation214_spill] sm:$0xff] %v14060_v16  ;;  %v6338_v27 = vsel %vm1920_vm0, %v17014_v20, %v6045_v58 }
 0x5db   : > { %17016 = vst [vmem:[#allocation215_spill] sm:$0xff] %v14079_v19 }
 0x5dc   : > { %v5972_v26 = vpop.permute.xlu1 %5971 }
 0x5dd   : > { %v14050_v39 = vsel %vm1920_vm0, %v17006_v36, %v5972_v26  ;;  %v6056_v49 = vpop.permute.xlu0 %6055 }
 0x5de   : > { %17007 = vst [vmem:[#allocation212_spill] sm:$0xff] %v14050_v39  ;;  %v7769_v7 = vcombine.high %v14046_v8, %v14050_v39  ;;  %v6340_v47 = vsel %vm1920_vm0, %v17009_v5, %v6056_v49 }
 0x5df   : > { %v7633_v54 = vcombine.high %v6336_v18, %v6340_v47  ;;  %v7632_v4 = vcombine.low %v6336_v18, %v6340_v47 }
 0x5e0   : > { %v5983_v33 = vpop.permute.xlu1 %5982  ;;  %v7783_v55 = vrot.slane %v7769_v7, %v10586_v51  ;;  %v14082_v7 = vrot.slane %v7665_v9, %v10669_v23  ;;  %v14100_v9 = vrot.slane %v7681_v42, %v10669_v23  ;;  %v14117_v42 = vrot.slane %v7816_v34, %v10669_v23 }
 0x5e1   : > { %v14064_v26 = vsel %vm1920_vm0, %v17012_v21, %v5983_v33  ;;  %v6067_v36 = vpop.permute.xlu0 %6066  ;;  %v7640_v21 = vrot.slane %v7632_v4, %v10586_v51  ;;  %v7647_v33 = vrot.slane %v7633_v54, %v10586_v51  ;;  %v14085_v4 = vrot.slane %v7680_v63, %v10669_v23 }
 0x5e2   : > { %17013 = vst [vmem:[#allocation213_spill] sm:$0xff] %v14064_v26  ;;  %v7785_v24 = vcombine.high %v14060_v16, %v14064_v26  ;;  %v6342_v49 = vsel %vm1920_vm0, %v17015_v43, %v6067_v36  ;;  %17021 = vst [vmem:[#allocation218_spill] sm:$0xff] %v14100_v9  ;;  %v17044_v9 = vld [vmem:[#allocation232_spill] sm:$0xff] }
 0x5e3   : > { %v7648_v5 = vcombine.low %v6338_v27, %v6342_v49  ;;  %v7649_v6 = vcombine.high %v6338_v27, %v6342_v49  ;;  %17017 = vst [vmem:[#allocation216_spill] sm:$0xff] %v14085_v4  ;;  %17024 = vst [vmem:[#allocation223_spill] sm:$0xff] %v14117_v42 }
 0x5e4   : > { %v7799_v57 = vrot.slane %v7785_v24, %v10586_v51  ;;  %v5994_v18 = vpop.permute.xlu1 %5993 }
 0x5e5   : > { %v7656_v20 = vrot.slane %v7648_v5, %v10586_v51  ;;  %v7663_v58 = vrot.slane %v7649_v6, %v10586_v51  ;;  %v6078_v47 = vpop.permute.xlu0 %6077 }
 0x5e6   : > { %v7848_v35 = vcombine.low %v7783_v55, %v7799_v57  ;;  %v7849_v0 = vcombine.high %v7783_v55, %v7799_v57 }
 0x5e7   : > { %v7696_v43 = vcombine.low %v7640_v21, %v7656_v20  ;;  %v7697_v36 = vcombine.high %v7640_v21, %v7656_v20  ;;  %v7712_v27 = vcombine.low %v7647_v33, %v7663_v58  ;;  %v7713_v29 = vcombine.high %v7647_v33, %v7663_v58  ;;  %v17028_v20 = vld [vmem:[#allocation112_spill] sm:$0xff] }
 0x5e8   : > { %v6005_v54 = vpop.permute.xlu1 %6004  ;;  %v14103_v63 = vrot.slane %v7848_v35, %v10669_v23  ;;  %v14106_v55 = vrot.slane %v7849_v0, %v10669_v23  ;;  %v17032_v58 = vld [vmem:[#allocation228_spill] sm:$0xff] }
 0x5e9   : > { %v14088_v24 = vrot.slane %v7696_v43, %v10669_v23  ;;  %v14091_v6 = vrot.slane %v7697_v36, %v10669_v23  ;;  %v14094_v49 = vrot.slane %v7712_v27, %v10669_v23  ;;  %v14097_v5 = vrot.slane %v7713_v29, %v10669_v23  ;;  %v6089_v1 = vpop.permute.xlu0 %6088  ;;  %v17026_v27 = vld [vmem:[#allocation224_spill] sm:$0xff] }
 0x5ea   : > { %17022 = vst [vmem:[#allocation222_spill] sm:$0xff] %v14103_v63  ;;  %17023 = vst [vmem:[#allocation219_spill] sm:$0xff] %v14106_v55  ;;  %v14126_v36 = vrot.slane %v7817_v3, %v10669_v23  ;;  %v14130_v29 = vsel %vm1920_vm0, %v17026_v27, %v5994_v18 }
 0x5eb   : > { %17018 = vst [vmem:[#allocation220_spill] sm:$0xff] %v14088_v24  ;;  %17019 = vst [vmem:[#allocation217_spill] sm:$0xff] %v14094_v49  ;;  %v7729_v57 = vcombine.high %v14079_v19, %v14088_v24 }
 0x5ec   : > { %17020 = vst [vmem:[#allocation221_spill] sm:$0xff] %v14097_v5  ;;  %v6016_v35 = vpop.permute.xlu1 %6015  ;;  %17025 = vst [vmem:[#allocation276_spill] sm:$0xff] %v14126_v36 }
 0x5ed   : > { %17027 = vst [vmem:[#allocation224_spill] sm:$0xff] %v14130_v29  ;;  %v14134_v34 = vsel %vm1920_vm0, %v17028_v20, %v6016_v35  ;;  %8570 = vrot.lane.b32.xlu1 %v7729_v57, %s9731_s21  ;;  %v6100_v0 = vpop.permute.xlu0 %6099  ;;  %v17030_v35 = vld [vmem:[#allocation226_spill] sm:$0xff] }
 0x5ee   : > { %17029 = vst [vmem:[#allocation112_spill] sm:$0xff] %v14134_v34  ;;  %v7873_v43 = vcombine.high %v14130_v29, %v14134_v34  ;;  %v14151_v33 = vsel %vm1920_vm0, %v17030_v35, %v6005_v54  ;;  %v17034_v54 = vld [vmem:[#allocation229_spill] sm:$0xff] }
 0x5ef   : > { %17031 = vst [vmem:[#allocation226_spill] sm:$0xff] %v14151_v33  ;;  %v17036_v29 = vld [vmem:[#allocation113_spill] sm:$0xff] }
 0x5f0   : > { %v6027_v20 = vpop.permute.xlu1 %6026  ;;  %v7887_v18 = vrot.slane %v7873_v43, %v10586_v51  ;;  %v14171_v34 = vsel %vm1920_vm0, %v17036_v29, %v6100_v0  ;;  %v17042_v29 = vld [vmem:[#allocation235_spill] sm:$0xff] }
 0x5f1   : > { %v14155_v21 = vsel %vm1920_vm0, %v17032_v58, %v6027_v20  ;;  %v6111_v24 = vpop.permute.xlu0 %6110  ;;  %v17035_v58 = vld [vmem:[#allocation227_spill] sm:$0xff] }
 0x5f2   : > { %17033 = vst [vmem:[#allocation228_spill] sm:$0xff] %v14155_v21  ;;  %v7889_v3 = vcombine.high %v14151_v33, %v14155_v21  ;;  %v14163_v35 = vsel %vm1920_vm0, %v17034_v54, %v6111_v24  ;;  %v14167_v20 = vsel %vm1920_vm0, %v17035_v58, %v6089_v1  ;;  %v17037_v33 = vld [vmem:[#allocation230_spill] sm:$0xff]  ;;  %v17041_v21 = vld [vmem:[#allocation225_spill] sm:$0xff] }
 0x5f3   : > { %v14185_v1 = vsel %vm1920_vm0, %v17041_v21, %v6078_v47 }
 0x5f4   : > { %v7903_v27 = vrot.slane %v7889_v3, %v10586_v51  ;;  %v6038_v19 = vpop.permute.xlu1 %6037  ;;  %v8024_v3 = vcombine.low %v14167_v20, %v14163_v35 }
 0x5f5   : > { %v6122_v63 = vpop.permute.xlu0 %6121 }
 0x5f6   : > { %v7952_v42 = vcombine.low %v7887_v18, %v7903_v27  ;;  %v7953_v57 = vcombine.high %v7887_v18, %v7903_v27  ;;  %v14177_v18 = vsel %vm1920_vm0, %v17037_v33, %v6038_v19  ;;  %v17039_v27 = vld [vmem:[#allocation234_spill] sm:$0xff]  ;;  %v8008_v19 = vcombine.low %v14185_v1, %v14171_v34  ;;  %v17043_v33 = vld [vmem:[#allocation231_spill] sm:$0xff] }
 0x5f7   : > { %17038 = vst [vmem:[#allocation229_spill] sm:$0xff] %v14177_v18  ;;  %v14197_v5 = vsel %vm1920_vm0, %v17043_v33, %v6122_v63 }
 0x5f8   : > { %v6049_v55 = vpop.permute.xlu1 %6048 }
 0x5f9   : > { %v6133_v36 = vpop.permute.xlu0 %6132  ;;  %v14202_v47 = vsel %vm1920_vm0, %v17044_v9, %v6049_v55  ;;  %v8016_v9 = vrot.slane %v8008_v19, %v10586_v51 }
 0x5fa   : > { %17045 = vst [vmem:[#allocation113_spill] sm:$0xff] %v14202_v47 }
 0x5fc   : > { %v6060_v43 = vpop.permute.xlu1 %6059 }
 0x5fd   : > { %v14181_v24 = vsel %vm1920_vm0, %v17039_v27, %v6060_v43  ;;  %v6144_v54 = vpop.permute.xlu0 %6143  ;;  %v8032_v27 = vrot.slane %v8024_v3, %v10586_v51  ;;  %v17049_v3 = vld [vmem:[#allocation237_spill] sm:$0xff] }
 0x5fe   : > { %17040 = vst [vmem:[#allocation227_spill] sm:$0xff] %v14181_v24  ;;  %v7905_v0 = vcombine.high %v14177_v18, %v14181_v24  ;;  %v14191_v58 = vsel %vm1920_vm0, %v17042_v29, %v6144_v54  ;;  %v17046_v18 = vld [vmem:[#allocation236_spill] sm:$0xff]  ;;  %v17048_v24 = vld [vmem:[#allocation233_spill] sm:$0xff] }
 0x5ff   : > { %v8040_v21 = vcombine.low %v14197_v5, %v14191_v58  ;;  %v14212_v8 = vsel %vm1920_vm0, %v17048_v24, %v6133_v36  ;;  %v8072_v12 = vcombine.low %v8016_v9, %v8032_v27 }
 0x600   : > { %v6071_v43 = vpop.permute.xlu1 %6070 }
 0x601   : > { %v14208_v54 = vsel %vm1920_vm0, %v17046_v18, %v6071_v43  ;;  %v6155_v29 = vpop.permute.xlu0 %6154  ;;  %v7919_v18 = vrot.slane %v7905_v0, %v10586_v51  ;;  %v8048_v36 = vrot.slane %v8040_v21, %v10586_v51  ;;  %v14228_v19 = vrot.slane %v8072_v12, %v10669_v23 }
 0x602   : > { %17047 = vst [vmem:[#allocation230_spill] sm:$0xff] %v14208_v54  ;;  %v7921_v63 = vcombine.high %v14202_v47, %v14208_v54  ;;  %v14218_v33 = vsel %vm1920_vm0, %v17049_v3, %v6155_v29  ;;  %v17064_v12 = vcombine.low %v13177_v41, %v13188_v40 }
 0x603   : > { %v8056_v55 = vcombine.low %v14212_v8, %v14218_v33  ;;  %17050 = vst [vmem:[#allocation234_spill] sm:$0xff] %v14228_v19 }
 0x604   : > { %v7935_v43 = vrot.slane %v7921_v63, %v10586_v51  ;;  %v6082_v39 = vpop.permute.xlu1 %6081 }
 0x605   : > { %v8064_v24 = vrot.slane %v8056_v55, %v10586_v51  ;;  %v6166_v47 = vpop.permute.xlu0 %6165  ;;  %v14242_v55 = vrot.slane %v7952_v42, %v10669_v23 }
 0x606   : > { %v7984_v54 = vcombine.low %v7919_v18, %v7935_v43  ;;  %v7985_v59 = vcombine.high %v7919_v18, %v7935_v43  ;;  %v14247_v43 = vrot.slane %v7953_v57, %v10669_v23 }
 0x607   : > { %v8104_v29 = vcombine.low %v8048_v36, %v8064_v24  ;;  %17054 = vst [vmem:[#allocation232_spill] sm:$0xff] %v14242_v55 }
 0x608   : > { %v6093_v3 = vpop.permute.xlu1 %6092  ;;  %v14234_v63 = vrot.slane %v7984_v54, %v10669_v23  ;;  %v14237_v26 = vrot.slane %v7985_v59, %v10669_v23  ;;  %17055 = vst [vmem:[#allocation236_spill] sm:$0xff] %v14247_v43 }
 0x609   : > { %v14231_v16 = vrot.slane %v8104_v29, %v10669_v23  ;;  %v6177_v0 = vpop.permute.xlu0 %6176  ;;  %v17056_v29 = vld [vmem:[#allocation238_spill] sm:$0xff] }
 0x60a   : > { %17052 = vst [vmem:[#allocation235_spill] sm:$0xff] %v14234_v63  ;;  %17053 = vst [vmem:[#allocation231_spill] sm:$0xff] %v14237_v26  ;;  %v14251_v54 = vsel %vm1920_vm0, %v17056_v29, %v6082_v39  ;;  %v8105_v63 = vcombine.high %v8048_v36, %v8064_v24  ;;  %v8073_v26 = vcombine.high %v8016_v9, %v8032_v27  ;;  %v17067_v9 = vld [vmem:[#allocation243_spill] sm:$0xff] }
 0x60b   : > { %17051 = vst [vmem:[#allocation225_spill] sm:$0xff] %v14231_v16  ;;  %v8137_v21 = vcombine.high %v14228_v19, %v14231_v16  ;;  %17057 = vst [vmem:[#allocation233_spill] sm:$0xff] %v14251_v54  ;;  %v17062_v16 = vld [vmem:[#allocation242_spill] sm:$0xff] }
 0x60c   : > { %v6104_v18 = vpop.permute.xlu1 %6103  ;;  %v8119_v55 = vrot.slane %v8105_v63, %v10669_v23  ;;  %v8087_v24 = vrot.slane %v8073_v26, %v10669_v23 }
 0x60d   : > { %v14255_v59 = vsel %vm1920_vm0, %v17058_v46, %v6104_v18  ;;  %8572 = vrot.lane.b32.xlu0 %v8137_v21, %s9731_s21  ;;  %v6188_v14 = vpop.permute.xlu0 %6187  ;;  %v17060_v18 = vld [vmem:[#allocation240_spill] sm:$0xff] }
 0x60e   : > { %17059 = vst [vmem:[#allocation237_spill] sm:$0xff] %v14255_v59  ;;  %v8281_v42 = vcombine.high %v14251_v54, %v14255_v59  ;;  %v14270_v21 = vsel %vm1920_vm0, %v17060_v18, %v6093_v3  ;;  %v17068_v54 = vld [vmem:[#allocation241_spill] sm:$0xff] }
 0x60f   : > { %17061 = vst [vmem:[#allocation238_spill] sm:$0xff] %v14270_v21  ;;  %v14304_v59 = vsel %vm1920_vm0, %v17068_v54, %v6177_v0  ;;  %v17074_v54 = vld [vmem:[#allocation239_spill] sm:$0xff] }
 0x610   : > { %v6115_v29 = vpop.permute.xlu1 %6114  ;;  %v14283_v46 = vrot.slane %v8281_v42, %v10586_v51  ;;  %v17066_v42 = vcombine.low %v13934_v52, %v13943_v31 }
 0x611   : > { %v14274_v19 = vsel %vm1920_vm0, %v17062_v16, %v6115_v29  ;;  %8592 = vrot.lane.b32.xlu0 %v17064_v12, %s9732_s27  ;;  %v6199_v57 = vpop.permute.xlu0 %6198  ;;  %v17065_v16 = vcombine.low %v13574_v38, %v13584_v60 }
 0x612   : > { %17063 = vst [vmem:[#allocation130_spill] sm:$0xff] %v14274_v19  ;;  %v8297_v39 = vcombine.high %v14270_v21, %v14274_v19  ;;  %v17070_v21 = vld [vmem:[#allocation244_spill] sm:$0xff] }
 0x613   : > { %v17072_v19 = vld [vmem:[#allocation248_spill] sm:$0xff] }
 0x614   : > { %v8311_v3 = vrot.slane %v8297_v39, %v10586_v51  ;;  %v6126_v18 = vpop.permute.xlu1 %6125  ;;  %v14300_v39 = vsel %vm1920_vm0, %v17067_v9, %v6199_v57  ;;  %v14323_v9 = vsel %vm1920_vm0, %v17074_v54, %v6166_v47  ;;  %v17077_v47 = vld [vmem:[#allocation246_spill] sm:$0xff] }
 0x615   : > { %8596 = vrot.lane.b32.xlu0 %v17065_v16, %s9732_s27  ;;  %v6210_v29 = vpop.permute.xlu0 %6209  ;;  %v8138_v16 = vcombine.low %v8087_v24, %v8119_v55 }
 0x616   : > { %v8360_v12 = vcombine.low %v14283_v46, %v8311_v3  ;;  %v8361_v43 = vcombine.high %v14283_v46, %v8311_v3  ;;  %v17069_v46 = vld [vmem:[#allocation131_spill] sm:$0xff]  ;;  %v8160_v3 = vcombine.low %v14304_v59, %v14300_v39 }
 0x617   : > { %v14308_v63 = vsel %vm1920_vm0, %v17069_v46, %v6188_v14  ;;  %v17075_v46 = vld [vmem:[#allocation249_spill] sm:$0xff] }
 0x618   : > { %v6137_v36 = vpop.permute.xlu1 %6136 }
 0x619   : > { %8600 = vrot.lane.b32.xlu0 %v17066_v42, %s9732_s27  ;;  %v6221_v27 = vpop.permute.xlu0 %6220  ;;  %v14314_v42 = vsel %vm1920_vm0, %v17070_v21, %v6126_v18  ;;  %v8144_v21 = vcombine.low %v14323_v9, %v14308_v63  ;;  %v17076_v18 = vld [vmem:[#allocation245_spill] sm:$0xff]  ;;  %v14342_v54 = vsel %vm1920_vm0, %v17077_v47, %v6137_v36  ;;  %v17083_v47 = vld [vmem:[#allocation251_spill] sm:$0xff] }
 0x61a   : > { %17071 = vst [vmem:[#allocation240_spill] sm:$0xff] %v14314_v42  ;;  %17078 = vst [vmem:[#allocation243_spill] sm:$0xff] %v14342_v54 }
 0x61c   : > { %v6148_v26 = vpop.permute.xlu1 %6147 }
 0x61d   : > { %v14318_v57 = vsel %vm1920_vm0, %v17072_v19, %v6148_v26  ;;  %8604 = vrot.lane.b32.xlu0 %v8138_v16, %s9732_s27  ;;  %v6232_v0 = vpop.permute.xlu0 %6231  ;;  %v14335_v19 = vsel %vm1920_vm0, %v17076_v18, %v6210_v29  ;;  %v14338_v26 = vrot.slane %v8160_v3, %v10586_v51  ;;  %v17081_v29 = vcombine.high %v13177_v41, %v13188_v40 }
 0x61e   : > { %17073 = vst [vmem:[#allocation242_spill] sm:$0xff] %v14318_v57  ;;  %v8313_v14 = vcombine.high %v14314_v42, %v14318_v57  ;;  %v14329_v49 = vsel %vm1920_vm0, %v17075_v46, %v6232_v0  ;;  %v17079_v0 = vld [vmem:[#allocation250_spill] sm:$0xff]  ;;  %v17082_v57 = vld [vmem:[#allocation247_spill] sm:$0xff] }
 0x61f   : > { %v8176_v42 = vcombine.low %v14335_v19, %v14329_v49  ;;  %v14356_v3 = vsel %vm1920_vm0, %v17082_v57, %v6221_v27 }
 0x620   : > { %v6159_v16 = vpop.permute.xlu1 %6158  ;;  %v8327_v41 = vrot.slane %v8313_v14, %v10586_v51 }
 0x621   : > { %v14348_v46 = vsel %vm1920_vm0, %v17079_v0, %v6159_v16  ;;  %8624 = vrot.lane.b32.xlu0 %v17081_v29, %s9733_s0  ;;  %v6243_v18 = vpop.permute.xlu0 %6242  ;;  %v14365_v16 = vrot.slane %v8144_v21, %v10586_v51  ;;  %v8184_v57 = vrot.slane %v8176_v42, %v10586_v51  ;;  %v17084_v21 = vcombine.high %v13574_v38, %v13584_v60 }
 0x622   : > { %17080 = vst [vmem:[#allocation241_spill] sm:$0xff] %v14348_v46  ;;  %v8329_v36 = vcombine.high %v14342_v54, %v14348_v46  ;;  %v14362_v4 = vsel %vm1920_vm0, %v17083_v47, %v6243_v18  ;;  %v17085_v42 = vcombine.high %v13934_v52, %v13943_v31  ;;  %v8057_v38 = vcombine.high %v14212_v8, %v14218_v33  ;;  %v17088_v33 = vld [vmem:[#allocation252_spill] sm:$0xff] }
 0x623   : > { %v8192_v0 = vcombine.low %v14356_v3, %v14362_v4  ;;  %v8208_v27 = vcombine.low %v14365_v16, %v14338_v26  ;;  %v8041_v52 = vcombine.high %v14197_v5, %v14191_v58  ;;  %v14404_v31 = vrot.slane %v8360_v12, %v10669_v23 }
 0x624   : > { %v8343_v40 = vrot.slane %v8329_v36, %v10586_v51  ;;  %v6170_v29 = vpop.permute.xlu1 %6169 }
 0x625   : > { %v8200_v54 = vrot.slane %v8192_v0, %v10586_v51  ;;  %8628 = vrot.lane.b32.xlu0 %v17084_v21, %s9733_s0  ;;  %v14380_v14 = vrot.slane %v8208_v27, %v10669_v23  ;;  %v14407_v27 = vrot.slane %v8361_v43, %v10669_v23  ;;  %v14411_v21 = vsel %vm1920_vm0, %v17088_v33, %v6170_v29 }
 0x626   : > { %v8392_v18 = vcombine.low %v8327_v41, %v8343_v40  ;;  %v8393_v47 = vcombine.high %v8327_v41, %v8343_v40  ;;  %v8139_v41 = vcombine.high %v8087_v24, %v8119_v55  ;;  %v17089_v55 = vld [vmem:[#allocation146_spill] sm:$0xff]  ;;  %v14428_v43 = vrot.slane %v8057_v38, %v10586_v51 }
 0x627   : > { %v8240_v46 = vcombine.low %v8184_v57, %v8200_v54  ;;  %17087 = vst [vmem:[#allocation244_spill] sm:$0xff] %v14407_v27 }
 0x628   : > { %v6181_v45 = vpop.permute.xlu1 %6180  ;;  %v14390_v0 = vrot.slane %v8392_v18, %v10669_v23  ;;  %v14395_v60 = vrot.slane %v8393_v47, %v10669_v23  ;;  %v14440_v47 = vrot.slane %v8041_v52, %v10586_v51 }
 0x629   : > { %v14383_v36 = vrot.slane %v8240_v46, %v10669_v23  ;;  %8632 = vrot.lane.b32.xlu0 %v17085_v42, %s9733_s0  ;;  %v8025_v46 = vcombine.high %v14167_v20, %v14163_v35  ;;  %v8009_v35 = vcombine.high %v14185_v1, %v14171_v34  ;;  %v17090_v42 = vld [vmem:[#allocation253_spill] sm:$0xff] }
 0x62a   : > { %17086 = vst [vmem:[#allocation131_spill] sm:$0xff] %v14395_v60  ;;  %v14444_v38 = vsel %vm1920_vm0, %v17090_v42, %v6181_v45  ;;  %v8120_v33 = vcombine.low %v14440_v47, %v14428_v43  ;;  %v17101_v60 = vld [vmem:[#allocation257_spill] sm:$0xff] }
 0x62b   : > { %v8273_v40 = vcombine.high %v14380_v14, %v14383_v36  ;;  %v14437_v34 = vrot.slane %v8025_v46, %v10586_v51  ;;  %v17093_v46 = vcombine.low %v13367_v11, %v13377_v15  ;;  %v14461_v45 = vrot.slane %v8009_v35, %v10586_v51 }
 0x62c   : > { %v6192_v8 = vpop.permute.xlu1 %6191  ;;  %v17094_v35 = vcombine.low %v13602_v10, %v13587_v22 }
 0x62d   : > { %v14415_v24 = vsel %vm1920_vm0, %v17089_v55, %v6192_v8  ;;  %8636 = vrot.lane.b32.xlu0 %v8139_v41, %s9733_s0  ;;  %8574 = vrot.lane.b32.xlu1 %v8273_v40, %s9731_s21  ;;  %v17091_v41 = vld [vmem:[#allocation147_spill] sm:$0xff]  ;;  %v17092_v8 = vcombine.low %v13197_v62, %v13191_v50  ;;  %v8241_v55 = vcombine.high %v8184_v57, %v8200_v54  ;;  %s9633_s21 = scalar_lea.vmem %s15661_s5, 1024 }
 0x62e   : > { %v8417_v20 = vcombine.high %v14411_v21, %v14415_v24  ;;  %v17095_v54 = vcombine.low %v13774_v53, %v13783_v56  ;;  %p9634_p8 = scmp.ne.s32.totalorder %s15661_s5, %s9633_s21 }
 0x62f   : > { %v8255_v18 = vrot.slane %v8241_v55, %v10669_v23 }
 0x630   : > { %v6203_v1 = vpop.permute.xlu1 %6202  ;;  %p9635_p0 = pnand %p9634_p8, %p9829_p9 }
 0x631   : > { %v14448_v40 = vsel %vm1920_vm0, %v17091_v41, %v6203_v1  ;;  %8656 = vrot.lane.b32.xlu0 %v17092_v8, %s9734_s1  ;;  %8594 = vrot.lane.b32.xlu1 %v17093_v46, %s9732_s27  ;;  %v8431_v1 = vrot.slane %v8417_v20, %v10586_v51  ;;  %v8088_v8 = vcombine.low %v14461_v45, %v14437_v34 }
 0x632   : > { %v8433_v52 = vcombine.high %v14444_v38, %v14448_v40  ;;  %v8209_v46 = vcombine.high %v14365_v16, %v14338_v26  ;;  %v17096_v16 = vcombine.low %v13937_v61, %v13946_v32  ;;  %p9636_p2 = pneg %p9635_p0 }
 0x633   : > { %v8096_v12 = vrot.slane %v8088_v8, %v10669_v23  ;;  %v17099_v8 = vld [vmem:[#allocation256_spill] sm:$0xff] }
 0x634   : > { %v8447_v42 = vrot.slane %v8433_v52, %v10586_v51  ;;  %v6214_v41 = vpop.permute.xlu1 %6213  ;;  %v8128_v52 = vrot.slane %v8120_v33, %v10669_v23  ;;  %v8223_v26 = vrot.slane %v8209_v46, %v10669_v23 }
 0x635   : > { %8660 = vrot.lane.b32.xlu0 %v17094_v35, %s9734_s1  ;;  %8598 = vrot.lane.b32.xlu1 %v17095_v54, %s9732_s27  ;;  %v17097_v35 = vcombine.low %v14082_v7, %v14091_v6  ;;  %v17098_v54 = vld [vmem:[#allocation254_spill] sm:$0xff] }
 0x636   : > { %v8496_v57 = vcombine.low %v8431_v1, %v8447_v42  ;;  %v8497_v20 = vcombine.high %v8431_v1, %v8447_v42  ;;  %v8140_v1 = vcombine.low %v8096_v12, %v8128_v52  ;;  %v8274_v42 = vcombine.low %v8223_v26, %v8255_v18 }
 0x637   : > { %v14493_v55 = vsel %vm1920_vm0, %v17098_v54, %v6214_v41 }
 0x638   : > { %v6225_v29 = vpop.permute.xlu1 %6224 }
 0x639   : > { %8664 = vrot.lane.b32.xlu0 %v17096_v16, %s9734_s1  ;;  %8602 = vrot.lane.b32.xlu1 %v17097_v35, %s9732_s27  ;;  %v17100_v35 = vld [vmem:[#allocation255_spill] sm:$0xff] }
 0x63a   : > { %v14505_v58 = vsel %vm1920_vm0, %v17100_v35, %v6225_v29  ;;  %v8275_v35 = vcombine.high %v8223_v26, %v8255_v18  ;;  %v17114_v26 = vcombine.low %v13608_v28, %v13590_v48 }
 0x63c   : > { %v6236_v33 = vpop.permute.xlu1 %6235 }
 0x63d   : > { %v14497_v46 = vsel %vm1920_vm0, %v17099_v8, %v6236_v33  ;;  %8668 = vrot.lane.b32.xlu0 %v8140_v1, %s9734_s1  ;;  %8606 = vrot.lane.b32.xlu1 %v8274_v42, %s9732_s27  ;;  %v17102_v33 = vcombine.high %v13197_v62, %v13191_v50  ;;  %v17103_v1 = vcombine.high %v13367_v11, %v13377_v15  ;;  %s9747_s27 = smov [#allocation10]  }
 0x63e   : > { %v8449_v16 = vcombine.high %v14493_v55, %v14497_v46  ;;  %v17105_v50 = vcombine.high %v13774_v53, %v13783_v56  ;;  %v14538_v8 = vrot.slane %v8496_v57, %v10669_v23  ;;  %v8193_v53 = vcombine.high %v14356_v3, %v14362_v4 }
 0x63f   : > { %v8141_v56 = vcombine.high %v8096_v12, %v8128_v52  ;;  %v8177_v4 = vcombine.high %v14335_v19, %v14329_v49  ;;  %v17112_v49 = vcombine.low %v13200_v44, %v13194_v25  ;;  %v8089_v19 = vcombine.high %v14461_v45, %v14437_v34  ;;  %v17116_v45 = vld [vmem:[#allocation203_spill] sm:$0xff] }
 0x640   : > { %v6247_v5 = vpop.permute.xlu1 %6246  ;;  %v8463_v29 = vrot.slane %v8449_v16, %v10586_v51  ;;  %17108 = vst [vmem:[#allocation249_spill] sm:$0xff] %v14538_v8  ;;  %v14541_v16 = vrot.slane %v8497_v20, %v10669_v23  ;;  %v14570_v3 = vrot.slane %v8193_v53, %v10586_v51  ;;  %v17123_v53 = vld [vmem:[#allocation261_spill] sm:$0xff] }
 0x641   : > { %v14509_v41 = vsel %vm1920_vm0, %v17101_v60, %v6247_v5  ;;  %8688 = vrot.lane.b32.xlu0 %v17102_v33, %s9735_s25  ;;  %8626 = vrot.lane.b32.xlu1 %v17103_v1, %s9733_s0  ;;  %v17104_v60 = vcombine.high %v13602_v10, %v13587_v22  ;;  %v17110_v22 = vcombine.high %v13937_v61, %v13946_v32  ;;  %v17169_v32 = vld [vmem:[#allocation38_spill] sm:$0xff]  ;;  %vm9184_vm0 = vcmask 261120  }
 0x642   : > { %v8465_v42 = vcombine.high %v14505_v58, %v14509_v41  ;;  %17109 = vst [vmem:[#allocation245_spill] sm:$0xff] %v14541_v16  ;;  %v17111_v10 = vcombine.high %v14082_v7, %v14091_v6  ;;  %v8161_v7 = vcombine.high %v14304_v59, %v14300_v39  ;;  %v8145_v6 = vcombine.high %v14323_v9, %v14308_v63  ;;  %v17173_v16 = vld [vmem:[#allocation274_spill] sm:$0xff] }
 0x643   : > { %v14576_v18 = vrot.slane %v8177_v4, %v10586_v51  ;;  %v17113_v59 = vcombine.low %v13395_v37, %v13380_v17  ;;  %v8121_v39 = vcombine.high %v14440_v47, %v14428_v43  ;;  %v17115_v43 = vcombine.low %v13798_v2, %v13786_v30  ;;  %v17126_v4 = vld [vmem:[#allocation262_spill] sm:$0xff] }
 0x644   : > { %v8479_v54 = vrot.slane %v8465_v42, %v10586_v51  ;;  %v14573_v12 = vrot.slane %v8161_v7, %v10586_v51  ;;  %v14589_v63 = vrot.slane %v8145_v6, %v10586_v51  ;;  %v8103_v1 = vrot.slane %v8089_v19, %v10669_v23  ;;  %v17125_v7 = vld [vmem:[#allocation263_spill] sm:$0xff] }
 0x645   : > { %8692 = vrot.lane.b32.xlu0 %v17104_v60, %s9735_s25  ;;  %8630 = vrot.lane.b32.xlu1 %v17105_v50, %s9733_s0  ;;  %v8256_v9 = vcombine.low %v14576_v18, %v14570_v3  ;;  %v8135_v47 = vrot.slane %v8121_v39, %v10669_v23  ;;  %v17117_v42 = vcombine.low %v13955_v13, %v17116_v45  ;;  %v17129_v39 = vld [vmem:[#allocation157_spill] sm:$0xff] }
 0x646   : > { %v8528_v62 = vcombine.low %v8463_v29, %v8479_v54  ;;  %v8529_v11 = vcombine.high %v8463_v29, %v8479_v54  ;;  %v8224_v52 = vcombine.low %v14589_v63, %v14573_v12  ;;  %v17118_v29 = vld [vmem:[#allocation216_spill] sm:$0xff]  ;;  %v17119_v54 = vld [vmem:[#allocation217_spill] sm:$0xff]  ;;  %v6680_v6 = vcombine.low %v17126_v4, %v17125_v7 }
 0x647   : > { %v8264_v33 = vrot.slane %v8256_v9, %v10669_v23  ;;  %v17120_v60 = vcombine.low %v17118_v29, %v17119_v54  ;;  %v8142_v50 = vcombine.low %v8103_v1, %v8135_v47  ;;  %v17130_v9 = vld [vmem:[#allocation156_spill] sm:$0xff]  ;;  %v17140_v7 = vld [vmem:[#allocation49_spill] sm:$0xff] }
 0x648   : > { %v14532_v15 = vrot.slane %v8528_v62, %v10669_v23  ;;  %v14535_v5 = vrot.slane %v8529_v11, %v10669_v23  ;;  %v8232_v34 = vrot.slane %v8224_v52, %v10669_v23  ;;  %v17121_v11 = vld [vmem:[#allocation265_spill] sm:$0xff]  ;;  %v6648_v19 = vcombine.low %v17130_v9, %v17129_v39  ;;  %v17143_v39 = vld [vmem:[#allocation211_spill] sm:$0xff] }
 0x649   : > { %8696 = vrot.lane.b32.xlu0 %v17110_v22, %s9735_s25  ;;  %8634 = vrot.lane.b32.xlu1 %v17111_v10, %s9733_s0  ;;  %v17122_v22 = vld [vmem:[#allocation264_spill] sm:$0xff]  ;;  %v17144_v9 = vld [vmem:[#allocation95_spill] sm:$0xff] }
 0x64a   : > { %17106 = vst [vmem:[#allocation248_spill] sm:$0xff] %v14532_v15  ;;  %17107 = vst [vmem:[#allocation239_spill] sm:$0xff] %v14535_v5  ;;  %v8276_v62 = vcombine.low %v8232_v34, %v8264_v33  ;;  %v6696_v10 = vcombine.low %v17122_v22, %v17121_v11  ;;  %v17137_v22 = vcombine.high %v13608_v28, %v13590_v48  ;;  %v17142_v48 = vld [vmem:[#allocation214_spill] sm:$0xff]  ;;  %v17172_v5 = vld [vmem:[#allocation275_spill] sm:$0xff] }
 0x64b   : > { %v6800_v27 = vcombine.low %v17173_v16, %v17172_v5 }
 0x64c   : > { %v14636_v52 = vrot.slane %v6696_v10, %v10586_v51  ;;  %v17138_v10 = vcombine.high %v13798_v2, %v13786_v30 }
 0x64d   : > { %8700 = vrot.lane.b32.xlu0 %v8141_v56, %s9735_s25  ;;  %8638 = vrot.lane.b32.xlu1 %v8275_v35, %s9733_s0  ;;  %v17124_v56 = vld [vmem:[#allocation260_spill] sm:$0xff]  ;;  %s9637_s0 = sshll.u32 %s9747_s27, 4  ;;  %s9638_s0 = int_to_ptr.vmem [resolvable:$false] %s9637_s0 }
 0x64e   : > { %v6664_v35 = vcombine.low %v17124_v56, %v17123_v53  ;;  %v14659_v53 = vrot.slane %v6648_v19, %v10586_v51  ;;  %v7752_v19 = vcombine.low %v17144_v9, %v17143_v39  ;;  %v17153_v39 = vld [vmem:[#allocation130_spill] sm:$0xff]  ;;  %p9640_p4 = scmp.lt.s32.totalorder %s15661_s5, %s9638_s0 }
 0x64f   : > { %v17154_v9 = vld [vmem:[#allocation238_spill] sm:$0xff] }
 0x651   : > { %8720 = vrot.lane.b32.xlu0 %v17112_v49, %s9736_s17  ;;  %8658 = vrot.lane.b32.xlu1 %v17113_v59, %s9734_s1  ;;  %v17127_v49 = vcombine.high %v13200_v44, %v13194_v25  ;;  %v17128_v59 = vcombine.high %v13395_v37, %v13380_v17  ;;  %v14644_v25 = vrot.slane %v6680_v6, %v10586_v51  ;;  %v17133_v44 = vld [vmem:[#allocation66_spill] sm:$0xff]  ;;  %v17135_v17 = vld [vmem:[#allocation185_spill] sm:$0xff]  ;;  %v17136_v37 = vld [vmem:[#allocation184_spill] sm:$0xff] }
 0x652   : > { %v7224_v11 = vcombine.low %v17136_v37, %v17135_v17 }
 0x653   : > { %v6744_v56 = vcombine.low %v14644_v25, %v14636_v52  ;;  %v6745_v15 = vcombine.high %v14644_v25, %v14636_v52  ;;  %v14820_v25 = vrot.slane %v6800_v27, %v10586_v51 }
 0x654   : > { %v14676_v2 = vrot.slane %v7224_v11, %v10586_v51  ;;  %v17149_v11 = vld [vmem:[#allocation210_spill] sm:$0xff] }
 0x655   : > { %8724 = vrot.lane.b32.xlu0 %v17114_v26, %s9736_s17  ;;  %8662 = vrot.lane.b32.xlu1 %v17115_v43, %s9734_s1  ;;  %v17131_v26 = vld [vmem:[#allocation187_spill] sm:$0xff]  ;;  %v17132_v43 = vld [vmem:[#allocation186_spill] sm:$0xff] }
 0x659   : > { %8728 = vrot.lane.b32.xlu0 %v17117_v42, %s9736_s17  ;;  %8666 = vrot.lane.b32.xlu1 %v17120_v60, %s9734_s1  ;;  %v7240_v42 = vcombine.low %v17132_v43, %v17131_v26  ;;  %v14641_v60 = vrot.slane %v6664_v35, %v10586_v51  ;;  %v17139_v35 = vld [vmem:[#allocation50_spill] sm:$0xff]  ;;  %v17145_v26 = vld [vmem:[#allocation212_spill] sm:$0xff] }
 0x65a   : > { %v7192_v4 = vcombine.low %v17140_v7, %v17139_v35  ;;  %v17146_v43 = vld [vmem:[#allocation96_spill] sm:$0xff] }
 0x65b   : > { %v14666_v6 = vrot.slane %v7240_v42, %v10586_v51  ;;  %v17147_v42 = vcombine.high %v13955_v13, %v17116_v45  ;;  %v17151_v13 = vld [vmem:[#allocation241_spill] sm:$0xff]  ;;  %v17152_v45 = vld [vmem:[#allocation243_spill] sm:$0xff]  ;;  %v6713_v5 = vcombine.high %v14659_v53, %v14641_v60 }
 0x65c   : > { %v14692_v17 = vrot.slane %v7192_v4, %v10586_v51  ;;  %v8328_v7 = vcombine.low %v17152_v45, %v17151_v13  ;;  %v14707_v4 = vrot.slane %v7752_v19, %v10586_v51  ;;  %v17158_v19 = vld [vmem:[#allocation233_spill] sm:$0xff]  ;;  %v14738_v13 = vpop.permute.xlu0 %8560 }
 0x65d   : > { %8732 = vrot.lane.b32.xlu0 %v8142_v50, %s9736_s17  ;;  %8670 = vrot.lane.b32.xlu1 %v8276_v62, %s9734_s1  ;;  %v17134_v50 = vld [vmem:[#allocation65_spill] sm:$0xff]  ;;  %v7288_v37 = vcombine.low %v14676_v2, %v14666_v6 }
 0x65e   : > { %v7208_v62 = vcombine.low %v17134_v50, %v17133_v44  ;;  %v7768_v44 = vcombine.low %v17146_v43, %v17145_v26  ;;  %v17148_v50 = vcombine.high %v17118_v29, %v17119_v54  ;;  %v8277_v29 = vcombine.high %v8232_v34, %v8264_v33  ;;  %v17155_v26 = vld [vmem:[#allocation242_spill] sm:$0xff]  ;;  %v17156_v43 = vld [vmem:[#allocation240_spill] sm:$0xff]  ;;  %v17159_v45 = vld [vmem:[#allocation269_spill] sm:$0xff] }
 0x660   : > { %v14673_v30 = vrot.slane %v7208_v62, %v10586_v51  ;;  %v6752_v62 = vrot.slane %v6744_v56, %v10669_v23 }
 0x661   : > { %8752 = vrot.lane.b32.xlu0 %v17127_v49, %s9737_s20  ;;  %8690 = vrot.lane.b32.xlu1 %v17128_v59, %s9735_s25  ;;  %v17141_v49 = vld [vmem:[#allocation213_spill] sm:$0xff]  ;;  %v6712_v59 = vcombine.low %v14659_v53, %v14641_v60  ;;  %v17184_v53 = vld [vmem:[#allocation79_spill] sm:$0xff] }
 0x662   : > { %v7784_v28 = vcombine.low %v17142_v48, %v17141_v49  ;;  %v8143_v49 = vcombine.high %v8103_v1, %v8135_v47  ;;  %v7256_v56 = vcombine.low %v14692_v17, %v14673_v30  ;;  %v14710_v48 = vrot.slane %v7768_v44, %v10586_v51 }
 0x663   : > { %v6720_v54 = vrot.slane %v6712_v59, %v10669_v23  ;;  %v7296_v47 = vrot.slane %v7288_v37, %v10669_v23  ;;  %v17157_v59 = vld [vmem:[#allocation237_spill] sm:$0xff] }
 0x664   : > { %v14699_v35 = vrot.slane %v7784_v28, %v10586_v51  ;;  %v8296_v28 = vcombine.low %v17154_v9, %v17153_v39  ;;  %v8280_v44 = vcombine.low %v17158_v19, %v17157_v59 }
 0x665   : > { %8756 = vrot.lane.b32.xlu0 %v17137_v22, %s9737_s20  ;;  %8694 = vrot.lane.b32.xlu1 %v17138_v10, %s9735_s25  ;;  %v17150_v22 = vld [vmem:[#allocation209_spill] sm:$0xff]  ;;  %v6776_v33 = vcombine.low %v6720_v54, %v6752_v62 }
 0x666   : > { %v7736_v10 = vcombine.low %v17150_v22, %v17149_v11  ;;  %v7832_v34 = vcombine.low %v14710_v48, %v14699_v35  ;;  %v7264_v11 = vrot.slane %v7256_v56, %v10669_v23  ;;  %v14733_v37 = vrot.slane %v8296_v28, %v10586_v51 }
 0x667   : > { %v14747_v39 = vrot.slane %v8280_v44, %v10586_v51  ;;  %v8257_v28 = vcombine.high %v14576_v18, %v14570_v3  ;;  %v14769_v18 = vpop.permute.xlu0 %8564 }
 0x668   : > { %v14720_v1 = vrot.slane %v7736_v10, %v10586_v51  ;;  %v7840_v56 = vrot.slane %v7832_v34, %v10669_v23  ;;  %v17163_v34 = vld [vmem:[#allocation193_spill] sm:$0xff]  ;;  %v7321_v52 = vcombine.high %v7264_v11, %v7296_v47 }
 0x669   : > { %8760 = vrot.lane.b32.xlu0 %v17147_v42, %s9737_s20  ;;  %8698 = vrot.lane.b32.xlu1 %v17148_v50, %s9735_s25  ;;  %v8312_v42 = vcombine.low %v17156_v43, %v17155_v26  ;;  %v14727_v50 = vrot.slane %v8328_v7, %v10586_v51  ;;  %v8344_v43 = vcombine.low %v14747_v39, %v14733_v37 }
 0x66a   : > { %v7800_v22 = vcombine.low %v14720_v1, %v14707_v4  ;;  %v14767_v3 = vrot.slane %v8257_v28, %v10669_v23 }
 0x66b   : > { %v14736_v10 = vrot.slane %v8312_v42, %v10586_v51  ;;  %v8225_v42 = vcombine.high %v14589_v63, %v14573_v12  ;;  %v17165_v63 = vld [vmem:[#allocation218_spill] sm:$0xff] }
 0x66c   : > { %v7808_v26 = vrot.slane %v7800_v22, %v10669_v23  ;;  %v14772_v22 = vrot.slane %v8344_v43, %v10669_v23  ;;  %v17168_v43 = vld [vmem:[#allocation39_spill] sm:$0xff] }
 0x66d   : > { %8764 = vrot.lane.b32.xlu0 %v8143_v49, %s9737_s20  ;;  %8702 = vrot.lane.b32.xlu1 %v8277_v29, %s9735_s25  ;;  %v17160_v49 = vld [vmem:[#allocation45_spill] sm:$0xff]  ;;  %v7320_v29 = vcombine.low %v7264_v11, %v7296_v47  ;;  %v8376_v9 = vcombine.low %v14736_v10, %v14727_v50  ;;  %v14775_v12 = vrot.slane %v8225_v42, %v10669_v23  ;;  %v17185_v47 = vld [vmem:[#allocation196_spill] sm:$0xff]  ;;  %s9639_s25 = scalar_lea.vmem %s9638_s0, 2048 }
 0x66e   : > { %v17161_v7 = vcombine.low %v17159_v45, %v17160_v49  ;;  %v7864_v44 = vcombine.low %v7808_v26, %v7840_v56  ;;  %v6832_v61 = vcombine.low %v17169_v32, %v17168_v43  ;;  %v17170_v42 = vld [vmem:[#allocation33_spill] sm:$0xff]  ;;  %v17174_v32 = vcombine.high %v17159_v45, %v17160_v49  ;;  %v17179_v45 = vld [vmem:[#allocation80_spill] sm:$0xff]  ;;  %p9641_p5 = scmp.lt.s32.totalorder %s9639_s25, %s9633_s21 }
 0x66f   : > { %v14764_v19 = vrot.slane %v8376_v9, %v10669_v23  ;;  %v14782_v9 = vpop.permute.xlu0 %8568  ;;  %v17180_v49 = vld [vmem:[#allocation197_spill] sm:$0xff]  ;;  %v7328_v11 = vcombine.low %v17185_v47, %v17184_v53  ;;  %v17190_v53 = vld [vmem:[#allocation227_spill] sm:$0xff] }
 0x670   : > { %v14801_v8 = vrot.slane %v6832_v61, %v10586_v51  ;;  %v17191_v47 = vld [vmem:[#allocation229_spill] sm:$0xff]  ;;  %p9642_p6 = por %p9641_p5, %p9640_p4 }
 0x671   : > { %8784 = vrot.lane.b32.xlu0 %v6776_v33, %s9738_s10  ;;  %8722 = vrot.lane.b32.xlu1 %v17161_v7, %s9736_s17  ;;  %v17162_v33 = vld [vmem:[#allocation191_spill] sm:$0xff]  ;;  %v17166_v7 = vld [vmem:[#allocation221_spill] sm:$0xff]  ;;  %v8408_v28 = vcombine.low %v14772_v22, %v14764_v19 }
 0x672   : > { %v17164_v59 = vcombine.low %v17162_v33, %v17163_v34  ;;  %p9643_p7 = pnand %p9642_p6, %p9636_p2 }
 0x675   : > { %8788 = vrot.lane.b32.xlu0 %v7320_v29, %s9738_s10  ;;  %8726 = vrot.lane.b32.xlu1 %v17164_v59, %s9736_s17  ;;  %v17167_v29 = vcombine.low %v17165_v63, %v17166_v7  ;;  %v8278_v59 = vcombine.low %v14775_v12, %v14767_v3 }
 0x679   : > { %8792 = vrot.lane.b32.xlu0 %v7864_v44, %s9738_s10  ;;  %8730 = vrot.lane.b32.xlu1 %v17167_v29, %s9736_s17  ;;  %v17171_v44 = vld [vmem:[#allocation32_spill] sm:$0xff]  ;;  %v6777_v29 = vcombine.high %v6720_v54, %v6752_v62  ;;  %v17177_v62 = vld [vmem:[#allocation201_spill] sm:$0xff]  ;;  %v17178_v54 = vld [vmem:[#allocation199_spill] sm:$0xff] }
 0x67a   : > { %v6816_v20 = vcombine.low %v17171_v44, %v17170_v42  ;;  %v7376_v42 = vcombine.low %v17178_v54, %v17177_v62  ;;  %v7344_v44 = vcombine.low %v17180_v49, %v17179_v45  ;;  %v17186_v54 = vld [vmem:[#allocation230_spill] sm:$0xff]  ;;  %v17187_v45 = vld [vmem:[#allocation113_spill] sm:$0xff] }
 0x67c   : > { %v14815_v16 = vrot.slane %v6816_v20, %v10586_v51  ;;  %v17183_v20 = vcombine.high %v17162_v33, %v17163_v34  ;;  %v14842_v62 = vrot.slane %v7376_v42, %v10586_v51  ;;  %v14854_v34 = vrot.slane %v7344_v44, %v10586_v51  ;;  %v17188_v42 = vld [vmem:[#allocation228_spill] sm:$0xff] }
 0x67d   : > { %8796 = vrot.lane.b32.xlu0 %v8408_v28, %s9738_s10  ;;  %8734 = vrot.lane.b32.xlu1 %v8278_v59, %s9736_s17  ;;  %v17175_v28 = vld [vmem:[#allocation273_spill] sm:$0xff]  ;;  %v17176_v59 = vld [vmem:[#allocation272_spill] sm:$0xff]  ;;  %v7289_v44 = vcombine.high %v14676_v2, %v14666_v6  ;;  %v8409_v6 = vcombine.high %v14772_v22, %v14764_v19  ;;  %v8279_v2 = vcombine.high %v14775_v12, %v14767_v3 }
 0x67e   : > { %v6784_v43 = vcombine.low %v17176_v59, %v17175_v28  ;;  %v14827_v59 = vrot.slane %v6745_v15, %v10669_v23  ;;  %v6880_v60 = vcombine.low %v14815_v16, %v14801_v8  ;;  %v14845_v15 = vrot.slane %v6713_v5, %v10669_v23 }
 0x67f   : > { %v14794_v57 = vpop.permute.xlu0 %8572  ;;  %v8448_v19 = vcombine.low %v14493_v55, %v14497_v46  ;;  %v7833_v3 = vcombine.high %v14710_v48, %v14699_v35  ;;  %v7801_v48 = vcombine.high %v14720_v1, %v14707_v4  ;;  %v8377_v1 = vcombine.high %v14736_v10, %v14727_v50 }
 0x680   : > { %v14837_v27 = vrot.slane %v6784_v43, %v10586_v51  ;;  %v14862_v5 = vrot.slane %v6880_v60, %v10669_v23 }
 0x681   : > { %8816 = vrot.lane.b32.xlu0 %v6777_v29, %s9739_s14  ;;  %8754 = vrot.lane.b32.xlu1 %v17174_v32, %s9737_s20  ;;  %v17181_v29 = vld [vmem:[#allocation200_spill] sm:$0xff]  ;;  %v17182_v32 = vld [vmem:[#allocation198_spill] sm:$0xff] }
 0x682   : > { %v7360_v28 = vcombine.low %v17182_v32, %v17181_v29  ;;  %v7865_v29 = vcombine.high %v7808_v26, %v7840_v56  ;;  %v6848_v33 = vcombine.low %v14837_v27, %v14820_v25  ;;  %v17189_v32 = vld [vmem:[#allocation226_spill] sm:$0xff]  ;;  %v17192_v56 = vcombine.high %v17165_v63, %v17166_v7 }
 0x683   : > { %v14817_v61 = vpop.permute.xlu0 %8592  ;;  %v6778_v26 = vcombine.low %v14845_v15, %v14827_v59  ;;  %v8464_v63 = vcombine.low %v14505_v58, %v14509_v41  ;;  %v8432_v41 = vcombine.low %v14444_v38, %v14448_v40  ;;  %v8416_v40 = vcombine.low %v14411_v21, %v14415_v24  ;;  %v14939_v24 = vpop.permute.xlu1 %8562 }
 0x684   : > { %v14857_v43 = vrot.slane %v7360_v28, %v10586_v51  ;;  %v14876_v28 = vrot.slane %v7328_v11, %v10586_v51  ;;  %v6856_v11 = vrot.slane %v6848_v33, %v10669_v23  ;;  %v14937_v21 = vrot.slane %v8448_v19, %v10586_v51 }
 0x685   : > { %8820 = vrot.lane.b32.xlu0 %v7321_v52, %s9739_s14  ;;  %8758 = vrot.lane.b32.xlu1 %v17183_v20, %s9737_s20  ;;  %v7920_v52 = vcombine.low %v17187_v45, %v17186_v54  ;;  %v7888_v20 = vcombine.low %v17189_v32, %v17188_v42  ;;  %v7904_v54 = vcombine.low %v17191_v47, %v17190_v53  ;;  %v17193_v45 = vld [vmem:[#allocation112_spill] sm:$0xff] }
 0x686   : > { %v7424_v60 = vcombine.low %v14857_v43, %v14842_v62  ;;  %v17194_v42 = vld [vmem:[#allocation224_spill] sm:$0xff]  ;;  %v7257_v53 = vcombine.high %v14692_v17, %v14673_v30  ;;  %v7303_v30 = vrot.slane %v7289_v44, %v10669_v23  ;;  %v6912_v22 = vcombine.low %v6856_v11, %v14862_v5 }
 0x687   : > { %v14849_v49 = vpop.permute.xlu0 %8596  ;;  %v14883_v32 = vrot.slane %v7920_v52, %v10586_v51  ;;  %v7392_v52 = vcombine.low %v14876_v28, %v14854_v34  ;;  %v14899_v47 = vrot.slane %v7888_v20, %v10586_v51  ;;  %v14902_v58 = vrot.slane %v7904_v54, %v10586_v51  ;;  %v14964_v10 = vpop.permute.xlu1 %8566 }
 0x688   : > { %v7432_v17 = vrot.slane %v7424_v60, %v10669_v23  ;;  %v14923_v55 = vrot.slane %v8464_v63, %v10586_v51  ;;  %v7271_v33 = vrot.slane %v7257_v53, %v10669_v23  ;;  %v14934_v54 = vrot.slane %v8432_v41, %v10586_v51 }
 0x689   : > { %8824 = vrot.lane.b32.xlu0 %v7865_v29, %s9739_s14  ;;  %8762 = vrot.lane.b32.xlu1 %v17192_v56, %s9737_s20  ;;  %v7872_v29 = vcombine.low %v17194_v42, %v17193_v45  ;;  %v7968_v38 = vcombine.low %v14902_v58, %v14883_v32  ;;  %v7400_v35 = vrot.slane %v7392_v52, %v10669_v23 }
 0x68a   : > { %v7847_v56 = vrot.slane %v7833_v3, %v10669_v23  ;;  %v7322_v44 = vcombine.low %v7271_v33, %v7303_v30  ;;  %v14948_v45 = vrot.slane %v8416_v40, %v10586_v51  ;;  %v8512_v42 = vcombine.low %v14937_v21, %v14923_v55 }
 0x68b   : > { %v14887_v7 = vpop.permute.xlu0 %8600  ;;  %v14916_v12 = vrot.slane %v7872_v29, %v10586_v51  ;;  %v7456_v60 = vcombine.low %v7400_v35, %v7432_v17  ;;  %v7976_v4 = vrot.slane %v7968_v38, %v10669_v23  ;;  %v8391_v51 = vrot.slane %v8377_v1, %v10669_v23 }
 0x68c   : > { %v8520_v50 = vrot.slane %v8512_v42, %v10669_v23  ;;  %v7323_v42 = vcombine.high %v7271_v33, %v7303_v30 }
 0x68d   : > { %8828 = vrot.lane.b32.xlu0 %v8409_v6, %s9739_s14  ;;  %8766 = vrot.lane.b32.xlu1 %v8279_v2, %s9737_s20  ;;  %v7936_v20 = vcombine.low %v14916_v12, %v14899_v47  ;;  %v8345_v6 = vcombine.high %v14747_v39, %v14733_v37  ;;  %v8480_v2 = vcombine.low %v14948_v45, %v14934_v54  ;;  %v14972_v39 = vpop.permute.xlu1 %8570 }
 0x68f   : > { %v14925_v46 = vpop.permute.xlu0 %8604  ;;  %v7944_v63 = vrot.slane %v7936_v20, %v10669_v23  ;;  %v8359_v19 = vrot.slane %v8345_v6, %v10669_v23  ;;  %v8488_v37 = vrot.slane %v8480_v2, %v10669_v23  ;;  %v6779_v20 = vcombine.high %v14845_v15, %v14827_v59 }
 0x690   : > { %v7457_v6 = vcombine.high %v7400_v35, %v7432_v17  ;;  %v6881_v2 = vcombine.high %v14815_v16, %v14801_v8  ;;  %v7425_v17 = vcombine.high %v14857_v43, %v14842_v62 }
 0x691   : > { %8848 = vrot.lane.b32.xlu0 %v6778_v26, %s9740_s26  ;;  %8786 = vrot.lane.b32.xlu1 %v6912_v22, %s9738_s10  ;;  %v7815_v26 = vrot.slane %v7801_v48, %v10669_v23  ;;  %v8000_v41 = vcombine.low %v7944_v63, %v7976_v4  ;;  %v8410_v22 = vcombine.low %v8359_v19, %v8391_v51 }
 0x692   : > { %v8544_v38 = vcombine.low %v8488_v37, %v8520_v50  ;;  %v14998_v30 = vrot.slane %v6881_v2, %v10669_v23  ;;  %v8411_v16 = vcombine.high %v8359_v19, %v8391_v51  ;;  %v8545_v35 = vcombine.high %v8488_v37, %v8520_v50  ;;  %v17199_v19 = vld [vmem:[#allocation259_spill] sm:$0xff] }
 0x693   : > { %v14952_v29 = vpop.permute.xlu0 %8624  ;;  %v7866_v52 = vcombine.low %v7815_v26, %v7847_v56  ;;  %v7867_v15 = vcombine.high %v7815_v26, %v7847_v56  ;;  %v7439_v43 = vrot.slane %v7425_v17, %v10669_v23 }
 0x695   : > { %8852 = vrot.lane.b32.xlu0 %v7322_v44, %s9740_s26  ;;  %8790 = vrot.lane.b32.xlu1 %v7456_v60, %s9738_s10  ;;  %v6913_v44 = vcombine.high %v6856_v11, %v14862_v5  ;;  %v8001_v5 = vcombine.high %v7944_v63, %v7976_v4  ;;  %v6849_v11 = vcombine.high %v14837_v27, %v14820_v25  ;;  %v17195_v27 = vld [vmem:[#allocation234_spill] sm:$0xff]  ;;  %v17196_v4 = vld [vmem:[#allocation225_spill] sm:$0xff] }
 0x696   : > { %v7393_v25 = vcombine.high %v14876_v28, %v14854_v34  ;;  %v17197_v26 = vcombine.low %v17195_v27, %v17196_v4  ;;  %v7969_v34 = vcombine.high %v14902_v58, %v14883_v32  ;;  %v7937_v32 = vcombine.high %v14916_v12, %v14899_v47 }
 0x697   : > { %v14966_v53 = vpop.permute.xlu0 %8628  ;;  %v6863_v56 = vrot.slane %v6849_v11, %v10669_v23 }
 0x698   : > { %v9038_v63 = vsel %vm4705_vm1, %v17197_v26, %v14794_v57 }
 0x699   : > { %8856 = vrot.lane.b32.xlu0 %v7866_v52, %s9740_s26  ;;  %8794 = vrot.lane.b32.xlu1 %v8000_v41, %s9738_s10  ;;  %v9046_v62 = vsel %vm16080_vm2, %v9038_v63, %v14925_v46  ;;  %v6914_v57 = vcombine.low %v6863_v56, %v14998_v30  ;;  %v17198_v41 = vld [vmem:[#allocation258_spill] sm:$0xff] }
 0x69a   : > { %v17200_v37 = vcombine.low %v17198_v41, %v17199_v19  ;;  %v17211_v63 = vld [vmem:[#allocation206_spill] sm:$0xff] }
 0x69b   : > { %v14974_v3 = vpop.permute.xlu0 %8632 }
 0x69d   : > { %8860 = vrot.lane.b32.xlu0 %v8410_v22, %s9740_s26  ;;  %8798 = vrot.lane.b32.xlu1 %v8544_v38, %s9738_s10  ;;  %v9032_v22 = vsel %vm4705_vm1, %v17200_v37, %v14738_v13  ;;  %v7407_v38 = vrot.slane %v7393_v25, %v10669_v23 }
 0x69e   : > { %v9040_v58 = vsel %vm16080_vm2, %v9032_v22, %v14817_v61 }
 0x69f   : > { %v14978_v40 = vpop.permute.xlu1 %8574  ;;  %v8637_v48 = vpop.permute.xlu0 %8636  ;;  %v9048_v13 = vsel %vm4723_vm3, %v9040_v58, %v14952_v29  ;;  %v7458_v2 = vcombine.low %v7407_v38, %v7439_v43  ;;  %v7951_v29 = vrot.slane %v7937_v32, %v10669_v23 }
 0x6a0   : > { %v9054_v28 = vsel %vm4723_vm3, %v9046_v62, %v8637_v48  ;;  %v17201_v48 = vld [vmem:[#allocation266_spill] sm:$0xff] }
 0x6a1   : > { %8880 = vrot.lane.b32.xlu0 %v6779_v20, %s9741_s13  ;;  %8818 = vrot.lane.b32.xlu1 %v6913_v44, %s9739_s14  ;;  %v17202_v20 = vld [vmem:[#allocation270_spill] sm:$0xff] }
 0x6a2   : > { %v17203_v44 = vcombine.low %v17201_v48, %v17202_v20 }
 0x6a3   : > { %v14985_v60 = vpop.permute.xlu1 %8594  ;;  %v8657_v1 = vpop.permute.xlu0 %8656 }
 0x6a4   : > { %v9056_v47 = vsel %vm4732_vm4, %v9048_v13, %v8657_v1  ;;  %v17208_v1 = vld [vmem:[#allocation189_spill] sm:$0xff]  ;;  %v6915_v13 = vcombine.high %v6863_v56, %v14998_v30 }
 0x6a5   : > { %8884 = vrot.lane.b32.xlu0 %v7323_v42, %s9741_s13  ;;  %8822 = vrot.lane.b32.xlu1 %v7457_v6, %s9739_s14  ;;  %v7983_v42 = vrot.slane %v7969_v34, %v10669_v23  ;;  %v8513_v6 = vcombine.high %v14937_v21, %v14923_v55  ;;  %v17207_v21 = vld [vmem:[#allocation190_spill] sm:$0xff] }
 0x6a6   : > { %v17209_v25 = vcombine.low %v17207_v21, %v17208_v1  ;;  %v17218_v30 = vcombine.high %v17207_v21, %v17208_v1  ;;  %v17222_v1 = vld [vmem:[#allocation267_spill] sm:$0xff] }
 0x6a7   : > { %v14991_v52 = vpop.permute.xlu1 %8598  ;;  %v8661_v59 = vpop.permute.xlu0 %8660  ;;  %v8527_v27 = vrot.slane %v8513_v6, %v10669_v23 }
 0x6a9   : > { %8888 = vrot.lane.b32.xlu0 %v7867_v15, %s9741_s13  ;;  %8826 = vrot.lane.b32.xlu1 %v8001_v5, %s9739_s14  ;;  %v17204_v15 = vld [vmem:[#allocation37_spill] sm:$0xff]  ;;  %v17205_v5 = vld [vmem:[#allocation40_spill] sm:$0xff] }
 0x6aa   : > { %v17206_v11 = vcombine.low %v17204_v15, %v17205_v5  ;;  %v8003_v15 = vcombine.high %v7951_v29, %v7983_v42 }
 0x6ab   : > { %v15002_v33 = vpop.permute.xlu1 %8602  ;;  %v8665_v8 = vpop.permute.xlu0 %8664 }
 0x6ac   : > { %v9034_v17 = vsel %vm4705_vm1, %v17206_v11, %v14769_v18 }
 0x6ad   : > { %8892 = vrot.lane.b32.xlu0 %v8411_v16, %s9741_s13  ;;  %8830 = vrot.lane.b32.xlu1 %v8545_v35, %s9739_s14  ;;  %v8481_v35 = vcombine.high %v14948_v45, %v14934_v54  ;;  %v9042_v55 = vsel %vm16080_vm2, %v9034_v17, %v14849_v49  ;;  %v8002_v45 = vcombine.low %v7951_v29, %v7983_v42  ;;  %v17210_v49 = vld [vmem:[#allocation202_spill] sm:$0xff] }
 0x6ae   : > { %v9050_v18 = vsel %vm4723_vm3, %v9042_v55, %v14966_v53  ;;  %v17212_v62 = vcombine.low %v17210_v49, %v17211_v63  ;;  %v17220_v17 = vcombine.low %v14380_v14, %v14383_v36 }
 0x6af   : > { %v15020_v51 = vpop.permute.xlu1 %8606  ;;  %v8669_v50 = vpop.permute.xlu0 %8668  ;;  %v9058_v4 = vsel %vm4732_vm4, %v9050_v18, %v8661_v59  ;;  %v17214_v59 = vld [vmem:[#allocation222_spill] sm:$0xff] }
 0x6b0   : > { %v9062_v46 = vsel %vm4732_vm4, %v9054_v28, %v8669_v50  ;;  %v9036_v34 = vsel %vm4705_vm1, %v17212_v62, %v14782_v9  ;;  %v8495_v50 = vrot.slane %v8481_v35, %v10669_v23  ;;  %v9039_v42 = vsel %vm4705_vm1, %v17220_v17, %v14978_v40  ;;  %v17250_v17 = vld [vmem:[#allocation248_spill] sm:$0xff] }
 0x6b1   : > { %8912 = vrot.lane.b32.xlu0 %v17203_v44, %s9742_s19  ;;  %8850 = vrot.lane.b32.xlu1 %v6914_v57, %s9740_s26  ;;  %v9044_v53 = vsel %vm16080_vm2, %v9036_v34, %v14887_v7  ;;  %v17213_v57 = vld [vmem:[#allocation223_spill] sm:$0xff]  ;;  %v17216_v7 = vcombine.low %v14404_v31, %v14390_v0  ;;  %v9047_v29 = vsel %vm16080_vm2, %v9039_v42, %v15020_v51  ;;  %v17226_v51 = vld [vmem:[#allocation57_spill] sm:$0xff]  ;;  %v17232_v34 = vld [vmem:[#allocation192_spill] sm:$0xff] }
 0x6b2   : > { %v17215_v41 = vcombine.low %v17213_v57, %v17214_v59  ;;  %v9052_v19 = vsel %vm4723_vm3, %v9044_v53, %v14974_v3  ;;  %v8546_v32 = vcombine.low %v8495_v50, %v8527_v27 }
 0x6b3   : > { %v15045_v12 = vpop.permute.xlu1 %8626  ;;  %v8689_v61 = vpop.permute.xlu0 %8688  ;;  %v9060_v37 = vsel %vm4732_vm4, %v9052_v19, %v8665_v8  ;;  %v17217_v8 = vcombine.high %v17201_v48, %v17202_v20  ;;  %v8547_v20 = vcombine.high %v8495_v50, %v8527_v27 }
 0x6b4   : > { %v9064_v16 = vsel %vm4741_vm5, %v9056_v47, %v8689_v61  ;;  %v7459_v61 = vcombine.high %v7407_v38, %v7439_v43  ;;  %v17219_v43 = vcombine.high %v17213_v57, %v17214_v59 }
 0x6b5   : > { %8916 = vrot.lane.b32.xlu0 %v17209_v25, %s9742_s19  ;;  %8854 = vrot.lane.b32.xlu1 %v7458_v2, %s9740_s26  ;;  %v17223_v25 = vld [vmem:[#allocation43_spill] sm:$0xff] }
 0x6b6   : > { %v17224_v14 = vcombine.low %v17222_v1, %v17223_v25 }
 0x6b7   : > { %v15067_v26 = vpop.permute.xlu1 %8630  ;;  %v8693_v54 = vpop.permute.xlu0 %8692 }
 0x6b8   : > { %v9066_v28 = vsel %vm4741_vm5, %v9058_v4, %v8693_v54  ;;  %v9033_v36 = vsel %vm4705_vm1, %v17224_v14, %v14939_v24  ;;  %v17228_v4 = vld [vmem:[#allocation268_spill] sm:$0xff]  ;;  %v17229_v54 = vld [vmem:[#allocation271_spill] sm:$0xff] }
 0x6b9   : > { %8920 = vrot.lane.b32.xlu0 %v17215_v41, %s9742_s19  ;;  %8858 = vrot.lane.b32.xlu1 %v8002_v45, %s9740_s26  ;;  %v17230_v45 = vcombine.low %v17228_v4, %v17229_v54  ;;  %v17235_v41 = vld [vmem:[#allocation204_spill] sm:$0xff]  ;;  %v17256_v1 = vcombine.high %v17228_v4, %v17229_v54 }
 0x6bb   : > { %v15086_v9 = vpop.permute.xlu1 %8634  ;;  %v8697_v22 = vpop.permute.xlu0 %8696 }
 0x6bc   : > { %v9068_v23 = vsel %vm4741_vm5, %v9060_v37, %v8697_v22  ;;  %v17237_v37 = vld [vmem:[#allocation195_spill] sm:$0xff]  ;;  %v17238_v22 = vld [vmem:[#allocation194_spill] sm:$0xff] }
 0x6bd   : > { %8924 = vrot.lane.b32.xlu0 %v17216_v7, %s9742_s19  ;;  %8862 = vrot.lane.b32.xlu1 %v8546_v32, %s9740_s26  ;;  %v17239_v32 = vcombine.low %v17237_v37, %v17238_v22 }
 0x6bf   : > { %v8639_v58 = vpop.permute.xlu1 %8638  ;;  %v8701_v44 = vpop.permute.xlu0 %8700 }
 0x6c0   : > { %v9070_v3 = vsel %vm4741_vm5, %v9062_v46, %v8701_v44  ;;  %v9055_v35 = vsel %vm4723_vm3, %v9047_v29, %v8639_v58  ;;  %v17240_v44 = vld [vmem:[#allocation215_spill] sm:$0xff] }
 0x6c1   : > { %8882 = vrot.lane.b32.xlu1 %v6915_v13, %s9741_s13  ;;  %8944 = vrot.lane.b32.xlu0 %v17217_v8, %s9743_s11  ;;  %v17253_v29 = vld [vmem:[#allocation131_spill] sm:$0xff] }
 0x6c3   : > { %v8659_v6 = vpop.permute.xlu1 %8658  ;;  %v8721_v47 = vpop.permute.xlu0 %8720 }
 0x6c4   : > { %v9072_v2 = vsel %vm4750_vm6, %v9064_v16, %v8721_v47  ;;  %v17221_v16 = vcombine.high %v14404_v31, %v14390_v0  ;;  %v9041_v0 = vsel %vm16080_vm2, %v9033_v36, %v14985_v60  ;;  %v17225_v31 = vld [vmem:[#allocation36_spill] sm:$0xff] }
 0x6c5   : > { %8886 = vrot.lane.b32.xlu1 %v7459_v61, %s9741_s13  ;;  %8948 = vrot.lane.b32.xlu0 %v17218_v30, %s9743_s11  ;;  %v17227_v27 = vcombine.low %v17225_v31, %v17226_v51  ;;  %v9049_v24 = vsel %vm4723_vm3, %v9041_v0, %v15045_v12  ;;  %v17231_v60 = vld [vmem:[#allocation188_spill] sm:$0xff]  ;;  %v17234_v12 = vld [vmem:[#allocation207_spill] sm:$0xff] }
 0x6c6   : > { %v9057_v49 = vsel %vm4732_vm4, %v9049_v24, %v8659_v6  ;;  %v17236_v19 = vcombine.low %v17234_v12, %v17235_v41  ;;  %v17243_v61 = vld [vmem:[#allocation232_spill] sm:$0xff] }
 0x6c7   : > { %v8663_v56 = vpop.permute.xlu1 %8662  ;;  %v8725_v46 = vpop.permute.xlu0 %8724  ;;  %v17246_v30 = vld [vmem:[#allocation276_spill] sm:$0xff] }
 0x6c8   : > { %v9074_v5 = vsel %vm4750_vm6, %v9066_v28, %v8725_v46  ;;  %v17233_v28 = vcombine.low %v17231_v60, %v17232_v34 }
 0x6c9   : > { %8890 = vrot.lane.b32.xlu1 %v8003_v15, %s9741_s13  ;;  %8952 = vrot.lane.b32.xlu0 %v17219_v43, %s9743_s11 }
 0x6ca   : > { %v9035_v50 = vsel %vm4705_vm1, %v17233_v28, %v14964_v10 }
 0x6cb   : > { %v8667_v38 = vpop.permute.xlu1 %8666  ;;  %v8729_v48 = vpop.permute.xlu0 %8728  ;;  %v9043_v59 = vsel %vm16080_vm2, %v9035_v50, %v14991_v52  ;;  %v17241_v52 = vld [vmem:[#allocation220_spill] sm:$0xff] }
 0x6cc   : > { %v9076_v11 = vsel %vm4750_vm6, %v9068_v23, %v8729_v48  ;;  %v9051_v10 = vsel %vm4723_vm3, %v9043_v59, %v15067_v26  ;;  %v17242_v13 = vcombine.low %v17240_v44, %v17241_v52  ;;  %v17244_v26 = vld [vmem:[#allocation235_spill] sm:$0xff]  ;;  %v17263_v59 = vld [vmem:[#allocation41_spill] sm:$0xff] }
 0x6cd   : > { %8894 = vrot.lane.b32.xlu1 %v8547_v20, %s9741_s13  ;;  %8956 = vrot.lane.b32.xlu0 %v17221_v16, %s9743_s11  ;;  %v9059_v23 = vsel %vm4732_vm4, %v9051_v10, %v8663_v56  ;;  %v17247_v56 = vld [vmem:[#allocation219_spill] sm:$0xff]  ;;  %v17249_v20 = vld [vmem:[#allocation249_spill] sm:$0xff]  ;;  %v17252_v16 = vld [vmem:[#allocation244_spill] sm:$0xff]  ;;  %v17259_v54 = vcombine.high %v17243_v61, %v17244_v26 }
 0x6ce   : > { %v17248_v46 = vcombine.low %v17246_v30, %v17247_v56  ;;  %v17251_v42 = vcombine.low %v17249_v20, %v17250_v17  ;;  %v17261_v60 = vcombine.high %v17249_v20, %v17250_v17  ;;  %v17262_v34 = vcombine.high %v17252_v16, %v17253_v29  ;;  %v17266_v10 = vld [vmem:[#allocation205_spill] sm:$0xff] }
 0x6cf   : > { %v8671_v55 = vpop.permute.xlu1 %8670  ;;  %v8733_v21 = vpop.permute.xlu0 %8732 }
 0x6d0   : > { %v9063_v40 = vsel %vm4732_vm4, %v9055_v35, %v8671_v55  ;;  %v9078_v18 = vsel %vm4750_vm6, %v9070_v3, %v8733_v21  ;;  %v9037_v3 = vsel %vm4705_vm1, %v17242_v13, %v14972_v39  ;;  %v17254_v35 = vcombine.low %v17252_v16, %v17253_v29 }
 0x6d1   : > { %8914 = vrot.lane.b32.xlu1 %v17227_v27, %s9742_s19  ;;  %8976 = vrot.lane.b32.xlu0 %v17230_v45, %s9744_s6  ;;  %v9045_v47 = vsel %vm16080_vm2, %v9037_v3, %v15002_v33  ;;  %v17260_v45 = vcombine.high %v17246_v30, %v17247_v56  ;;  %v17269_v3 = vld [vmem:[#allocation236_spill] sm:$0xff]  ;;  %v17272_v30 = vld [vmem:[#allocation245_spill] sm:$0xff]  ;;  %v17273_v56 = vld [vmem:[#allocation239_spill] sm:$0xff] }
 0x6d2   : > { %v9053_v39 = vsel %vm4723_vm3, %v9045_v47, %v15086_v9 }
 0x6d3   : > { %v8691_v63 = vpop.permute.xlu1 %8690  ;;  %v8753_v62 = vpop.permute.xlu0 %8752  ;;  %v9061_v15 = vsel %vm4732_vm4, %v9053_v39, %v8667_v38 }
 0x6d4   : > { %v9065_v53 = vsel %vm4741_vm5, %v9057_v49, %v8691_v63  ;;  %v9080_v57 = vsel %vm4759_vm7, %v9072_v2, %v8753_v62  ;;  %v17245_v2 = vcombine.low %v17243_v61, %v17244_v26 }
 0x6d5   : > { %8918 = vrot.lane.b32.xlu1 %v17236_v19, %s9742_s19  ;;  %8980 = vrot.lane.b32.xlu0 %v17239_v32, %s9744_s6 }
 0x6d7   : > { %v8695_v7 = vpop.permute.xlu1 %8694  ;;  %v8757_v58 = vpop.permute.xlu0 %8756 }
 0x6d8   : > { %v9067_v8 = vsel %vm4741_vm5, %v9059_v23, %v8695_v7  ;;  %v9082_v6 = vsel %vm4759_vm7, %v9074_v5, %v8757_v58  ;;  %v17267_v23 = vld [vmem:[#allocation208_spill] sm:$0xff] }
 0x6d9   : > { %8922 = vrot.lane.b32.xlu1 %v17245_v2, %s9742_s19  ;;  %8984 = vrot.lane.b32.xlu0 %v17248_v46, %s9744_s6  ;;  %v17268_v7 = vcombine.low %v17266_v10, %v17267_v23  ;;  %v17274_v46 = vcombine.low %v17272_v30, %v17273_v56  ;;  %v17276_v16 = vcombine.high %v17266_v10, %v17267_v23 }
 0x6db   : > { %v8699_v43 = vpop.permute.xlu1 %8698  ;;  %v8761_v5 = vpop.permute.xlu0 %8760 }
 0x6dc   : > { %v9069_v48 = vsel %vm4741_vm5, %v9061_v15, %v8699_v43  ;;  %v9084_v33 = vsel %vm4759_vm7, %v9076_v11, %v8761_v5  ;;  %v17255_v11 = vcombine.high %v17225_v31, %v17226_v51 }
 0x6dd   : > { %8926 = vrot.lane.b32.xlu1 %v17251_v42, %s9742_s19  ;;  %8988 = vrot.lane.b32.xlu0 %v17254_v35, %s9744_s6 }
 0x6df   : > { %v8703_v55 = vpop.permute.xlu1 %8702  ;;  %v8765_v9 = vpop.permute.xlu0 %8764 }
 0x6e0   : > { %v9071_v38 = vsel %vm4741_vm5, %v9063_v40, %v8703_v55  ;;  %v9086_v21 = vsel %vm4759_vm7, %v9078_v18, %v8765_v9  ;;  %v17257_v40 = vcombine.high %v17234_v12, %v17235_v41  ;;  %v17258_v18 = vcombine.high %v17237_v37, %v17238_v22  ;;  %v17264_v12 = vld [vmem:[#allocation58_spill] sm:$0xff] }
 0x6e1   : > { %8946 = vrot.lane.b32.xlu1 %v17255_v11, %s9743_s11  ;;  %9008 = vrot.lane.b32.xlu0 %v17256_v1, %s9745_s7  ;;  %v17265_v41 = vcombine.low %v17263_v59, %v17264_v12 }
 0x6e3   : > { %v8723_v25 = vpop.permute.xlu1 %8722  ;;  %v8785_v14 = vpop.permute.xlu0 %8784 }
 0x6e4   : > { %v9073_v36 = vsel %vm4750_vm6, %v9065_v53, %v8723_v25  ;;  %v9088_v0 = vsel %vm4768_vm8, %v9080_v57, %v8785_v14  ;;  %v17278_v14 = vcombine.high %v17272_v30, %v17273_v56 }
 0x6e5   : > { %8950 = vrot.lane.b32.xlu1 %v17257_v40, %s9743_s11  ;;  %9012 = vrot.lane.b32.xlu0 %v17258_v18, %s9745_s7 }
 0x6e7   : > { %v8727_v31 = vpop.permute.xlu1 %8726  ;;  %v8789_v51 = vpop.permute.xlu0 %8788 }
 0x6e8   : > { %v9075_v27 = vsel %vm4750_vm6, %v9067_v8, %v8727_v31  ;;  %v9090_v4 = vsel %vm4768_vm8, %v9082_v6, %v8789_v51  ;;  %v17270_v8 = vld [vmem:[#allocation231_spill] sm:$0xff] }
 0x6e9   : > { %8954 = vrot.lane.b32.xlu1 %v17259_v54, %s9743_s11  ;;  %9016 = vrot.lane.b32.xlu0 %v17260_v45, %s9745_s7  ;;  %v17271_v6 = vcombine.low %v17269_v3, %v17270_v8 }
 0x6eb   : > { %v8731_v24 = vpop.permute.xlu1 %8730  ;;  %v8793_v49 = vpop.permute.xlu0 %8792 }
 0x6ec   : > { %v9077_v63 = vsel %vm4750_vm6, %v9069_v48, %v8731_v24  ;;  %v9092_v62 = vsel %vm4768_vm8, %v9084_v33, %v8793_v49  ;;  %v17275_v48 = vcombine.high %v17263_v59, %v17264_v12 }
 0x6ed   : > { %8958 = vrot.lane.b32.xlu1 %v17261_v60, %s9743_s11  ;;  %9020 = vrot.lane.b32.xlu0 %v17262_v34, %s9745_s7 }
 0x6ef   : > { %v8735_v28 = vpop.permute.xlu1 %8734  ;;  %v8797_v50 = vpop.permute.xlu0 %8796 }
 0x6f0   : > { %v9079_v53 = vsel %vm4750_vm6, %v9071_v38, %v8735_v28  ;;  %v9094_v57 = vsel %vm4768_vm8, %v9086_v21, %v8797_v50  ;;  %v17277_v38 = vcombine.high %v17269_v3, %v17270_v8 }
 0x6f1   : > { %8978 = vrot.lane.b32.xlu1 %v17265_v41, %s9744_s6 }
 0x6f3   : > { %v8755_v19 = vpop.permute.xlu1 %8754  ;;  %v8817_v37 = vpop.permute.xlu0 %8816 }
 0x6f4   : > { %v9081_v22 = vsel %vm4759_vm7, %v9073_v36, %v8755_v19  ;;  %v9096_v32 = vsel %vm4777_vm9, %v9088_v0, %v8817_v37 }
 0x6f5   : > { %8982 = vrot.lane.b32.xlu1 %v17268_v7, %s9744_s6 }
 0x6f7   : > { %v8759_v58 = vpop.permute.xlu1 %8758  ;;  %v8821_v44 = vpop.permute.xlu0 %8820 }
 0x6f8   : > { %v9083_v52 = vsel %vm4759_vm7, %v9075_v27, %v8759_v58  ;;  %v9098_v13 = vsel %vm4777_vm9, %v9090_v4, %v8821_v44 }
 0x6f9   : > { %8986 = vrot.lane.b32.xlu1 %v17271_v6, %s9744_s6 }
 0x6fb   : > { %v8763_v47 = vpop.permute.xlu1 %8762  ;;  %v8825_v61 = vpop.permute.xlu0 %8824 }
 0x6fc   : > { %v9085_v26 = vsel %vm4759_vm7, %v9077_v63, %v8763_v47  ;;  %v9100_v2 = vsel %vm4777_vm9, %v9092_v62, %v8825_v61 }
 0x6fd   : > { %8990 = vrot.lane.b32.xlu1 %v17274_v46, %s9744_s6 }
 0x6ff   : > { %v8767_v39 = vpop.permute.xlu1 %8766  ;;  %v8829_v15 = vpop.permute.xlu0 %8828 }
 0x700   : > { %v9087_v43 = vsel %vm4759_vm7, %v9079_v53, %v8767_v39  ;;  %v9102_v5 = vsel %vm4777_vm9, %v9094_v57, %v8829_v15 }
 0x701   : > { %9010 = vrot.lane.b32.xlu1 %v17275_v48, %s9745_s7 }
 0x703   : > { %v8787_v33 = vpop.permute.xlu1 %8786  ;;  %v8849_v20 = vpop.permute.xlu0 %8848 }
 0x704   : > { %v9089_v17 = vsel %vm4768_vm8, %v9081_v22, %v8787_v33  ;;  %v9104_v42 = vsel %vm4786_vm10, %v9096_v32, %v8849_v20 }
 0x705   : > { %9014 = vrot.lane.b32.xlu1 %v17276_v16, %s9745_s7 }
 0x707   : > { %v8791_v29 = vpop.permute.xlu1 %8790  ;;  %v8853_v35 = vpop.permute.xlu0 %8852 }
 0x708   : > { %v9091_v55 = vsel %vm4768_vm8, %v9083_v52, %v8791_v29  ;;  %v15275_v9 = vsel %vm4786_vm10, %v9098_v13, %v8853_v35 }
 0x709   : > { %9018 = vrot.lane.b32.xlu1 %v17277_v38, %s9745_s7 }
 0x70b   : > { %v8795_v21 = vpop.permute.xlu1 %8794  ;;  %v8857_v11 = vpop.permute.xlu0 %8856 }
 0x70c   : > { %v9093_v1 = vsel %vm4768_vm8, %v9085_v26, %v8795_v21  ;;  %v15283_v25 = vsel %vm4786_vm10, %v9100_v2, %v8857_v11 }
 0x70d   : > { %9022 = vrot.lane.b32.xlu1 %v17278_v14, %s9745_s7 }
 0x70f   : > { %v8799_v36 = vpop.permute.xlu1 %8798  ;;  %v8861_v0 = vpop.permute.xlu0 %8860 }
 0x710   : > { %v9095_v40 = vsel %vm4768_vm8, %v9087_v43, %v8799_v36  ;;  %v15291_v18 = vsel %vm4786_vm10, %v9102_v5, %v8861_v0 }
 0x713   : > { %v8819_v31 = vpop.permute.xlu1 %8818  ;;  %v8881_v51 = vpop.permute.xlu0 %8880 }
 0x714   : > { %v9097_v27 = vsel %vm4777_vm9, %v9089_v17, %v8819_v31  ;;  %v9112_v39 = vsel %vm4795_vm11, %v9104_v42, %v8881_v51 }
 0x717   : > { %v8823_v4 = vpop.permute.xlu1 %8822  ;;  %v8885_v54 = vpop.permute.xlu0 %8884 }
 0x718   : > { %v9099_v45 = vsel %vm4777_vm9, %v9091_v55, %v8823_v4  ;;  %v9114_v20 = vsel %vm4795_vm11, %v15275_v9, %v8885_v54 }
 0x71b   : > { %v8827_v24 = vpop.permute.xlu1 %8826  ;;  %v8889_v49 = vpop.permute.xlu0 %8888 }
 0x71c   : > { %v9101_v63 = vsel %vm4777_vm9, %v9093_v1, %v8827_v24  ;;  %v9116_v38 = vsel %vm4795_vm11, %v15283_v25, %v8889_v49 }
 0x71f   : > { %v8831_v62 = vpop.permute.xlu1 %8830  ;;  %v8893_v60 = vpop.permute.xlu0 %8892 }
 0x720   : > { %v9103_v34 = vsel %vm4777_vm9, %v9095_v40, %v8831_v62  ;;  %v9118_v0 = vsel %vm4795_vm11, %v15291_v18, %v8893_v60 }
 0x723   : > { %v8851_v28 = vpop.permute.xlu1 %8850  ;;  %v8913_v50 = vpop.permute.xlu0 %8912 }
 0x724   : > { %v15298_v53 = vsel %vm4786_vm10, %v9097_v27, %v8851_v28  ;;  %v9120_v15 = vsel %vm4804_vm12, %v9112_v39, %v8913_v50 }
 0x727   : > { %v8855_v57 = vpop.permute.xlu1 %8854  ;;  %v8917_v59 = vpop.permute.xlu0 %8916 }
 0x728   : > { %v15301_v12 = vsel %vm4786_vm10, %v9099_v45, %v8855_v57  ;;  %v9122_v16 = vsel %vm4804_vm12, %v9114_v20, %v8917_v59 }
 0x72b   : > { %v8859_v41 = vpop.permute.xlu1 %8858  ;;  %v8921_v19 = vpop.permute.xlu0 %8920 }
 0x72c   : > { %v15304_v37 = vsel %vm4786_vm10, %v9101_v63, %v8859_v41  ;;  %v9124_v9 = vsel %vm4804_vm12, %v9116_v38, %v8921_v19 }
 0x72f   : > { %v8863_v22 = vpop.permute.xlu1 %8862  ;;  %v8925_v32 = vpop.permute.xlu0 %8924 }
 0x730   : > { %v15307_v10 = vsel %vm4786_vm10, %v9103_v34, %v8863_v22  ;;  %v9126_v31 = vsel %vm4804_vm12, %v9118_v0, %v8925_v32  ;;  %v17296_v0 = vld [vmem:[#allocation44_spill] sm:$0xff] }
 0x733   : > { %v8883_v23 = vpop.permute.xlu1 %8882  ;;  %v8945_v7 = vpop.permute.xlu0 %8944 }
 0x734   : > { %v9128_v43 = vsel %vm16081_vm13, %v9120_v15, %v8945_v7  ;;  %v9113_v63 = vsel %vm4795_vm11, %v15298_v53, %v8883_v23  ;;  %v17285_v15 = vld [vmem:[#allocation148_spill] sm:$0xff] }
 0x737   : > { %v8887_v58 = vpop.permute.xlu1 %8886  ;;  %v8949_v44 = vpop.permute.xlu0 %8948 }
 0x738   : > { %v9130_v42 = vsel %vm16081_vm13, %v9122_v16, %v8949_v44  ;;  %v9115_v50 = vsel %vm4795_vm11, %v15301_v12, %v8887_v58  ;;  %v17290_v16 = vld [vmem:[#allocation47_spill] sm:$0xff] }
 0x73b   : > { %v15309_v52 = vpop.permute.xlu1 %8890  ;;  %v8953_v13 = vpop.permute.xlu0 %8952 }
 0x73c   : > { %v9132_v11 = vsel %vm16081_vm13, %v9124_v9, %v8953_v13  ;;  %v9117_v22 = vsel %vm4795_vm11, %v15304_v37, %v15309_v52 }
 0x73f   : > { %v15311_v3 = vpop.permute.xlu1 %8894  ;;  %v8957_v8 = vpop.permute.xlu0 %8956 }
 0x740   : > { %v9134_v25 = vsel %vm16081_vm13, %v9126_v31, %v8957_v8  ;;  %v9119_v44 = vsel %vm4795_vm11, %v15307_v10, %v15311_v3  ;;  %v17297_v31 = vld [vmem:[#allocation143_spill] sm:$0xff] }
 0x743   : > { %v8915_v6 = vpop.permute.xlu1 %8914  ;;  %v8977_v47 = vpop.permute.xlu0 %8976 }
 0x744   : > { %v9136_v5 = vsel %vm4822_vm14, %v9128_v43, %v8977_v47  ;;  %v9121_v62 = vsel %vm4804_vm12, %v9113_v63, %v8915_v6 }
 0x747   : > { %v8919_v61 = vpop.permute.xlu1 %8918  ;;  %v8981_v26 = vpop.permute.xlu0 %8980 }
 0x748   : > { %v9138_v29 = vsel %vm4822_vm14, %v9130_v42, %v8981_v26  ;;  %v9123_v59 = vsel %vm4804_vm12, %v9115_v50, %v8919_v61  ;;  %v17279_v61 = vld [vmem:[#allocation142_spill] sm:$0xff]  ;;  %v17280_v26 = vld [vmem:[#allocation159_spill] sm:$0xff] }
 0x749   : > { %v17306_v50 = vld [vmem:[#allocation139_spill] sm:$0xff] }
 0x74b   : > { %v8923_v2 = vpop.permute.xlu1 %8922  ;;  %v8985_v30 = vpop.permute.xlu0 %8984 }
 0x74c   : > { %v9140_v1 = vsel %vm4822_vm14, %v9132_v11, %v8985_v30  ;;  %v9125_v23 = vsel %vm4804_vm12, %v9117_v22, %v8923_v2  ;;  %v17281_v2 = vld [vmem:[#allocation160_spill] sm:$0xff]  ;;  %v17294_v11 = vld [vmem:[#allocation110_spill] sm:$0xff] }
 0x74d   : > { %v17282_v10 = vcombine.low %v17280_v26, %v17281_v2  ;;  %v17283_v30 = vld [vmem:[#allocation140_spill] sm:$0xff]  ;;  %v17318_v2 = vld [vmem:[#allocation177_spill] sm:$0xff] }
 0x74f   : > { %v15313_v56 = vpop.permute.xlu1 %8926  ;;  %v8989_v46 = vpop.permute.xlu0 %8988  ;;  %v4706_v3 = vsel %vm4705_vm1, %v17282_v10, %v17279_v61  ;;  %v17317_v61 = vld [vmem:[#allocation78_spill] sm:$0xff] }
 0x750   : > { %v9142_v51 = vsel %vm4822_vm14, %v9134_v25, %v8989_v46  ;;  %v9127_v37 = vsel %vm4804_vm12, %v9119_v44, %v15313_v56  ;;  %v4715_v56 = vsel %vm16080_vm2, %v4706_v3, %v17283_v30  ;;  %v17284_v46 = vld [vmem:[#allocation107_spill] sm:$0xff]  ;;  %v17298_v25 = vld [vmem:[#allocation89_spill] sm:$0xff] }
 0x751   : > { %v4724_v39 = vsel %vm4723_vm3, %v4715_v56, %v17284_v46  ;;  %v17319_v3 = vld [vmem:[#allocation173_spill] sm:$0xff]  ;;  %v17320_v56 = vld [vmem:[#allocation114_spill] sm:$0xff] }
 0x752   : > { %v4733_v43 = vsel %vm4732_vm4, %v4724_v39, %v17285_v15  ;;  %v17321_v39 = vld [vmem:[#allocation94_spill] sm:$0xff] }
 0x753   : > { %v8947_v48 = vpop.permute.xlu1 %8946  ;;  %v9009_v33 = vpop.permute.xlu0 %9008  ;;  %v4742_v42 = vsel %vm4741_vm5, %v4733_v43, %v17290_v16  ;;  %v17322_v43 = vld [vmem:[#allocation109_spill] sm:$0xff]  ;;  %v17325_v16 = vld [vmem:[#allocation128_spill] sm:$0xff] }
 0x754   : > { %v9144_v17 = vsel %vm4831_vm15, %v9136_v5, %v9009_v33  ;;  %v9129_v60 = vsel %vm16081_vm13, %v9121_v62, %v8947_v48  ;;  %v17286_v5 = vld [vmem:[#allocation129_spill] sm:$0xff]  ;;  %v17287_v48 = vld [vmem:[#allocation62_spill] sm:$0xff]  ;;  %v17288_v33 = vld [vmem:[#allocation59_spill] sm:$0xff] }
 0x755   : > { %9160 = vrot.lane.b32.xlu0 %v9144_v17, %s9746_s8  ;;  %v17289_v20 = vcombine.low %v17287_v48, %v17288_v33  ;;  %v17304_v62 = vld [vmem:[#allocation117_spill] sm:$0xff]  ;;  %v17323_v48 = vld [vmem:[#allocation152_spill] sm:$0xff] }
 0x757   : > { %v8951_v35 = vpop.permute.xlu1 %8950  ;;  %v9013_v55 = vpop.permute.xlu0 %9012  ;;  %v4708_v17 = vsel %vm4705_vm1, %v17289_v20, %v17286_v5  ;;  %v17324_v20 = vld [vmem:[#allocation75_spill] sm:$0xff] }
 0x758   : > { %v9146_v21 = vsel %vm4831_vm15, %v9138_v29, %v9013_v55  ;;  %v9131_v41 = vsel %vm16081_vm13, %v9123_v59, %v8951_v35  ;;  %v17291_v29 = vld [vmem:[#allocation144_spill] sm:$0xff]  ;;  %v17292_v55 = vld [vmem:[#allocation77_spill] sm:$0xff]  ;;  %v17308_v59 = vld [vmem:[#allocation111_spill] sm:$0xff] }
 0x759   : > { %9164 = vrot.lane.b32.xlu0 %v9146_v21, %s9746_s8  ;;  %v4717_v35 = vsel %vm16080_vm2, %v4708_v17, %v17291_v29  ;;  %v4751_v38 = vsel %vm4750_vm6, %v4742_v42, %v17292_v55  ;;  %v17293_v21 = vld [vmem:[#allocation154_spill] sm:$0xff]  ;;  %v17326_v29 = vld [vmem:[#allocation171_spill] sm:$0xff] }
 0x75a   : > { %v4726_v9 = vsel %vm4723_vm3, %v4717_v35, %v17293_v21 }
 0x75b   : > { %v8955_v14 = vpop.permute.xlu1 %8954  ;;  %v9017_v36 = vpop.permute.xlu0 %9016 }
 0x75c   : > { %v9148_v40 = vsel %vm4831_vm15, %v9140_v1, %v9017_v36  ;;  %v9133_v12 = vsel %vm16081_vm13, %v9125_v23, %v8955_v14  ;;  %v4760_v1 = vsel %vm4759_vm7, %v4751_v38, %v17294_v11  ;;  %v17295_v14 = vld [vmem:[#allocation55_spill] sm:$0xff] }
 0x75d   : > { %9168 = vrot.lane.b32.xlu0 %v9148_v40, %s9746_s8  ;;  %v4735_v36 = vsel %vm4732_vm4, %v4726_v9, %v17295_v14  ;;  %v4769_v40 = vsel %vm4768_vm8, %v4760_v1, %v17296_v0  ;;  %v17327_v38 = vld [vmem:[#allocation51_spill] sm:$0xff]  ;;  %v17328_v9 = vld [vmem:[#allocation166_spill] sm:$0xff] }
 0x75e   : > { %v17329_v1 = vld [vmem:[#allocation63_spill] sm:$0xff] }
 0x75f   : > { %v8959_v27 = vpop.permute.xlu1 %8958  ;;  %v9021_v4 = vpop.permute.xlu0 %9020  ;;  %v17330_v0 = vld [vmem:[#allocation83_spill] sm:$0xff] }
 0x760   : > { %v9150_v54 = vsel %vm4831_vm15, %v9142_v51, %v9021_v4  ;;  %v9135_v52 = vsel %vm16081_vm13, %v9127_v37, %v8959_v27  ;;  %v17299_v51 = vld [vmem:[#allocation86_spill] sm:$0xff] }
 0x761   : > { %9172 = vrot.lane.b32.xlu0 %v9150_v54, %s9746_s8  ;;  %v17300_v27 = vcombine.low %v17298_v25, %v17299_v51  ;;  %v17301_v54 = vld [vmem:[#allocation84_spill] sm:$0xff]  ;;  %v17332_v51 = vld [vmem:[#allocation163_spill] sm:$0xff] }
 0x763   : > { %v8979_v45 = vpop.permute.xlu1 %8978  ;;  %v4710_v4 = vsel %vm4705_vm1, %v17300_v27, %v17297_v31  ;;  %v17331_v31 = vld [vmem:[#allocation68_spill] sm:$0xff] }
 0x764   : > { %v9137_v34 = vsel %vm4822_vm14, %v9129_v60, %v8979_v45  ;;  %v4744_v45 = vsel %vm4741_vm5, %v4735_v36, %v17301_v54 }
 0x765   : > { %v4753_v60 = vsel %vm4750_vm6, %v4744_v45, %v17304_v62  ;;  %v17334_v45 = vld [vmem:[#allocation97_spill] sm:$0xff] }
 0x767   : > { %v8983_v24 = vpop.permute.xlu1 %8982 }
 0x768   : > { %v9139_v53 = vsel %vm4822_vm14, %v9131_v41, %v8983_v24  ;;  %v17302_v24 = vld [vmem:[#allocation70_spill] sm:$0xff] }
 0x76b   : > { %v8987_v49 = vpop.permute.xlu1 %8986 }
 0x76c   : > { %v9141_v7 = vsel %vm4822_vm14, %v9133_v12, %v8987_v49  ;;  %v4778_v49 = vsel %vm4777_vm9, %v4769_v40, %v17302_v24  ;;  %v17312_v12 = vld [vmem:[#allocation137_spill] sm:$0xff] }
 0x76f   : > { %v8991_v18 = vpop.permute.xlu1 %8990 }
 0x770   : > { %v9143_v8 = vsel %vm4822_vm14, %v9135_v52, %v8991_v18  ;;  %v17303_v18 = vld [vmem:[#allocation141_spill] sm:$0xff]  ;;  %v17315_v52 = vld [vmem:[#allocation168_spill] sm:$0xff] }
 0x771   : > { %v4719_v63 = vsel %vm16080_vm2, %v4710_v4, %v17303_v18  ;;  %v17333_v4 = vld [vmem:[#allocation119_spill] sm:$0xff] }
 0x773   : > { %v9011_v28 = vpop.permute.xlu1 %9010 }
 0x774   : > { %v9145_v57 = vsel %vm4831_vm15, %v9137_v34, %v9011_v28  ;;  %v17305_v34 = vld [vmem:[#allocation98_spill] sm:$0xff] }
 0x775   : > { %9162 = vrot.lane.b32.xlu1 %v9145_v57, %s9746_s8  ;;  %v4787_v28 = vsel %vm4786_vm10, %v4778_v49, %v17305_v34  ;;  %v17307_v57 = vld [vmem:[#allocation124_spill] sm:$0xff]  ;;  %v17335_v49 = vld [vmem:[#allocation91_spill] sm:$0xff] }
 0x776   : > { %v17309_v41 = vcombine.low %v17307_v57, %v17308_v59  ;;  %v17339_v59 = vld [vmem:[#allocation164_spill] sm:$0xff] }
 0x777   : > { %v9015_v19 = vpop.permute.xlu1 %9014 }
 0x778   : > { %v9147_v32 = vsel %vm4831_vm15, %v9139_v53, %v9015_v19  ;;  %v4712_v53 = vsel %vm4705_vm1, %v17309_v41, %v17306_v50  ;;  %v17310_v19 = vld [vmem:[#allocation150_spill] sm:$0xff] }
 0x779   : > { %9166 = vrot.lane.b32.xlu1 %v9147_v32, %s9746_s8  ;;  %v4728_v22 = vsel %vm4723_vm3, %v4719_v63, %v17310_v19  ;;  %v17311_v32 = vld [vmem:[#allocation170_spill] sm:$0xff]  ;;  %v17336_v63 = vld [vmem:[#allocation104_spill] sm:$0xff] }
 0x77a   : > { %v4762_v23 = vsel %vm4759_vm7, %v4753_v60, %v17311_v32  ;;  %v17337_v60 = vld [vmem:[#allocation132_spill] sm:$0xff]  ;;  %v17341_v32 = vld [vmem:[#allocation175_spill] sm:$0xff] }
 0x77b   : > { %v9019_v58 = vpop.permute.xlu1 %9018 }
 0x77c   : > { %v9149_v13 = vsel %vm4831_vm15, %v9141_v7, %v9019_v58  ;;  %v4796_v7 = vsel %vm4795_vm11, %v4787_v28, %v17312_v12  ;;  %v17313_v58 = vld [vmem:[#allocation145_spill] sm:$0xff]  ;;  %v17338_v28 = vld [vmem:[#allocation22_spill] sm:$0xff]  ;;  %v17342_v12 = vld [vmem:[#allocation76_spill] sm:$0xff] }
 0x77d   : > { %9170 = vrot.lane.b32.xlu1 %v9149_v13, %s9746_s8  ;;  %v4721_v44 = vsel %vm16080_vm2, %v4712_v53, %v17313_v58  ;;  %v17314_v13 = vld [vmem:[#allocation53_spill] sm:$0xff]  ;;  %vm16082_vm2 = vcmask 523264   ;;  %v17340_v53 = vld [vmem:[#allocation87_spill] sm:$0xff]  ;;  %v17343_v58 = vld [vmem:[#allocation92_spill] sm:$0xff] }
 0x77e   : > { %v4737_v37 = vsel %vm4732_vm4, %v4728_v22, %v17314_v13  ;;  %v4730_v33 = vsel %vm4723_vm3, %v4721_v44, %v17323_v48  ;;  %v17344_v13 = vld [vmem:[#allocation121_spill] sm:$0xff]  ;;  %v17351_v48 = vld [vmem:[#allocation106_spill] sm:$0xff] }
 0x77f   : > { %v9023_v6 = vpop.permute.xlu1 %9022  ;;  %v4746_v26 = vsel %vm4741_vm5, %v4737_v37, %v17317_v61  ;;  %v4739_v21 = vsel %vm4732_vm4, %v4730_v33, %v17327_v38  ;;  %v17352_v33 = vld [vmem:[#allocation34_spill] sm:$0xff]  ;;  %v17358_v38 = vld [vmem:[#allocation180_spill] sm:$0xff] }
 0x780   : > { %v9151_v47 = vsel %vm4831_vm15, %v9143_v8, %v9023_v6  ;;  %v4771_v8 = vsel %vm4768_vm8, %v4762_v23, %v17315_v52  ;;  %v17316_v6 = vld [vmem:[#allocation162_spill] sm:$0xff]  ;;  %v4755_v46 = vsel %vm4750_vm6, %v4746_v26, %v17320_v56  ;;  %v4748_v40 = vsel %vm4741_vm5, %v4739_v21, %v17330_v0  ;;  %v17345_v52 = vld [vmem:[#allocation123_spill] sm:$0xff]  ;;  %v17347_v26 = vld [vmem:[#allocation125_spill] sm:$0xff] }
 0x781   : > { %9174 = vrot.lane.b32.xlu1 %v9151_v47, %s9746_s8  ;;  %v4805_v47 = vsel %vm4804_vm12, %v4796_v7, %v17316_v6  ;;  %v4780_v10 = vsel %vm4777_vm9, %v4771_v8, %v17318_v2  ;;  %v4764_v17 = vsel %vm4759_vm7, %v4755_v46, %v17324_v20  ;;  %v4757_v54 = vsel %vm4750_vm6, %v4748_v40, %v17333_v4  ;;  %v17346_v6 = vld [vmem:[#allocation178_spill] sm:$0xff]  ;;  %v17349_v56 = vld [vmem:[#allocation21_spill] sm:$0xff]  ;;  %v17353_v20 = vld [vmem:[#allocation35_spill] sm:$0xff] }
 0x782   : > { %v4814_v30 = vsel %vm16081_vm13, %v4805_v47, %v17319_v3  ;;  %v4789_v15 = vsel %vm4786_vm10, %v4780_v10, %v17321_v39  ;;  %v4773_v11 = vsel %vm4768_vm8, %v4764_v17, %v17328_v9  ;;  %v4766_v62 = vsel %vm4759_vm7, %v4757_v54, %v17336_v63  ;;  %v17348_v3 = vld [vmem:[#allocation64_spill] sm:$0xff]  ;;  %v17350_v39 = vld [vmem:[#allocation183_spill] sm:$0xff]  ;;  %v17367_v4 = vld [vmem:[#allocation85_spill] sm:$0xff] }
 0x783   : > { %v4823_v5 = vsel %vm4822_vm14, %v4814_v30, %v17322_v43  ;;  %v4798_v42 = vsel %vm4795_vm11, %v4789_v15, %v17325_v16  ;;  %v4782_v25 = vsel %vm4777_vm9, %v4773_v11, %v17331_v31  ;;  %v4775_v41 = vsel %vm4768_vm8, %v4766_v62, %v17339_v59  ;;  %v17359_v9 = vld [vmem:[#allocation155_spill] sm:$0xff]  ;;  %v17360_v11 = vld [vmem:[#allocation74_spill] sm:$0xff]  ;;  %v17363_v0 = vld [vmem:[#allocation116_spill] sm:$0xff] }
 0x784   : > { %v4832_v35 = vsel %vm4831_vm15, %v4823_v5, %v17326_v29  ;;  %v4807_v14 = vsel %vm4804_vm12, %v4798_v42, %v17329_v1  ;;  %v4791_v24 = vsel %vm4786_vm10, %v4782_v25, %v17334_v45  ;;  %v4784_v23 = vsel %vm4777_vm9, %v4775_v41, %v17341_v32  ;;  %v17355_v42 = vld [vmem:[#allocation149_spill] sm:$0xff]  ;;  %v17361_v1 = vld [vmem:[#allocation71_spill] sm:$0xff]  ;;  %v17364_v31 = vld [vmem:[#allocation56_spill] sm:$0xff] }
 0x785   : > { %v4816_v27 = vsel %vm16081_vm13, %v4807_v14, %v17332_v51  ;;  %v4800_v34 = vsel %vm4795_vm11, %v4791_v24, %v17337_v60  ;;  %v4793_v44 = vsel %vm4786_vm10, %v4784_v23, %v17343_v58  ;;  %v17354_v17 = vcombine.low %v17352_v33, %v17353_v20  ;;  %v17366_v51 = vld [vmem:[#allocation42_spill] sm:$0xff]  ;;  %v17368_v45 = vld [vmem:[#allocation73_spill] sm:$0xff]  ;;  %v17371_v60 = vld [vmem:[#allocation151_spill] sm:$0xff] }
 0x786   : > { %v4825_v18 = vsel %vm4822_vm14, %v4816_v27, %v17335_v49  ;;  %v4809_v19 = vsel %vm4804_vm12, %v4800_v34, %v17340_v53  ;;  %v4802_v8 = vsel %vm4795_vm11, %v4793_v44, %v17345_v52  ;;  %v17362_v14 = vcombine.low %v17360_v11, %v17361_v1  ;;  %v17369_v49 = vld [vmem:[#allocation120_spill] sm:$0xff]  ;;  %v17370_v63 = vld [vmem:[#allocation101_spill] sm:$0xff]  ;;  %v17372_v34 = vld [vmem:[#allocation102_spill] sm:$0xff] }
 0x787   : > { %v4834_v50 = vsel %vm4831_vm15, %v4825_v18, %v17338_v28  ;;  %v4818_v7 = vsel %vm16081_vm13, %v4809_v19, %v17342_v12  ;;  %v4811_v2 = vsel %vm4804_vm12, %v4802_v8, %v17347_v26  ;;  %v4707_v16 = vsel %vm4705_vm1, %v17354_v17, %v17351_v48  ;;  %v17373_v28 = vld [vmem:[#allocation103_spill] sm:$0xff]  ;;  %v17375_v59 = vld [vmem:[#allocation172_spill] sm:$0xff]  ;;  %v17376_v53 = vld [vmem:[#allocation133_spill] sm:$0xff] }
 0x788   : > { %v4827_v37 = vsel %vm4822_vm14, %v4818_v7, %v17344_v13  ;;  %v4820_v30 = vsel %vm16081_vm13, %v4811_v2, %v17348_v3  ;;  %vm17356_vm13 = vcmask 31744   ;;  %v17378_v23 = vld [vmem:[#allocation169_spill] sm:$0xff]  ;;  %v17379_v7 = vld [vmem:[#allocation158_spill] sm:$0xff]  ;;  %v17384_v26 = vld [vmem:[#allocation99_spill] sm:$0xff] }
 0x789   : > { %v4836_v47 = vsel %vm4831_vm15, %v4827_v37, %v17346_v6  ;;  %v4829_v46 = vsel %vm4822_vm14, %v4820_v30, %v17349_v56  ;;  %v4716_v29 = vsel %vm17356_vm13, %v4707_v16, %v17355_v42  ;;  %v17380_v44 = vld [vmem:[#allocation81_spill] sm:$0xff]  ;;  %v17381_v37 = vld [vmem:[#allocation67_spill] sm:$0xff]  ;;  %v17382_v8 = vld [vmem:[#allocation46_spill] sm:$0xff] }
 0x78a   : > { %v4838_v15 = vsel %vm4831_vm15, %v4829_v46, %v17350_v39  ;;  %v17386_v30 = vld [vmem:[#allocation153_spill] sm:$0xff]  ;;  %v17387_v56 = vld [vmem:[#allocation135_spill] sm:$0xff]  ;;  %v17388_v46 = vld [vmem:[#allocation138_spill] sm:$0xff] }
 0x78b   : > { %v17389_v39 = vcombine.low %v17387_v56, %v17388_v46  ;;  %v17391_v48 = vld [vmem:[#allocation134_spill] sm:$0xff]  ;;  %v17392_v20 = vld [vmem:[#allocation23_spill] sm:$0xff]  ;;  %v17394_v16 = vld [vmem:[#allocation52_spill] sm:$0xff] }
 0x78c   : > { %v17398_v11 = vld [vmem:[#allocation82_spill] sm:$0xff] }
 0x78d   : > { %v17423_v56 = vld [vmem:[#allocation26_spill] sm:$0xff] }
 0x7c7   : > { %v9161_v55 = vpop.permute.xlu0 %9160 }
 0x7c8   : > { %v9185_v36 = vsel %vm9184_vm0, %v4832_v35, %v9161_v55  ;;  %v17357_v35 = vld [vmem:[#allocation48_spill] sm:$0xff] }
 0x7c9   : > { %9194 = vst.msk [vmem:[%s15471_s24] sm:$0xff] %vm16082_vm2, %v9185_v36  ;;  %v4725_v55 = vsel %vm4723_vm3, %v4716_v29, %v17357_v35  ;;  %v4709_v36 = vsel %vm4705_vm1, %v17362_v14, %v17359_v9  ;;  %v17395_v29 = vld [vmem:[#allocation167_spill] sm:$0xff]  ;;  %v17399_v14 = vld [vmem:[#allocation69_spill] sm:$0xff] }
 0x7ca   : > { %v4734_v21 = vsel %vm4732_vm4, %v4725_v55, %v17358_v38  ;;  %v17396_v55 = vld [vmem:[#allocation61_spill] sm:$0xff] }
 0x7cb   : > { %v9165_v57 = vpop.permute.xlu0 %9164  ;;  %v4743_v40 = vsel %vm4741_vm5, %v4734_v21, %v17363_v0  ;;  %v17397_v21 = vld [vmem:[#allocation182_spill] sm:$0xff]  ;;  %v17400_v0 = vld [vmem:[#allocation161_spill] sm:$0xff] }
 0x7cc   : > { %v9187_v22 = vsel %vm9184_vm0, %v4834_v50, %v9165_v57  ;;  %v4752_v27 = vsel %vm4750_vm6, %v4743_v40, %v17366_v51  ;;  %v17374_v50 = vcombine.low %v17372_v34, %v17373_v28  ;;  %v17407_v28 = vld [vmem:[#allocation174_spill] sm:$0xff] }
 0x7cd   : > { %9196 = vst.msk [vmem:[%s15471_s24 + $0x10] sm:$0xff] %vm16082_vm2, %v9187_v22  ;;  %v4761_v24 = vsel %vm4759_vm7, %v4752_v27, %v17368_v45  ;;  %v17377_v22 = vld [vmem:[#allocation54_spill] sm:$0xff]  ;;  %v17402_v27 = vld [vmem:[#allocation115_spill] sm:$0xff] }
 0x7ce   : > { %v4770_v62 = vsel %vm4768_vm8, %v4761_v24, %v17370_v63  ;;  %v4711_v57 = vsel %vm4705_vm1, %v17374_v50, %v17371_v60  ;;  %v17404_v24 = vld [vmem:[#allocation88_spill] sm:$0xff]  ;;  %v17405_v63 = vld [vmem:[#allocation105_spill] sm:$0xff] }
 0x7cf   : > { %v9169_v61 = vpop.permute.xlu0 %9168  ;;  %v4779_v19 = vsel %vm4777_vm9, %v4770_v62, %v17376_v53  ;;  %v17406_v60 = vld [vmem:[#allocation136_spill] sm:$0xff] }
 0x7d0   : > { %v9189_v10 = vsel %vm9184_vm0, %v4836_v47, %v9169_v61  ;;  %v4788_v58 = vsel %vm4786_vm10, %v4779_v19, %v17379_v7  ;;  %v17383_v47 = vld [vmem:[#allocation118_spill] sm:$0xff]  ;;  %v17412_v19 = vld [vmem:[#allocation25_spill] sm:$0xff] }
 0x7d1   : > { %9198 = vst.msk [vmem:[%s15471_s24 + $0x20] sm:$0xff] %vm16082_vm2, %v9189_v10  ;;  %v4797_v6 = vsel %vm4795_vm11, %v4788_v58, %v17382_v8  ;;  %v17385_v10 = vld [vmem:[#allocation108_spill] sm:$0xff]  ;;  %v17415_v58 = vld [vmem:[#allocation29_spill] sm:$0xff]  ;;  %v17417_v8 = vld [vmem:[#allocation126_spill] sm:$0xff] }
 0x7d2   : > { %v4806_v3 = vsel %vm4804_vm12, %v4797_v6, %v17385_v10 }
 0x7d3   : > { %v9173_v43 = vpop.permute.xlu0 %9172 }
 0x7d4   : > { %v9191_v5 = vsel %vm9184_vm0, %v4838_v15, %v9173_v43  ;;  %v4713_v15 = vsel %vm4705_vm1, %v17389_v39, %v17386_v30  ;;  %v17390_v43 = vld [vmem:[#allocation72_spill] sm:$0xff] }
 0x7d5   : > { %9200 = vst.msk [vmem:[%s15471_s24 + $0x30] sm:$0xff] %vm16082_vm2, %v9191_v5  ;;  %vm17365_vm2 = vmmov %vm17356_vm13  ;;  %vm17393_vm13 = vcmask 211968   ;;  %v17424_v39 = vld [vmem:[#allocation60_spill] sm:$0xff] }
 0x7d6   : > { %v4718_v25 = vsel %vm17365_vm2, %v4709_v36, %v17364_v31  ;;  %v4720_v32 = vsel %vm17365_vm2, %v4711_v57, %v17377_v22  ;;  %v4815_v17 = vsel %vm17393_vm13, %v4806_v3, %v17392_v20  ;;  %v4722_v42 = vsel %vm17365_vm2, %v4713_v15, %v17394_v16  ;;  %v17401_v31 = vld [vmem:[#allocation28_spill] sm:$0xff]  ;;  %vm17408_vm1 = vmmov %vm17393_vm13  ;;  %v17410_v57 = vld [vmem:[#allocation165_spill] sm:$0xff] }
 0x7d7   : > { %v4727_v54 = vsel %vm4723_vm3, %v4718_v25, %v17367_v4  ;;  %v4729_v13 = vsel %vm4723_vm3, %v4720_v32, %v17380_v44  ;;  %v4824_v9 = vsel %vm4822_vm14, %v4815_v17, %v17397_v21  ;;  %v4731_v1 = vsel %vm4723_vm3, %v4722_v42, %v17398_v11  ;;  %v17413_v32 = vld [vmem:[#allocation176_spill] sm:$0xff]  ;;  %v17422_v3 = vld [vmem:[#allocation122_spill] sm:$0xff] }
 0x7d8   : > { %v4736_v18 = vsel %vm4732_vm4, %v4727_v54, %v17369_v49  ;;  %v4738_v61 = vsel %vm4732_vm4, %v4729_v13, %v17383_v47  ;;  %v4833_v25 = vsel %vm4831_vm15, %v4824_v9, %v17401_v31  ;;  %v4740_v4 = vsel %vm4732_vm4, %v4731_v1, %v17402_v27  ;;  %v17403_v54 = vld [vmem:[#allocation100_spill] sm:$0xff]  ;;  %vm17420_vm4 = vmmov %vm17408_vm1 }
 0x7d9   : > { %v4745_v41 = vsel %vm4741_vm5, %v4736_v18, %v17375_v59  ;;  %v4747_v5 = vsel %vm4741_vm5, %v4738_v61, %v17390_v43  ;;  %v4749_v62 = vsel %vm4741_vm5, %v4740_v4, %v17405_v63  ;;  %vm17409_vm3 = vcmask 523264   ;;  %v17418_v61 = vld [vmem:[#allocation127_spill] sm:$0xff]  ;;  %v17425_v43 = vld [vmem:[#allocation30_spill] sm:$0xff]  ;;  %v17427_v16 = vld [vmem:[#allocation24_spill] sm:$0xff] }
 0x7da   : > { %v4754_v12 = vsel %vm4750_vm6, %v4745_v41, %v17378_v23  ;;  %v4756_v35 = vsel %vm4750_vm6, %v4747_v5, %v17395_v29  ;;  %v4758_v59 = vsel %vm4750_vm6, %v4749_v62, %v17410_v57  ;;  %v17411_v41 = vld [vmem:[#allocation90_spill] sm:$0xff]  ;;  %vm17421_vm5 = vmmov %vm17409_vm3  ;;  %v17430_v29 = vld [vmem:[#allocation27_spill] sm:$0xff] }
 0x7db   : > { %v4763_v52 = vsel %vm4759_vm7, %v4754_v12, %v17381_v37  ;;  %v4765_v36 = vsel %vm4759_vm7, %v4756_v35, %v17399_v14  ;;  %v4767_v23 = vsel %vm4759_vm7, %v4758_v59, %v17413_v32  ;;  %v17414_v12 = vld [vmem:[#allocation179_spill] sm:$0xff]  ;;  %v17416_v37 = vld [vmem:[#allocation93_spill] sm:$0xff]  ;;  %vm17428_vm6 = vmmov %vm17408_vm1 }
 0x7dc   : > { %v4772_v2 = vsel %vm4768_vm8, %v4763_v52, %v17384_v26  ;;  %v4774_v45 = vsel %vm4768_vm8, %v4765_v36, %v17403_v54  ;;  %v4776_v52 = vsel %vm4768_vm8, %v4767_v23, %v17416_v37  ;;  %vm17429_vm7 = vmmov %vm17409_vm3 }
 0x7dd   : > { %v4781_v33 = vsel %vm4777_vm9, %v4772_v2, %v17391_v48  ;;  %v4783_v34 = vsel %vm4777_vm9, %v4774_v45, %v17406_v60  ;;  %v4785_v26 = vsel %vm4777_vm9, %v4776_v52, %v17418_v61  ;;  %v17419_v2 = vld [vmem:[#allocation181_spill] sm:$0xff]  ;;  %vm17432_vm8 = vmmov %vm17409_vm3 }
 0x7de   : > { %v4790_v38 = vsel %vm4786_vm10, %v4781_v33, %v17396_v55  ;;  %v4792_v53 = vsel %vm4786_vm10, %v4783_v34, %v17411_v41  ;;  %v4794_v30 = vsel %vm4786_vm10, %v4785_v26, %v17422_v3  ;;  %v17426_v33 = vld [vmem:[#allocation20_spill] sm:$0xff]  ;;  %v17431_v55 = vld [vmem:[#allocation31_spill] sm:$0xff] }
 0x7df   : > { %v4799_v40 = vsel %vm4795_vm11, %v4790_v38, %v17400_v0  ;;  %v4801_v7 = vsel %vm4795_vm11, %v4792_v53, %v17414_v12  ;;  %v4803_v15 = vsel %vm4795_vm11, %v4794_v30, %v17424_v39 }
 0x7e0   : > { %v4808_v49 = vsel %vm4804_vm12, %v4799_v40, %v17404_v24  ;;  %v4810_v6 = vsel %vm4804_vm12, %v4801_v7, %v17417_v8  ;;  %v4812_v20 = vsel %vm4804_vm12, %v4803_v15, %v17426_v33 }
 0x7e1   : > { %v4817_v50 = vsel %vm17408_vm1, %v4808_v49, %v17407_v28  ;;  %v4819_v10 = vsel %vm17420_vm4, %v4810_v6, %v17419_v2  ;;  %v4821_v42 = vsel %vm17428_vm6, %v4812_v20, %v17427_v16 }
 0x7e2   : > { %v4826_v22 = vsel %vm4822_vm14, %v4817_v50, %v17412_v19  ;;  %v4828_v46 = vsel %vm4822_vm14, %v4819_v10, %v17423_v56  ;;  %v4830_v35 = vsel %vm4822_vm14, %v4821_v42, %v17430_v29 }
 0x7e3   : > { %v4835_v44 = vsel %vm4831_vm15, %v4826_v22, %v17415_v58  ;;  %v4837_v5 = vsel %vm4831_vm15, %v4828_v46, %v17425_v43  ;;  %v4839_v38 = vsel %vm4831_vm15, %v4830_v35, %v17431_v55 }
 0x7e7   : > { %v9163_v51 = vpop.permute.xlu1 %9162 }
 0x7e8   : > { %v9186_v18 = vsel %vm9184_vm0, %v4833_v25, %v9163_v51 }
 0x7e9   : > { %9195 = vst.msk [vmem:[%s15471_s24 + $0x8] sm:$0xff] %vm17409_vm3, %v9186_v18 }
 0x7eb   : > { %v9167_v13 = vpop.permute.xlu1 %9166 }
 0x7ec   : > { %v9188_v47 = vsel %vm9184_vm0, %v4835_v44, %v9167_v13 }
 0x7ed   : > { %9197 = vst.msk [vmem:[%s15471_s24 + $0x18] sm:$0xff] %vm17421_vm5, %v9188_v47 }
 0x7ef   : > { %v9171_v48 = vpop.permute.xlu1 %9170 }
 0x7f0   : > { %v9190_v17 = vsel %vm9184_vm0, %v4837_v5, %v9171_v48 }
 0x7f1   : > { %9199 = vst.msk [vmem:[%s15471_s24 + $0x28] sm:$0xff] %vm17429_vm7, %v9190_v17 }
 0x7f3   : > { %v9175_v21 = vpop.permute.xlu1 %9174 }
 0x7f4   : > { %v9192_v9 = vsel %vm9184_vm0, %v4839_v38, %v9175_v21 }
 0x7f5   : > { %9201 = vst.msk [vmem:[%s15471_s24 + $0x38] sm:$0xff] %vm17432_vm8, %v9192_v9 }
 0x7f6   : > { %9646 = shalt.err (!%p9643_p7)
}
 0x7f7   : > { %s9647_s17 = scalar_lea.hbm %s15668_s18, 1024  ;;  %s9651_s14 = scalar_lea.hbm %s15724_s4, 2048 }
 0x7f8   : > { %p9648_p1 = scmp.ne.s32.totalorder %s15668_s18, %s9647_s17  ;;  %p9652_p3 = scmp.lt.s32.totalorder %s15668_s18, %s15724_s4 }
 0x7f9   : > { %p9653_p8 = scmp.lt.s32.totalorder %s9651_s14, %s9647_s17 }
 0x7fa   : > { %p9649_p10 = pnand %p9648_p1, %p9829_p9 }
 0x7fb   : > { %p9654_p0 = por %p9653_p8, %p9652_p3 }
 0x7fc   : > { %p9650_p13 = pneg %p9649_p10 }
 0x7fe   : > { %p9655_p2 = pnand %p9654_p0, %p9650_p13 }
 0x800   : > { %9658 = shalt.err (!%p9655_p2)
}
 0x801   : > { %s9748_s19 = smov 128  }
 0x802   : > { %9424 = dma.vmem_to_hbm [thread:$0]  (%p9829_p9), %s15661_s5, 1024, %s15668_s18, %s9203_s22, %s9748_s19, %s9748_s19, %s9734_s1  }
 0x803 PF: > { %s17433_s11 = sld [smem:[#allocation17_spill]]  ;;  %s9234_s6 = sand.u32 1, %s9701_s15  }
 0x804   : > { %p9440_p4 = pnand %p9387_p12, %p9836_p11  ;;  %s9235_s7 = scalar_lea.sflag [#allocation4], %s9234_s6 }
 0x806   : > { %p9441_p5 = pneg %p9440_p4 }
 0x808   : > { %9696 = dma.done.wait (%p9441_p5), %s9235_s7, 1024  }
 0x809   : > { %9698 = vsyncadd (%p9441_p5), %s9235_s7, 4294966272  ;;  %s26_s20 = sadd.s32 1, %s17433_s11   ;;  %s17434_s28 = sld [smem:[#allocation15_spill]] }
 0x80a   : > { %p23_p6 = scmp.ge.s32.totalorder %s26_s20, 4   ;;  %s17435_s17 = sld [smem:[#allocation19_spill]] }
 0x80b   : > { %s17436_s18 = sld [smem:[#allocation16_spill]]  ;;  %s17438_s15 = smov %s9705_s16 }
 0x80c   : > { %s17437_s19 = sld [smem:[#allocation18_spill]]  ;;  %25 = sbr.rel (!%p23_p6) target bundleno = 13 (0xd), region = 118 }
 0x80f   : > { %s17439_s16 = smov %s17434_s28 }
 0x811   :  { %9240 = vsyncpa [#allocation3], 1 }
 0x812   :  { %9242 = vsyncpa [#allocation3 + $0x1], 1 }
 0x813   :  { %9243 = vsyncpa [#allocation6], 1 }
 0x814   :  { %9245 = vsyncpa [#allocation6 + $0x1], 1 }
 0x815   :  { %9246 = vsyncpa [#allocation9], 1 }
 0x816   :  { %9248 = vsyncpa [#allocation9 + $0x1], 1 }
 0x817   :  { %9249 = vsyncpa [#allocation4], 1 }
 0x818   :  { %9251 = vsyncpa [#allocation4 + $0x1], 1 }

</bundles_post_ra>
